<compile_context>
chip_gen: v6e
topology: v6e:2x2x1
jax: 0.10.0
libtpu: 0.0.40
codegen_flags: <defaults>
</compile_context>

<pallas_src>
import numpy as np

import jax
import jax.numpy as jnp
from jax.experimental import pallas as pl
from jax.experimental.pallas import tpu as pltpu


def _round_up(x, m):
    return -(-x // m) * m


def _full_spec(shape):
    """BlockSpec covering the whole array (block index 0 on every axis)."""
    n = len(shape)
    return pl.BlockSpec(tuple(shape), lambda *_a, _n=n: (0,) * _n)


def _leaky(x):
    # nn.LeakyReLU default negative_slope = 0.01
    return jnp.where(x > 0, x, 0.01 * x)


def _pool_selectors(H, out_size=128):
    """Static one-hot matrices composing Conv1d(1,C,2,2,2) input extraction with
    AdaptiveMaxPool1d(out_size) window selection.

    Returns A0, A1 of shape (H, W*out_size) such that, for window member j and
    output lane i (with o = the j-th conv position inside pool window i):
        (enc @ A0)[:, j*O + i] == xpad[2*o]       (0 where the tap hits padding)
        (enc @ A1)[:, j*O + i] == xpad[2*o + 1]
    Windows with fewer than W members duplicate a valid member (max-invariant).
    """
    L = (H + 2 * 2 - 2) // 2 + 1          # conv1d output length (pad=2, k=2, s=2)
    O = out_size
    starts = [(i * L) // O for i in range(O)]
    ends = [-(-((i + 1) * L) // O) for i in range(O)]
    W = max(e - s for s, e in zip(starts, ends))
    A0 = np.zeros((H, W * O), dtype=np.float32)
    A1 = np.zeros((H, W * O), dtype=np.float32)
    for j in range(W):
        for i in range(O):
            o = starts[i] + j
            if o >= ends[i]:
                o = starts[i]              # clamp to a valid window member
            p0, p1 = 2 * o - 2, 2 * o - 1  # conv taps in un-padded coordinates
            if 0 <= p0 < H:
                A0[p0, j * O + i] = 1.0
            if 0 <= p1 < H:
                A1[p1, j * O + i] = 1.0
    return A0, A1


def _choose_batch_tiling(B, max_tile=64):
    """Pick (TB, num_tiles, padded_B).  TB is a multiple of 8 (sublane rows);
    once the padded batch reaches 16 we use >=2 grid steps so both v7x
    TensorCores get a tile ("parallel" grid axis)."""
    b8 = _round_up(B, 8)
    if b8 >= 16:
        tb = _round_up(min(max_tile, -(-b8 // 2)), 8)
    else:
        tb = b8
    ntiles = -(-b8 // tb)
    return tb, ntiles, ntiles * tb


# ----------------------------------------------------------------------------
# Fused kernel: one-hot embed+GRU-input matmul -> GRU -> conv+adaptive-pool ->
# fc -> fc2.  One grid step per BATCH TILE; everything lives in VMEM.
# ----------------------------------------------------------------------------
def _fused_kernel(tok_ref,                                    # (TB, T) int32 tokens
                  tab_ref, brz_ref, whh_ref, bhn_ref,
                  a_ref, wc0_ref, wc1_ref, bc_ref,
                  w1_ref, b1_ref, w2_ref, b2_ref, w3_ref, b3_ref,
                  wf1_ref, bf1_ref, wf2_ref, bf2_ref, wf3_ref, bf3_ref,
                  out_ref):
    TB, T = tok_ref.shape
    Vp = tab_ref.shape[0]                                     # padded vocab (128)
    H = whh_ref.shape[0]
    O = 128                                                   # adaptive-pool output
    W = a_ref.shape[1] // (2 * O)                             # max pool-window size
    C = wc0_ref.shape[0]                                      # conv channels (32)
    cdt = tab_ref.dtype                                       # bf16 MXU operand dtype

    # ---- x-path: one-hot(token) @ (embedding @ W_ih); all T steps up front ---
    tok = tok_ref[...]                                        # (TB, T) int32
    iota_v = jax.lax.broadcasted_iota(jnp.int32, (1, Vp), 1)
    table = tab_ref[...]                                      # (Vp, 3H) bf16
    brz = jnp.broadcast_to(brz_ref[...], (TB, 3 * H))         # hoisted bias bcast
    gi = [jnp.dot((tok[:, t:t + 1] == iota_v).astype(cdt), table,
                  preferred_element_type=jnp.float32) + brz
          for t in range(T)]                                  # T x (TB, 3H) f32

    # ---- GRU recurrence: only h @ W_hh is on the serial chain ----------------
    whh = whh_ref[...]                                        # (H, 3H) bf16, read once
    b_hn = jnp.broadcast_to(bhn_ref[...], (TB, H))
    h = jnp.zeros((TB, H), jnp.float32)
    for t in range(T):                                        # static unroll, T small
        gh = jnp.dot(h.astype(cdt), whh, preferred_element_type=jnp.float32)
        r = jax.nn.sigmoid(gi[t][:, :H] + gh[:, :H])
        z = jax.nn.sigmoid(gi[t][:, H:2 * H] + gh[:, H:2 * H])
        n = jnp.tanh(gi[t][:, 2 * H:] + r * (gh[:, 2 * H:] + b_hn))
        h = (1.0 - z) * n + z * h
    enc = h                                                   # (TB, H) final hidden

    # ---- Conv1d(1,C,2,2,2) + AdaptiveMaxPool1d(128): one merged selector -----
    e = jnp.dot(enc.astype(cdt), a_ref[...],
                preferred_element_type=jnp.float32)           # (TB, 2*W*128)
    wc0b = jnp.broadcast_to(wc0_ref[...], (C, O))[None]       # (1, C, 128), hoisted
    wc1b = jnp.broadcast_to(wc1_ref[...], (C, O))[None]
    bcb = jnp.broadcast_to(bc_ref[...], (C, O))[None]
    pool = None
    for j in range(W):                                        # W == 2 for H = 256
        e0 = e[:, j * O:(j + 1) * O][:, None, :]              # (TB, 1, 128)
        e1 = e[:, (W + j) * O:(W + j + 1) * O][:, None, :]
        cand = wc0b * e0 + wc1b * e1 + bcb                    # (TB, C, 128)
        pool = cand if pool is None else jnp.maximum(pool, cand)

    # ---- fc: Linear(32,16)->LReLU->Linear(16,8)->LReLU->Linear(8,1) ----------
    # Batched over the tile (Dropout = identity); positions stay on 128 lanes.
    w1b = jnp.broadcast_to(w1_ref[...][None], (TB, 16, C))
    h1 = _leaky(jnp.einsum('bkc,bci->bki', w1b, pool,
                           preferred_element_type=jnp.float32) + b1_ref[...][None])
    w2b = jnp.broadcast_to(w2_ref[...][None], (TB, 8, 16))
    h2 = _leaky(jnp.einsum('bmk,bki->bmi', w2b, h1,
                           preferred_element_type=jnp.float32) + b2_ref[...][None])
    # Last Linear(8,1) as a weighted sum over the 8 hidden channels.
    dec = jnp.sum(h2 * w3_ref[...][None], axis=1) + b3_ref[...]   # (TB, 128)

    # ---- fc2: 128 -> P/4 -> P/2 -> P, zero-padded to NP lanes ----------------
    g = _leaky(jnp.dot(dec, wf1_ref[...], preferred_element_type=jnp.float32)
               + bf1_ref[...])
    g = _leaky(jnp.dot(g, wf2_ref[...], preferred_element_type=jnp.float32)
               + bf2_ref[...])
    out_ref[...] = (jnp.dot(g, wf3_ref[...], preferred_element_type=jnp.float32)
                    + bf3_ref[...])


def protein_encoder_pretrain_forward(protein_tokens, params, protein_size,
                                     max_batch_tile=64):
    B, T = protein_tokens.shape
    NP = params["wf3p"].shape[1]
    H = params["w_hh"].shape[0]
    Vp = params["tab"].shape[0]
    C = params["wc0"].shape[0]
    assert NP >= protein_size

    TB, ntiles, B_pad = _choose_batch_tiling(B, max_batch_tile)
    tok = jnp.pad(protein_tokens.astype(jnp.int32), ((0, B_pad - B), (0, 0)))

    args = (params["tab"], params["b_rz"], params["w_hh"], params["b_hn"],
            params["A"], params["wc0"], params["wc1"], params["bc"],
            params["w1"], params["b1"], params["w2"], params["b2"],
            params["w3"], params["b3"],
            params["wf1p"], params["bf1p"], params["wf2p"], params["bf2p"],
            params["wf3p"], params["bf3p"])

    # Advisory cost estimate so XLA schedules this small custom call sensibly.
    flops = B_pad * (T * 2 * (Vp + H) * 3 * H               # one-hot + hidden matmuls
                     + 2 * H * params["A"].shape[1]         # selector matmul
                     + 2 * 128 * (C * 16 + 16 * 8 + 8)      # fc
                     + 3 * 2 * NP * NP)                     # fc2
    bytes_accessed = (int(tok.size) * 4 + B_pad * NP * 4
                      + sum(int(a.size) * a.dtype.itemsize for a in args))
    cost = pl.CostEstimate(flops=int(flops),
                           transcendentals=int(B_pad * T * 3 * H),
                           bytes_accessed=int(bytes_accessed))

    # Note: all weight/selector inputs are grid-invariant; single-buffering them
    # (pipeline_mode=pl.Buffered(1)) would halve their ~1.5 MiB residency, but we
    # keep the default here for API portability — negligible at these sizes.
    out = pl.pallas_call(
        _fused_kernel,
        out_shape=jax.ShapeDtypeStruct((B_pad, NP), jnp.float32),
        grid_spec=pltpu.PrefetchScalarGridSpec(
            num_scalar_prefetch=0,
            grid=(ntiles,),                               # batch-tile grid
            in_specs=[pl.BlockSpec((TB, T), lambda g: (g, 0))]
                     + [_full_spec(a.shape) for a in args],
            out_specs=pl.BlockSpec((TB, NP), lambda g: (g, 0)),
        ),
        compiler_params=pltpu.CompilerParams(dimension_semantics=("parallel",)),
        cost_estimate=cost,
    )(tok, *args)
    return out[:B, :protein_size]


# ----------------------------------------------------------------------------
# Deterministic synthetic parameter initialization (shapes from __init__)
# ----------------------------------------------------------------------------
def init_params(key, vocab, E, H, protein_size):
    ks = jax.random.split(key, 20)

    def n(k, shape, scale=0.1):
        return (scale * jax.random.normal(k, shape)).astype(jnp.float32)

    C, O = 32, 128
    P = protein_size
    P4, P2 = P // 4, P // 2
    NP = max(O, _round_up(P, O))                 # lane-padded fc2 width
    Vp = 128                                     # lane-aligned one-hot K
    assert vocab <= Vp

    def pad2(w, r, c):
        return jnp.zeros((r, c), jnp.float32).at[:w.shape[0], :w.shape[1]].set(w)

    # assumed ProteinEncoder: Embedding(vocab, E) + GRU(E, H), final hidden state
    emb = n(ks[0], (vocab, E))
    w_ih = n(ks[1], (E, 3 * H))                  # torch weight_ih_l0 (3H,E), transposed
    w_hh = n(ks[2], (H, 3 * H))                  # torch weight_hh_l0 (3H,H), transposed
    b_ih = n(ks[3], (1, 3 * H))
    b_hh = n(ks[4], (1, 3 * H))

    # x-path folded into a one-hot table: onehot(tok) @ (emb @ W_ih) == emb[tok] @ W_ih
    table = jnp.zeros((Vp, 3 * H), jnp.float32).at[:vocab].set(emb @ w_ih)

    A0, A1 = _pool_selectors(H, O)
    A = np.concatenate([A0, A1], axis=1)         # merged selector (H, 2*W*128)

    wf1, bf1 = n(ks[14], (128, P4)), n(ks[15], (1, P4))
    wf2, bf2 = n(ks[16], (P4, P2)), n(ks[17], (1, P2))
    wf3, bf3 = n(ks[18], (P2, P)), n(ks[19], (1, P))

    return {
        # precomputed embedding @ W_ih one-hot table (padded vocab rows are zero)
        "tab": table.astype(jnp.bfloat16),
        # b_ih with the r/z slices of b_hh pre-folded; b_hn applied inside r*(...)
        "b_rz": b_ih + jnp.concatenate(
            [b_hh[:, :2 * H], jnp.zeros((1, H), jnp.float32)], axis=1),
        "b_hn": b_hh[:, 2 * H:],
        "w_hh": w_hh.astype(jnp.bfloat16),
        # one-hot selector is exact in bf16 (halves VMEM footprint + DMA)
        "A": jnp.asarray(A).astype(jnp.bfloat16),
        # Conv1d(1,32,2,2,2): torch weight (32,1,2) split into its two taps + bias.
        # TODO(synk): a real checkpoint loader must perform this split (w[:,0,0], w[:,0,1]).
        "wc0": n(ks[5], (C, 1)), "wc1": n(ks[6], (C, 1)), "bc": n(ks[7], (C, 1)),
        # fc: Linear(32,16), Linear(16,8), Linear(8,1); w3 stored (in=8, out=1)
        "w1": n(ks[8], (16, C)), "b1": n(ks[9], (16, 1)),
        "w2": n(ks[10], (8, 16)), "b2": n(ks[11], (8, 1)),
        "w3": n(ks[12], (8, 1)), "b3": n(ks[13], (1, 1)),
        # fc2: Linear(128,P/4), Linear(P/4,P/2), Linear(P/2,P) stored (in,out),
        # zero-padded to NP lanes so every in-kernel store is unmasked.
        "wf1p": pad2(wf1, O, NP), "bf1p": pad2(bf1, 1, NP),
        "wf2p": pad2(wf2, NP, NP), "bf2p": pad2(bf2, 1, NP),
        "wf3p": pad2(wf3, NP, NP), "bf3p": pad2(bf3, 1, NP),
    }


if __name__ == "__main__":
    B, T, VOCAB, E, H, PROTEIN_SIZE = 2, 8, 25, 16, 256, 32

    key = jax.random.PRNGKey(0)
    k_tok, k_par = jax.random.split(key)
    protein = jax.random.randint(k_tok, (B, T), 0, VOCAB, dtype=jnp.int32)
    params = init_params(k_par, VOCAB, E, H, PROTEIN_SIZE)

    out = protein_encoder_pretrain_forward(protein, params, PROTEIN_SIZE)
    out = jax.block_until_ready(out)

    assert out.shape == (B, PROTEIN_SIZE), out.shape
    assert bool(jnp.all(jnp.isfinite(out)))
    print("KERNEL_OK")
</pallas_src>

<mosaic_0001>
module attributes {stable_mosaic.version = 11 : i64} {
  func.func @_fused_kernel(%arg0: i32, %arg1: memref<8x8xi32, #tpu.memory_space<vmem>>, %arg2: memref<128x768xbf16, #tpu.memory_space<vmem>>, %arg3: memref<1x768xf32, #tpu.memory_space<vmem>>, %arg4: memref<256x768xbf16, #tpu.memory_space<vmem>>, %arg5: memref<1x256xf32, #tpu.memory_space<vmem>>, %arg6: memref<256x512xbf16, #tpu.memory_space<vmem>>, %arg7: memref<32x1xf32, #tpu.memory_space<vmem>>, %arg8: memref<32x1xf32, #tpu.memory_space<vmem>>, %arg9: memref<32x1xf32, #tpu.memory_space<vmem>>, %arg10: memref<16x32xf32, #tpu.memory_space<vmem>>, %arg11: memref<16x1xf32, #tpu.memory_space<vmem>>, %arg12: memref<8x16xf32, #tpu.memory_space<vmem>>, %arg13: memref<8x1xf32, #tpu.memory_space<vmem>>, %arg14: memref<8x1xf32, #tpu.memory_space<vmem>>, %arg15: memref<1x1xf32, #tpu.memory_space<vmem>>, %arg16: memref<128x128xf32, #tpu.memory_space<vmem>>, %arg17: memref<1x128xf32, #tpu.memory_space<vmem>>, %arg18: memref<128x128xf32, #tpu.memory_space<vmem>>, %arg19: memref<1x128xf32, #tpu.memory_space<vmem>>, %arg20: memref<128x128xf32, #tpu.memory_space<vmem>>, %arg21: memref<1x128xf32, #tpu.memory_space<vmem>>, %arg22: memref<8x128xf32, #tpu.memory_space<vmem>>) attributes {dimension_semantics = [#tpu.dimension_semantics<parallel>], iteration_bounds = array<i64: 1>, scalar_prefetch = 0 : i64, scratch_operands = 0 : i64, tpu.core_type = #tpu.core_type<tc>, window_params = [{transform_indices = @transform_0, window_bounds = array<i64: 8, 8>}, {pipeline_mode = #tpu.pipeline_mode<synchronous>, transform_indices = @transform_1, window_bounds = array<i64: 128, 768>}, {pipeline_mode = #tpu.pipeline_mode<synchronous>, transform_indices = @transform_2, window_bounds = array<i64: 1, 768>}, {pipeline_mode = #tpu.pipeline_mode<synchronous>, transform_indices = @transform_3, window_bounds = array<i64: 256, 768>}, {pipeline_mode = #tpu.pipeline_mode<synchronous>, transform_indices = @transform_4, window_bounds = array<i64: 1, 256>}, {pipeline_mode = #tpu.pipeline_mode<synchronous>, transform_indices = @transform_5, window_bounds = array<i64: 256, 512>}, {pipeline_mode = #tpu.pipeline_mode<synchronous>, transform_indices = @transform_6, window_bounds = array<i64: 32, 1>}, {pipeline_mode = #tpu.pipeline_mode<synchronous>, transform_indices = @transform_7, window_bounds = array<i64: 32, 1>}, {pipeline_mode = #tpu.pipeline_mode<synchronous>, transform_indices = @transform_8, window_bounds = array<i64: 32, 1>}, {pipeline_mode = #tpu.pipeline_mode<synchronous>, transform_indices = @transform_9, window_bounds = array<i64: 16, 32>}, {pipeline_mode = #tpu.pipeline_mode<synchronous>, transform_indices = @transform_10, window_bounds = array<i64: 16, 1>}, {pipeline_mode = #tpu.pipeline_mode<synchronous>, transform_indices = @transform_11, window_bounds = array<i64: 8, 16>}, {pipeline_mode = #tpu.pipeline_mode<synchronous>, transform_indices = @transform_12, window_bounds = array<i64: 8, 1>}, {pipeline_mode = #tpu.pipeline_mode<synchronous>, transform_indices = @transform_13, window_bounds = array<i64: 8, 1>}, {pipeline_mode = #tpu.pipeline_mode<synchronous>, transform_indices = @transform_14, window_bounds = array<i64: 1, 1>}, {pipeline_mode = #tpu.pipeline_mode<synchronous>, transform_indices = @transform_15, window_bounds = array<i64: 128, 128>}, {pipeline_mode = #tpu.pipeline_mode<synchronous>, transform_indices = @transform_16, window_bounds = array<i64: 1, 128>}, {pipeline_mode = #tpu.pipeline_mode<synchronous>, transform_indices = @transform_17, window_bounds = array<i64: 128, 128>}, {pipeline_mode = #tpu.pipeline_mode<synchronous>, transform_indices = @transform_18, window_bounds = array<i64: 1, 128>}, {pipeline_mode = #tpu.pipeline_mode<synchronous>, transform_indices = @transform_19, window_bounds = array<i64: 128, 128>}, {pipeline_mode = #tpu.pipeline_mode<synchronous>, transform_indices = @transform_20, window_bounds = array<i64: 1, 128>}, {transform_indices = @transform_21, window_bounds = array<i64: 8, 128>}]} {
    %c0 = arith.constant 0 : index
    %c0_0 = arith.constant 0 : index
    %0 = vector.load %arg1[%c0, %c0_0] : memref<8x8xi32, #tpu.memory_space<vmem>>, vector<8x8xi32>
    %1 = tpu.iota {dimensions = array<i32: 1>} : vector<1x128xi32>
    %c0_1 = arith.constant 0 : index
    %c0_2 = arith.constant 0 : index
    %2 = vector.load %arg2[%c0_1, %c0_2] : memref<128x768xbf16, #tpu.memory_space<vmem>>, vector<128x768xbf16>
    %c0_3 = arith.constant 0 : index
    %c0_4 = arith.constant 0 : index
    %3 = vector.load %arg3[%c0_3, %c0_4] : memref<1x768xf32, #tpu.memory_space<vmem>>, vector<1x768xf32>
    %4 = vector.shape_cast %3 : vector<1x768xf32> to vector<1x768xf32>
    %5 = vector.broadcast %4 : vector<1x768xf32> to vector<8x768xf32>
    %6 = vector.extract_strided_slice %0 {offsets = [0, 0], sizes = [8, 1], strides = [1, 1]} : vector<8x8xi32> to vector<8x1xi32>
    %7 = vector.broadcast %6 : vector<8x1xi32> to vector<8x128xi32>
    %8 = vector.broadcast %1 : vector<1x128xi32> to vector<8x128xi32>
    %9 = arith.cmpi eq, %7, %8 : vector<8x128xi32>
    %10 = arith.extui %9 : vector<8x128xi1> to vector<8x128xi32>
    %11 = arith.sitofp %10 : vector<8x128xi32> to vector<8x128xf32>
    %12 = arith.truncf %11 : vector<8x128xf32> to vector<8x128xbf16>
    %cst = arith.constant dense<0.000000e+00> : vector<8x768xf32>
    %13 = tpu.matmul %12, %2, %cst {dimension_numbers = #tpu.dot_dimension_numbers<[1], [0], [0], [1], [0, 0, 1, 1], [], []>} : vector<8x128xbf16>, vector<128x768xbf16>, vector<8x768xf32> -> vector<8x768xf32>
    %14 = arith.addf %13, %5 : vector<8x768xf32>
    %15 = vector.extract_strided_slice %0 {offsets = [0, 1], sizes = [8, 1], strides = [1, 1]} : vector<8x8xi32> to vector<8x1xi32>
    %16 = vector.broadcast %15 : vector<8x1xi32> to vector<8x128xi32>
    %17 = vector.broadcast %1 : vector<1x128xi32> to vector<8x128xi32>
    %18 = arith.cmpi eq, %16, %17 : vector<8x128xi32>
    %19 = arith.extui %18 : vector<8x128xi1> to vector<8x128xi32>
    %20 = arith.sitofp %19 : vector<8x128xi32> to vector<8x128xf32>
    %21 = arith.truncf %20 : vector<8x128xf32> to vector<8x128xbf16>
    %cst_5 = arith.constant dense<0.000000e+00> : vector<8x768xf32>
    %22 = tpu.matmul %21, %2, %cst_5 {dimension_numbers = #tpu.dot_dimension_numbers<[1], [0], [0], [1], [0, 0, 1, 1], [], []>} : vector<8x128xbf16>, vector<128x768xbf16>, vector<8x768xf32> -> vector<8x768xf32>
    %23 = arith.addf %22, %5 : vector<8x768xf32>
    %24 = vector.extract_strided_slice %0 {offsets = [0, 2], sizes = [8, 1], strides = [1, 1]} : vector<8x8xi32> to vector<8x1xi32>
    %25 = vector.broadcast %24 : vector<8x1xi32> to vector<8x128xi32>
    %26 = vector.broadcast %1 : vector<1x128xi32> to vector<8x128xi32>
    %27 = arith.cmpi eq, %25, %26 : vector<8x128xi32>
    %28 = arith.extui %27 : vector<8x128xi1> to vector<8x128xi32>
    %29 = arith.sitofp %28 : vector<8x128xi32> to vector<8x128xf32>
    %30 = arith.truncf %29 : vector<8x128xf32> to vector<8x128xbf16>
    %cst_6 = arith.constant dense<0.000000e+00> : vector<8x768xf32>
    %31 = tpu.matmul %30, %2, %cst_6 {dimension_numbers = #tpu.dot_dimension_numbers<[1], [0], [0], [1], [0, 0, 1, 1], [], []>} : vector<8x128xbf16>, vector<128x768xbf16>, vector<8x768xf32> -> vector<8x768xf32>
    %32 = arith.addf %31, %5 : vector<8x768xf32>
    %33 = vector.extract_strided_slice %0 {offsets = [0, 3], sizes = [8, 1], strides = [1, 1]} : vector<8x8xi32> to vector<8x1xi32>
    %34 = vector.broadcast %33 : vector<8x1xi32> to vector<8x128xi32>
    %35 = vector.broadcast %1 : vector<1x128xi32> to vector<8x128xi32>
    %36 = arith.cmpi eq, %34, %35 : vector<8x128xi32>
    %37 = arith.extui %36 : vector<8x128xi1> to vector<8x128xi32>
    %38 = arith.sitofp %37 : vector<8x128xi32> to vector<8x128xf32>
    %39 = arith.truncf %38 : vector<8x128xf32> to vector<8x128xbf16>
    %cst_7 = arith.constant dense<0.000000e+00> : vector<8x768xf32>
    %40 = tpu.matmul %39, %2, %cst_7 {dimension_numbers = #tpu.dot_dimension_numbers<[1], [0], [0], [1], [0, 0, 1, 1], [], []>} : vector<8x128xbf16>, vector<128x768xbf16>, vector<8x768xf32> -> vector<8x768xf32>
    %41 = arith.addf %40, %5 : vector<8x768xf32>
    %42 = vector.extract_strided_slice %0 {offsets = [0, 4], sizes = [8, 1], strides = [1, 1]} : vector<8x8xi32> to vector<8x1xi32>
    %43 = vector.broadcast %42 : vector<8x1xi32> to vector<8x128xi32>
    %44 = vector.broadcast %1 : vector<1x128xi32> to vector<8x128xi32>
    %45 = arith.cmpi eq, %43, %44 : vector<8x128xi32>
    %46 = arith.extui %45 : vector<8x128xi1> to vector<8x128xi32>
    %47 = arith.sitofp %46 : vector<8x128xi32> to vector<8x128xf32>
    %48 = arith.truncf %47 : vector<8x128xf32> to vector<8x128xbf16>
    %cst_8 = arith.constant dense<0.000000e+00> : vector<8x768xf32>
    %49 = tpu.matmul %48, %2, %cst_8 {dimension_numbers = #tpu.dot_dimension_numbers<[1], [0], [0], [1], [0, 0, 1, 1], [], []>} : vector<8x128xbf16>, vector<128x768xbf16>, vector<8x768xf32> -> vector<8x768xf32>
    %50 = arith.addf %49, %5 : vector<8x768xf32>
    %51 = vector.extract_strided_slice %0 {offsets = [0, 5], sizes = [8, 1], strides = [1, 1]} : vector<8x8xi32> to vector<8x1xi32>
    %52 = vector.broadcast %51 : vector<8x1xi32> to vector<8x128xi32>
    %53 = vector.broadcast %1 : vector<1x128xi32> to vector<8x128xi32>
    %54 = arith.cmpi eq, %52, %53 : vector<8x128xi32>
    %55 = arith.extui %54 : vector<8x128xi1> to vector<8x128xi32>
    %56 = arith.sitofp %55 : vector<8x128xi32> to vector<8x128xf32>
    %57 = arith.truncf %56 : vector<8x128xf32> to vector<8x128xbf16>
    %cst_9 = arith.constant dense<0.000000e+00> : vector<8x768xf32>
    %58 = tpu.matmul %57, %2, %cst_9 {dimension_numbers = #tpu.dot_dimension_numbers<[1], [0], [0], [1], [0, 0, 1, 1], [], []>} : vector<8x128xbf16>, vector<128x768xbf16>, vector<8x768xf32> -> vector<8x768xf32>
    %59 = arith.addf %58, %5 : vector<8x768xf32>
    %60 = vector.extract_strided_slice %0 {offsets = [0, 6], sizes = [8, 1], strides = [1, 1]} : vector<8x8xi32> to vector<8x1xi32>
    %61 = vector.broadcast %60 : vector<8x1xi32> to vector<8x128xi32>
    %62 = vector.broadcast %1 : vector<1x128xi32> to vector<8x128xi32>
    %63 = arith.cmpi eq, %61, %62 : vector<8x128xi32>
    %64 = arith.extui %63 : vector<8x128xi1> to vector<8x128xi32>
    %65 = arith.sitofp %64 : vector<8x128xi32> to vector<8x128xf32>
    %66 = arith.truncf %65 : vector<8x128xf32> to vector<8x128xbf16>
    %cst_10 = arith.constant dense<0.000000e+00> : vector<8x768xf32>
    %67 = tpu.matmul %66, %2, %cst_10 {dimension_numbers = #tpu.dot_dimension_numbers<[1], [0], [0], [1], [0, 0, 1, 1], [], []>} : vector<8x128xbf16>, vector<128x768xbf16>, vector<8x768xf32> -> vector<8x768xf32>
    %68 = arith.addf %67, %5 : vector<8x768xf32>
    %69 = vector.extract_strided_slice %0 {offsets = [0, 7], sizes = [8, 1], strides = [1, 1]} : vector<8x8xi32> to vector<8x1xi32>
    %70 = vector.broadcast %69 : vector<8x1xi32> to vector<8x128xi32>
    %71 = vector.broadcast %1 : vector<1x128xi32> to vector<8x128xi32>
    %72 = arith.cmpi eq, %70, %71 : vector<8x128xi32>
    %73 = arith.extui %72 : vector<8x128xi1> to vector<8x128xi32>
    %74 = arith.sitofp %73 : vector<8x128xi32> to vector<8x128xf32>
    %75 = arith.truncf %74 : vector<8x128xf32> to vector<8x128xbf16>
    %cst_11 = arith.constant dense<0.000000e+00> : vector<8x768xf32>
    %76 = tpu.matmul %75, %2, %cst_11 {dimension_numbers = #tpu.dot_dimension_numbers<[1], [0], [0], [1], [0, 0, 1, 1], [], []>} : vector<8x128xbf16>, vector<128x768xbf16>, vector<8x768xf32> -> vector<8x768xf32>
    %77 = arith.addf %76, %5 : vector<8x768xf32>
    %c0_12 = arith.constant 0 : index
    %c0_13 = arith.constant 0 : index
    %78 = vector.load %arg4[%c0_12, %c0_13] : memref<256x768xbf16, #tpu.memory_space<vmem>>, vector<256x768xbf16>
    %c0_14 = arith.constant 0 : index
    %c0_15 = arith.constant 0 : index
    %79 = vector.load %arg5[%c0_14, %c0_15] : memref<1x256xf32, #tpu.memory_space<vmem>>, vector<1x256xf32>
    %80 = vector.shape_cast %79 : vector<1x256xf32> to vector<1x256xf32>
    %81 = vector.broadcast %80 : vector<1x256xf32> to vector<8x256xf32>
    %cst_16 = arith.constant 0.000000e+00 : f32
    %82 = vector.broadcast %cst_16 : f32 to vector<8x256xf32>
    %83 = arith.truncf %82 : vector<8x256xf32> to vector<8x256xbf16>
    %cst_17 = arith.constant dense<0.000000e+00> : vector<8x768xf32>
    %84 = tpu.matmul %83, %78, %cst_17 {dimension_numbers = #tpu.dot_dimension_numbers<[1], [0], [0], [1], [0, 0, 1, 1], [], []>} : vector<8x256xbf16>, vector<256x768xbf16>, vector<8x768xf32> -> vector<8x768xf32>
    %85 = vector.extract_strided_slice %14 {offsets = [0, 0], sizes = [8, 256], strides = [1, 1]} : vector<8x768xf32> to vector<8x256xf32>
    %86 = vector.extract_strided_slice %84 {offsets = [0, 0], sizes = [8, 256], strides = [1, 1]} : vector<8x768xf32> to vector<8x256xf32>
    %87 = arith.addf %85, %86 : vector<8x256xf32>
    %88 = arith.negf %87 : vector<8x256xf32>
    %89 = math.exp %88 : vector<8x256xf32>
    %cst_18 = arith.constant 1.000000e+00 : f32
    %90 = vector.broadcast %cst_18 : f32 to vector<8x256xf32>
    %91 = arith.addf %90, %89 : vector<8x256xf32>
    %92 = arith.divf %90, %91 : vector<8x256xf32>
    %93 = vector.extract_strided_slice %14 {offsets = [0, 256], sizes = [8, 256], strides = [1, 1]} : vector<8x768xf32> to vector<8x256xf32>
    %94 = vector.extract_strided_slice %84 {offsets = [0, 256], sizes = [8, 256], strides = [1, 1]} : vector<8x768xf32> to vector<8x256xf32>
    %95 = arith.addf %93, %94 : vector<8x256xf32>
    %96 = arith.negf %95 : vector<8x256xf32>
    %97 = math.exp %96 : vector<8x256xf32>
    %cst_19 = arith.constant 1.000000e+00 : f32
    %98 = vector.broadcast %cst_19 : f32 to vector<8x256xf32>
    %99 = arith.addf %98, %97 : vector<8x256xf32>
    %100 = arith.divf %98, %99 : vector<8x256xf32>
    %101 = vector.extract_strided_slice %14 {offsets = [0, 512], sizes = [8, 256], strides = [1, 1]} : vector<8x768xf32> to vector<8x256xf32>
    %102 = vector.extract_strided_slice %84 {offsets = [0, 512], sizes = [8, 256], strides = [1, 1]} : vector<8x768xf32> to vector<8x256xf32>
    %103 = arith.addf %102, %81 : vector<8x256xf32>
    %104 = arith.mulf %92, %103 : vector<8x256xf32>
    %105 = arith.addf %101, %104 : vector<8x256xf32>
    %106 = math.tanh %105 : vector<8x256xf32>
    %cst_20 = arith.constant 1.000000e+00 : f32
    %107 = vector.broadcast %cst_20 : f32 to vector<8x256xf32>
    %108 = arith.subf %107, %100 : vector<8x256xf32>
    %109 = arith.mulf %108, %106 : vector<8x256xf32>
    %110 = arith.mulf %100, %82 : vector<8x256xf32>
    %111 = arith.addf %109, %110 : vector<8x256xf32>
    %112 = arith.truncf %111 : vector<8x256xf32> to vector<8x256xbf16>
    %cst_21 = arith.constant dense<0.000000e+00> : vector<8x768xf32>
    %113 = tpu.matmul %112, %78, %cst_21 {dimension_numbers = #tpu.dot_dimension_numbers<[1], [0], [0], [1], [0, 0, 1, 1], [], []>} : vector<8x256xbf16>, vector<256x768xbf16>, vector<8x768xf32> -> vector<8x768xf32>
    %114 = vector.extract_strided_slice %23 {offsets = [0, 0], sizes = [8, 256], strides = [1, 1]} : vector<8x768xf32> to vector<8x256xf32>
    %115 = vector.extract_strided_slice %113 {offsets = [0, 0], sizes = [8, 256], strides = [1, 1]} : vector<8x768xf32> to vector<8x256xf32>
    %116 = arith.addf %114, %115 : vector<8x256xf32>
    %117 = arith.negf %116 : vector<8x256xf32>
    %118 = math.exp %117 : vector<8x256xf32>
    %cst_22 = arith.constant 1.000000e+00 : f32
    %119 = vector.broadcast %cst_22 : f32 to vector<8x256xf32>
    %120 = arith.addf %119, %118 : vector<8x256xf32>
    %121 = arith.divf %119, %120 : vector<8x256xf32>
    %122 = vector.extract_strided_slice %23 {offsets = [0, 256], sizes = [8, 256], strides = [1, 1]} : vector<8x768xf32> to vector<8x256xf32>
    %123 = vector.extract_strided_slice %113 {offsets = [0, 256], sizes = [8, 256], strides = [1, 1]} : vector<8x768xf32> to vector<8x256xf32>
    %124 = arith.addf %122, %123 : vector<8x256xf32>
    %125 = arith.negf %124 : vector<8x256xf32>
    %126 = math.exp %125 : vector<8x256xf32>
    %cst_23 = arith.constant 1.000000e+00 : f32
    %127 = vector.broadcast %cst_23 : f32 to vector<8x256xf32>
    %128 = arith.addf %127, %126 : vector<8x256xf32>
    %129 = arith.divf %127, %128 : vector<8x256xf32>
    %130 = vector.extract_strided_slice %23 {offsets = [0, 512], sizes = [8, 256], strides = [1, 1]} : vector<8x768xf32> to vector<8x256xf32>
    %131 = vector.extract_strided_slice %113 {offsets = [0, 512], sizes = [8, 256], strides = [1, 1]} : vector<8x768xf32> to vector<8x256xf32>
    %132 = arith.addf %131, %81 : vector<8x256xf32>
    %133 = arith.mulf %121, %132 : vector<8x256xf32>
    %134 = arith.addf %130, %133 : vector<8x256xf32>
    %135 = math.tanh %134 : vector<8x256xf32>
    %cst_24 = arith.constant 1.000000e+00 : f32
    %136 = vector.broadcast %cst_24 : f32 to vector<8x256xf32>
    %137 = arith.subf %136, %129 : vector<8x256xf32>
    %138 = arith.mulf %137, %135 : vector<8x256xf32>
    %139 = arith.mulf %129, %111 : vector<8x256xf32>
    %140 = arith.addf %138, %139 : vector<8x256xf32>
    %141 = arith.truncf %140 : vector<8x256xf32> to vector<8x256xbf16>
    %cst_25 = arith.constant dense<0.000000e+00> : vector<8x768xf32>
    %142 = tpu.matmul %141, %78, %cst_25 {dimension_numbers = #tpu.dot_dimension_numbers<[1], [0], [0], [1], [0, 0, 1, 1], [], []>} : vector<8x256xbf16>, vector<256x768xbf16>, vector<8x768xf32> -> vector<8x768xf32>
    %143 = vector.extract_strided_slice %32 {offsets = [0, 0], sizes = [8, 256], strides = [1, 1]} : vector<8x768xf32> to vector<8x256xf32>
    %144 = vector.extract_strided_slice %142 {offsets = [0, 0], sizes = [8, 256], strides = [1, 1]} : vector<8x768xf32> to vector<8x256xf32>
    %145 = arith.addf %143, %144 : vector<8x256xf32>
    %146 = arith.negf %145 : vector<8x256xf32>
    %147 = math.exp %146 : vector<8x256xf32>
    %cst_26 = arith.constant 1.000000e+00 : f32
    %148 = vector.broadcast %cst_26 : f32 to vector<8x256xf32>
    %149 = arith.addf %148, %147 : vector<8x256xf32>
    %150 = arith.divf %148, %149 : vector<8x256xf32>
    %151 = vector.extract_strided_slice %32 {offsets = [0, 256], sizes = [8, 256], strides = [1, 1]} : vector<8x768xf32> to vector<8x256xf32>
    %152 = vector.extract_strided_slice %142 {offsets = [0, 256], sizes = [8, 256], strides = [1, 1]} : vector<8x768xf32> to vector<8x256xf32>
    %153 = arith.addf %151, %152 : vector<8x256xf32>
    %154 = arith.negf %153 : vector<8x256xf32>
    %155 = math.exp %154 : vector<8x256xf32>
    %cst_27 = arith.constant 1.000000e+00 : f32
    %156 = vector.broadcast %cst_27 : f32 to vector<8x256xf32>
    %157 = arith.addf %156, %155 : vector<8x256xf32>
    %158 = arith.divf %156, %157 : vector<8x256xf32>
    %159 = vector.extract_strided_slice %32 {offsets = [0, 512], sizes = [8, 256], strides = [1, 1]} : vector<8x768xf32> to vector<8x256xf32>
    %160 = vector.extract_strided_slice %142 {offsets = [0, 512], sizes = [8, 256], strides = [1, 1]} : vector<8x768xf32> to vector<8x256xf32>
    %161 = arith.addf %160, %81 : vector<8x256xf32>
    %162 = arith.mulf %150, %161 : vector<8x256xf32>
    %163 = arith.addf %159, %162 : vector<8x256xf32>
    %164 = math.tanh %163 : vector<8x256xf32>
    %cst_28 = arith.constant 1.000000e+00 : f32
    %165 = vector.broadcast %cst_28 : f32 to vector<8x256xf32>
    %166 = arith.subf %165, %158 : vector<8x256xf32>
    %167 = arith.mulf %166, %164 : vector<8x256xf32>
    %168 = arith.mulf %158, %140 : vector<8x256xf32>
    %169 = arith.addf %167, %168 : vector<8x256xf32>
    %170 = arith.truncf %169 : vector<8x256xf32> to vector<8x256xbf16>
    %cst_29 = arith.constant dense<0.000000e+00> : vector<8x768xf32>
    %171 = tpu.matmul %170, %78, %cst_29 {dimension_numbers = #tpu.dot_dimension_numbers<[1], [0], [0], [1], [0, 0, 1, 1], [], []>} : vector<8x256xbf16>, vector<256x768xbf16>, vector<8x768xf32> -> vector<8x768xf32>
    %172 = vector.extract_strided_slice %41 {offsets = [0, 0], sizes = [8, 256], strides = [1, 1]} : vector<8x768xf32> to vector<8x256xf32>
    %173 = vector.extract_strided_slice %171 {offsets = [0, 0], sizes = [8, 256], strides = [1, 1]} : vector<8x768xf32> to vector<8x256xf32>
    %174 = arith.addf %172, %173 : vector<8x256xf32>
    %175 = arith.negf %174 : vector<8x256xf32>
    %176 = math.exp %175 : vector<8x256xf32>
    %cst_30 = arith.constant 1.000000e+00 : f32
    %177 = vector.broadcast %cst_30 : f32 to vector<8x256xf32>
    %178 = arith.addf %177, %176 : vector<8x256xf32>
    %179 = arith.divf %177, %178 : vector<8x256xf32>
    %180 = vector.extract_strided_slice %41 {offsets = [0, 256], sizes = [8, 256], strides = [1, 1]} : vector<8x768xf32> to vector<8x256xf32>
    %181 = vector.extract_strided_slice %171 {offsets = [0, 256], sizes = [8, 256], strides = [1, 1]} : vector<8x768xf32> to vector<8x256xf32>
    %182 = arith.addf %180, %181 : vector<8x256xf32>
    %183 = arith.negf %182 : vector<8x256xf32>
    %184 = math.exp %183 : vector<8x256xf32>
    %cst_31 = arith.constant 1.000000e+00 : f32
    %185 = vector.broadcast %cst_31 : f32 to vector<8x256xf32>
    %186 = arith.addf %185, %184 : vector<8x256xf32>
    %187 = arith.divf %185, %186 : vector<8x256xf32>
    %188 = vector.extract_strided_slice %41 {offsets = [0, 512], sizes = [8, 256], strides = [1, 1]} : vector<8x768xf32> to vector<8x256xf32>
    %189 = vector.extract_strided_slice %171 {offsets = [0, 512], sizes = [8, 256], strides = [1, 1]} : vector<8x768xf32> to vector<8x256xf32>
    %190 = arith.addf %189, %81 : vector<8x256xf32>
    %191 = arith.mulf %179, %190 : vector<8x256xf32>
    %192 = arith.addf %188, %191 : vector<8x256xf32>
    %193 = math.tanh %192 : vector<8x256xf32>
    %cst_32 = arith.constant 1.000000e+00 : f32
    %194 = vector.broadcast %cst_32 : f32 to vector<8x256xf32>
    %195 = arith.subf %194, %187 : vector<8x256xf32>
    %196 = arith.mulf %195, %193 : vector<8x256xf32>
    %197 = arith.mulf %187, %169 : vector<8x256xf32>
    %198 = arith.addf %196, %197 : vector<8x256xf32>
    %199 = arith.truncf %198 : vector<8x256xf32> to vector<8x256xbf16>
    %cst_33 = arith.constant dense<0.000000e+00> : vector<8x768xf32>
    %200 = tpu.matmul %199, %78, %cst_33 {dimension_numbers = #tpu.dot_dimension_numbers<[1], [0], [0], [1], [0, 0, 1, 1], [], []>} : vector<8x256xbf16>, vector<256x768xbf16>, vector<8x768xf32> -> vector<8x768xf32>
    %201 = vector.extract_strided_slice %50 {offsets = [0, 0], sizes = [8, 256], strides = [1, 1]} : vector<8x768xf32> to vector<8x256xf32>
    %202 = vector.extract_strided_slice %200 {offsets = [0, 0], sizes = [8, 256], strides = [1, 1]} : vector<8x768xf32> to vector<8x256xf32>
    %203 = arith.addf %201, %202 : vector<8x256xf32>
    %204 = arith.negf %203 : vector<8x256xf32>
    %205 = math.exp %204 : vector<8x256xf32>
    %cst_34 = arith.constant 1.000000e+00 : f32
    %206 = vector.broadcast %cst_34 : f32 to vector<8x256xf32>
    %207 = arith.addf %206, %205 : vector<8x256xf32>
    %208 = arith.divf %206, %207 : vector<8x256xf32>
    %209 = vector.extract_strided_slice %50 {offsets = [0, 256], sizes = [8, 256], strides = [1, 1]} : vector<8x768xf32> to vector<8x256xf32>
    %210 = vector.extract_strided_slice %200 {offsets = [0, 256], sizes = [8, 256], strides = [1, 1]} : vector<8x768xf32> to vector<8x256xf32>
    %211 = arith.addf %209, %210 : vector<8x256xf32>
    %212 = arith.negf %211 : vector<8x256xf32>
    %213 = math.exp %212 : vector<8x256xf32>
    %cst_35 = arith.constant 1.000000e+00 : f32
    %214 = vector.broadcast %cst_35 : f32 to vector<8x256xf32>
    %215 = arith.addf %214, %213 : vector<8x256xf32>
    %216 = arith.divf %214, %215 : vector<8x256xf32>
    %217 = vector.extract_strided_slice %50 {offsets = [0, 512], sizes = [8, 256], strides = [1, 1]} : vector<8x768xf32> to vector<8x256xf32>
    %218 = vector.extract_strided_slice %200 {offsets = [0, 512], sizes = [8, 256], strides = [1, 1]} : vector<8x768xf32> to vector<8x256xf32>
    %219 = arith.addf %218, %81 : vector<8x256xf32>
    %220 = arith.mulf %208, %219 : vector<8x256xf32>
    %221 = arith.addf %217, %220 : vector<8x256xf32>
    %222 = math.tanh %221 : vector<8x256xf32>
    %cst_36 = arith.constant 1.000000e+00 : f32
    %223 = vector.broadcast %cst_36 : f32 to vector<8x256xf32>
    %224 = arith.subf %223, %216 : vector<8x256xf32>
    %225 = arith.mulf %224, %222 : vector<8x256xf32>
    %226 = arith.mulf %216, %198 : vector<8x256xf32>
    %227 = arith.addf %225, %226 : vector<8x256xf32>
    %228 = arith.truncf %227 : vector<8x256xf32> to vector<8x256xbf16>
    %cst_37 = arith.constant dense<0.000000e+00> : vector<8x768xf32>
    %229 = tpu.matmul %228, %78, %cst_37 {dimension_numbers = #tpu.dot_dimension_numbers<[1], [0], [0], [1], [0, 0, 1, 1], [], []>} : vector<8x256xbf16>, vector<256x768xbf16>, vector<8x768xf32> -> vector<8x768xf32>
    %230 = vector.extract_strided_slice %59 {offsets = [0, 0], sizes = [8, 256], strides = [1, 1]} : vector<8x768xf32> to vector<8x256xf32>
    %231 = vector.extract_strided_slice %229 {offsets = [0, 0], sizes = [8, 256], strides = [1, 1]} : vector<8x768xf32> to vector<8x256xf32>
    %232 = arith.addf %230, %231 : vector<8x256xf32>
    %233 = arith.negf %232 : vector<8x256xf32>
    %234 = math.exp %233 : vector<8x256xf32>
    %cst_38 = arith.constant 1.000000e+00 : f32
    %235 = vector.broadcast %cst_38 : f32 to vector<8x256xf32>
    %236 = arith.addf %235, %234 : vector<8x256xf32>
    %237 = arith.divf %235, %236 : vector<8x256xf32>
    %238 = vector.extract_strided_slice %59 {offsets = [0, 256], sizes = [8, 256], strides = [1, 1]} : vector<8x768xf32> to vector<8x256xf32>
    %239 = vector.extract_strided_slice %229 {offsets = [0, 256], sizes = [8, 256], strides = [1, 1]} : vector<8x768xf32> to vector<8x256xf32>
    %240 = arith.addf %238, %239 : vector<8x256xf32>
    %241 = arith.negf %240 : vector<8x256xf32>
    %242 = math.exp %241 : vector<8x256xf32>
    %cst_39 = arith.constant 1.000000e+00 : f32
    %243 = vector.broadcast %cst_39 : f32 to vector<8x256xf32>
    %244 = arith.addf %243, %242 : vector<8x256xf32>
    %245 = arith.divf %243, %244 : vector<8x256xf32>
    %246 = vector.extract_strided_slice %59 {offsets = [0, 512], sizes = [8, 256], strides = [1, 1]} : vector<8x768xf32> to vector<8x256xf32>
    %247 = vector.extract_strided_slice %229 {offsets = [0, 512], sizes = [8, 256], strides = [1, 1]} : vector<8x768xf32> to vector<8x256xf32>
    %248 = arith.addf %247, %81 : vector<8x256xf32>
    %249 = arith.mulf %237, %248 : vector<8x256xf32>
    %250 = arith.addf %246, %249 : vector<8x256xf32>
    %251 = math.tanh %250 : vector<8x256xf32>
    %cst_40 = arith.constant 1.000000e+00 : f32
    %252 = vector.broadcast %cst_40 : f32 to vector<8x256xf32>
    %253 = arith.subf %252, %245 : vector<8x256xf32>
    %254 = arith.mulf %253, %251 : vector<8x256xf32>
    %255 = arith.mulf %245, %227 : vector<8x256xf32>
    %256 = arith.addf %254, %255 : vector<8x256xf32>
    %257 = arith.truncf %256 : vector<8x256xf32> to vector<8x256xbf16>
    %cst_41 = arith.constant dense<0.000000e+00> : vector<8x768xf32>
    %258 = tpu.matmul %257, %78, %cst_41 {dimension_numbers = #tpu.dot_dimension_numbers<[1], [0], [0], [1], [0, 0, 1, 1], [], []>} : vector<8x256xbf16>, vector<256x768xbf16>, vector<8x768xf32> -> vector<8x768xf32>
    %259 = vector.extract_strided_slice %68 {offsets = [0, 0], sizes = [8, 256], strides = [1, 1]} : vector<8x768xf32> to vector<8x256xf32>
    %260 = vector.extract_strided_slice %258 {offsets = [0, 0], sizes = [8, 256], strides = [1, 1]} : vector<8x768xf32> to vector<8x256xf32>
    %261 = arith.addf %259, %260 : vector<8x256xf32>
    %262 = arith.negf %261 : vector<8x256xf32>
    %263 = math.exp %262 : vector<8x256xf32>
    %cst_42 = arith.constant 1.000000e+00 : f32
    %264 = vector.broadcast %cst_42 : f32 to vector<8x256xf32>
    %265 = arith.addf %264, %263 : vector<8x256xf32>
    %266 = arith.divf %264, %265 : vector<8x256xf32>
    %267 = vector.extract_strided_slice %68 {offsets = [0, 256], sizes = [8, 256], strides = [1, 1]} : vector<8x768xf32> to vector<8x256xf32>
    %268 = vector.extract_strided_slice %258 {offsets = [0, 256], sizes = [8, 256], strides = [1, 1]} : vector<8x768xf32> to vector<8x256xf32>
    %269 = arith.addf %267, %268 : vector<8x256xf32>
    %270 = arith.negf %269 : vector<8x256xf32>
    %271 = math.exp %270 : vector<8x256xf32>
    %cst_43 = arith.constant 1.000000e+00 : f32
    %272 = vector.broadcast %cst_43 : f32 to vector<8x256xf32>
    %273 = arith.addf %272, %271 : vector<8x256xf32>
    %274 = arith.divf %272, %273 : vector<8x256xf32>
    %275 = vector.extract_strided_slice %68 {offsets = [0, 512], sizes = [8, 256], strides = [1, 1]} : vector<8x768xf32> to vector<8x256xf32>
    %276 = vector.extract_strided_slice %258 {offsets = [0, 512], sizes = [8, 256], strides = [1, 1]} : vector<8x768xf32> to vector<8x256xf32>
    %277 = arith.addf %276, %81 : vector<8x256xf32>
    %278 = arith.mulf %266, %277 : vector<8x256xf32>
    %279 = arith.addf %275, %278 : vector<8x256xf32>
    %280 = math.tanh %279 : vector<8x256xf32>
    %cst_44 = arith.constant 1.000000e+00 : f32
    %281 = vector.broadcast %cst_44 : f32 to vector<8x256xf32>
    %282 = arith.subf %281, %274 : vector<8x256xf32>
    %283 = arith.mulf %282, %280 : vector<8x256xf32>
    %284 = arith.mulf %274, %256 : vector<8x256xf32>
    %285 = arith.addf %283, %284 : vector<8x256xf32>
    %286 = arith.truncf %285 : vector<8x256xf32> to vector<8x256xbf16>
    %cst_45 = arith.constant dense<0.000000e+00> : vector<8x768xf32>
    %287 = tpu.matmul %286, %78, %cst_45 {dimension_numbers = #tpu.dot_dimension_numbers<[1], [0], [0], [1], [0, 0, 1, 1], [], []>} : vector<8x256xbf16>, vector<256x768xbf16>, vector<8x768xf32> -> vector<8x768xf32>
    %288 = vector.extract_strided_slice %77 {offsets = [0, 0], sizes = [8, 256], strides = [1, 1]} : vector<8x768xf32> to vector<8x256xf32>
    %289 = vector.extract_strided_slice %287 {offsets = [0, 0], sizes = [8, 256], strides = [1, 1]} : vector<8x768xf32> to vector<8x256xf32>
    %290 = arith.addf %288, %289 : vector<8x256xf32>
    %291 = arith.negf %290 : vector<8x256xf32>
    %292 = math.exp %291 : vector<8x256xf32>
    %cst_46 = arith.constant 1.000000e+00 : f32
    %293 = vector.broadcast %cst_46 : f32 to vector<8x256xf32>
    %294 = arith.addf %293, %292 : vector<8x256xf32>
    %295 = arith.divf %293, %294 : vector<8x256xf32>
    %296 = vector.extract_strided_slice %77 {offsets = [0, 256], sizes = [8, 256], strides = [1, 1]} : vector<8x768xf32> to vector<8x256xf32>
    %297 = vector.extract_strided_slice %287 {offsets = [0, 256], sizes = [8, 256], strides = [1, 1]} : vector<8x768xf32> to vector<8x256xf32>
    %298 = arith.addf %296, %297 : vector<8x256xf32>
    %299 = arith.negf %298 : vector<8x256xf32>
    %300 = math.exp %299 : vector<8x256xf32>
    %cst_47 = arith.constant 1.000000e+00 : f32
    %301 = vector.broadcast %cst_47 : f32 to vector<8x256xf32>
    %302 = arith.addf %301, %300 : vector<8x256xf32>
    %303 = arith.divf %301, %302 : vector<8x256xf32>
    %304 = vector.extract_strided_slice %77 {offsets = [0, 512], sizes = [8, 256], strides = [1, 1]} : vector<8x768xf32> to vector<8x256xf32>
    %305 = vector.extract_strided_slice %287 {offsets = [0, 512], sizes = [8, 256], strides = [1, 1]} : vector<8x768xf32> to vector<8x256xf32>
    %306 = arith.addf %305, %81 : vector<8x256xf32>
    %307 = arith.mulf %295, %306 : vector<8x256xf32>
    %308 = arith.addf %304, %307 : vector<8x256xf32>
    %309 = math.tanh %308 : vector<8x256xf32>
    %cst_48 = arith.constant 1.000000e+00 : f32
    %310 = vector.broadcast %cst_48 : f32 to vector<8x256xf32>
    %311 = arith.subf %310, %303 : vector<8x256xf32>
    %312 = arith.mulf %311, %309 : vector<8x256xf32>
    %313 = arith.mulf %303, %285 : vector<8x256xf32>
    %314 = arith.addf %312, %313 : vector<8x256xf32>
    %315 = arith.truncf %314 : vector<8x256xf32> to vector<8x256xbf16>
    %c0_49 = arith.constant 0 : index
    %c0_50 = arith.constant 0 : index
    %316 = vector.load %arg6[%c0_49, %c0_50] : memref<256x512xbf16, #tpu.memory_space<vmem>>, vector<256x512xbf16>
    %cst_51 = arith.constant dense<0.000000e+00> : vector<8x512xf32>
    %317 = tpu.matmul %315, %316, %cst_51 {dimension_numbers = #tpu.dot_dimension_numbers<[1], [0], [0], [1], [0, 0, 1, 1], [], []>} : vector<8x256xbf16>, vector<256x512xbf16>, vector<8x512xf32> -> vector<8x512xf32>
    %c0_52 = arith.constant 0 : index
    %c0_53 = arith.constant 0 : index
    %318 = vector.load %arg7[%c0_52, %c0_53] : memref<32x1xf32, #tpu.memory_space<vmem>>, vector<32x1xf32>
    %319 = vector.shape_cast %318 : vector<32x1xf32> to vector<32x1xf32>
    %320 = vector.broadcast %319 : vector<32x1xf32> to vector<32x128xf32>
    %321 = vector.shape_cast %320 : vector<32x128xf32> to vector<1x32x128xf32>
    %c0_54 = arith.constant 0 : index
    %c0_55 = arith.constant 0 : index
    %322 = vector.load %arg8[%c0_54, %c0_55] : memref<32x1xf32, #tpu.memory_space<vmem>>, vector<32x1xf32>
    %323 = vector.shape_cast %322 : vector<32x1xf32> to vector<32x1xf32>
    %324 = vector.broadcast %323 : vector<32x1xf32> to vector<32x128xf32>
    %325 = vector.shape_cast %324 : vector<32x128xf32> to vector<1x32x128xf32>
    %c0_56 = arith.constant 0 : index
    %c0_57 = arith.constant 0 : index
    %326 = vector.load %arg9[%c0_56, %c0_57] : memref<32x1xf32, #tpu.memory_space<vmem>>, vector<32x1xf32>
    %327 = vector.shape_cast %326 : vector<32x1xf32> to vector<32x1xf32>
    %328 = vector.broadcast %327 : vector<32x1xf32> to vector<32x128xf32>
    %329 = vector.shape_cast %328 : vector<32x128xf32> to vector<1x32x128xf32>
    %330 = vector.extract_strided_slice %317 {offsets = [0, 0], sizes = [8, 128], strides = [1, 1]} : vector<8x512xf32> to vector<8x128xf32>
    %331 = vector.shape_cast %330 : vector<8x128xf32> to vector<8x1x128xf32>
    %332 = vector.extract_strided_slice %317 {offsets = [0, 256], sizes = [8, 128], strides = [1, 1]} : vector<8x512xf32> to vector<8x128xf32>
    %333 = vector.shape_cast %332 : vector<8x128xf32> to vector<8x1x128xf32>
    %334 = vector.broadcast %321 : vector<1x32x128xf32> to vector<8x32x128xf32>
    %335 = vector.broadcast %331 : vector<8x1x128xf32> to vector<8x32x128xf32>
    %336 = arith.mulf %334, %335 : vector<8x32x128xf32>
    %337 = vector.broadcast %325 : vector<1x32x128xf32> to vector<8x32x128xf32>
    %338 = vector.broadcast %333 : vector<8x1x128xf32> to vector<8x32x128xf32>
    %339 = arith.mulf %337, %338 : vector<8x32x128xf32>
    %340 = arith.addf %336, %339 : vector<8x32x128xf32>
    %341 = vector.broadcast %329 : vector<1x32x128xf32> to vector<8x32x128xf32>
    %342 = arith.addf %340, %341 : vector<8x32x128xf32>
    %343 = vector.extract_strided_slice %317 {offsets = [0, 128], sizes = [8, 128], strides = [1, 1]} : vector<8x512xf32> to vector<8x128xf32>
    %344 = vector.shape_cast %343 : vector<8x128xf32> to vector<8x1x128xf32>
    %345 = vector.extract_strided_slice %317 {offsets = [0, 384], sizes = [8, 128], strides = [1, 1]} : vector<8x512xf32> to vector<8x128xf32>
    %346 = vector.shape_cast %345 : vector<8x128xf32> to vector<8x1x128xf32>
    %347 = vector.broadcast %321 : vector<1x32x128xf32> to vector<8x32x128xf32>
    %348 = vector.broadcast %344 : vector<8x1x128xf32> to vector<8x32x128xf32>
    %349 = arith.mulf %347, %348 : vector<8x32x128xf32>
    %350 = vector.broadcast %325 : vector<1x32x128xf32> to vector<8x32x128xf32>
    %351 = vector.broadcast %346 : vector<8x1x128xf32> to vector<8x32x128xf32>
    %352 = arith.mulf %350, %351 : vector<8x32x128xf32>
    %353 = arith.addf %349, %352 : vector<8x32x128xf32>
    %354 = vector.broadcast %329 : vector<1x32x128xf32> to vector<8x32x128xf32>
    %355 = arith.addf %353, %354 : vector<8x32x128xf32>
    %356 = arith.maximumf %342, %355 : vector<8x32x128xf32>
    %c0_58 = arith.constant 0 : index
    %c0_59 = arith.constant 0 : index
    %357 = vector.load %arg10[%c0_58, %c0_59] : memref<16x32xf32, #tpu.memory_space<vmem>>, vector<16x32xf32>
    %358 = vector.shape_cast %357 : vector<16x32xf32> to vector<1x16x32xf32>
    %359 = vector.shape_cast %358 : vector<1x16x32xf32> to vector<1x16x32xf32>
    %360 = vector.broadcast %359 : vector<1x16x32xf32> to vector<8x16x32xf32>
    "tpu.trace_start"() <{level = 10 : i32, message = "bkc,bci->bki"}> : () -> ()
    %cst_60 = arith.constant dense<0.000000e+00> : vector<8x16x128xf32>
    %361 = tpu.matmul %360, %356, %cst_60 {dimension_numbers = #tpu.dot_dimension_numbers<[2], [1], [1], [2], [0, 0, 0, 1, 1, 2], [0], [0]>} : vector<8x16x32xf32>, vector<8x32x128xf32>, vector<8x16x128xf32> -> vector<8x16x128xf32>
    "tpu.trace_stop"() : () -> ()
    %c0_61 = arith.constant 0 : index
    %c0_62 = arith.constant 0 : index
    %362 = vector.load %arg11[%c0_61, %c0_62] : memref<16x1xf32, #tpu.memory_space<vmem>>, vector<16x1xf32>
    %363 = vector.shape_cast %362 : vector<16x1xf32> to vector<1x16x1xf32>
    %364 = vector.broadcast %363 : vector<1x16x1xf32> to vector<8x16x128xf32>
    %365 = arith.addf %361, %364 : vector<8x16x128xf32>
    %cst_63 = arith.constant 0.000000e+00 : f32
    %366 = vector.broadcast %cst_63 : f32 to vector<8x16x128xf32>
    %367 = arith.cmpf ogt, %365, %366 : vector<8x16x128xf32>
    %cst_64 = arith.constant 0.00999999977 : f32
    %368 = vector.broadcast %cst_64 : f32 to vector<8x16x128xf32>
    %369 = arith.mulf %368, %365 : vector<8x16x128xf32>
    %370 = arith.select %367, %365, %369 : vector<8x16x128xi1>, vector<8x16x128xf32>
    %c0_65 = arith.constant 0 : index
    %c0_66 = arith.constant 0 : index
    %371 = vector.load %arg12[%c0_65, %c0_66] : memref<8x16xf32, #tpu.memory_space<vmem>>, vector<8x16xf32>
    %372 = vector.shape_cast %371 : vector<8x16xf32> to vector<1x8x16xf32>
    %373 = vector.shape_cast %372 : vector<1x8x16xf32> to vector<1x8x16xf32>
    %374 = vector.broadcast %373 : vector<1x8x16xf32> to vector<8x8x16xf32>
    "tpu.trace_start"() <{level = 10 : i32, message = "bmk,bki->bmi"}> : () -> ()
    %cst_67 = arith.constant dense<0.000000e+00> : vector<8x8x128xf32>
    %375 = tpu.matmul %374, %370, %cst_67 {dimension_numbers = #tpu.dot_dimension_numbers<[2], [1], [1], [2], [0, 0, 0, 1, 1, 2], [0], [0]>} : vector<8x8x16xf32>, vector<8x16x128xf32>, vector<8x8x128xf32> -> vector<8x8x128xf32>
    "tpu.trace_stop"() : () -> ()
    %c0_68 = arith.constant 0 : index
    %c0_69 = arith.constant 0 : index
    %376 = vector.load %arg13[%c0_68, %c0_69] : memref<8x1xf32, #tpu.memory_space<vmem>>, vector<8x1xf32>
    %377 = vector.shape_cast %376 : vector<8x1xf32> to vector<1x8x1xf32>
    %378 = vector.broadcast %377 : vector<1x8x1xf32> to vector<8x8x128xf32>
    %379 = arith.addf %375, %378 : vector<8x8x128xf32>
    %cst_70 = arith.constant 0.000000e+00 : f32
    %380 = vector.broadcast %cst_70 : f32 to vector<8x8x128xf32>
    %381 = arith.cmpf ogt, %379, %380 : vector<8x8x128xf32>
    %cst_71 = arith.constant 0.00999999977 : f32
    %382 = vector.broadcast %cst_71 : f32 to vector<8x8x128xf32>
    %383 = arith.mulf %382, %379 : vector<8x8x128xf32>
    %384 = arith.select %381, %379, %383 : vector<8x8x128xi1>, vector<8x8x128xf32>
    %c0_72 = arith.constant 0 : index
    %c0_73 = arith.constant 0 : index
    %385 = vector.load %arg14[%c0_72, %c0_73] : memref<8x1xf32, #tpu.memory_space<vmem>>, vector<8x1xf32>
    %386 = vector.shape_cast %385 : vector<8x1xf32> to vector<1x8x1xf32>
    %387 = vector.broadcast %386 : vector<1x8x1xf32> to vector<8x8x128xf32>
    %388 = arith.mulf %384, %387 : vector<8x8x128xf32>
    %cst_74 = arith.constant dense<0.000000e+00> : vector<8x128xf32>
    %389 = vector.multi_reduction <add>, %388, %cst_74 [1] : vector<8x8x128xf32> to vector<8x128xf32>
    %c0_75 = arith.constant 0 : index
    %c0_76 = arith.constant 0 : index
    %390 = vector.load %arg15[%c0_75, %c0_76] : memref<1x1xf32, #tpu.memory_space<vmem>>, vector<1x1xf32>
    %391 = vector.broadcast %390 : vector<1x1xf32> to vector<8x128xf32>
    %392 = arith.addf %389, %391 : vector<8x128xf32>
    %c0_77 = arith.constant 0 : index
    %c0_78 = arith.constant 0 : index
    %393 = vector.load %arg16[%c0_77, %c0_78] : memref<128x128xf32, #tpu.memory_space<vmem>>, vector<128x128xf32>
    %cst_79 = arith.constant dense<0.000000e+00> : vector<8x128xf32>
    %394 = tpu.matmul %392, %393, %cst_79 {dimension_numbers = #tpu.dot_dimension_numbers<[1], [0], [0], [1], [0, 0, 1, 1], [], []>} : vector<8x128xf32>, vector<128x128xf32>, vector<8x128xf32> -> vector<8x128xf32>
    %c0_80 = arith.constant 0 : index
    %c0_81 = arith.constant 0 : index
    %395 = vector.load %arg17[%c0_80, %c0_81] : memref<1x128xf32, #tpu.memory_space<vmem>>, vector<1x128xf32>
    %396 = vector.broadcast %395 : vector<1x128xf32> to vector<8x128xf32>
    %397 = arith.addf %394, %396 : vector<8x128xf32>
    %cst_82 = arith.constant 0.000000e+00 : f32
    %398 = vector.broadcast %cst_82 : f32 to vector<8x128xf32>
    %399 = arith.cmpf ogt, %397, %398 : vector<8x128xf32>
    %cst_83 = arith.constant 0.00999999977 : f32
    %400 = vector.broadcast %cst_83 : f32 to vector<8x128xf32>
    %401 = arith.mulf %400, %397 : vector<8x128xf32>
    %402 = arith.select %399, %397, %401 : vector<8x128xi1>, vector<8x128xf32>
    %c0_84 = arith.constant 0 : index
    %c0_85 = arith.constant 0 : index
    %403 = vector.load %arg18[%c0_84, %c0_85] : memref<128x128xf32, #tpu.memory_space<vmem>>, vector<128x128xf32>
    %cst_86 = arith.constant dense<0.000000e+00> : vector<8x128xf32>
    %404 = tpu.matmul %402, %403, %cst_86 {dimension_numbers = #tpu.dot_dimension_numbers<[1], [0], [0], [1], [0, 0, 1, 1], [], []>} : vector<8x128xf32>, vector<128x128xf32>, vector<8x128xf32> -> vector<8x128xf32>
    %c0_87 = arith.constant 0 : index
    %c0_88 = arith.constant 0 : index
    %405 = vector.load %arg19[%c0_87, %c0_88] : memref<1x128xf32, #tpu.memory_space<vmem>>, vector<1x128xf32>
    %406 = vector.broadcast %405 : vector<1x128xf32> to vector<8x128xf32>
    %407 = arith.addf %404, %406 : vector<8x128xf32>
    %cst_89 = arith.constant 0.000000e+00 : f32
    %408 = vector.broadcast %cst_89 : f32 to vector<8x128xf32>
    %409 = arith.cmpf ogt, %407, %408 : vector<8x128xf32>
    %cst_90 = arith.constant 0.00999999977 : f32
    %410 = vector.broadcast %cst_90 : f32 to vector<8x128xf32>
    %411 = arith.mulf %410, %407 : vector<8x128xf32>
    %412 = arith.select %409, %407, %411 : vector<8x128xi1>, vector<8x128xf32>
    %c0_91 = arith.constant 0 : index
    %c0_92 = arith.constant 0 : index
    %413 = vector.load %arg20[%c0_91, %c0_92] : memref<128x128xf32, #tpu.memory_space<vmem>>, vector<128x128xf32>
    %cst_93 = arith.constant dense<0.000000e+00> : vector<8x128xf32>
    %414 = tpu.matmul %412, %413, %cst_93 {dimension_numbers = #tpu.dot_dimension_numbers<[1], [0], [0], [1], [0, 0, 1, 1], [], []>} : vector<8x128xf32>, vector<128x128xf32>, vector<8x128xf32> -> vector<8x128xf32>
    %c0_94 = arith.constant 0 : index
    %c0_95 = arith.constant 0 : index
    %415 = vector.load %arg21[%c0_94, %c0_95] : memref<1x128xf32, #tpu.memory_space<vmem>>, vector<1x128xf32>
    %416 = vector.broadcast %415 : vector<1x128xf32> to vector<8x128xf32>
    %417 = arith.addf %414, %416 : vector<8x128xf32>
    %c0_96 = arith.constant 0 : index
    %c0_97 = arith.constant 0 : index
    %418 = vector.load %arg22[%c0_96, %c0_97] : memref<8x128xf32, #tpu.memory_space<vmem>>, vector<8x128xf32>
    tpu.vector_store %arg22[%c0_96, %c0_97], %417 {strides = array<i32>} : memref<8x128xf32, #tpu.memory_space<vmem>>, vector<8x128xf32>,
    return
  }
  func.func @transform_0(%arg0: i32) -> (i32, i32) {
    %c0_i32 = arith.constant 0 : i32
    %c0_i32_0 = arith.constant 0 : i32
    return %arg0, %c0_i32 : i32, i32
  }
  func.func @transform_1(%arg0: i32) -> (i32, i32) {
    %c0_i32 = arith.constant 0 : i32
    %c0_i32_0 = arith.constant 0 : i32
    %c0_i32_1 = arith.constant 0 : i32
    return %c0_i32, %c0_i32_0 : i32, i32
  }
  func.func @transform_2(%arg0: i32) -> (i32, i32) {
    %c0_i32 = arith.constant 0 : i32
    %c0_i32_0 = arith.constant 0 : i32
    %c0_i32_1 = arith.constant 0 : i32
    return %c0_i32, %c0_i32_0 : i32, i32
  }
  func.func @transform_3(%arg0: i32) -> (i32, i32) {
    %c0_i32 = arith.constant 0 : i32
    %c0_i32_0 = arith.constant 0 : i32
    %c0_i32_1 = arith.constant 0 : i32
    return %c0_i32, %c0_i32_0 : i32, i32
  }
  func.func @transform_4(%arg0: i32) -> (i32, i32) {
    %c0_i32 = arith.constant 0 : i32
    %c0_i32_0 = arith.constant 0 : i32
    %c0_i32_1 = arith.constant 0 : i32
    return %c0_i32, %c0_i32_0 : i32, i32
  }
  func.func @transform_5(%arg0: i32) -> (i32, i32) {
    %c0_i32 = arith.constant 0 : i32
    %c0_i32_0 = arith.constant 0 : i32
    %c0_i32_1 = arith.constant 0 : i32
    return %c0_i32, %c0_i32_0 : i32, i32
  }
  func.func @transform_6(%arg0: i32) -> (i32, i32) {
    %c0_i32 = arith.constant 0 : i32
    %c0_i32_0 = arith.constant 0 : i32
    %c0_i32_1 = arith.constant 0 : i32
    return %c0_i32, %c0_i32_0 : i32, i32
  }
  func.func @transform_7(%arg0: i32) -> (i32, i32) {
    %c0_i32 = arith.constant 0 : i32
    %c0_i32_0 = arith.constant 0 : i32
    %c0_i32_1 = arith.constant 0 : i32
    return %c0_i32, %c0_i32_0 : i32, i32
  }
  func.func @transform_8(%arg0: i32) -> (i32, i32) {
    %c0_i32 = arith.constant 0 : i32
    %c0_i32_0 = arith.constant 0 : i32
    %c0_i32_1 = arith.constant 0 : i32
    return %c0_i32, %c0_i32_0 : i32, i32
  }
  func.func @transform_9(%arg0: i32) -> (i32, i32) {
    %c0_i32 = arith.constant 0 : i32
    %c0_i32_0 = arith.constant 0 : i32
    %c0_i32_1 = arith.constant 0 : i32
    return %c0_i32, %c0_i32_0 : i32, i32
  }
  func.func @transform_10(%arg0: i32) -> (i32, i32) {
    %c0_i32 = arith.constant 0 : i32
    %c0_i32_0 = arith.constant 0 : i32
    %c0_i32_1 = arith.constant 0 : i32
    return %c0_i32, %c0_i32_0 : i32, i32
  }
  func.func @transform_11(%arg0: i32) -> (i32, i32) {
    %c0_i32 = arith.constant 0 : i32
    %c0_i32_0 = arith.constant 0 : i32
    %c0_i32_1 = arith.constant 0 : i32
    return %c0_i32, %c0_i32_0 : i32, i32
  }
  func.func @transform_12(%arg0: i32) -> (i32, i32) {
    %c0_i32 = arith.constant 0 : i32
    %c0_i32_0 = arith.constant 0 : i32
    %c0_i32_1 = arith.constant 0 : i32
    return %c0_i32, %c0_i32_0 : i32, i32
  }
  func.func @transform_13(%arg0: i32) -> (i32, i32) {
    %c0_i32 = arith.constant 0 : i32
    %c0_i32_0 = arith.constant 0 : i32
    %c0_i32_1 = arith.constant 0 : i32
    return %c0_i32, %c0_i32_0 : i32, i32
  }
  func.func @transform_14(%arg0: i32) -> (i32, i32) {
    %c0_i32 = arith.constant 0 : i32
    %c0_i32_0 = arith.constant 0 : i32
    %c0_i32_1 = arith.constant 0 : i32
    return %c0_i32, %c0_i32_0 : i32, i32
  }
  func.func @transform_15(%arg0: i32) -> (i32, i32) {
    %c0_i32 = arith.constant 0 : i32
    %c0_i32_0 = arith.constant 0 : i32
    %c0_i32_1 = arith.constant 0 : i32
    return %c0_i32, %c0_i32_0 : i32, i32
  }
  func.func @transform_16(%arg0: i32) -> (i32, i32) {
    %c0_i32 = arith.constant 0 : i32
    %c0_i32_0 = arith.constant 0 : i32
    %c0_i32_1 = arith.constant 0 : i32
    return %c0_i32, %c0_i32_0 : i32, i32
  }
  func.func @transform_17(%arg0: i32) -> (i32, i32) {
    %c0_i32 = arith.constant 0 : i32
    %c0_i32_0 = arith.constant 0 : i32
    %c0_i32_1 = arith.constant 0 : i32
    return %c0_i32, %c0_i32_0 : i32, i32
  }
  func.func @transform_18(%arg0: i32) -> (i32, i32) {
    %c0_i32 = arith.constant 0 : i32
    %c0_i32_0 = arith.constant 0 : i32
    %c0_i32_1 = arith.constant 0 : i32
    return %c0_i32, %c0_i32_0 : i32, i32
  }
  func.func @transform_19(%arg0: i32) -> (i32, i32) {
    %c0_i32 = arith.constant 0 : i32
    %c0_i32_0 = arith.constant 0 : i32
    %c0_i32_1 = arith.constant 0 : i32
    return %c0_i32, %c0_i32_0 : i32, i32
  }
  func.func @transform_20(%arg0: i32) -> (i32, i32) {
    %c0_i32 = arith.constant 0 : i32
    %c0_i32_0 = arith.constant 0 : i32
    %c0_i32_1 = arith.constant 0 : i32
    return %c0_i32, %c0_i32_0 : i32, i32
  }
  func.func @transform_21(%arg0: i32) -> (i32, i32) {
    %c0_i32 = arith.constant 0 : i32
    %c0_i32_0 = arith.constant 0 : i32
    return %arg0, %c0_i32 : i32, i32
  }
}

</mosaic_0001>

<bundles_post_ra>
// kernel: tpu_custom_call.1
= control target key start
LH: loop header
LB: loop body
LE: loop exit
PB: predicated region body
PF: predicated region fallthrough
CT: control target
= control target key end

     0   :  { %s10929_s0 = inlined_call_operand.vmem [shape: s32[8,8], index: 0, kind: input, shape index: {}]   ;;  %s10930_s1 = inlined_call_operand.hbm [shape: bf16[128,768], index: 1, kind: input, shape index: {}]   ;;  %s10931_s2 = inlined_call_operand.hbm [shape: f32[1,768], index: 2, kind: input, shape index: {}]   ;;  %s10932_s3 = inlined_call_operand.hbm [shape: bf16[256,768], index: 3, kind: input, shape index: {}]   ;;  %s10933_s4 = inlined_call_operand.hbm [shape: f32[1,256], index: 4, kind: input, shape index: {}]   ;;  %s10934_s5 = inlined_call_operand.hbm [shape: bf16[256,512], index: 5, kind: input, shape index: {}]   ;;  %s10935_s6 = inlined_call_operand.vmem [shape: f32[32,1], index: 6, kind: input, shape index: {}]   ;;  %s10936_s7 = inlined_call_operand.vmem [shape: f32[32,1], index: 7, kind: input, shape index: {}]   ;;  %s10937_s8 = inlined_call_operand.vmem [shape: f32[32,1], index: 8, kind: input, shape index: {}]   ;;  %s10938_s9 = inlined_call_operand.vmem [shape: f32[16,32], index: 9, kind: input, shape index: {}]   ;;  %s10939_s10 = inlined_call_operand.vmem [shape: f32[16,1], index: 10, kind: input, shape index: {}]   ;;  %s10940_s11 = inlined_call_operand.vmem [shape: f32[8,16], index: 11, kind: input, shape index: {}]   ;;  %s10941_s12 = inlined_call_operand.vmem [shape: f32[8,1], index: 12, kind: input, shape index: {}]   ;;  %s10942_s13 = inlined_call_operand.vmem [shape: f32[8,1], index: 13, kind: input, shape index: {}]   ;;  %s10943_s14 = inlined_call_operand.<no memory space> [shape: f32[1,1], index: 14, kind: input, shape index: {}]   ;;  %s10944_s15 = inlined_call_operand.vmem [shape: f32[128,128], index: 15, kind: input, shape index: {}]   ;;  %s10945_s16 = inlined_call_operand.vmem [shape: f32[1,128], index: 16, kind: input, shape index: {}]   ;;  %s10946_s17 = inlined_call_operand.hbm [shape: f32[128,128], index: 17, kind: input, shape index: {}]   ;;  %s10947_s18 = inlined_call_operand.vmem [shape: f32[1,128], index: 18, kind: input, shape index: {}]   ;;  %s10948_s19 = inlined_call_operand.hbm [shape: f32[128,128], index: 19, kind: input, shape index: {}]   ;;  %s10949_s20 = inlined_call_operand.vmem [shape: f32[1,128], index: 20, kind: input, shape index: {}]   ;;  %s10950_s21 = inlined_call_operand.hbm [shape: f32[8,128], index: 21, kind: output, shape index: {}]  }
   0x1   :  { %11182 = sst [smem:[#allocation129_spill]] %s10929_s0  ;;  %v26_v0 = vstv %s10943_s14 }
   0x2   :  { %11183 = sst [smem:[#allocation130_spill]] %s10930_s1  ;;  %27 = vst [vmem:[#allocation2] sm:$0x1] %v26_v0 }
   0x3   :  { %11184 = sst [smem:[#allocation131_spill]] %s10931_s2 }
   0x4   :  { %11185 = sst [smem:[#allocation132_spill]] %s10932_s3 }
   0x5   :  { %11186 = sst [smem:[#allocation133_spill]] %s10933_s4 }
   0x6   :  { %11187 = sst [smem:[#allocation134_spill]] %s10934_s5 }
   0x7   :  { %28 = vsyncpa [#allocation4], 0 }
   0x8   :  { %29 = vsyncpa [#allocation7], 0 }
   0x9   :  { %30 = vsyncpa [#allocation10], 0 }
   0xa   :  { %31 = vsyncpa [#allocation13], 0 }
   0xb   :  { %32 = vsyncpa [#allocation5], 0  ;;  %s7912_s26 = smov [#allocation6]   ;;  %s7913_s3 = smov [#allocation9]  }
   0xc   :  { %s53_s27 = sshll.u32 %s7912_s26, 4  ;;  %s75_s28 = sshll.u32 %s7913_s3, 4  ;;  %s54_s27 = int_to_ptr.vmem [resolvable:$true] %s53_s27  ;;  %s76_s28 = int_to_ptr.vmem [resolvable:$true] %s75_s28 }
   0xd   :  { %s7750_s29 = scalar_lea.vmem %s54_s27, 96  ;;  %p7755_p1 = scmp.lt.s32.totalorder %s54_s27, %s54_s27 }
   0xe   :  { %p7751_p0 = scmp.ne.s32.totalorder %s54_s27, %s7750_s29  ;;  %p7756_p2 = scmp.lt.s32.totalorder %s7750_s29, %s7750_s29 }
  0x10   :  { %p7757_p3 = por %p7756_p2, %p7755_p1 }
  0x12   :  { %p7758_p4 = pnand %p7757_p3, %p7751_p0 }
  0x14   :  { %7761 = shalt.err (!%p7758_p4)
}
  0x15   :  { %s11188_s4 = sld [smem:[#allocation131_spill]]  ;;  %s7770_s30 = scalar_lea.vmem %s76_s28, 32 }
  0x16   :  { %p7771_p5 = scmp.ne.s32.totalorder %s76_s28, %s7770_s30  ;;  %p7775_p6 = scmp.lt.s32.totalorder %s76_s28, %s76_s28 }
  0x17   :  { %p7776_p7 = scmp.lt.s32.totalorder %s7770_s30, %s7770_s30 }
  0x19   :  { %p7777_p8 = por %p7776_p7, %p7775_p6 }
  0x1b   :  { %56 = dma.hbm_to_vmem [thread:$0]  %s11188_s4, 96, %s54_s27, [#allocation7]  }
  0x1c   :  { %p7778_p9 = pnand %p7777_p8, %p7771_p5 }
  0x1e   :  { %7781 = shalt.err (!%p7778_p9)
}
  0x1f   :  { %s11189_s23 = sld [smem:[#allocation133_spill]]  ;;  %s7914_s1 = smov [#allocation12]  }
  0x20   :  { %s118_s24 = sshll.u32 %s7914_s1, 4  ;;  %s119_s24 = int_to_ptr.vmem [resolvable:$true] %s118_s24 }
  0x21   :  { %s7790_s2 = scalar_lea.vmem %s119_s24, 2048  ;;  %p7795_p11 = scmp.lt.s32.totalorder %s119_s24, %s119_s24 }
  0x22   :  { %p7791_p10 = scmp.ne.s32.totalorder %s119_s24, %s7790_s2  ;;  %p7796_p12 = scmp.lt.s32.totalorder %s7790_s2, %s7790_s2 }
  0x24   :  { %p7797_p13 = por %p7796_p12, %p7795_p11 }
  0x25   :  { %78 = dma.hbm_to_vmem [thread:$0]  %s11189_s23, 32, %s76_s28, [#allocation10]  }
  0x26   :  { %p7798_p0 = pnand %p7797_p13, %p7791_p10 }
  0x28   :  { %7801 = shalt.err (!%p7798_p0)
}
  0x29   :  { %s10951_s25 = smov 128   ;;  %s7916_s26 = smov 8  }
  0x2a   :  { %124 = dma.hbm_to_vmem [thread:$0]  %s10946_s17, 2048, %s119_s24, [#allocation13], %s10951_s25, %s10951_s25, %s7916_s26  }
  0x2b   :  { %s7917_s28 = smov [#allocation3]  }
  0x2c   :  { %s40_s29 = sshll.u32 %s7917_s28, 4  ;;  %s41_s29 = int_to_ptr.vmem [resolvable:$true] %s40_s29 }
  0x2d   :  { %s7810_s14 = scalar_lea.vmem %s41_s29, 6144  ;;  %p7815_p2 = scmp.lt.s32.totalorder %s41_s29, %s41_s29 }
  0x2e   :  { %p7811_p1 = scmp.ne.s32.totalorder %s41_s29, %s7810_s14  ;;  %p7816_p3 = scmp.lt.s32.totalorder %s7810_s14, %s7810_s14 }
  0x30   :  { %p7817_p4 = por %p7816_p3, %p7815_p2 }
  0x32   :  { %p7818_p5 = pnand %p7817_p4, %p7811_p1 }
  0x34   :  { %7821 = shalt.err (!%p7818_p5)
}
  0x35   :  { %s7918_s0 = smov 384   ;;  %s7919_s4 = smov 24  }
  0x36   :  { %s11190_s22 = sld [smem:[#allocation130_spill]]  ;;  %s7920_s23 = smov [#allocation8]  }
  0x37   :  { %s62_s1 = sshll.u32 %s7920_s23, 4  ;;  %s7921_s2 = smov [#allocation11]   ;;  %s63_s1 = int_to_ptr.vmem [resolvable:$true] %s62_s1 }
  0x38   :  { %s84_s17 = sshll.u32 %s7921_s2, 4  ;;  %s7830_s24 = scalar_lea.vmem %s63_s1, 12288  ;;  %s85_s17 = int_to_ptr.vmem [resolvable:$true] %s84_s17 }
  0x39   :  { %p7831_p6 = scmp.ne.s32.totalorder %s63_s1, %s7830_s24  ;;  %p7835_p7 = scmp.lt.s32.totalorder %s63_s1, %s63_s1 }
  0x3a   :  { %p7836_p8 = scmp.lt.s32.totalorder %s7830_s24, %s7830_s24 }
  0x3c   :  { %46 = dma.hbm_to_vmem [thread:$0]  %s11190_s22, 6144, %s41_s29, [#allocation4], %s7918_s0, %s7918_s0, %s7919_s4  }
  0x3d   :  { %p7837_p9 = por %p7836_p8, %p7835_p7 }
  0x3f   :  { %p7838_p10 = pnand %p7837_p9, %p7831_p6 }
  0x41   :  { %7841 = shalt.err (!%p7838_p10)
}
  0x42   :  { %s11191_s28 = sld [smem:[#allocation132_spill]]  ;;  %s7850_s14 = scalar_lea.vmem %s85_s17, 8192 }
  0x43   :  { %p7851_p11 = scmp.ne.s32.totalorder %s85_s17, %s7850_s14  ;;  %p7855_p12 = scmp.lt.s32.totalorder %s85_s17, %s85_s17 }
  0x44   :  { %p7856_p13 = scmp.lt.s32.totalorder %s7850_s14, %s7850_s14 }
  0x46   :  { %p7857_p0 = por %p7856_p13, %p7855_p12 }
  0x48   :  { %68 = dma.hbm_to_vmem [thread:$0]  %s11191_s28, 12288, %s63_s1, [#allocation7], %s7918_s0, %s7918_s0, %s7919_s4  }
  0x49   :  { %p7858_p1 = pnand %p7857_p0, %p7851_p11 }
  0x4b   :  { %7861 = shalt.err (!%p7858_p1)
}
  0x4c   :  { %s7922_s29 = smov 256   ;;  %s7923_s30 = smov 16  }
  0x4d   :  { %s11192_s23 = sld [smem:[#allocation134_spill]]  ;;  %s7924_s2 = smov [#allocation14]  }
  0x4e   :  { %s132_s24 = sshll.u32 %s7924_s2, 4  ;;  %s133_s24 = int_to_ptr.vmem [resolvable:$true] %s132_s24 }
  0x4f   :  { %s7870_s25 = scalar_lea.vmem %s133_s24, 2048  ;;  %p7875_p3 = scmp.lt.s32.totalorder %s133_s24, %s133_s24 }
  0x50   :  { %p7871_p2 = scmp.ne.s32.totalorder %s133_s24, %s7870_s25  ;;  %p7876_p4 = scmp.lt.s32.totalorder %s7870_s25, %s7870_s25 }
  0x52   :  { %p7877_p5 = por %p7876_p4, %p7875_p3 }
  0x53   :  { %90 = dma.hbm_to_vmem [thread:$0]  %s11192_s23, 8192, %s85_s17, [#allocation10], %s7922_s29, %s7922_s29, %s7923_s30  }
  0x54   :  { %p7878_p6 = pnand %p7877_p5, %p7871_p2 }
  0x56   :  { %7881 = shalt.err (!%p7878_p6)
}
  0x57   :  { %s11193_s0 = smov 128  }
  0x58   :  { %138 = dma.hbm_to_vmem [thread:$0]  %s10948_s19, 2048, %s133_s24, [#allocation13], %s11193_s0, %s11193_s0, %s7916_s26  }
  0x59   :  { %7902 = dma.done.wait [#allocation4], 6144  }
  0x5a   :  { %7903 = vsyncadd [#allocation4], 4294961152 }
  0x5b   :  { %7904 = dma.done.wait [#allocation7], 12384  }
  0x5c   :  { %7905 = vsyncadd [#allocation7], 4294954912 }
  0x5d   :  { %7906 = dma.done.wait [#allocation10], 8224  }
  0x5e   :  { %7907 = vsyncadd [#allocation10], 4294959072 }
  0x5f   :  { %7908 = dma.done.wait [#allocation13], 4096  }
  0x60   :  { %7909 = vsyncadd [#allocation13], 4294963200  ;;  %v10953_v1 = vmov 0   ;;  %v7926_v2 = vmov 2   ;;  %s11194_s19 = sld [smem:[#allocation129_spill]]  ;;  %v7927_v10 = vmov 1   ;;  %v10952_v41 = vlaneseq }
  0x61   :  { %7045 = vset.pattern.permute.xlu0 %v10953_v1  ;;  %7047 = vset.pattern.permute.xlu1 %v7926_v2  ;;  %v8087_v4 = vld [vmem:[#allocation3 + $0x154] ss:$24 sps:$4 sm:$0xff]   ;;  %v8092_v6 = vld [vmem:[#allocation3 + $0x150] ss:$24 sps:$4 sm:$0xff]   ;;  %v8097_v8 = vld [vmem:[#allocation3 + $0x124] ss:$24 sps:$4 sm:$0xff]  }
  0x62   :  { %525 = vmatprep.mubr.bf16.mxu0 %v10953_v1  ;;  %566 = vmatprep.mubr.bf16.mxu1 %v10953_v1  ;;  %v8090_v5 = vld [vmem:[#allocation3 + $0x15c] ss:$24 sps:$4 sm:$0xff]   ;;  %v8094_v7 = vld [vmem:[#allocation3 + $0x158] ss:$24 sps:$4 sm:$0xff]   ;;  %v8101_v9 = vld [vmem:[#allocation3 + $0x12c] ss:$24 sps:$4 sm:$0xff]  }
  0x63   :  { %493 = vmatprep.subr.bf16.mxu0 %v8087_v4  ;;  %534 = vmatprep.subr.bf16.mxu1 %v8090_v5  ;;  %v8104_v11 = vld [vmem:[#allocation3 + $0x120] ss:$24 sps:$4 sm:$0xff]   ;;  %v8110_v13 = vld [vmem:[#allocation3 + $0xf4] ss:$24 sps:$4 sm:$0xff]   ;;  %v8115_v15 = vld [vmem:[#allocation3 + $0xf0] ss:$24 sps:$4 sm:$0xff]  }
  0x64   :  { %494 = vmatpush1.bf16.msra.mxu0 %v8092_v6  ;;  %535 = vmatpush1.bf16.msra.mxu1 %v8094_v7  ;;  %v8106_v12 = vld [vmem:[#allocation3 + $0x128] ss:$24 sps:$4 sm:$0xff]   ;;  %v8113_v14 = vld [vmem:[#allocation3 + $0xfc] ss:$24 sps:$4 sm:$0xff]   ;;  %v7928_v16 = vmov 3   ;;  %v7929_v39 = vmov 4  }
  0x65   :  { %495 = vmatprep.subr.bf16.mxu0 %v8097_v8  ;;  %536 = vmatprep.subr.bf16.mxu1 %v8101_v9  ;;  %v8118_v17 = vld [vmem:[#allocation3 + $0xf8] ss:$24 sps:$4 sm:$0xff]   ;;  %v8123_v18 = vld [vmem:[#allocation3 + $0xc4] ss:$24 sps:$4 sm:$0xff]   ;;  %v8133_v21 = vld [vmem:[#allocation3 + $0xc8] ss:$24 sps:$4 sm:$0xff]  }
  0x66   :  { %v8084_v3 = vld [vmem:[%s11194_s19] sm:$0xff]  ;;  %v8135_v22 = vld [vmem:[#allocation3 + $0x94] ss:$24 sps:$4 sm:$0xff]   ;;  %v8140_v24 = vld [vmem:[#allocation3 + $0x90] ss:$24 sps:$4 sm:$0xff]   ;;  %v7930_v40 = vmov 5  }
  0x67   :  { %247 = vperm.xlu0 %7045, %v8084_v3   ;;  %747 = vperm.xlu1 %7047, %v8084_v3   ;;  %v8126_v19 = vld [vmem:[#allocation3 + $0xcc] ss:$24 sps:$4 sm:$0xff]   ;;  %v8129_v20 = vld [vmem:[#allocation3 + $0xc0] ss:$24 sps:$4 sm:$0xff]   ;;  %v8138_v23 = vld [vmem:[#allocation3 + $0x9c] ss:$24 sps:$4 sm:$0xff]  }
  0x68   :  { %496 = vmatpush1.bf16.msra.mxu0 %v8104_v11  ;;  %537 = vmatpush1.bf16.msra.mxu1 %v8106_v12  ;;  %v8143_v25 = vld [vmem:[#allocation3 + $0x98] ss:$24 sps:$4 sm:$0xff]   ;;  %v8147_v26 = vld [vmem:[#allocation3 + $0x64] ss:$24 sps:$4 sm:$0xff]   ;;  %v8157_v29 = vld [vmem:[#allocation3 + $0x68] ss:$24 sps:$4 sm:$0xff]  }
  0x69   :  { %497 = vmatprep.subr.bf16.mxu0 %v8110_v13  ;;  %538 = vmatprep.subr.bf16.mxu1 %v8113_v14  ;;  %v8150_v27 = vld [vmem:[#allocation3 + $0x6c] ss:$24 sps:$4 sm:$0xff]   ;;  %v8153_v28 = vld [vmem:[#allocation3 + $0x60] ss:$24 sps:$4 sm:$0xff]   ;;  %v8162_v31 = vld [vmem:[#allocation3 + $0x3c] ss:$24 sps:$4 sm:$0xff]  }
  0x6a   :  { %v8159_v30 = vld [vmem:[#allocation3 + $0x34] ss:$24 sps:$4 sm:$0xff]   ;;  %v8165_v32 = vld [vmem:[#allocation3 + $0x30] ss:$24 sps:$4 sm:$0xff]   ;;  %v8171_v34 = vld [vmem:[#allocation3 + $0x4] ss:$24 sps:$4 sm:$0xff]  }
  0x6b   :  { %7046 = vset.pattern.permute.xlu0 %v7927_v10  ;;  %7048 = vset.pattern.permute.xlu1 %v7928_v16  ;;  %v8169_v33 = vld [vmem:[#allocation3 + $0x38] ss:$24 sps:$4 sm:$0xff]   ;;  %v8174_v35 = vld [vmem:[#allocation3 + $0xc] ss:$24 sps:$4 sm:$0xff]   ;;  %v8181_v37 = vld [vmem:[#allocation3 + $0x8] ss:$24 sps:$4 sm:$0xff]  }
  0x6c   :  { %617 = vperm.xlu0 %7046, %v8084_v3   ;;  %877 = vperm.xlu1 %7048, %v8084_v3   ;;  %v8177_v36 = vld [vmem:[#allocation3] ss:$24 sps:$4 sm:$0xff]   ;;  %v8183_v38 = vld [vmem:[#allocation3 + $0x164] ss:$24 sps:$4 sm:$0xff]   ;;  %v8194_v42 = vand.u32 127, %v10952_v41  ;;  %v7932_v63 = vmov 6  }
  0x6d   :  { %498 = vmatpush1.bf16.msra.mxu0 %v8115_v15  ;;  %539 = vmatpush1.bf16.msra.mxu1 %v8118_v17  ;;  %v8196_v44 = vld [vmem:[#allocation3 + $0x160] ss:$24 sps:$4 sm:$0xff]   ;;  %v8199_v45 = vld [vmem:[#allocation3 + $0x134] ss:$24 sps:$4 sm:$0xff]   ;;  %v10955_v47 = vmov 1.0|1.0  }
  0x6e   :  { %499 = vmatprep.subr.bf16.mxu0 %v8123_v18  ;;  %540 = vmatprep.subr.bf16.mxu1 %v8126_v19  ;;  %v8213_v48 = vld [vmem:[#allocation3 + $0x130] ss:$24 sps:$4 sm:$0xff]   ;;  %v8217_v49 = vld [vmem:[#allocation3 + $0x104] ss:$24 sps:$4 sm:$0xff]   ;;  %v8223_v50 = vld [vmem:[#allocation3 + $0x100] ss:$24 sps:$4 sm:$0xff]  }
  0x6f   :  { %v8227_v51 = vld [vmem:[#allocation3 + $0xd4] ss:$24 sps:$4 sm:$0xff]   ;;  %v8231_v52 = vld [vmem:[#allocation3 + $0xd0] ss:$24 sps:$4 sm:$0xff]   ;;  %v8235_v53 = vld [vmem:[#allocation3 + $0xa4] ss:$24 sps:$4 sm:$0xff]  }
  0x70   :  { %7049 = vset.pattern.permute.xlu1 %v7929_v39  ;;  %7050 = vset.pattern.permute.xlu0 %v7930_v40  ;;  %v8239_v54 = vld [vmem:[#allocation3 + $0xa0] ss:$24 sps:$4 sm:$0xff]   ;;  %v8243_v55 = vld [vmem:[#allocation3 + $0x74] ss:$24 sps:$4 sm:$0xff]   ;;  %v8247_v56 = vld [vmem:[#allocation3 + $0x70] ss:$24 sps:$4 sm:$0xff]  }
  0x71   :  { %500 = vmatpush1.bf16.msra.mxu0 %v8129_v20  ;;  %541 = vmatpush1.bf16.msra.mxu1 %v8133_v21  ;;  %v8251_v57 = vld [vmem:[#allocation3 + $0x44] ss:$24 sps:$4 sm:$0xff]   ;;  %v8255_v58 = vld [vmem:[#allocation3 + $0x40] ss:$24 sps:$4 sm:$0xff]   ;;  %v8259_v59 = vld [vmem:[#allocation3 + $0x14] ss:$24 sps:$4 sm:$0xff]  }
  0x72   :  { %501 = vmatprep.subr.bf16.mxu0 %v8135_v22  ;;  %542 = vmatprep.subr.bf16.mxu1 %v8138_v23  ;;  %v8263_v61 = vld [vmem:[#allocation3 + $0x10] ss:$24 sps:$4 sm:$0xff]   ;;  %v7933_v0 = vmov 7   ;;  %v8597_v39 = vld [vmem:[#allocation3 + $0xfc] ss:$24 sps:$4 sm:$0xff]   ;;  %s7937_s14 = smov [#allocation15]  }
  0x73   :  { %1007 = vperm.xlu1 %7049, %v8084_v3   ;;  %1137 = vperm.xlu0 %7050, %v8084_v3   ;;  %v8605_v46 = vld [vmem:[#allocation3 + $0xcc] ss:$24 sps:$4 sm:$0xff]   ;;  %v8613_v62 = vld [vmem:[#allocation3 + $0x9c] ss:$24 sps:$4 sm:$0xff]   ;;  %v7558_v41 = vld [vmem:[#allocation3] ss:$24 sps:$4 sm:$0xff]  }
  0x74   :  { %v8637_v16 = vld [vmem:[#allocation3 + $0xc] ss:$24 sps:$4 sm:$0xff]   ;;  %s6311_s29 = sshll.u32 %s7937_s14, 4  ;;  %s6312_s29 = int_to_ptr.vmem [resolvable:$true] %s6311_s29 }
  0x75   :  { %502 = vmatpush1.bf16.msra.mxu0 %v8140_v24  ;;  %543 = vmatpush1.bf16.msra.mxu1 %v8143_v25  ;;  %p7887_p8 = scmp.lt.s32.totalorder %s6312_s29, %s6312_s29 }
  0x76   :  { %503 = vmatprep.subr.bf16.mxu0 %v8147_v26  ;;  %544 = vmatprep.subr.bf16.mxu1 %v8150_v27 }
  0x77   :  { %7053 = vset.pattern.permute.xlu0 %v10953_v1  ;;  %7051 = vset.pattern.permute.xlu1 %v7932_v63  ;;  %v8617_v63 = vld [vmem:[#allocation3 + $0x98] ss:$24 sps:$4 sm:$0xff]  }
  0x78   :  { %1267 = vperm.xlu1 %7051, %v8084_v3  }
  0x79   :  { %504 = vmatpush1.bf16.msra.mxu0 %v8153_v28  ;;  %545 = vmatpush1.bf16.msra.mxu1 %v8157_v29 }
  0x7a   :  { %505 = vmatprep.subr.bf16.mxu0 %v8159_v30  ;;  %546 = vmatprep.subr.bf16.mxu1 %v8162_v31 }
  0x7c   :  { %7052 = vset.pattern.permute.xlu1 %v7933_v0  ;;  %v8621_v0 = vld [vmem:[#allocation3 + $0x6c] ss:$24 sps:$4 sm:$0xff]  }
  0x7d   :  { %506 = vmatpush1.bf16.msra.mxu0 %v8165_v32  ;;  %547 = vmatpush1.bf16.msra.mxu1 %v8169_v33 }
  0x7e   :  { %507 = vmatprep.subr.bf16.mxu0 %v8171_v34  ;;  %548 = vmatprep.subr.bf16.mxu1 %v8174_v35 }
  0x7f   :  { %1397 = vperm.xlu1 %7052, %v8084_v3   ;;  %v8629_v3 = vld [vmem:[#allocation3 + $0x3c] ss:$24 sps:$4 sm:$0xff]  }
  0x81   :  { %508 = vmatpush1.bf16.msra.mxu0 %v8177_v36  ;;  %549 = vmatpush1.bf16.msra.mxu1 %v8181_v37 }
  0x82   :  { %575 = vmatprep.subr.bf16.mxu0 %v8183_v38  ;;  %623 = vmatprep.subr.bf16.mxu1 %v8087_v4 }
  0x83   :  { %7054 = vset.pattern.permute.xlu1 %v10953_v1 }
  0xe2   :  { %v248_v43 = vpop.permute.xlu0 %247  ;;  %v748_v2 = vpop.permute.xlu1 %747 }
  0xe3   :  { %vm249_vm0 = vcmp.eq.s32.totalorder %v248_v43, %v8194_v42  ;;  %vm749_vm4 = vcmp.eq.s32.totalorder %v748_v2, %v8194_v42  ;;  %v8601_v43 = vld [vmem:[#allocation3 + $0xf8] ss:$24 sps:$4 sm:$0xff]   ;;  %v8625_v2 = vld [vmem:[#allocation3 + $0x68] ss:$24 sps:$4 sm:$0xff]  }
  0xe4   :  { %vm8201_vm1 = vmpackc.low %vm249_vm0, %vm249_vm0  ;;  %vm4666_vm0 = vcmask 261120  }
  0xe5   :  { %6373 = vmatmul.mubr.msk.bf16.vlgmr.msra.gmra.mxu0 %vm8201_vm1, %v10955_v47  ;;  %6375 = vmatmul.mubr.msk.bf16.vlgmr.msra.gmra.mxu1 %vm8201_vm1, %v10955_v47  ;;  %vm8356_vm5 = vmpackc.low %vm749_vm4, %vm749_vm4  ;;  %vm5328_vm4 = vcmask 130048  }
  0xe6   :  { %576 = vmatpush1.bf16.msra.mxu0 %v8196_v44  ;;  %624 = vmatpush1.bf16.msra.mxu1 %v8092_v6 }
  0xe7   :  { %577 = vmatprep.subr.bf16.mxu0 %v8199_v45  ;;  %625 = vmatprep.subr.bf16.mxu1 %v8097_v8  ;;  %v618_v60 = vpop.permute.xlu0 %617  ;;  %v878_v10 = vpop.permute.xlu1 %877 }
  0xe8   :  { %607 = vmatprep.mubr.bf16.mxu0 %v10953_v1  ;;  %655 = vmatprep.mubr.bf16.mxu1 %v10953_v1  ;;  %vm619_vm2 = vcmp.eq.s32.totalorder %v618_v60, %v8194_v42  ;;  %vm879_vm6 = vcmp.eq.s32.totalorder %v878_v10, %v8194_v42  ;;  %v8609_v60 = vld [vmem:[#allocation3 + $0xc8] ss:$24 sps:$4 sm:$0xff]   ;;  %v8633_v10 = vld [vmem:[#allocation3 + $0x38] ss:$24 sps:$4 sm:$0xff]  }
  0xe9   :  { %vm8270_vm3 = vmpackc.low %vm619_vm2, %vm619_vm2 }
  0xea   :  { %578 = vmatpush1.bf16.msra.mxu0 %v8213_v48  ;;  %626 = vmatpush1.bf16.msra.mxu1 %v8104_v11  ;;  %vm8403_vm7 = vmpackc.low %vm879_vm6, %vm879_vm6 }
  0xeb   :  { %579 = vmatprep.subr.bf16.mxu0 %v8217_v49  ;;  %627 = vmatprep.subr.bf16.mxu1 %v8110_v13 }
  0xee   :  { %580 = vmatpush1.bf16.msra.mxu0 %v8223_v50  ;;  %628 = vmatpush1.bf16.msra.mxu1 %v8115_v15 }
  0xef   :  { %581 = vmatprep.subr.bf16.mxu0 %v8227_v51  ;;  %629 = vmatprep.subr.bf16.mxu1 %v8123_v18 }
  0xf2   :  { %582 = vmatpush1.bf16.msra.mxu0 %v8231_v52  ;;  %630 = vmatpush1.bf16.msra.mxu1 %v8129_v20 }
  0xf3   :  { %583 = vmatprep.subr.bf16.mxu0 %v8235_v53  ;;  %631 = vmatprep.subr.bf16.mxu1 %v8135_v22 }
  0xf6   :  { %584 = vmatpush1.bf16.msra.mxu0 %v8239_v54  ;;  %632 = vmatpush1.bf16.msra.mxu1 %v8140_v24 }
  0xf7   :  { %585 = vmatprep.subr.bf16.mxu0 %v8243_v55  ;;  %633 = vmatprep.subr.bf16.mxu1 %v8147_v26 }
  0xfa   :  { %586 = vmatpush1.bf16.msra.mxu0 %v8247_v56  ;;  %634 = vmatpush1.bf16.msra.mxu1 %v8153_v28 }
  0xfb   :  { %587 = vmatprep.subr.bf16.mxu0 %v8251_v57  ;;  %635 = vmatprep.subr.bf16.mxu1 %v8159_v30 }
  0xfe   :  { %588 = vmatpush1.bf16.msra.mxu0 %v8255_v58  ;;  %636 = vmatpush1.bf16.msra.mxu1 %v8165_v32 }
  0xff   :  { %589 = vmatprep.subr.bf16.mxu0 %v8259_v59  ;;  %637 = vmatprep.subr.bf16.mxu1 %v8171_v34 }
 0x102   :  { %590 = vmatpush1.bf16.msra.mxu0 %v8263_v61  ;;  %638 = vmatpush1.bf16.msra.mxu1 %v8177_v36 }
 0x103   :  { %664 = vmatprep.subr.bf16.mxu0 %v8090_v5  ;;  %705 = vmatprep.subr.bf16.mxu1 %v8183_v38 }
 0x105   :  { %6377 = vmatmul.mubr.msk.bf16.vlgmr.msra.gmra.mxu0 %vm8201_vm1, %v10955_v47  ;;  %6380 = vmatmul.mubr.msk.bf16.vlgmr.msra.gmra.mxu1 %vm8270_vm3, %v10955_v47  ;;  %vm7936_vm1 = vmmov 0  }
 0x106   :  { %665 = vmatpush1.bf16.msra.mxu0 %v8094_v7  ;;  %706 = vmatpush1.bf16.msra.mxu1 %v8196_v44 }
 0x107   :  { %666 = vmatprep.subr.bf16.mxu0 %v8101_v9  ;;  %707 = vmatprep.subr.bf16.mxu1 %v8199_v45 }
 0x108   :  { %696 = vmatprep.mubr.bf16.mxu0 %v10953_v1  ;;  %737 = vmatprep.mubr.bf16.mxu1 %v10953_v1 }
 0x10a   :  { %667 = vmatpush1.bf16.msra.mxu0 %v8106_v12  ;;  %708 = vmatpush1.bf16.msra.mxu1 %v8213_v48 }
 0x10b   :  { %668 = vmatprep.subr.bf16.mxu0 %v8113_v14  ;;  %709 = vmatprep.subr.bf16.mxu1 %v8217_v49 }
 0x10e   :  { %669 = vmatpush1.bf16.msra.mxu0 %v8118_v17  ;;  %710 = vmatpush1.bf16.msra.mxu1 %v8223_v50 }
 0x10f   :  { %670 = vmatprep.subr.bf16.mxu0 %v8126_v19  ;;  %711 = vmatprep.subr.bf16.mxu1 %v8227_v51 }
 0x112   :  { %671 = vmatpush1.bf16.msra.mxu0 %v8133_v21  ;;  %712 = vmatpush1.bf16.msra.mxu1 %v8231_v52 }
 0x113   :  { %672 = vmatprep.subr.bf16.mxu0 %v8138_v23  ;;  %713 = vmatprep.subr.bf16.mxu1 %v8235_v53 }
 0x116   :  { %673 = vmatpush1.bf16.msra.mxu0 %v8143_v25  ;;  %714 = vmatpush1.bf16.msra.mxu1 %v8239_v54 }
 0x117   :  { %674 = vmatprep.subr.bf16.mxu0 %v8150_v27  ;;  %715 = vmatprep.subr.bf16.mxu1 %v8243_v55 }
 0x11a   :  { %675 = vmatpush1.bf16.msra.mxu0 %v8157_v29  ;;  %716 = vmatpush1.bf16.msra.mxu1 %v8247_v56 }
 0x11b   :  { %676 = vmatprep.subr.bf16.mxu0 %v8162_v31  ;;  %717 = vmatprep.subr.bf16.mxu1 %v8251_v57 }
 0x11e   :  { %677 = vmatpush1.bf16.msra.mxu0 %v8169_v33  ;;  %718 = vmatpush1.bf16.msra.mxu1 %v8255_v58 }
 0x11f   :  { %678 = vmatprep.subr.bf16.mxu0 %v8174_v35  ;;  %719 = vmatprep.subr.bf16.mxu1 %v8259_v59 }
 0x122   :  { %679 = vmatpush1.bf16.msra.mxu0 %v8181_v37  ;;  %720 = vmatpush1.bf16.msra.mxu1 %v8263_v61 }
 0x123   :  { %753 = vmatprep.subr.bf16.mxu0 %v8087_v4  ;;  %794 = vmatprep.subr.bf16.mxu1 %v8090_v5 }
 0x125   :  { %6382 = vmatmul.mubr.msk.bf16.vlgmr.msra.gmra.mxu0 %vm8270_vm3, %v10955_v47  ;;  %6384 = vmatmul.mubr.msk.bf16.vlgmr.msra.gmra.mxu1 %vm8270_vm3, %v10955_v47 }
 0x126   :  { %754 = vmatpush1.bf16.msra.mxu0 %v8092_v6  ;;  %795 = vmatpush1.bf16.msra.mxu1 %v8094_v7 }
 0x127   :  { %755 = vmatprep.subr.bf16.mxu0 %v8097_v8  ;;  %796 = vmatprep.subr.bf16.mxu1 %v8101_v9 }
 0x128   :  { %785 = vmatprep.mubr.bf16.mxu0 %v10953_v1  ;;  %826 = vmatprep.mubr.bf16.mxu1 %v10953_v1 }
 0x12a   :  { %756 = vmatpush1.bf16.msra.mxu0 %v8104_v11  ;;  %797 = vmatpush1.bf16.msra.mxu1 %v8106_v12 }
 0x12b   :  { %757 = vmatprep.subr.bf16.mxu0 %v8110_v13  ;;  %798 = vmatprep.subr.bf16.mxu1 %v8113_v14 }
 0x12e   :  { %758 = vmatpush1.bf16.msra.mxu0 %v8115_v15  ;;  %799 = vmatpush1.bf16.msra.mxu1 %v8118_v17 }
 0x12f   :  { %759 = vmatprep.subr.bf16.mxu0 %v8123_v18  ;;  %800 = vmatprep.subr.bf16.mxu1 %v8126_v19 }
 0x132   :  { %760 = vmatpush1.bf16.msra.mxu0 %v8129_v20  ;;  %801 = vmatpush1.bf16.msra.mxu1 %v8133_v21 }
 0x133   :  { %761 = vmatprep.subr.bf16.mxu0 %v8135_v22  ;;  %802 = vmatprep.subr.bf16.mxu1 %v8138_v23 }
 0x136   :  { %762 = vmatpush1.bf16.msra.mxu0 %v8140_v24  ;;  %803 = vmatpush1.bf16.msra.mxu1 %v8143_v25 }
 0x137   :  { %763 = vmatprep.subr.bf16.mxu0 %v8147_v26  ;;  %804 = vmatprep.subr.bf16.mxu1 %v8150_v27 }
 0x13a   :  { %764 = vmatpush1.bf16.msra.mxu0 %v8153_v28  ;;  %805 = vmatpush1.bf16.msra.mxu1 %v8157_v29 }
 0x13b   :  { %765 = vmatprep.subr.bf16.mxu0 %v8159_v30  ;;  %806 = vmatprep.subr.bf16.mxu1 %v8162_v31 }
 0x13e   :  { %766 = vmatpush1.bf16.msra.mxu0 %v8165_v32  ;;  %807 = vmatpush1.bf16.msra.mxu1 %v8169_v33 }
 0x13f   :  { %767 = vmatprep.subr.bf16.mxu0 %v8171_v34  ;;  %808 = vmatprep.subr.bf16.mxu1 %v8174_v35 }
 0x142   :  { %768 = vmatpush1.bf16.msra.mxu0 %v8177_v36  ;;  %809 = vmatpush1.bf16.msra.mxu1 %v8181_v37 }
 0x143   :  { %835 = vmatprep.subr.bf16.mxu0 %v8183_v38  ;;  %883 = vmatprep.subr.bf16.mxu1 %v8087_v4 }
 0x145   :  { %6387 = vmatmul.mubr.msk.bf16.vlgmr.msra.gmra.mxu0 %vm8356_vm5, %v10955_v47  ;;  %6389 = vmatmul.mubr.msk.bf16.vlgmr.msra.gmra.mxu1 %vm8356_vm5, %v10955_v47 }
 0x146   :  { %836 = vmatpush1.bf16.msra.mxu0 %v8196_v44  ;;  %884 = vmatpush1.bf16.msra.mxu1 %v8092_v6 }
 0x147   :  { %837 = vmatprep.subr.bf16.mxu0 %v8199_v45  ;;  %885 = vmatprep.subr.bf16.mxu1 %v8097_v8 }
 0x148   :  { %867 = vmatprep.mubr.bf16.mxu0 %v10953_v1  ;;  %915 = vmatprep.mubr.bf16.mxu1 %v10953_v1 }
 0x14a   :  { %838 = vmatpush1.bf16.msra.mxu0 %v8213_v48  ;;  %886 = vmatpush1.bf16.msra.mxu1 %v8104_v11 }
 0x14b   :  { %839 = vmatprep.subr.bf16.mxu0 %v8217_v49  ;;  %887 = vmatprep.subr.bf16.mxu1 %v8110_v13 }
 0x14e   :  { %840 = vmatpush1.bf16.msra.mxu0 %v8223_v50  ;;  %888 = vmatpush1.bf16.msra.mxu1 %v8115_v15 }
 0x14f   :  { %841 = vmatprep.subr.bf16.mxu0 %v8227_v51  ;;  %889 = vmatprep.subr.bf16.mxu1 %v8123_v18 }
 0x152   :  { %842 = vmatpush1.bf16.msra.mxu0 %v8231_v52  ;;  %890 = vmatpush1.bf16.msra.mxu1 %v8129_v20 }
 0x153   :  { %843 = vmatprep.subr.bf16.mxu0 %v8235_v53  ;;  %891 = vmatprep.subr.bf16.mxu1 %v8135_v22 }
 0x156   :  { %844 = vmatpush1.bf16.msra.mxu0 %v8239_v54  ;;  %892 = vmatpush1.bf16.msra.mxu1 %v8140_v24 }
 0x157   :  { %845 = vmatprep.subr.bf16.mxu0 %v8243_v55  ;;  %893 = vmatprep.subr.bf16.mxu1 %v8147_v26 }
 0x15a   :  { %846 = vmatpush1.bf16.msra.mxu0 %v8247_v56  ;;  %894 = vmatpush1.bf16.msra.mxu1 %v8153_v28 }
 0x15b   :  { %847 = vmatprep.subr.bf16.mxu0 %v8251_v57  ;;  %895 = vmatprep.subr.bf16.mxu1 %v8159_v30 }
 0x15e   :  { %848 = vmatpush1.bf16.msra.mxu0 %v8255_v58  ;;  %896 = vmatpush1.bf16.msra.mxu1 %v8165_v32 }
 0x15f   :  { %849 = vmatprep.subr.bf16.mxu0 %v8259_v59  ;;  %897 = vmatprep.subr.bf16.mxu1 %v8171_v34 }
 0x162   :  { %850 = vmatpush1.bf16.msra.mxu0 %v8263_v61  ;;  %898 = vmatpush1.bf16.msra.mxu1 %v8177_v36 }
 0x163   :  { %924 = vmatprep.subr.bf16.mxu0 %v8090_v5  ;;  %965 = vmatprep.subr.bf16.mxu1 %v8183_v38 }
 0x165   :  { %6391 = vmatmul.mubr.msk.bf16.vlgmr.msra.gmra.mxu0 %vm8356_vm5, %v10955_v47  ;;  %6394 = vmatmul.mubr.msk.bf16.vlgmr.msra.gmra.mxu1 %vm8403_vm7, %v10955_v47 }
 0x166   :  { %925 = vmatpush1.bf16.msra.mxu0 %v8094_v7  ;;  %966 = vmatpush1.bf16.msra.mxu1 %v8196_v44 }
 0x167   :  { %926 = vmatprep.subr.bf16.mxu0 %v8101_v9  ;;  %967 = vmatprep.subr.bf16.mxu1 %v8199_v45 }
 0x168   :  { %956 = vmatprep.mubr.bf16.mxu0 %v10953_v1  ;;  %997 = vmatprep.mubr.bf16.mxu1 %v10953_v1 }
 0x16a   :  { %927 = vmatpush1.bf16.msra.mxu0 %v8106_v12  ;;  %968 = vmatpush1.bf16.msra.mxu1 %v8213_v48 }
 0x16b   :  { %928 = vmatprep.subr.bf16.mxu0 %v8113_v14  ;;  %969 = vmatprep.subr.bf16.mxu1 %v8217_v49 }
 0x16e   :  { %929 = vmatpush1.bf16.msra.mxu0 %v8118_v17  ;;  %970 = vmatpush1.bf16.msra.mxu1 %v8223_v50 }
 0x16f   :  { %930 = vmatprep.subr.bf16.mxu0 %v8126_v19  ;;  %971 = vmatprep.subr.bf16.mxu1 %v8227_v51 }
 0x172   :  { %931 = vmatpush1.bf16.msra.mxu0 %v8133_v21  ;;  %972 = vmatpush1.bf16.msra.mxu1 %v8231_v52 }
 0x173   :  { %932 = vmatprep.subr.bf16.mxu0 %v8138_v23  ;;  %973 = vmatprep.subr.bf16.mxu1 %v8235_v53 }
 0x176   :  { %933 = vmatpush1.bf16.msra.mxu0 %v8143_v25  ;;  %974 = vmatpush1.bf16.msra.mxu1 %v8239_v54 }
 0x177   :  { %934 = vmatprep.subr.bf16.mxu0 %v8150_v27  ;;  %975 = vmatprep.subr.bf16.mxu1 %v8243_v55 }
 0x17a   :  { %935 = vmatpush1.bf16.msra.mxu0 %v8157_v29  ;;  %976 = vmatpush1.bf16.msra.mxu1 %v8247_v56 }
 0x17b   :  { %936 = vmatprep.subr.bf16.mxu0 %v8162_v31  ;;  %977 = vmatprep.subr.bf16.mxu1 %v8251_v57 }
 0x17e   :  { %937 = vmatpush1.bf16.msra.mxu0 %v8169_v33  ;;  %978 = vmatpush1.bf16.msra.mxu1 %v8255_v58 }
 0x17f   :  { %938 = vmatprep.subr.bf16.mxu0 %v8174_v35  ;;  %979 = vmatprep.subr.bf16.mxu1 %v8259_v59 }
 0x182   :  { %939 = vmatpush1.bf16.msra.mxu0 %v8181_v37  ;;  %980 = vmatpush1.bf16.msra.mxu1 %v8263_v61 }
 0x183   :  { %1013 = vmatprep.subr.bf16.mxu0 %v8087_v4  ;;  %1054 = vmatprep.subr.bf16.mxu1 %v8090_v5  ;;  %v1008_v4 = vpop.permute.xlu1 %1007 }
 0x184   :  { %vm1009_vm8 = vcmp.eq.s32.totalorder %v1008_v4, %v8194_v42  ;;  %v8641_v4 = vld [vmem:[#allocation3 + $0x8] ss:$24 sps:$4 sm:$0xff]  }
 0x185   :  { %6396 = vmatmul.mubr.msk.bf16.vlgmr.msra.gmra.mxu0 %vm8403_vm7, %v10955_v47  ;;  %6398 = vmatmul.mubr.msk.bf16.vlgmr.msra.gmra.mxu1 %vm8403_vm7, %v10955_v47  ;;  %vm8486_vm9 = vmpackc.low %vm1009_vm8, %vm1009_vm8 }
 0x186   :  { %1014 = vmatpush1.bf16.msra.mxu0 %v8092_v6  ;;  %1055 = vmatpush1.bf16.msra.mxu1 %v8094_v7  ;;  %v8493_v6 = vld [vmem:[#allocation3 + $0x154] ss:$24 sps:$4 sm:$0xff]  }
 0x187   :  { %1015 = vmatprep.subr.bf16.mxu0 %v8097_v8  ;;  %1056 = vmatprep.subr.bf16.mxu1 %v8101_v9  ;;  %v8507_v9 = vld [vmem:[#allocation3 + $0x150] ss:$24 sps:$4 sm:$0xff]  }
 0x188   :  { %1045 = vmatprep.mubr.bf16.mxu0 %v10953_v1  ;;  %1086 = vmatprep.mubr.bf16.mxu1 %v10953_v1 }
 0x18a   :  { %1016 = vmatpush1.bf16.msra.mxu0 %v8104_v11  ;;  %1057 = vmatpush1.bf16.msra.mxu1 %v8106_v12 }
 0x18b   :  { %1017 = vmatprep.subr.bf16.mxu0 %v8110_v13  ;;  %1058 = vmatprep.subr.bf16.mxu1 %v8113_v14  ;;  %v8515_v13 = vld [vmem:[#allocation3 + $0x124] ss:$24 sps:$4 sm:$0xff]  }
 0x18e   :  { %1018 = vmatpush1.bf16.msra.mxu0 %v8115_v15  ;;  %1059 = vmatpush1.bf16.msra.mxu1 %v8118_v17  ;;  %v8521_v17 = vld [vmem:[#allocation3 + $0x120] ss:$24 sps:$4 sm:$0xff]  }
 0x18f   :  { %1019 = vmatprep.subr.bf16.mxu0 %v8123_v18  ;;  %1060 = vmatprep.subr.bf16.mxu1 %v8126_v19 }
 0x192   :  { %1020 = vmatpush1.bf16.msra.mxu0 %v8129_v20  ;;  %1061 = vmatpush1.bf16.msra.mxu1 %v8133_v21  ;;  %v8525_v20 = vld [vmem:[#allocation3 + $0xf4] ss:$24 sps:$4 sm:$0xff]   ;;  %v8529_v21 = vld [vmem:[#allocation3 + $0xf0] ss:$24 sps:$4 sm:$0xff]  }
 0x193   :  { %1021 = vmatprep.subr.bf16.mxu0 %v8135_v22  ;;  %1062 = vmatprep.subr.bf16.mxu1 %v8138_v23  ;;  %v8533_v22 = vld [vmem:[#allocation3 + $0xc4] ss:$24 sps:$4 sm:$0xff]   ;;  %v8537_v23 = vld [vmem:[#allocation3 + $0xc0] ss:$24 sps:$4 sm:$0xff]  }
 0x196   :  { %1022 = vmatpush1.bf16.msra.mxu0 %v8140_v24  ;;  %1063 = vmatpush1.bf16.msra.mxu1 %v8143_v25  ;;  %v8541_v24 = vld [vmem:[#allocation3 + $0x94] ss:$24 sps:$4 sm:$0xff]   ;;  %v8545_v25 = vld [vmem:[#allocation3 + $0x90] ss:$24 sps:$4 sm:$0xff]  }
 0x197   :  { %1023 = vmatprep.subr.bf16.mxu0 %v8147_v26  ;;  %1064 = vmatprep.subr.bf16.mxu1 %v8150_v27  ;;  %v1138_v27 = vpop.permute.xlu0 %1137 }
 0x198   :  { %vm1139_vm10 = vcmp.eq.s32.totalorder %v1138_v27, %v8194_v42 }
 0x199   :  { %vm8561_vm11 = vmpackc.low %vm1139_vm10, %vm1139_vm10 }
 0x19a   :  { %1024 = vmatpush1.bf16.msra.mxu0 %v8153_v28  ;;  %1065 = vmatpush1.bf16.msra.mxu1 %v8157_v29 }
 0x19b   :  { %1025 = vmatprep.subr.bf16.mxu0 %v8159_v30  ;;  %1066 = vmatprep.subr.bf16.mxu1 %v8162_v31  ;;  %v8579_v31 = vld [vmem:[#allocation3 + $0x158] ss:$24 sps:$4 sm:$0xff]  }
 0x19e   :  { %1026 = vmatpush1.bf16.msra.mxu0 %v8165_v32  ;;  %1067 = vmatpush1.bf16.msra.mxu1 %v8169_v33  ;;  %v8585_v33 = vld [vmem:[#allocation3 + $0x12c] ss:$24 sps:$4 sm:$0xff]  }
 0x19f   :  { %1027 = vmatprep.subr.bf16.mxu0 %v8171_v34  ;;  %1068 = vmatprep.subr.bf16.mxu1 %v8174_v35 }
 0x1a2   :  { %1028 = vmatpush1.bf16.msra.mxu0 %v8177_v36  ;;  %1069 = vmatpush1.bf16.msra.mxu1 %v8181_v37  ;;  %v8593_v37 = vld [vmem:[#allocation3 + $0x128] ss:$24 sps:$4 sm:$0xff]  }
 0x1a3   :  { %1095 = vmatprep.subr.bf16.mxu0 %v8183_v38  ;;  %1143 = vmatprep.subr.bf16.mxu1 %v8493_v6 }
 0x1a5   :  { %6401 = vmatmul.mubr.msk.bf16.vlgmr.msra.gmra.mxu0 %vm8486_vm9, %v10955_v47  ;;  %6403 = vmatmul.mubr.msk.bf16.vlgmr.msra.gmra.mxu1 %vm8486_vm9, %v10955_v47  ;;  %v8502_v7 = vpop.f32.mrf.mxu0  ;;  %v8504_v8 = vpop.f32.mrf.mxu1 }
 0x1a6   :  { %11205 = vst [vmem:[#allocation21_spill] sm:$0xff] %v8502_v7  ;;  %11206 = vst [vmem:[#allocation22_spill] sm:$0xff] %v8504_v8  ;;  %1096 = vmatpush1.bf16.msra.mxu0 %v8196_v44  ;;  %1144 = vmatpush1.bf16.msra.mxu1 %v8507_v9  ;;  %v8987_v8 = vld [vmem:[#allocation8 + $0x184] ss:$24 sps:$4 sm:$0xff]   ;;  %v8993_v7 = vld [vmem:[#allocation8 + $0x180] ss:$24 sps:$4 sm:$0xff]  }
 0x1a7   :  { %v8510_v11 = vpop.f32.mrf.mxu0  ;;  %v8512_v12 = vpop.f32.mrf.mxu1  ;;  %1097 = vmatprep.subr.bf16.mxu0 %v8199_v45  ;;  %1145 = vmatprep.subr.bf16.mxu1 %v8515_v13  ;;  %11279 = vst [vmem:[#allocation87_spill] sm:$0xff] %v8993_v7 }
 0x1a8   :  { %11207 = vst [vmem:[#allocation23_spill] sm:$0xff] %v8510_v11  ;;  %11208 = vst [vmem:[#allocation24_spill] sm:$0xff] %v8512_v12  ;;  %1127 = vmatprep.mubr.bf16.mxu0 %v10953_v1  ;;  %1175 = vmatprep.mubr.bf16.mxu1 %v10953_v1  ;;  %v8983_v12 = vld [vmem:[#allocation8 + $0x1b8] ss:$24 sps:$4 sm:$0xff]   ;;  %v8989_v11 = vld [vmem:[#allocation8 + $0x18c] ss:$24 sps:$4 sm:$0xff]  }
 0x1a9   :  { %v531_v14 = vpop.f32.mrf.mxu0  ;;  %v572_v15 = vpop.f32.mrf.mxu1  ;;  %11277 = vst [vmem:[#allocation85_spill] sm:$0xff] %v8983_v12  ;;  %11278 = vst [vmem:[#allocation86_spill] sm:$0xff] %v8989_v11 }
 0x1aa   :  { %1098 = vmatpush1.bf16.msra.mxu0 %v8213_v48  ;;  %1146 = vmatpush1.bf16.msra.mxu1 %v8521_v17 }
 0x1ab   :  { %v532_v18 = vpop.f32.mrf.mxu0  ;;  %v573_v19 = vpop.f32.mrf.mxu1  ;;  %1099 = vmatprep.subr.bf16.mxu0 %v8217_v49  ;;  %1147 = vmatprep.subr.bf16.mxu1 %v8525_v20 }
 0x1ae   :  { %1100 = vmatpush1.bf16.msra.mxu0 %v8223_v50  ;;  %1148 = vmatpush1.bf16.msra.mxu1 %v8529_v21 }
 0x1af   :  { %1101 = vmatprep.subr.bf16.mxu0 %v8227_v51  ;;  %1149 = vmatprep.subr.bf16.mxu1 %v8533_v22 }
 0x1b2   :  { %1102 = vmatpush1.bf16.msra.mxu0 %v8231_v52  ;;  %1150 = vmatpush1.bf16.msra.mxu1 %v8537_v23 }
 0x1b3   :  { %1103 = vmatprep.subr.bf16.mxu0 %v8235_v53  ;;  %1151 = vmatprep.subr.bf16.mxu1 %v8541_v24 }
 0x1b6   :  { %1104 = vmatpush1.bf16.msra.mxu0 %v8239_v54  ;;  %1152 = vmatpush1.bf16.msra.mxu1 %v8545_v25 }
 0x1b7   :  { %1105 = vmatprep.subr.bf16.mxu0 %v8243_v55  ;;  %1153 = vmatprep.subr.bf16.mxu1 %v8147_v26 }
 0x1ba   :  { %1106 = vmatpush1.bf16.msra.mxu0 %v8247_v56  ;;  %1154 = vmatpush1.bf16.msra.mxu1 %v8153_v28  ;;  %v8565_v28 = vld [vmem:[#allocation3 + $0x15c] ss:$24 sps:$4 sm:$0xff]  }
 0x1bb   :  { %1107 = vmatprep.subr.bf16.mxu0 %v8251_v57  ;;  %1155 = vmatprep.subr.bf16.mxu1 %v8159_v30 }
 0x1be   :  { %1108 = vmatpush1.bf16.msra.mxu0 %v8255_v58  ;;  %1156 = vmatpush1.bf16.msra.mxu1 %v8165_v32 }
 0x1bf   :  { %1109 = vmatprep.subr.bf16.mxu0 %v8259_v59  ;;  %1157 = vmatprep.subr.bf16.mxu1 %v8171_v34 }
 0x1c2   :  { %1110 = vmatpush1.bf16.msra.mxu0 %v8263_v61  ;;  %1158 = vmatpush1.bf16.msra.mxu1 %v8177_v36 }
 0x1c3   :  { %1184 = vmatprep.subr.bf16.mxu0 %v8565_v28  ;;  %1225 = vmatprep.subr.bf16.mxu1 %v8183_v38 }
 0x1c5   :  { %v8569_v29 = vpop.f32.mrf.mxu0  ;;  %6405 = vmatmul.mubr.msk.bf16.vlgmr.msra.gmra.mxu0 %vm8486_vm9, %v10955_v47  ;;  %6408 = vmatmul.mubr.msk.bf16.vlgmr.msra.gmra.mxu1 %vm8561_vm11, %v10955_v47  ;;  %v8577_v30 = vpop.f32.mrf.mxu1 }
 0x1c6   :  { %11211 = vst [vmem:[#allocation25_spill] sm:$0xff] %v8569_v29  ;;  %11212 = vst [vmem:[#allocation26_spill] sm:$0xff] %v8577_v30  ;;  %1185 = vmatpush1.bf16.msra.mxu0 %v8579_v31  ;;  %1226 = vmatpush1.bf16.msra.mxu1 %v8196_v44  ;;  %v8975_v30 = vld [vmem:[#allocation8 + $0x1b4] ss:$24 sps:$4 sm:$0xff]   ;;  %v8981_v29 = vld [vmem:[#allocation8 + $0x1b0] ss:$24 sps:$4 sm:$0xff]  }
 0x1c7   :  { %v8583_v32 = vpop.f32.mrf.mxu0  ;;  %1186 = vmatprep.subr.bf16.mxu0 %v8585_v33  ;;  %1227 = vmatprep.subr.bf16.mxu1 %v8199_v45  ;;  %v8589_v34 = vpop.f32.mrf.mxu1  ;;  %11274 = vst [vmem:[#allocation82_spill] sm:$0xff] %v8975_v30  ;;  %11276 = vst [vmem:[#allocation84_spill] sm:$0xff] %v8981_v29 }
 0x1c8   :  { %11213 = vst [vmem:[#allocation27_spill] sm:$0xff] %v8583_v32  ;;  %11214 = vst [vmem:[#allocation28_spill] sm:$0xff] %v8589_v34  ;;  %1216 = vmatprep.mubr.bf16.mxu0 %v10953_v1  ;;  %1257 = vmatprep.mubr.bf16.mxu1 %v10953_v1  ;;  %v8971_v34 = vld [vmem:[#allocation8 + $0x1e8] ss:$24 sps:$4 sm:$0xff]   ;;  %v8977_v32 = vld [vmem:[#allocation8 + $0x1bc] ss:$24 sps:$4 sm:$0xff]  }
 0x1c9   :  { %v613_v35 = vpop.f32.mrf.mxu0  ;;  %v661_v36 = vpop.f32.mrf.mxu1  ;;  %11273 = vst [vmem:[#allocation81_spill] sm:$0xff] %v8971_v34  ;;  %11275 = vst [vmem:[#allocation83_spill] sm:$0xff] %v8977_v32 }
 0x1ca   :  { %1187 = vmatpush1.bf16.msra.mxu0 %v8593_v37  ;;  %1228 = vmatpush1.bf16.msra.mxu1 %v8213_v48  ;;  %v7553_v36 = vld [vmem:[#allocation3 + $0x64] ss:$24 sps:$4 sm:$0xff]  }
 0x1cb   :  { %v614_v38 = vpop.f32.mrf.mxu0  ;;  %1188 = vmatprep.subr.bf16.mxu0 %v8597_v39  ;;  %1229 = vmatprep.subr.bf16.mxu1 %v8217_v49  ;;  %v662_v40 = vpop.f32.mrf.mxu1 }
 0x1cc   :  { %v7554_v38 = vld [vmem:[#allocation3 + $0x60] ss:$24 sps:$4 sm:$0xff]   ;;  %v7555_v40 = vld [vmem:[#allocation3 + $0x34] ss:$24 sps:$4 sm:$0xff]  }
 0x1ce   :  { %1189 = vmatpush1.bf16.msra.mxu0 %v8601_v43  ;;  %1230 = vmatpush1.bf16.msra.mxu1 %v8223_v50 }
 0x1cf   :  { %1190 = vmatprep.subr.bf16.mxu0 %v8605_v46  ;;  %1231 = vmatprep.subr.bf16.mxu1 %v8227_v51 }
 0x1d2   :  { %1191 = vmatpush1.bf16.msra.mxu0 %v8609_v60  ;;  %1232 = vmatpush1.bf16.msra.mxu1 %v8231_v52 }
 0x1d3   :  { %1192 = vmatprep.subr.bf16.mxu0 %v8613_v62  ;;  %1233 = vmatprep.subr.bf16.mxu1 %v8235_v53 }
 0x1d6   :  { %1193 = vmatpush1.bf16.msra.mxu0 %v8617_v63  ;;  %1234 = vmatpush1.bf16.msra.mxu1 %v8239_v54 }
 0x1d7   :  { %1194 = vmatprep.subr.bf16.mxu0 %v8621_v0  ;;  %1235 = vmatprep.subr.bf16.mxu1 %v8243_v55 }
 0x1da   :  { %1195 = vmatpush1.bf16.msra.mxu0 %v8625_v2  ;;  %1236 = vmatpush1.bf16.msra.mxu1 %v8247_v56 }
 0x1db   :  { %1196 = vmatprep.subr.bf16.mxu0 %v8629_v3  ;;  %1237 = vmatprep.subr.bf16.mxu1 %v8251_v57 }
 0x1de   :  { %1197 = vmatpush1.bf16.msra.mxu0 %v8633_v10  ;;  %1238 = vmatpush1.bf16.msra.mxu1 %v8255_v58 }
 0x1df   :  { %1198 = vmatprep.subr.bf16.mxu0 %v8637_v16  ;;  %1239 = vmatprep.subr.bf16.mxu1 %v8259_v59 }
 0x1e2   :  { %1199 = vmatpush1.bf16.msra.mxu0 %v8641_v4  ;;  %1240 = vmatpush1.bf16.msra.mxu1 %v8263_v61 }
 0x1e3   :  { %1273 = vmatprep.subr.bf16.mxu0 %v8493_v6  ;;  %1314 = vmatprep.subr.bf16.mxu1 %v8565_v28 }
 0x1e5   :  { %v8647_v5 = vpop.f32.mrf.mxu0  ;;  %v8649_v14 = vpop.f32.mrf.mxu1  ;;  %6410 = vmatmul.mubr.msk.bf16.vlgmr.msra.gmra.mxu0 %vm8561_vm11, %v10955_v47  ;;  %6412 = vmatmul.mubr.msk.bf16.vlgmr.msra.gmra.mxu1 %vm8561_vm11, %v10955_v47 }
 0x1e6   :  { %11215 = vst [vmem:[#allocation29_spill] sm:$0xff] %v8647_v5  ;;  %11216 = vst [vmem:[#allocation30_spill] sm:$0xff] %v8649_v14  ;;  %1274 = vmatpush1.bf16.msra.mxu0 %v8507_v9  ;;  %1315 = vmatpush1.bf16.msra.mxu1 %v8579_v31  ;;  %v11223_v14 = vmov 1.0|1.0  }
 0x1e7   :  { %v8659_v15 = vpop.f32.mrf.mxu0  ;;  %v8661_v18 = vpop.f32.mrf.mxu1  ;;  %1275 = vmatprep.subr.bf16.mxu0 %v8515_v13  ;;  %1316 = vmatprep.subr.bf16.mxu1 %v8585_v33 }
 0x1e8   :  { %11217 = vst [vmem:[#allocation31_spill] sm:$0xff] %v8659_v15  ;;  %11218 = vst [vmem:[#allocation32_spill] sm:$0xff] %v8661_v18  ;;  %1305 = vmatprep.mubr.bf16.mxu0 %v10953_v1  ;;  %1346 = vmatprep.mubr.bf16.mxu1 %v10953_v1  ;;  %v7559_v1 = vld [vmem:[#allocation3 + $0x164] ss:$24 sps:$4 sm:$0xff]  }
 0x1e9   :  { %v702_v19 = vpop.f32.mrf.mxu0  ;;  %v743_v27 = vpop.f32.mrf.mxu1 }
 0x1ea   :  { %1276 = vmatpush1.bf16.msra.mxu0 %v8521_v17  ;;  %1317 = vmatpush1.bf16.msra.mxu1 %v8593_v37  ;;  %v1268_v19 = vpop.permute.xlu1 %1267  ;;  %v7556_v27 = vld [vmem:[#allocation3 + $0x30] ss:$24 sps:$4 sm:$0xff]  }
 0x1eb   :  { %v703_v26 = vpop.f32.mrf.mxu0  ;;  %v744_v35 = vpop.f32.mrf.mxu1  ;;  %1277 = vmatprep.subr.bf16.mxu0 %v8525_v20  ;;  %1318 = vmatprep.subr.bf16.mxu1 %v8597_v39  ;;  %vm1269_vm12 = vcmp.eq.s32.totalorder %v1268_v19, %v8194_v42 }
 0x1ec   :  { %v7557_v26 = vld [vmem:[#allocation3 + $0x4] ss:$24 sps:$4 sm:$0xff]   ;;  %vm8687_vm13 = vmpackc.low %vm1269_vm12, %vm1269_vm12 }
 0x1ed   :  { %v8897_v35 = vld [vmem:[#allocation8 + $0x2dc] ss:$24 sps:$4 sm:$0xff]  }
 0x1ee   :  { %1278 = vmatpush1.bf16.msra.mxu0 %v8529_v21  ;;  %1319 = vmatpush1.bf16.msra.mxu1 %v8601_v43  ;;  %11255 = vst [vmem:[#allocation63_spill] sm:$0xff] %v8897_v35 }
 0x1ef   :  { %1279 = vmatprep.subr.bf16.mxu0 %v8533_v22  ;;  %1320 = vmatprep.subr.bf16.mxu1 %v8605_v46 }
 0x1f2   :  { %1280 = vmatpush1.bf16.msra.mxu0 %v8537_v23  ;;  %1321 = vmatpush1.bf16.msra.mxu1 %v8609_v60 }
 0x1f3   :  { %1281 = vmatprep.subr.bf16.mxu0 %v8541_v24  ;;  %1322 = vmatprep.subr.bf16.mxu1 %v8613_v62 }
 0x1f6   :  { %1282 = vmatpush1.bf16.msra.mxu0 %v8545_v25  ;;  %1323 = vmatpush1.bf16.msra.mxu1 %v8617_v63 }
 0x1f7   :  { %1283 = vmatprep.subr.bf16.mxu0 %v7553_v36  ;;  %1324 = vmatprep.subr.bf16.mxu1 %v8621_v0 }
 0x1fa   :  { %1284 = vmatpush1.bf16.msra.mxu0 %v7554_v38  ;;  %1325 = vmatpush1.bf16.msra.mxu1 %v8625_v2 }
 0x1fb   :  { %1285 = vmatprep.subr.bf16.mxu0 %v7555_v40  ;;  %1326 = vmatprep.subr.bf16.mxu1 %v8629_v3 }
 0x1fe   :  { %1286 = vmatpush1.bf16.msra.mxu0 %v7556_v27  ;;  %1327 = vmatpush1.bf16.msra.mxu1 %v8633_v10 }
 0x1ff   :  { %1287 = vmatprep.subr.bf16.mxu0 %v7557_v26  ;;  %1328 = vmatprep.subr.bf16.mxu1 %v8637_v16 }
 0x202   :  { %1288 = vmatpush1.bf16.msra.mxu0 %v7558_v41  ;;  %1329 = vmatpush1.bf16.msra.mxu1 %v8641_v4 }
 0x203   :  { %1355 = vmatprep.subr.bf16.mxu0 %v7559_v1  ;;  %1403 = vmatprep.subr.bf16.mxu1 %v8493_v6  ;;  %v11226_v6 = vmov 0  }
 0x205   :  { %v8693_v47 = vpop.f32.mrf.mxu0  ;;  %v8695_v18 = vpop.f32.mrf.mxu1  ;;  %6415 = vmatmul.mubr.msk.bf16.vlgmr.msra.gmra.mxu0 %vm8687_vm13, %v11223_v14  ;;  %6417 = vmatmul.mubr.msk.bf16.vlgmr.msra.gmra.mxu1 %vm8687_vm13, %v11223_v14 }
 0x206   :  { %11221 = vst [vmem:[#allocation33_spill] sm:$0xff] %v8693_v47  ;;  %11222 = vst [vmem:[#allocation34_spill] sm:$0xff] %v8695_v18  ;;  %1356 = vmatpush1.bf16.msra.mxu0 %v8196_v44  ;;  %1404 = vmatpush1.bf16.msra.mxu1 %v8507_v9 }
 0x207   :  { %v8705_v19 = vpop.f32.mrf.mxu0  ;;  %v8707_v15 = vpop.f32.mrf.mxu1  ;;  %1357 = vmatprep.subr.bf16.mxu0 %v8199_v45  ;;  %1405 = vmatprep.subr.bf16.mxu1 %v8515_v13  ;;  %v8907_v13 = vld [vmem:[#allocation8 + $0x2a4] ss:$24 sps:$4 sm:$0xff]  }
 0x208   :  { %11224 = vst [vmem:[#allocation35_spill] sm:$0xff] %v8705_v19  ;;  %11225 = vst [vmem:[#allocation36_spill] sm:$0xff] %v8707_v15  ;;  %1387 = vmatprep.mubr.bf16.mxu0 %v11226_v6  ;;  %1435 = vmatprep.mubr.bf16.mxu1 %v11226_v6  ;;  %v8965_v15 = vld [vmem:[#allocation8 + $0x1ec] ss:$24 sps:$4 sm:$0xff]   ;;  %v8969_v19 = vld [vmem:[#allocation8 + $0x1e0] ss:$24 sps:$4 sm:$0xff]  }
 0x209   :  { %v791_v18 = vpop.f32.mrf.mxu0  ;;  %v832_v47 = vpop.f32.mrf.mxu1  ;;  %11271 = vst [vmem:[#allocation79_spill] sm:$0xff] %v8965_v15  ;;  %11272 = vst [vmem:[#allocation80_spill] sm:$0xff] %v8969_v19 }
 0x20a   :  { %1358 = vmatpush1.bf16.msra.mxu0 %v8213_v48  ;;  %1406 = vmatpush1.bf16.msra.mxu1 %v8521_v17  ;;  %v1398_v47 = vpop.permute.xlu1 %1397  ;;  %v8879_v18 = vld [vmem:[#allocation8 + $0x38] ss:$24 sps:$4 sm:$0xff]  }
 0x20b   :  { %v792_v5 = vpop.f32.mrf.mxu0  ;;  %v833_v9 = vpop.f32.mrf.mxu1  ;;  %1359 = vmatprep.subr.bf16.mxu0 %v8217_v49  ;;  %1407 = vmatprep.subr.bf16.mxu1 %v8525_v20  ;;  %vm1399_vm14 = vcmp.eq.s32.totalorder %v1398_v47, %v8194_v42  ;;  %11249 = vst [vmem:[#allocation57_spill] sm:$0xff] %v8879_v18  ;;  %v8903_v47 = vld [vmem:[#allocation8 + $0x2d8] ss:$24 sps:$4 sm:$0xff]  }
 0x20c   :  { %vm8734_vm15 = vmpackc.low %vm1399_vm14, %vm1399_vm14  ;;  %v8873_v5 = vld [vmem:[#allocation8 + $0x3c] ss:$24 sps:$4 sm:$0xff]   ;;  %v8901_v9 = vld [vmem:[#allocation8 + $0x2d0] ss:$24 sps:$4 sm:$0xff]   ;;  %11256 = vst [vmem:[#allocation64_spill] sm:$0xff] %v8903_v47 }
 0x20d   :  { %11247 = vst [vmem:[#allocation55_spill] sm:$0xff] %v8873_v5 }
 0x20e   :  { %1360 = vmatpush1.bf16.msra.mxu0 %v8223_v50  ;;  %1408 = vmatpush1.bf16.msra.mxu1 %v8529_v21 }
 0x20f   :  { %1361 = vmatprep.subr.bf16.mxu0 %v8227_v51  ;;  %1409 = vmatprep.subr.bf16.mxu1 %v8533_v22 }
 0x212   :  { %1362 = vmatpush1.bf16.msra.mxu0 %v8231_v52  ;;  %1410 = vmatpush1.bf16.msra.mxu1 %v8537_v23 }
 0x213   :  { %1363 = vmatprep.subr.bf16.mxu0 %v8235_v53  ;;  %1411 = vmatprep.subr.bf16.mxu1 %v8541_v24 }
 0x216   :  { %1364 = vmatpush1.bf16.msra.mxu0 %v8239_v54  ;;  %1412 = vmatpush1.bf16.msra.mxu1 %v8545_v25  ;;  %v8829_v25 = vld [vmem:[#allocation8 + $0xf0] ss:$24 sps:$4 sm:$0xff]  }
 0x217   :  { %1365 = vmatprep.subr.bf16.mxu0 %v8243_v55  ;;  %1413 = vmatprep.subr.bf16.mxu1 %v7553_v36  ;;  %11239 = vst [vmem:[#allocation47_spill] sm:$0xff] %v8829_v25  ;;  %v8883_v36 = vld [vmem:[#allocation8 + $0x4] ss:$24 sps:$4 sm:$0xff]  }
 0x218   :  { %11250 = vst [vmem:[#allocation58_spill] sm:$0xff] %v8883_v36 }
 0x21a   :  { %1366 = vmatpush1.bf16.msra.mxu0 %v8247_v56  ;;  %1414 = vmatpush1.bf16.msra.mxu1 %v7554_v38  ;;  %v8885_v38 = vld [vmem:[#allocation8 + $0xc] ss:$24 sps:$4 sm:$0xff]  }
 0x21b   :  { %1367 = vmatprep.subr.bf16.mxu0 %v8251_v57  ;;  %1415 = vmatprep.subr.bf16.mxu1 %v7555_v40  ;;  %11251 = vst [vmem:[#allocation59_spill] sm:$0xff] %v8885_v38  ;;  %v8889_v40 = vld [vmem:[#allocation8] ss:$24 sps:$4 sm:$0xff]  }
 0x21c   :  { %11252 = vst [vmem:[#allocation60_spill] sm:$0xff] %v8889_v40 }
 0x21e   :  { %1368 = vmatpush1.bf16.msra.mxu0 %v8255_v58  ;;  %1416 = vmatpush1.bf16.msra.mxu1 %v7556_v27  ;;  %v8891_v27 = vld [vmem:[#allocation8 + $0x8] ss:$24 sps:$4 sm:$0xff]  }
 0x21f   :  { %1369 = vmatprep.subr.bf16.mxu0 %v8259_v59  ;;  %1417 = vmatprep.subr.bf16.mxu1 %v7557_v26  ;;  %11253 = vst [vmem:[#allocation61_spill] sm:$0xff] %v8891_v27  ;;  %v8895_v26 = vld [vmem:[#allocation8 + $0x2d4] ss:$24 sps:$4 sm:$0xff]  }
 0x220   :  { %11254 = vst [vmem:[#allocation62_spill] sm:$0xff] %v8895_v26 }
 0x222   :  { %1370 = vmatpush1.bf16.msra.mxu0 %v8263_v61  ;;  %1418 = vmatpush1.bf16.msra.mxu1 %v7558_v41 }
 0x223   :  { %1444 = vmatprep.subr.bf16.mxu0 %v8565_v28  ;;  %1485 = vmatprep.subr.bf16.mxu1 %v7559_v1  ;;  %v8831_v28 = vld [vmem:[#allocation8 + $0xf8] ss:$24 sps:$4 sm:$0xff]  }
 0x225   :  { %v8739_v17 = vpop.f32.mrf.mxu0  ;;  %6419 = vmatmul.mubr.msk.bf16.vlgmr.msra.gmra.mxu0 %vm8687_vm13, %v11223_v14  ;;  %6422 = vmatmul.mubr.msk.bf16.vlgmr.msra.gmra.mxu1 %vm8734_vm15, %v11223_v14  ;;  %v8747_v42 = vpop.f32.mrf.mxu1 }
 0x226   :  { %11229 = vst [vmem:[#allocation37_spill] sm:$0xff] %v8739_v17  ;;  %11230 = vst [vmem:[#allocation38_spill] sm:$0xff] %v8747_v42  ;;  %1445 = vmatpush1.bf16.msra.mxu0 %v8579_v31  ;;  %1486 = vmatpush1.bf16.msra.mxu1 %v8196_v44  ;;  %v8957_v42 = vld [vmem:[#allocation8 + $0x210] ss:$24 sps:$4 sm:$0xff]   ;;  %v8963_v17 = vld [vmem:[#allocation8 + $0x1e4] ss:$24 sps:$4 sm:$0xff]  }
 0x227   :  { %v8751_v41 = vpop.f32.mrf.mxu0  ;;  %1446 = vmatprep.subr.bf16.mxu0 %v8585_v33  ;;  %1487 = vmatprep.subr.bf16.mxu1 %v8199_v45  ;;  %v8755_v1 = vpop.f32.mrf.mxu1  ;;  %v8783_v45 = vld [vmem:[#allocation8 + $0x154] ss:$24 sps:$4 sm:$0xff]  }
 0x228   :  { %11231 = vst [vmem:[#allocation39_spill] sm:$0xff] %v8751_v41  ;;  %11232 = vst [vmem:[#allocation40_spill] sm:$0xff] %v8755_v1  ;;  %1476 = vmatprep.mubr.bf16.mxu0 %v11226_v6  ;;  %1517 = vmatprep.mubr.bf16.mxu1 %v11226_v6  ;;  %v8941_v1 = vld [vmem:[#allocation8 + $0x24c] ss:$24 sps:$4 sm:$0xff]   ;;  %v8959_v41 = vld [vmem:[#allocation8 + $0x218] ss:$24 sps:$4 sm:$0xff]  }
 0x229   :  { %v873_v20 = vpop.f32.mrf.mxu0  ;;  %v921_v21 = vpop.f32.mrf.mxu1  ;;  %11233 = vst [vmem:[#allocation41_spill] sm:$0xff] %v8783_v45  ;;  %11266 = vst [vmem:[#allocation74_spill] sm:$0xff] %v8941_v1 }
 0x22a   :  { %1447 = vmatpush1.bf16.msra.mxu0 %v8593_v37  ;;  %1488 = vmatpush1.bf16.msra.mxu1 %v8213_v48  ;;  %v8785_v48 = vld [vmem:[#allocation8 + $0x15c] ss:$24 sps:$4 sm:$0xff]   ;;  %v8909_v20 = vld [vmem:[#allocation8 + $0x2ac] ss:$24 sps:$4 sm:$0xff]   ;;  %11270 = vst [vmem:[#allocation78_spill] sm:$0xff] %v8959_v41 }
 0x22b   :  { %v874_v22 = vpop.f32.mrf.mxu0  ;;  %1448 = vmatprep.subr.bf16.mxu0 %v8597_v39  ;;  %1489 = vmatprep.subr.bf16.mxu1 %v8217_v49  ;;  %v922_v44 = vpop.f32.mrf.mxu1  ;;  %11234 = vst [vmem:[#allocation42_spill] sm:$0xff] %v8785_v48  ;;  %v8789_v49 = vld [vmem:[#allocation8 + $0x150] ss:$24 sps:$4 sm:$0xff]   ;;  %v8835_v37 = vld [vmem:[#allocation8 + $0xc4] ss:$24 sps:$4 sm:$0xff]   ;;  %11257 = vst [vmem:[#allocation65_spill] sm:$0xff] %v8909_v20 }
 0x22c   :  { %v8837_v39 = vld [vmem:[#allocation8 + $0xcc] ss:$24 sps:$4 sm:$0xff]   ;;  %v8917_v44 = vld [vmem:[#allocation8 + $0x2a0] ss:$24 sps:$4 sm:$0xff]  }
 0x22e   :  { %1449 = vmatpush1.bf16.msra.mxu0 %v8601_v43  ;;  %1490 = vmatpush1.bf16.msra.mxu1 %v8223_v50  ;;  %v8791_v50 = vld [vmem:[#allocation8 + $0x158] ss:$24 sps:$4 sm:$0xff]  }
 0x22f   :  { %1450 = vmatprep.subr.bf16.mxu0 %v8605_v46  ;;  %1491 = vmatprep.subr.bf16.mxu1 %v8227_v51  ;;  %v8795_v51 = vld [vmem:[#allocation8 + $0x124] ss:$24 sps:$4 sm:$0xff]   ;;  %v8841_v43 = vld [vmem:[#allocation8 + $0xc0] ss:$24 sps:$4 sm:$0xff]  }
 0x230   :  { %11240 = vst [vmem:[#allocation48_spill] sm:$0xff] %v8841_v43  ;;  %v8843_v46 = vld [vmem:[#allocation8 + $0xc8] ss:$24 sps:$4 sm:$0xff]  }
 0x232   :  { %1451 = vmatpush1.bf16.msra.mxu0 %v8609_v60  ;;  %1492 = vmatpush1.bf16.msra.mxu1 %v8231_v52  ;;  %v8797_v52 = vld [vmem:[#allocation8 + $0x12c] ss:$24 sps:$4 sm:$0xff]  }
 0x233   :  { %1452 = vmatprep.subr.bf16.mxu0 %v8613_v62  ;;  %1493 = vmatprep.subr.bf16.mxu1 %v8235_v53  ;;  %v8847_v60 = vld [vmem:[#allocation8 + $0x94] ss:$24 sps:$4 sm:$0xff]  }
 0x234   :  { %v8849_v62 = vld [vmem:[#allocation8 + $0x9c] ss:$24 sps:$4 sm:$0xff]  }
 0x235   :  { %11241 = vst [vmem:[#allocation49_spill] sm:$0xff] %v8849_v62 }
 0x236   :  { %1453 = vmatpush1.bf16.msra.mxu0 %v8617_v63  ;;  %1494 = vmatpush1.bf16.msra.mxu1 %v8239_v54  ;;  %v8853_v63 = vld [vmem:[#allocation8 + $0x90] ss:$24 sps:$4 sm:$0xff]  }
 0x237   :  { %1454 = vmatprep.subr.bf16.mxu0 %v8621_v0  ;;  %1495 = vmatprep.subr.bf16.mxu1 %v8243_v55  ;;  %v8811_v55 = vld [vmem:[#allocation8 + $0x120] ss:$24 sps:$4 sm:$0xff]   ;;  %11242 = vst [vmem:[#allocation50_spill] sm:$0xff] %v8853_v63 }
 0x238   :  { %v8855_v0 = vld [vmem:[#allocation8 + $0x98] ss:$24 sps:$4 sm:$0xff]  }
 0x239   :  { %11243 = vst [vmem:[#allocation51_spill] sm:$0xff] %v8855_v0 }
 0x23a   :  { %1455 = vmatpush1.bf16.msra.mxu0 %v8625_v2  ;;  %1496 = vmatpush1.bf16.msra.mxu1 %v8247_v56  ;;  %v8813_v56 = vld [vmem:[#allocation8 + $0x128] ss:$24 sps:$4 sm:$0xff]   ;;  %v8859_v2 = vld [vmem:[#allocation8 + $0x64] ss:$24 sps:$4 sm:$0xff]  }
 0x23b   :  { %1456 = vmatprep.subr.bf16.mxu0 %v8629_v3  ;;  %1497 = vmatprep.subr.bf16.mxu1 %v8251_v57  ;;  %v8861_v3 = vld [vmem:[#allocation8 + $0x6c] ss:$24 sps:$4 sm:$0xff]  }
 0x23c   :  { %11244 = vst [vmem:[#allocation52_spill] sm:$0xff] %v8861_v3 }
 0x23e   :  { %1457 = vmatpush1.bf16.msra.mxu0 %v8633_v10  ;;  %1498 = vmatpush1.bf16.msra.mxu1 %v8255_v58  ;;  %v8865_v10 = vld [vmem:[#allocation8 + $0x60] ss:$24 sps:$4 sm:$0xff]  }
 0x23f   :  { %1458 = vmatprep.subr.bf16.mxu0 %v8637_v16  ;;  %1499 = vmatprep.subr.bf16.mxu1 %v8259_v59  ;;  %v8821_v59 = vld [vmem:[#allocation8 + $0xf4] ss:$24 sps:$4 sm:$0xff]   ;;  %11245 = vst [vmem:[#allocation53_spill] sm:$0xff] %v8865_v10  ;;  %v8867_v16 = vld [vmem:[#allocation8 + $0x68] ss:$24 sps:$4 sm:$0xff]  }
 0x240   :  { %11246 = vst [vmem:[#allocation54_spill] sm:$0xff] %v8867_v16 }
 0x242   :  { %1459 = vmatpush1.bf16.msra.mxu0 %v8641_v4  ;;  %1500 = vmatpush1.bf16.msra.mxu1 %v8263_v61  ;;  %v8823_v61 = vld [vmem:[#allocation8 + $0xfc] ss:$24 sps:$4 sm:$0xff]  }
 0x243   :  { %2114 = vmatprep.subr.bf16.mxu0 %v8783_v45  ;;  %2155 = vmatprep.subr.bf16.mxu1 %v8785_v48  ;;  %v8871_v4 = vld [vmem:[#allocation8 + $0x34] ss:$24 sps:$4 sm:$0xff]  }
 0x245   :  { %v8799_v53 = vpop.f32.mrf.mxu0  ;;  %v8801_v54 = vpop.f32.mrf.mxu1  ;;  %6424 = vmatmul.mubr.msk.bf16.vlgmr.msra.gmra.mxu0 %vm8734_vm15, %v11223_v14  ;;  %6426 = vmatmul.mubr.msk.bf16.vlgmr.msra.gmra.mxu1 %vm8734_vm15, %v11223_v14  ;;  %v8877_v14 = vld [vmem:[#allocation8 + $0x30] ss:$24 sps:$4 sm:$0xff]  }
 0x246   :  { %11235 = vst [vmem:[#allocation43_spill] sm:$0xff] %v8799_v53  ;;  %11236 = vst [vmem:[#allocation44_spill] sm:$0xff] %v8801_v54  ;;  %2115 = vmatpush1.bf16.msra.mxu0 %v8789_v49  ;;  %2156 = vmatpush1.bf16.msra.mxu1 %v8791_v50  ;;  %v8933_v54 = vld [vmem:[#allocation8 + $0x270] ss:$24 sps:$4 sm:$0xff]   ;;  %v8939_v53 = vld [vmem:[#allocation8 + $0x244] ss:$24 sps:$4 sm:$0xff]  }
 0x247   :  { %v8815_v57 = vpop.f32.mrf.mxu0  ;;  %v8817_v58 = vpop.f32.mrf.mxu1  ;;  %2116 = vmatprep.subr.bf16.mxu0 %v8795_v51  ;;  %2157 = vmatprep.subr.bf16.mxu1 %v8797_v52  ;;  %11248 = vst [vmem:[#allocation56_spill] sm:$0xff] %v8877_v14  ;;  %11264 = vst [vmem:[#allocation72_spill] sm:$0xff] %v8933_v54 }
 0x248   :  { %11237 = vst [vmem:[#allocation45_spill] sm:$0xff] %v8815_v57  ;;  %11238 = vst [vmem:[#allocation46_spill] sm:$0xff] %v8817_v58  ;;  %2146 = vmatprep.mubr.bf16.mxu0 %v11226_v6  ;;  %2187 = vmatprep.mubr.bf16.mxu1 %v11226_v6  ;;  %v8935_v57 = vld [vmem:[#allocation8 + $0x278] ss:$24 sps:$4 sm:$0xff]  }
 0x249   :  { %v962_v23 = vpop.f32.mrf.mxu0  ;;  %v1003_v24 = vpop.f32.mrf.mxu1  ;;  %11265 = vst [vmem:[#allocation73_spill] sm:$0xff] %v8935_v57 }
 0x24a   :  { %2117 = vmatpush1.bf16.msra.mxu0 %v8811_v55  ;;  %2158 = vmatpush1.bf16.msra.mxu1 %v8813_v56  ;;  %v8919_v23 = vld [vmem:[#allocation8 + $0x2a8] ss:$24 sps:$4 sm:$0xff]  }
 0x24b   :  { %v963_v31 = vpop.f32.mrf.mxu0  ;;  %v1004_v33 = vpop.f32.mrf.mxu1  ;;  %2118 = vmatprep.subr.bf16.mxu0 %v8821_v59  ;;  %2159 = vmatprep.subr.bf16.mxu1 %v8823_v61  ;;  %11260 = vst [vmem:[#allocation68_spill] sm:$0xff] %v8919_v23 }
 0x24c   :  { %v8927_v33 = vld [vmem:[#allocation8 + $0x274] ss:$24 sps:$4 sm:$0xff]  }
 0x24e   :  { %2119 = vmatpush1.bf16.msra.mxu0 %v8829_v25  ;;  %2160 = vmatpush1.bf16.msra.mxu1 %v8831_v28 }
 0x24f   :  { %2120 = vmatprep.subr.bf16.mxu0 %v8835_v37  ;;  %2161 = vmatprep.subr.bf16.mxu1 %v8837_v39 }
 0x252   :  { %2121 = vmatpush1.bf16.msra.mxu0 %v8841_v43  ;;  %2162 = vmatpush1.bf16.msra.mxu1 %v8843_v46 }
 0x253   :  { %2122 = vmatprep.subr.bf16.mxu0 %v8847_v60  ;;  %2163 = vmatprep.subr.bf16.mxu1 %v8849_v62 }
 0x256   :  { %2123 = vmatpush1.bf16.msra.mxu0 %v8853_v63  ;;  %2164 = vmatpush1.bf16.msra.mxu1 %v8855_v0 }
 0x257   :  { %2124 = vmatprep.subr.bf16.mxu0 %v8859_v2  ;;  %2165 = vmatprep.subr.bf16.mxu1 %v8861_v3 }
 0x25a   :  { %2125 = vmatpush1.bf16.msra.mxu0 %v8865_v10  ;;  %2166 = vmatpush1.bf16.msra.mxu1 %v8867_v16 }
 0x25b   :  { %2126 = vmatprep.subr.bf16.mxu0 %v8871_v4  ;;  %2167 = vmatprep.subr.bf16.mxu1 %v8873_v5 }
 0x25e   :  { %2127 = vmatpush1.bf16.msra.mxu0 %v8877_v14  ;;  %2168 = vmatpush1.bf16.msra.mxu1 %v8879_v18 }
 0x25f   :  { %2128 = vmatprep.subr.bf16.mxu0 %v8883_v36  ;;  %2169 = vmatprep.subr.bf16.mxu1 %v8885_v38 }
 0x262   :  { %2129 = vmatpush1.bf16.msra.mxu0 %v8889_v40  ;;  %2170 = vmatpush1.bf16.msra.mxu1 %v8891_v27 }
 0x263   :  { %2130 = vmatprep.subr.bf16.mxu0 %v8895_v26  ;;  %2171 = vmatprep.subr.bf16.mxu1 %v8897_v35 }
 0x265   :  { %v8911_v21 = vpop.f32.mrf.mxu0  ;;  %v8913_v22 = vpop.f32.mrf.mxu1 }
 0x266   :  { %11258 = vst [vmem:[#allocation66_spill] sm:$0xff] %v8911_v21  ;;  %11259 = vst [vmem:[#allocation67_spill] sm:$0xff] %v8913_v22  ;;  %2131 = vmatpush2.bf16.msra.mxu0 %v8901_v9  ;;  %2172 = vmatpush2.bf16.msra.mxu1 %v8903_v47  ;;  %v8929_v21 = vld [vmem:[#allocation8 + $0x27c] ss:$24 sps:$4 sm:$0xff]  }
 0x267   :  { %v8921_v24 = vpop.f32.mrf.mxu0  ;;  %v8923_v31 = vpop.f32.mrf.mxu1  ;;  %2132 = vmatprep.subr.bf16.mxu0 %v8907_v13  ;;  %2173 = vmatprep.subr.bf16.mxu1 %v8909_v20  ;;  %11263 = vst [vmem:[#allocation71_spill] sm:$0xff] %v8929_v21 }
 0x268   :  { %11261 = vst [vmem:[#allocation69_spill] sm:$0xff] %v8921_v24  ;;  %11262 = vst [vmem:[#allocation70_spill] sm:$0xff] %v8923_v31 }
 0x269   :  { %v1051_v22 = vpop.f32.mrf.mxu0  ;;  %v1092_v58 = vpop.f32.mrf.mxu1 }
 0x26a   :  { %2133 = vmatpush2.bf16.msra.mxu0 %v8917_v44  ;;  %2174 = vmatpush2.bf16.msra.mxu1 %v8919_v23  ;;  %v8945_v58 = vld [vmem:[#allocation8 + $0x240] ss:$24 sps:$4 sm:$0xff]  }
 0x26b   :  { %v1052_v24 = vpop.f32.mrf.mxu0  ;;  %v1093_v31 = vpop.f32.mrf.mxu1  ;;  %2134 = vmatprep.subr.bf16.mxu0 %v8927_v33  ;;  %2175 = vmatprep.subr.bf16.mxu1 %v8929_v21  ;;  %11267 = vst [vmem:[#allocation75_spill] sm:$0xff] %v8945_v58  ;;  %v8947_v22 = vld [vmem:[#allocation8 + $0x248] ss:$24 sps:$4 sm:$0xff]  }
 0x26c   :  { %11268 = vst [vmem:[#allocation76_spill] sm:$0xff] %v8947_v22  ;;  %v8951_v24 = vld [vmem:[#allocation8 + $0x214] ss:$24 sps:$4 sm:$0xff]  }
 0x26d   :  { %v8953_v31 = vld [vmem:[#allocation8 + $0x21c] ss:$24 sps:$4 sm:$0xff]  }
 0x26e   :  { %2135 = vmatpush2.bf16.msra.mxu0 %v8933_v54  ;;  %2176 = vmatpush2.bf16.msra.mxu1 %v8935_v57  ;;  %11269 = vst [vmem:[#allocation77_spill] sm:$0xff] %v8953_v31 }
 0x26f   :  { %2136 = vmatprep.subr.bf16.mxu0 %v8939_v53  ;;  %2177 = vmatprep.subr.bf16.mxu1 %v8941_v1 }
 0x272   :  { %2137 = vmatpush2.bf16.msra.mxu0 %v8945_v58  ;;  %2178 = vmatpush2.bf16.msra.mxu1 %v8947_v22  ;;  %v9022_v22 = vld [vmem:[#allocation8 + $0x104] ss:$24 sps:$4 sm:$0xff]  }
 0x273   :  { %2138 = vmatprep.subr.bf16.mxu0 %v8951_v24  ;;  %2179 = vmatprep.subr.bf16.mxu1 %v8953_v31  ;;  %v9016_v31 = vld [vmem:[#allocation8 + $0x130] ss:$24 sps:$4 sm:$0xff]  }
 0x276   :  { %2139 = vmatpush2.bf16.msra.mxu0 %v8957_v42  ;;  %2180 = vmatpush2.bf16.msra.mxu1 %v8959_v41  ;;  %v9006_v41 = vld [vmem:[#allocation8 + $0x134] ss:$24 sps:$4 sm:$0xff]  }
 0x277   :  { %2140 = vmatprep.subr.bf16.mxu0 %v8963_v17  ;;  %2181 = vmatprep.subr.bf16.mxu1 %v8965_v15  ;;  %v8995_v15 = vld [vmem:[#allocation8 + $0x188] ss:$24 sps:$4 sm:$0xff]   ;;  %11283 = vst [vmem:[#allocation91_spill] sm:$0xff] %v9006_v41 }
 0x278   :  { %11280 = vst [vmem:[#allocation88_spill] sm:$0xff] %v8995_v15 }
 0x27a   :  { %2141 = vmatpush2.bf16.msra.mxu0 %v8969_v19  ;;  %2182 = vmatpush2.bf16.msra.mxu1 %v8971_v34  ;;  %v8999_v34 = vld [vmem:[#allocation8 + $0x164] ss:$24 sps:$4 sm:$0xff]  }
 0x27b   :  { %2142 = vmatprep.subr.bf16.mxu0 %v8975_v30  ;;  %2183 = vmatprep.subr.bf16.mxu1 %v8977_v32  ;;  %11281 = vst [vmem:[#allocation89_spill] sm:$0xff] %v8999_v34  ;;  %v9003_v32 = vld [vmem:[#allocation8 + $0x160] ss:$24 sps:$4 sm:$0xff]  }
 0x27c   :  { %11282 = vst [vmem:[#allocation90_spill] sm:$0xff] %v9003_v32 }
 0x27e   :  { %2143 = vmatpush2.bf16.msra.mxu0 %v8981_v29  ;;  %2184 = vmatpush2.bf16.msra.mxu1 %v8983_v12 }
 0x27f   :  { %2144 = vmatprep.subr.bf16.mxu0 %v8987_v8  ;;  %2185 = vmatprep.subr.bf16.mxu1 %v8989_v11 }
 0x282   :  { %2145 = vmatpush2.bf16.msra.mxu0 %v8993_v7  ;;  %2186 = vmatpush2.bf16.msra.mxu1 %v8995_v15 }
 0x283   :  { %2196 = vmatprep.subr.bf16.mxu0 %v8999_v34  ;;  %2283 = vmatprep.subr.bf16.mxu1 %v8783_v45 }
 0x285   :  { %v9009_v12 = vpop.f32.mrf.mxu0  ;;  %2147 = vmatmul.mubr.bf16.vlgmr.msra.gmra.mxu0 %v11226_v6  ;;  %2188 = vmatmul.mubr.bf16.vlgmr.msra.gmra.mxu1 %v11226_v6  ;;  %v9013_v11 = vpop.f32.mrf.mxu1 }
 0x286   :  { %11284 = vst [vmem:[#allocation92_spill] sm:$0xff] %v9009_v12  ;;  %11285 = vst [vmem:[#allocation93_spill] sm:$0xff] %v9013_v11  ;;  %2197 = vmatpush1.bf16.msra.mxu0 %v9003_v32  ;;  %2228 = vmatprep.mubr.bf16.mxu0 %v11226_v6  ;;  %v9029_v32 = vld [vmem:[#allocation8 + $0x100] ss:$24 sps:$4 sm:$0xff]  }
 0x287   :  { %v9019_v15 = vpop.f32.mrf.mxu0  ;;  %2198 = vmatprep.subr.bf16.mxu0 %v9006_v41  ;;  %v9024_v45 = vpop.f32.mrf.mxu1  ;;  %2284 = vmatpush1.bf16.msra.mxu1 %v8789_v49 }
 0x288   :  { %11286 = vst [vmem:[#allocation94_spill] sm:$0xff] %v9019_v15  ;;  %11287 = vst [vmem:[#allocation95_spill] sm:$0xff] %v9024_v45  ;;  %2285 = vmatprep.subr.bf16.mxu1 %v8795_v51  ;;  %v9032_v15 = vld [vmem:[#allocation8 + $0xd4] ss:$24 sps:$4 sm:$0xff]   ;;  %v9037_v45 = vld [vmem:[#allocation8 + $0xd0] ss:$24 sps:$4 sm:$0xff]  }
 0x289   :  { %v1133_v12 = vpop.f32.mrf.mxu0  ;;  %v1181_v11 = vpop.f32.mrf.mxu1 }
 0x28a   :  { %2199 = vmatpush1.bf16.msra.mxu0 %v9016_v31  ;;  %v9040_v11 = vld [vmem:[#allocation8 + $0xa4] ss:$24 sps:$4 sm:$0xff]   ;;  %v9045_v12 = vld [vmem:[#allocation8 + $0xa0] ss:$24 sps:$4 sm:$0xff]  }
 0x28b   :  { %v1134_v1 = vpop.f32.mrf.mxu0  ;;  %2200 = vmatprep.subr.bf16.mxu0 %v9022_v22  ;;  %v1182_v41 = vpop.f32.mrf.mxu1  ;;  %2286 = vmatpush1.bf16.msra.mxu1 %v8811_v55  ;;  %11288 = vst [vmem:[#allocation96_spill] sm:$0xff] %v9040_v11 }
 0x28c   :  { %2287 = vmatprep.subr.bf16.mxu1 %v8821_v59  ;;  %v9048_v41 = vld [vmem:[#allocation8 + $0x74] ss:$24 sps:$4 sm:$0xff]   ;;  %v9053_v1 = vld [vmem:[#allocation8 + $0x70] ss:$24 sps:$4 sm:$0xff]  }
 0x28d   :  { %11289 = vst [vmem:[#allocation97_spill] sm:$0xff] %v9048_v41 }
 0x28e   :  { %2201 = vmatpush1.bf16.msra.mxu0 %v9029_v32 }
 0x28f   :  { %2202 = vmatprep.subr.bf16.mxu0 %v9032_v15  ;;  %2288 = vmatpush1.bf16.msra.mxu1 %v8829_v25  ;;  %v9056_v25 = vld [vmem:[#allocation8 + $0x44] ss:$24 sps:$4 sm:$0xff]  }
 0x290   :  { %2289 = vmatprep.subr.bf16.mxu1 %v8835_v37  ;;  %11290 = vst [vmem:[#allocation98_spill] sm:$0xff] %v9056_v25 }
 0x292   :  { %2203 = vmatpush1.bf16.msra.mxu0 %v9037_v45 }
 0x293   :  { %2204 = vmatprep.subr.bf16.mxu0 %v9040_v11  ;;  %2290 = vmatpush1.bf16.msra.mxu1 %v8841_v43  ;;  %v9061_v11 = vld [vmem:[#allocation8 + $0x40] ss:$24 sps:$4 sm:$0xff]   ;;  %v9064_v43 = vld [vmem:[#allocation8 + $0x14] ss:$24 sps:$4 sm:$0xff]  }
 0x294   :  { %2291 = vmatprep.subr.bf16.mxu1 %v8847_v60  ;;  %11291 = vst [vmem:[#allocation99_spill] sm:$0xff] %v9061_v11  ;;  %11292 = vst [vmem:[#allocation100_spill] sm:$0xff] %v9064_v43 }
 0x296   :  { %2205 = vmatpush1.bf16.msra.mxu0 %v9045_v12 }
 0x297   :  { %2206 = vmatprep.subr.bf16.mxu0 %v9048_v41  ;;  %2292 = vmatpush1.bf16.msra.mxu1 %v8853_v63  ;;  %v9069_v41 = vld [vmem:[#allocation8 + $0x10] ss:$24 sps:$4 sm:$0xff]   ;;  %v9072_v63 = vld [vmem:[#allocation8 + $0x2e4] ss:$24 sps:$4 sm:$0xff]  }
 0x298   :  { %2293 = vmatprep.subr.bf16.mxu1 %v8859_v2  ;;  %11293 = vst [vmem:[#allocation101_spill] sm:$0xff] %v9069_v41  ;;  %11294 = vst [vmem:[#allocation102_spill] sm:$0xff] %v9072_v63 }
 0x29a   :  { %2207 = vmatpush1.bf16.msra.mxu0 %v9053_v1 }
 0x29b   :  { %2208 = vmatprep.subr.bf16.mxu0 %v9056_v25  ;;  %2294 = vmatpush1.bf16.msra.mxu1 %v8865_v10  ;;  %v9077_v25 = vld [vmem:[#allocation8 + $0x2e0] ss:$24 sps:$4 sm:$0xff]   ;;  %v9080_v10 = vld [vmem:[#allocation8 + $0x2b4] ss:$24 sps:$4 sm:$0xff]  }
 0x29c   :  { %2295 = vmatprep.subr.bf16.mxu1 %v8871_v4  ;;  %11295 = vst [vmem:[#allocation103_spill] sm:$0xff] %v9077_v25 }
 0x29e   :  { %2209 = vmatpush1.bf16.msra.mxu0 %v9061_v11 }
 0x29f   :  { %2210 = vmatprep.subr.bf16.mxu0 %v9064_v43  ;;  %2296 = vmatpush1.bf16.msra.mxu1 %v8877_v14  ;;  %v9089_v14 = vld [vmem:[#allocation8 + $0x2b0] ss:$24 sps:$4 sm:$0xff]  }
 0x2a0   :  { %2297 = vmatprep.subr.bf16.mxu1 %v8883_v36 }
 0x2a2   :  { %2211 = vmatpush1.bf16.msra.mxu0 %v9069_v41 }
 0x2a3   :  { %2212 = vmatprep.subr.bf16.mxu0 %v9072_v63  ;;  %2298 = vmatpush1.bf16.msra.mxu1 %v8889_v40  ;;  %v9096_v63 = vld [vmem:[#allocation8 + $0x284] ss:$24 sps:$4 sm:$0xff]  }
 0x2a4   :  { %2299 = vmatprep.subr.bf16.mxu1 %v8895_v26 }
 0x2a5   :  { %v9084_v11 = vpop.f32.mrf.mxu0  ;;  %v9086_v43 = vpop.f32.mrf.mxu1 }
 0x2a6   :  { %11296 = vst [vmem:[#allocation104_spill] sm:$0xff] %v9084_v11  ;;  %11297 = vst [vmem:[#allocation105_spill] sm:$0xff] %v9086_v43  ;;  %2213 = vmatpush2.bf16.msra.mxu0 %v9077_v25  ;;  %v9101_v43 = vld [vmem:[#allocation8 + $0x280] ss:$24 sps:$4 sm:$0xff]  }
 0x2a7   :  { %v9091_v36 = vpop.f32.mrf.mxu0  ;;  %v9093_v41 = vpop.f32.mrf.mxu1  ;;  %2214 = vmatprep.subr.bf16.mxu0 %v9080_v10  ;;  %2300 = vmatpush2.bf16.msra.mxu1 %v8901_v9 }
 0x2a8   :  { %11298 = vst [vmem:[#allocation106_spill] sm:$0xff] %v9091_v36  ;;  %11299 = vst [vmem:[#allocation107_spill] sm:$0xff] %v9093_v41  ;;  %2301 = vmatprep.subr.bf16.mxu1 %v8907_v13  ;;  %v9104_v36 = vld [vmem:[#allocation8 + $0x254] ss:$24 sps:$4 sm:$0xff]   ;;  %v9109_v41 = vld [vmem:[#allocation8 + $0x250] ss:$24 sps:$4 sm:$0xff]  }
 0x2a9   :  { %v1222_v26 = vpop.f32.mrf.mxu0  ;;  %v1263_v11 = vpop.f32.mrf.mxu1 }
 0x2aa   :  { %2215 = vmatpush2.bf16.msra.mxu0 %v9089_v14  ;;  %v9112_v26 = vld [vmem:[#allocation8 + $0x224] ss:$24 sps:$4 sm:$0xff]   ;;  %v9125_v11 = vld [vmem:[#allocation8 + $0x1f0] ss:$24 sps:$4 sm:$0xff]  }
 0x2ab   :  { %v1223_v25 = vpop.f32.mrf.mxu0  ;;  %v1264_v40 = vpop.f32.mrf.mxu1  ;;  %2216 = vmatprep.subr.bf16.mxu0 %v9096_v63  ;;  %2302 = vmatpush2.bf16.msra.mxu1 %v8917_v44  ;;  %11300 = vst [vmem:[#allocation108_spill] sm:$0xff] %v9112_v26 }
 0x2ac   :  { %2303 = vmatprep.subr.bf16.mxu1 %v8927_v33  ;;  %v9117_v25 = vld [vmem:[#allocation8 + $0x220] ss:$24 sps:$4 sm:$0xff]   ;;  %v9120_v40 = vld [vmem:[#allocation8 + $0x1f4] ss:$24 sps:$4 sm:$0xff]  }
 0x2ad   :  { %11301 = vst [vmem:[#allocation109_spill] sm:$0xff] %v9120_v40 }
 0x2ae   :  { %2217 = vmatpush2.bf16.msra.mxu0 %v9101_v43 }
 0x2af   :  { %2218 = vmatprep.subr.bf16.mxu0 %v9104_v36  ;;  %2304 = vmatpush2.bf16.msra.mxu1 %v8933_v54  ;;  %v9128_v54 = vld [vmem:[#allocation8 + $0x1c4] ss:$24 sps:$4 sm:$0xff]  }
 0x2b0   :  { %2305 = vmatprep.subr.bf16.mxu1 %v8939_v53 }
 0x2b2   :  { %2219 = vmatpush2.bf16.msra.mxu0 %v9109_v41 }
 0x2b3   :  { %2220 = vmatprep.subr.bf16.mxu0 %v9112_v26  ;;  %2306 = vmatpush2.bf16.msra.mxu1 %v8945_v58  ;;  %v9133_v26 = vld [vmem:[#allocation8 + $0x1c0] ss:$24 sps:$4 sm:$0xff]   ;;  %v9136_v58 = vld [vmem:[#allocation8 + $0x194] ss:$24 sps:$4 sm:$0xff]  }
 0x2b4   :  { %2307 = vmatprep.subr.bf16.mxu1 %v8951_v24  ;;  %11302 = vst [vmem:[#allocation110_spill] sm:$0xff] %v9136_v58 }
 0x2b6   :  { %2221 = vmatpush2.bf16.msra.mxu0 %v9117_v25 }
 0x2b7   :  { %2222 = vmatprep.subr.bf16.mxu0 %v9120_v40  ;;  %2308 = vmatpush2.bf16.msra.mxu1 %v8957_v42  ;;  %v9141_v40 = vld [vmem:[#allocation8 + $0x190] ss:$24 sps:$4 sm:$0xff]  }
 0x2b8   :  { %2309 = vmatprep.subr.bf16.mxu1 %v8963_v17  ;;  %11303 = vst [vmem:[#allocation111_spill] sm:$0xff] %v9141_v40 }
 0x2ba   :  { %2223 = vmatpush2.bf16.msra.mxu0 %v9125_v11 }
 0x2bb   :  { %2224 = vmatprep.subr.bf16.mxu0 %v9128_v54  ;;  %2310 = vmatpush2.bf16.msra.mxu1 %v8969_v19 }
 0x2bc   :  { %2311 = vmatprep.subr.bf16.mxu1 %v8975_v30 }
 0x2be   :  { %2225 = vmatpush2.bf16.msra.mxu0 %v9133_v26 }
 0x2bf   :  { %2226 = vmatprep.subr.bf16.mxu0 %v9136_v58  ;;  %2312 = vmatpush2.bf16.msra.mxu1 %v8981_v29 }
 0x2c0   :  { %2313 = vmatprep.subr.bf16.mxu1 %v8987_v8 }
 0x2c2   :  { %2227 = vmatpush2.bf16.msra.mxu0 %v9141_v40 }
 0x2c3   :  { %2324 = vmatprep.subr.bf16.mxu0 %v8785_v48  ;;  %2314 = vmatpush2.bf16.msra.mxu1 %v8993_v7 }
 0x2c4   :  { %2365 = vmatprep.subr.bf16.mxu1 %v8999_v34 }
 0x2c5   :  { %v9150_v19 = vpop.f32.mrf.mxu0  ;;  %v9152_v30 = vpop.f32.mrf.mxu1  ;;  %2229 = vmatmul.mubr.bf16.vlgmr.msra.gmra.mxu0 %v11226_v6 }
 0x2c6   :  { %11304 = vst [vmem:[#allocation112_spill] sm:$0xff] %v9150_v19  ;;  %11305 = vst [vmem:[#allocation113_spill] sm:$0xff] %v9152_v30  ;;  %2325 = vmatpush1.bf16.msra.mxu0 %v8791_v50  ;;  %v11314_v19 = vld [vmem:[#allocation77_spill] sm:$0xff] }
 0x2c7   :  { %v9156_v58 = vpop.f32.mrf.mxu0  ;;  %v9158_v29 = vpop.f32.mrf.mxu1  ;;  %2326 = vmatprep.subr.bf16.mxu0 %v8797_v52 }
 0x2c8   :  { %11306 = vst [vmem:[#allocation114_spill] sm:$0xff] %v9156_v58  ;;  %11307 = vst [vmem:[#allocation115_spill] sm:$0xff] %v9158_v29 }
 0x2c9   :  { %v1311_v40 = vpop.f32.mrf.mxu0  ;;  %v1352_v48 = vpop.f32.mrf.mxu1 }
 0x2ca   :  { %2327 = vmatpush1.bf16.msra.mxu0 %v8813_v56 }
 0x2cb   :  { %v1312_v7 = vpop.f32.mrf.mxu0  ;;  %v1353_v34 = vpop.f32.mrf.mxu1  ;;  %2328 = vmatprep.subr.bf16.mxu0 %v8823_v61 }
 0x2ce   :  { %2329 = vmatpush1.bf16.msra.mxu0 %v8831_v28 }
 0x2cf   :  { %2330 = vmatprep.subr.bf16.mxu0 %v8837_v39 }
 0x2d2   :  { %2331 = vmatpush1.bf16.msra.mxu0 %v8843_v46 }
 0x2d3   :  { %2332 = vmatprep.subr.bf16.mxu0 %v8849_v62  ;;  %v11336_v62 = vld [vmem:[#allocation22_spill] sm:$0xff] }
 0x2d6   :  { %2333 = vmatpush1.bf16.msra.mxu0 %v8855_v0 }
 0x2d7   :  { %2334 = vmatprep.subr.bf16.mxu0 %v8861_v3 }
 0x2da   :  { %2335 = vmatpush1.bf16.msra.mxu0 %v8867_v16 }
 0x2db   :  { %2336 = vmatprep.subr.bf16.mxu0 %v8873_v5 }
 0x2de   :  { %2337 = vmatpush1.bf16.msra.mxu0 %v8879_v18 }
 0x2df   :  { %2338 = vmatprep.subr.bf16.mxu0 %v8885_v38  ;;  %v11327_v38 = vlaneseq }
 0x2e2   :  { %2339 = vmatpush1.bf16.msra.mxu0 %v8891_v27 }
 0x2e3   :  { %2340 = vmatprep.subr.bf16.mxu0 %v8897_v35 }
 0x2e5   :  { %v9175_v7 = vpop.f32.mrf.mxu0  ;;  %v9177_v34 = vpop.f32.mrf.mxu1 }
 0x2e6   :  { %11308 = vst [vmem:[#allocation116_spill] sm:$0xff] %v9175_v7  ;;  %11309 = vst [vmem:[#allocation117_spill] sm:$0xff] %v9177_v34  ;;  %2341 = vmatpush2.bf16.msra.mxu0 %v8903_v47  ;;  %v11312_v7 = vld [vmem:[#allocation74_spill] sm:$0xff]  ;;  %v11313_v34 = vld [vmem:[#allocation76_spill] sm:$0xff] }
 0x2e7   :  { %v9180_v6 = vpop.f32.mrf.mxu0  ;;  %v9182_v48 = vpop.f32.mrf.mxu1  ;;  %2342 = vmatprep.subr.bf16.mxu0 %v8909_v20 }
 0x2e8   :  { %11310 = vst [vmem:[#allocation118_spill] sm:$0xff] %v9180_v6  ;;  %11311 = vst [vmem:[#allocation119_spill] sm:$0xff] %v9182_v48  ;;  %v11315_v6 = vld [vmem:[#allocation78_spill] sm:$0xff]  ;;  %v11316_v48 = vld [vmem:[#allocation79_spill] sm:$0xff] }
 0x2e9   :  { %v1393_v40 = vpop.f32.mrf.mxu0  ;;  %v1441_v29 = vpop.f32.mrf.mxu1 }
 0x2ea   :  { %2343 = vmatpush2.bf16.msra.mxu0 %v8919_v23  ;;  %v11317_v40 = vld [vmem:[#allocation81_spill] sm:$0xff]  ;;  %v11318_v29 = vld [vmem:[#allocation83_spill] sm:$0xff] }
 0x2eb   :  { %v1394_v30 = vpop.f32.mrf.mxu0  ;;  %v1442_v58 = vpop.f32.mrf.mxu1  ;;  %2344 = vmatprep.subr.bf16.mxu0 %v8929_v21  ;;  %v11321_v21 = vld [vmem:[#allocation88_spill] sm:$0xff] }
 0x2ec   :  { %v11319_v30 = vld [vmem:[#allocation85_spill] sm:$0xff]  ;;  %v11320_v58 = vld [vmem:[#allocation86_spill] sm:$0xff] }
 0x2ee   :  { %2345 = vmatpush2.bf16.msra.mxu0 %v8935_v57  ;;  %v11322_v57 = vld [vmem:[#allocation41_spill] sm:$0xff] }
 0x2ef   :  { %2346 = vmatprep.subr.bf16.mxu0 %v11312_v7 }
 0x2f2   :  { %2347 = vmatpush2.bf16.msra.mxu0 %v11313_v34 }
 0x2f3   :  { %2348 = vmatprep.subr.bf16.mxu0 %v11314_v19 }
 0x2f6   :  { %2349 = vmatpush2.bf16.msra.mxu0 %v11315_v6 }
 0x2f7   :  { %2350 = vmatprep.subr.bf16.mxu0 %v11316_v48 }
 0x2fa   :  { %2351 = vmatpush2.bf16.msra.mxu0 %v11317_v40 }
 0x2fb   :  { %2352 = vmatprep.subr.bf16.mxu0 %v11318_v29 }
 0x2fe   :  { %2353 = vmatpush2.bf16.msra.mxu0 %v11319_v30 }
 0x2ff   :  { %2354 = vmatprep.subr.bf16.mxu0 %v11320_v58 }
 0x302   :  { %2355 = vmatpush2.bf16.msra.mxu0 %v11321_v21 }
 0x303   :  { %2452 = vmatprep.subr.bf16.mxu0 %v11322_v57 }
 0x305   :  { %v9199_v7 = vpop.f32.mrf.mxu0  ;;  %v9201_v34 = vpop.f32.mrf.mxu1 }
 0x306   :  { %11323 = vst [vmem:[#allocation120_spill] sm:$0xff] %v9199_v7  ;;  %11324 = vst [vmem:[#allocation121_spill] sm:$0xff] %v9201_v34  ;;  %v9208_v7 = vshrl.u32 %v11327_v38, 7 }
 0x307   :  { %v9203_v19 = vpop.f32.mrf.mxu0  ;;  %v9205_v6 = vpop.f32.mrf.mxu1 }
 0x308   :  { %11325 = vst [vmem:[#allocation122_spill] sm:$0xff] %v9203_v19  ;;  %11326 = vst [vmem:[#allocation123_spill] sm:$0xff] %v9205_v6  ;;  %v9211_v34 = vsub.s32 0, %v9208_v7  ;;  %v214_v19 = vld [vmem:[#allocation6] sm:$0x3f]  ;;  %v226_v6 = vsub.s32 2, %v9208_v7 }
 0x309   :  { %v1482_v48 = vpop.f32.mrf.mxu0  ;;  %v1523_v40 = vpop.f32.mrf.mxu1  ;;  %11328 = vst [vmem:[#allocation124_spill] sm:$0xff] %v9208_v7  ;;  %v230_v5 = vsub.s32 3, %v9208_v7 }
 0x30a   :  { %11329 = vst [vmem:[#allocation125_spill] sm:$0xff] %v9211_v34  ;;  %v222_v48 = vsub.s32 1, %v9208_v7  ;;  %v9225_v3 = vrot.slane %v214_v19, %v226_v6 }
 0x30b   :  { %v1483_v23 = vpop.f32.mrf.mxu0  ;;  %v1524_v29 = vpop.f32.mrf.mxu1  ;;  %v9227_v0 = vrot.slane %v214_v19, %v230_v5  ;;  %v1622_v5 = vld [vmem:[#allocation9] sm:$0x3] }
 0x30c   :  { %v9215_v23 = vrot.slane %v214_v19, %v9211_v34  ;;  %v9217_v40 = vrot.slane %v214_v19, %v222_v48  ;;  %v11332_v29 = vld [vmem:[#allocation21_spill] sm:$0xff] }
 0x30d   :  { %11334 = vst [vmem:[#allocation21_spill] sm:$0xff] %v9225_v3 }
 0x30e   :  { %11330 = vst [vmem:[#allocation126_spill] sm:$0xff] %v9215_v23  ;;  %11331 = vst [vmem:[#allocation127_spill] sm:$0xff] %v9217_v40 }
 0x345   :  { %v2148_v20 = vpop.f32.mrf.mxu0  ;;  %v2189_v30 = vpop.f32.mrf.mxu1 }
 0x347   :  { %v2150_v47 = vpop.f32.mrf.mxu0  ;;  %v2191_v58 = vpop.f32.mrf.mxu1 }
 0x349   :  { %v2152_v35 = vpop.f32.mrf.mxu0  ;;  %v2193_v21 = vpop.f32.mrf.mxu1 }
 0x34a   :  { %v528_v35 = vadd.f32 %v11332_v29, %v9215_v23  ;;  %v569_v29 = vadd.f32 %v11336_v62, %v9225_v3  ;;  %v11337_v23 = vld [vmem:[#allocation24_spill] sm:$0xff]  ;;  %v238_v62 = vsub.s32 5, %v9208_v7 }
 0x34b   :  { %v2153_v27 = vpop.f32.mrf.mxu0  ;;  %v2194_v57 = vpop.f32.mrf.mxu1 }
 0x34c   :  { %v11333_v27 = vld [vmem:[#allocation23_spill] sm:$0xff]  ;;  %v2237_v21 = vadd.f32 %v2148_v20, %v528_v35  ;;  %v2251_v20 = vadd.f32 %v2189_v30, %v569_v29 }
 0x34d   :  { %v530_v57 = vadd.f32 %v11333_v27, %v9217_v40  ;;  %11335 = vst [vmem:[#allocation23_spill] sm:$0xff] %v9227_v0  ;;  %v571_v27 = vadd.f32 %v11337_v23, %v9227_v0  ;;  %v9236_v23 = vrot.slane %v1622_v5, %v9211_v34 }
 0x34e   :  { %v6523_v18 = vmul.f32 -1.442695, %v2237_v21  ;;  %v6525_v35 = vmul.f32 -1.442695, %v2251_v20 }
 0x34f   :  { %v2238_v38 = vadd.f32 %v2150_v47, %v530_v57  ;;  %v2252_v47 = vadd.f32 %v2191_v58, %v571_v27  ;;  %11338 = vst [vmem:[#allocation22_spill] sm:$0xff] %v9236_v23  ;;  %v9240_v27 = vrot.slane %v1622_v5, %v222_v48  ;;  %v11342_v48 = vld [vmem:[#allocation27_spill] sm:$0xff] }
 0x350   :  { %7367 = vpow2.f32 %v6523_v18 }
 0x351   :  { %v6524_v16 = vmul.f32 -1.442695, %v2238_v38  ;;  %v6526_v57 = vmul.f32 -1.442695, %v2252_v47  ;;  %11340 = vst [vmem:[#allocation128_spill] sm:$0xff] %v9240_v27  ;;  %v9242_v47 = vrot.slane %v214_v19, %v238_v62 }
 0x353   :  { %7369 = vpow2.f32 %v6524_v16  ;;  %v234_v16 = vsub.s32 4, %v9208_v7  ;;  %v612_v5 = vadd.f32 %v11342_v48, %v9242_v47 }
 0x354   :  { %7371 = vpow2.f32 %v6525_v35 }
 0x355   :  { %7373 = vpow2.f32 %v6526_v57  ;;  %v9238_v58 = vrot.slane %v214_v19, %v234_v16 }
 0x357   :  { %11339 = vst [vmem:[#allocation24_spill] sm:$0xff] %v9238_v58 }
 0x35d   :  { %v7368_v21 = vpop.eup %7367 }
 0x35e   :  { %v2245_v38 = vadd.f32 1.0, %v7368_v21 }
 0x360   :  { %v7370_v40 = vpop.eup %7369  ;;  %7375 = vrcp.f32 %v2245_v38  ;;  %v11341_v38 = vld [vmem:[#allocation25_spill] sm:$0xff] }
 0x361   :  { %v2246_v6 = vadd.f32 1.0, %v7370_v40  ;;  %v7372_v18 = vpop.eup %7371 }
 0x362   :  { %v7374_v30 = vpop.eup %7373  ;;  %v2259_v29 = vadd.f32 1.0, %v7372_v18 }
 0x363   :  { %7377 = vrcp.f32 %v2246_v6  ;;  %v2260_v40 = vadd.f32 1.0, %v7374_v30  ;;  %v610_v6 = vadd.f32 %v11341_v38, %v9238_v58 }
 0x364   :  { %7379 = vrcp.f32 %v2259_v29 }
 0x365   :  { %7381 = vrcp.f32 %v2260_v40  ;;  %v11350_v40 = vld [vmem:[#allocation98_spill] sm:$0xff] }
 0x36d   :  { %v7376_v57 = vpop.eup %7375 }
 0x370   :  { %v7378_v16 = vpop.eup %7377 }
 0x385   :  { %v2230_v20 = vpop.f32.mrf.mxu0 }
 0x386   :  { %v2265_v35 = vadd.f32 %v2230_v20, %v9236_v23  ;;  %v7380_v20 = vpop.eup %7379 }
 0x387   :  { %v2232_v21 = vpop.f32.mrf.mxu0  ;;  %v7382_v23 = vpop.eup %7381  ;;  %v2273_v3 = vsub.f32 1.0, %v7380_v20 }
 0x388   :  { %v2267_v34 = vmul.f32 %v7376_v57, %v2265_v35  ;;  %v2266_v7 = vadd.f32 %v2232_v21, %v9240_v27  ;;  %v2274_v29 = vsub.f32 1.0, %v7382_v23  ;;  %v2277_v57 = vmul.f32 0.0, %v7380_v20  ;;  %v11367_v20 = vld [vmem:[#allocation110_spill] sm:$0xff] }
 0x389   :  { %v2234_v0 = vpop.f32.mrf.mxu0 }
 0x38a   :  { %v2269_v19 = vadd.f32 %v2267_v34, %v610_v6  ;;  %v2268_v18 = vmul.f32 %v7378_v16, %v2266_v7  ;;  %v2278_v0 = vmul.f32 0.0, %v7382_v23  ;;  %v11344_v23 = vld [vmem:[#allocation91_spill] sm:$0xff]  ;;  %v11353_v16 = vld [vmem:[#allocation100_spill] sm:$0xff] }
 0x38b   :  { %v2235_v62 = vpop.f32.mrf.mxu0  ;;  %v11352_v6 = vld [vmem:[#allocation99_spill] sm:$0xff] }
 0x38c   :  { %7383 = vtanh.f32 %v2269_v19  ;;  %v2270_v30 = vadd.f32 %v2268_v18, %v612_v5  ;;  %v11355_v5 = vld [vmem:[#allocation58_spill] sm:$0xff]  ;;  %v11356_v19 = vld [vmem:[#allocation101_spill] sm:$0xff] }
 0x38d   :  { %v11357_v18 = vld [vmem:[#allocation102_spill] sm:$0xff] }
 0x38e   :  { %7385 = vtanh.f32 %v2270_v30  ;;  %v11359_v62 = vld [vmem:[#allocation62_spill] sm:$0xff]  ;;  %v11360_v30 = vld [vmem:[#allocation103_spill] sm:$0xff] }
 0x399   :  { %v7384_v38 = vpop.eup %7383 }
 0x39a   :  { %v2275_v35 = vmul.f32 %v7384_v38, %v2273_v3  ;;  %v11343_v3 = vld [vmem:[#allocation90_spill] sm:$0xff]  ;;  %v11368_v38 = vld [vmem:[#allocation84_spill] sm:$0xff] }
 0x39b   :  { %v7386_v21 = vpop.eup %7385 }
 0x39c   :  { %v2276_v27 = vmul.f32 %v7386_v21, %v2274_v29  ;;  %v9250_v58 = vadd.f32 %v2277_v57, %v2275_v35  ;;  %v11369_v29 = vld [vmem:[#allocation111_spill] sm:$0xff]  ;;  %v11370_v35 = vld [vmem:[#allocation42_spill] sm:$0xff]  ;;  %v11372_v21 = vld [vmem:[#allocation89_spill] sm:$0xff] }
 0x39d   :  { %v11371_v57 = vld [vmem:[#allocation87_spill] sm:$0xff] }
 0x39e   :  { %v9252_v48 = vadd.f32 %v2278_v0, %v2276_v27  ;;  %v9258_v34 = vpack.c.bf16 %v9250_v58, %v9250_v58  ;;  %v11345_v27 = vld [vmem:[#allocation47_spill] sm:$0xff]  ;;  %v11373_v0 = vld [vmem:[#allocation49_spill] sm:$0xff] }
 0x3a0   :  { %v2282_v7 = vpack.c.bf16 %v9252_v48, %v9252_v48 }
 0x3a2   :  { %2315 = vmatprep.mubr.bf16.mxu1 %v2282_v7  ;;  %2356 = vmatprep.mubr.bf16.mxu0 %v2282_v7 }
 0x3a3   :  { %2316 = vmatmul.mubr.bf16.vlgmr.msra.gmra.mxu1 %v9258_v34  ;;  %2357 = vmatmul.mubr.bf16.vlgmr.msra.gmra.mxu0 %v9258_v34 }
 0x3a4   :  { %2366 = vmatpush1.bf16.msra.mxu1 %v11343_v3  ;;  %2397 = vmatprep.mubr.bf16.mxu1 %v2282_v7  ;;  %v11374_v7 = vld [vmem:[#allocation51_spill] sm:$0xff] }
 0x3a5   :  { %2367 = vmatprep.subr.bf16.mxu1 %v11344_v23  ;;  %2453 = vmatpush1.bf16.msra.mxu0 %v8789_v49  ;;  %v11346_v49 = vld [vmem:[#allocation96_spill] sm:$0xff] }
 0x3a6   :  { %2454 = vmatprep.subr.bf16.mxu0 %v8795_v51  ;;  %v11347_v51 = vld [vmem:[#allocation48_spill] sm:$0xff] }
 0x3a8   :  { %2368 = vmatpush1.bf16.msra.mxu1 %v9016_v31 }
 0x3a9   :  { %2369 = vmatprep.subr.bf16.mxu1 %v9022_v22  ;;  %2455 = vmatpush1.bf16.msra.mxu0 %v8811_v55  ;;  %v11348_v55 = vld [vmem:[#allocation97_spill] sm:$0xff] }
 0x3aa   :  { %2456 = vmatprep.subr.bf16.mxu0 %v8821_v59  ;;  %v11349_v59 = vld [vmem:[#allocation50_spill] sm:$0xff] }
 0x3ac   :  { %2370 = vmatpush1.bf16.msra.mxu1 %v9029_v32 }
 0x3ad   :  { %2371 = vmatprep.subr.bf16.mxu1 %v9032_v15  ;;  %2457 = vmatpush1.bf16.msra.mxu0 %v11345_v27  ;;  %v11375_v27 = vld [vmem:[#allocation52_spill] sm:$0xff] }
 0x3ae   :  { %2458 = vmatprep.subr.bf16.mxu0 %v8835_v37  ;;  %v11351_v37 = vld [vmem:[#allocation53_spill] sm:$0xff] }
 0x3b0   :  { %2372 = vmatpush1.bf16.msra.mxu1 %v9037_v45 }
 0x3b1   :  { %2373 = vmatprep.subr.bf16.mxu1 %v11346_v49  ;;  %2459 = vmatpush1.bf16.msra.mxu0 %v11347_v51  ;;  %v11384_v51 = vld [vmem:[#allocation68_spill] sm:$0xff] }
 0x3b2   :  { %2460 = vmatprep.subr.bf16.mxu0 %v8847_v60  ;;  %v11354_v60 = vld [vmem:[#allocation56_spill] sm:$0xff] }
 0x3b4   :  { %2374 = vmatpush1.bf16.msra.mxu1 %v9045_v12 }
 0x3b5   :  { %2375 = vmatprep.subr.bf16.mxu1 %v11348_v55  ;;  %2461 = vmatpush1.bf16.msra.mxu0 %v11349_v59  ;;  %v11385_v59 = vld [vmem:[#allocation71_spill] sm:$0xff] }
 0x3b6   :  { %2462 = vmatprep.subr.bf16.mxu0 %v8859_v2  ;;  %v11358_v2 = vld [vmem:[#allocation60_spill] sm:$0xff] }
 0x3b8   :  { %2376 = vmatpush1.bf16.msra.mxu1 %v9053_v1 }
 0x3b9   :  { %2377 = vmatprep.subr.bf16.mxu1 %v11350_v40  ;;  %2463 = vmatpush1.bf16.msra.mxu0 %v11351_v37  ;;  %v11386_v37 = vld [vmem:[#allocation73_spill] sm:$0xff] }
 0x3ba   :  { %2464 = vmatprep.subr.bf16.mxu0 %v8871_v4  ;;  %v11361_v4 = vld [vmem:[#allocation72_spill] sm:$0xff] }
 0x3bc   :  { %2378 = vmatpush1.bf16.msra.mxu1 %v11352_v6 }
 0x3bd   :  { %2379 = vmatprep.subr.bf16.mxu1 %v11353_v16  ;;  %2465 = vmatpush1.bf16.msra.mxu0 %v11354_v60  ;;  %v11387_v60 = vld [vmem:[#allocation74_spill] sm:$0xff] }
 0x3be   :  { %2466 = vmatprep.subr.bf16.mxu0 %v11355_v5  ;;  %v11388_v5 = vld [vmem:[#allocation76_spill] sm:$0xff] }
 0x3c0   :  { %2380 = vmatpush1.bf16.msra.mxu1 %v11356_v19 }
 0x3c1   :  { %2381 = vmatprep.subr.bf16.mxu1 %v11357_v18  ;;  %2467 = vmatpush1.bf16.msra.mxu0 %v11358_v2  ;;  %v11389_v2 = vld [vmem:[#allocation77_spill] sm:$0xff] }
 0x3c2   :  { %2468 = vmatprep.subr.bf16.mxu0 %v11359_v62  ;;  %v11390_v62 = vld [vmem:[#allocation78_spill] sm:$0xff] }
 0x3c4   :  { %2382 = vmatpush2.bf16.msra.mxu1 %v11360_v30 }
 0x3c5   :  { %2383 = vmatprep.subr.bf16.mxu1 %v9080_v10  ;;  %2469 = vmatpush2.bf16.msra.mxu0 %v8901_v9  ;;  %v11362_v9 = vld [vmem:[#allocation108_spill] sm:$0xff] }
 0x3c6   :  { %2470 = vmatprep.subr.bf16.mxu0 %v8907_v13  ;;  %v11363_v13 = vld [vmem:[#allocation75_spill] sm:$0xff] }
 0x3c8   :  { %2384 = vmatpush2.bf16.msra.mxu1 %v9089_v14 }
 0x3c9   :  { %2385 = vmatprep.subr.bf16.mxu1 %v9096_v63  ;;  %2471 = vmatpush2.bf16.msra.mxu0 %v8917_v44  ;;  %v11364_v44 = vld [vmem:[#allocation109_spill] sm:$0xff] }
 0x3ca   :  { %2472 = vmatprep.subr.bf16.mxu0 %v8927_v33  ;;  %v11366_v33 = vld [vmem:[#allocation82_spill] sm:$0xff] }
 0x3cc   :  { %2386 = vmatpush2.bf16.msra.mxu1 %v9101_v43 }
 0x3cd   :  { %2387 = vmatprep.subr.bf16.mxu1 %v9104_v36  ;;  %2473 = vmatpush2.bf16.msra.mxu0 %v11361_v4  ;;  %v11391_v4 = vld [vmem:[#allocation79_spill] sm:$0xff] }
 0x3ce   :  { %2474 = vmatprep.subr.bf16.mxu0 %v8939_v53  ;;  %v11365_v53 = vld [vmem:[#allocation80_spill] sm:$0xff] }
 0x3d0   :  { %2388 = vmatpush2.bf16.msra.mxu1 %v9109_v41 }
 0x3d1   :  { %2389 = vmatprep.subr.bf16.mxu1 %v11362_v9  ;;  %2475 = vmatpush2.bf16.msra.mxu0 %v11363_v13  ;;  %v11392_v13 = vld [vmem:[#allocation81_spill] sm:$0xff] }
 0x3d2   :  { %2476 = vmatprep.subr.bf16.mxu0 %v8951_v24 }
 0x3d4   :  { %2390 = vmatpush2.bf16.msra.mxu1 %v9117_v25 }
 0x3d5   :  { %2391 = vmatprep.subr.bf16.mxu1 %v11364_v44  ;;  %2477 = vmatpush2.bf16.msra.mxu0 %v8957_v42 }
 0x3d6   :  { %2478 = vmatprep.subr.bf16.mxu0 %v8963_v17 }
 0x3d8   :  { %2392 = vmatpush2.bf16.msra.mxu1 %v9125_v11 }
 0x3d9   :  { %2393 = vmatprep.subr.bf16.mxu1 %v9128_v54  ;;  %2479 = vmatpush2.bf16.msra.mxu0 %v11365_v53 }
 0x3da   :  { %2480 = vmatprep.subr.bf16.mxu0 %v11366_v33 }
 0x3dc   :  { %2394 = vmatpush2.bf16.msra.mxu1 %v9133_v26 }
 0x3dd   :  { %2395 = vmatprep.subr.bf16.mxu1 %v11367_v20  ;;  %2481 = vmatpush2.bf16.msra.mxu0 %v11368_v38 }
 0x3de   :  { %2482 = vmatprep.subr.bf16.mxu0 %v8987_v8 }
 0x3e0   :  { %2396 = vmatpush2.bf16.msra.mxu1 %v11369_v29 }
 0x3e1   :  { %2493 = vmatprep.subr.bf16.mxu1 %v11370_v35  ;;  %2483 = vmatpush2.bf16.msra.mxu0 %v11371_v57  ;;  %v11393_v35 = vld [vmem:[#allocation83_spill] sm:$0xff] }
 0x3e2   :  { %2534 = vmatprep.subr.bf16.mxu0 %v11372_v21  ;;  %v11404_v21 = vld [vmem:[#allocation23_spill] sm:$0xff] }
 0x3e3   :  { %2398 = vmatmul.mubr.bf16.vlgmr.msra.gmra.mxu1 %v9258_v34  ;;  %v11376_v34 = vld [vmem:[#allocation54_spill] sm:$0xff] }
 0x3e4   :  { %2494 = vmatpush1.bf16.msra.mxu1 %v8791_v50  ;;  %v11377_v50 = vld [vmem:[#allocation55_spill] sm:$0xff] }
 0x3e5   :  { %2495 = vmatprep.subr.bf16.mxu1 %v8797_v52  ;;  %v11378_v52 = vld [vmem:[#allocation57_spill] sm:$0xff] }
 0x3e8   :  { %2496 = vmatpush1.bf16.msra.mxu1 %v8813_v56  ;;  %v11379_v56 = vld [vmem:[#allocation59_spill] sm:$0xff] }
 0x3e9   :  { %2497 = vmatprep.subr.bf16.mxu1 %v8823_v61  ;;  %v11380_v61 = vld [vmem:[#allocation61_spill] sm:$0xff] }
 0x3ec   :  { %2498 = vmatpush1.bf16.msra.mxu1 %v8831_v28  ;;  %v11381_v28 = vld [vmem:[#allocation63_spill] sm:$0xff] }
 0x3ed   :  { %2499 = vmatprep.subr.bf16.mxu1 %v8837_v39  ;;  %v11382_v39 = vld [vmem:[#allocation64_spill] sm:$0xff] }
 0x3f0   :  { %2500 = vmatpush1.bf16.msra.mxu1 %v8843_v46  ;;  %v11383_v46 = vld [vmem:[#allocation65_spill] sm:$0xff] }
 0x3f1   :  { %2501 = vmatprep.subr.bf16.mxu1 %v11373_v0  ;;  %v11394_v0 = vld [vmem:[#allocation85_spill] sm:$0xff] }
 0x3f4   :  { %2502 = vmatpush1.bf16.msra.mxu1 %v11374_v7  ;;  %v11395_v7 = vld [vmem:[#allocation86_spill] sm:$0xff] }
 0x3f5   :  { %2503 = vmatprep.subr.bf16.mxu1 %v11375_v27  ;;  %v11396_v27 = vld [vmem:[#allocation88_spill] sm:$0xff] }
 0x3f8   :  { %2504 = vmatpush1.bf16.msra.mxu1 %v11376_v34  ;;  %v11397_v34 = vld [vmem:[#allocation41_spill] sm:$0xff] }
 0x3f9   :  { %2505 = vmatprep.subr.bf16.mxu1 %v11377_v50 }
 0x3fc   :  { %2506 = vmatpush1.bf16.msra.mxu1 %v11378_v52 }
 0x3fd   :  { %2507 = vmatprep.subr.bf16.mxu1 %v11379_v56 }
 0x400   :  { %2508 = vmatpush1.bf16.msra.mxu1 %v11380_v61 }
 0x401   :  { %2509 = vmatprep.subr.bf16.mxu1 %v11381_v28 }
 0x404   :  { %2510 = vmatpush2.bf16.msra.mxu1 %v11382_v39 }
 0x405   :  { %2511 = vmatprep.subr.bf16.mxu1 %v11383_v46 }
 0x408   :  { %2512 = vmatpush2.bf16.msra.mxu1 %v11384_v51 }
 0x409   :  { %2513 = vmatprep.subr.bf16.mxu1 %v11385_v59  ;;  %v11398_v59 = vld [vmem:[#allocation126_spill] sm:$0xff] }
 0x40c   :  { %2514 = vmatpush2.bf16.msra.mxu1 %v11386_v37  ;;  %v11399_v37 = vld [vmem:[#allocation26_spill] sm:$0xff] }
 0x40d   :  { %2515 = vmatprep.subr.bf16.mxu1 %v11387_v60  ;;  %v658_v60 = vadd.f32 %v11399_v37, %v11398_v59 }
 0x410   :  { %2516 = vmatpush2.bf16.msra.mxu1 %v11388_v5  ;;  %v11400_v5 = vld [vmem:[#allocation127_spill] sm:$0xff] }
 0x411   :  { %2517 = vmatprep.subr.bf16.mxu1 %v11389_v2  ;;  %v11401_v2 = vld [vmem:[#allocation28_spill] sm:$0xff] }
 0x414   :  { %2518 = vmatpush2.bf16.msra.mxu1 %v11390_v62  ;;  %v660_v62 = vadd.f32 %v11401_v2, %v11400_v5 }
 0x415   :  { %2519 = vmatprep.subr.bf16.mxu1 %v11391_v4 }
 0x418   :  { %2520 = vmatpush2.bf16.msra.mxu1 %v11392_v13 }
 0x419   :  { %2521 = vmatprep.subr.bf16.mxu1 %v11393_v35 }
 0x41c   :  { %2522 = vmatpush2.bf16.msra.mxu1 %v11394_v0 }
 0x41d   :  { %2523 = vmatprep.subr.bf16.mxu1 %v11395_v7  ;;  %v11402_v7 = vld [vmem:[#allocation21_spill] sm:$0xff] }
 0x420   :  { %2524 = vmatpush2.bf16.msra.mxu1 %v11396_v27  ;;  %v11403_v27 = vld [vmem:[#allocation29_spill] sm:$0xff] }
 0x421   :  { %2621 = vmatprep.subr.bf16.mxu1 %v11397_v34  ;;  %v699_v34 = vadd.f32 %v11403_v27, %v11402_v7 }
 0x463   :  { %v2317_v50 = vpop.f32.mrf.mxu1  ;;  %v2358_v52 = vpop.f32.mrf.mxu0 }
 0x464   :  { %v2406_v4 = vadd.f32 %v2317_v50, %v658_v60 }
 0x465   :  { %v2319_v56 = vpop.f32.mrf.mxu1  ;;  %v2360_v61 = vpop.f32.mrf.mxu0 }
 0x466   :  { %v2407_v13 = vadd.f32 %v2319_v56, %v660_v62  ;;  %v6527_v35 = vmul.f32 -1.442695, %v2406_v4 }
 0x467   :  { %v2321_v28 = vpop.f32.mrf.mxu1  ;;  %v2362_v39 = vpop.f32.mrf.mxu0 }
 0x468   :  { %v6528_v0 = vmul.f32 -1.442695, %v2407_v13  ;;  %7387 = vpow2.f32 %v6527_v35  ;;  %v11405_v28 = vld [vmem:[#allocation31_spill] sm:$0xff]  ;;  %v11406_v35 = vld [vmem:[#allocation22_spill] sm:$0xff] }
 0x469   :  { %v2322_v46 = vpop.f32.mrf.mxu1  ;;  %v2363_v51 = vpop.f32.mrf.mxu0  ;;  %v701_v39 = vadd.f32 %v11405_v28, %v11404_v21 }
 0x46a   :  { %7389 = vpow2.f32 %v6528_v0  ;;  %v2420_v46 = vadd.f32 %v2358_v52, %v699_v34  ;;  %v11408_v34 = vld [vmem:[#allocation30_spill] sm:$0xff] }
 0x46b   :  { %v2421_v51 = vadd.f32 %v2360_v61, %v701_v39  ;;  %v11407_v61 = vld [vmem:[#allocation24_spill] sm:$0xff] }
 0x46c   :  { %v6529_v57 = vmul.f32 -1.442695, %v2420_v46  ;;  %v740_v28 = vadd.f32 %v11408_v34, %v11407_v61  ;;  %v11409_v39 = vld [vmem:[#allocation128_spill] sm:$0xff] }
 0x46d   :  { %v6530_v29 = vmul.f32 -1.442695, %v2421_v51  ;;  %v11410_v51 = vld [vmem:[#allocation32_spill] sm:$0xff] }
 0x46e   :  { %7391 = vpow2.f32 %v6529_v57 }
 0x46f   :  { %7393 = vpow2.f32 %v6530_v29 }
 0x475   :  { %v7388_v37 = vpop.eup %7387 }
 0x476   :  { %v2414_v2 = vadd.f32 1.0, %v7388_v37  ;;  %v742_v37 = vadd.f32 %v11410_v51, %v9242_v47 }
 0x477   :  { %v7390_v59 = vpop.eup %7389 }
 0x478   :  { %v2415_v50 = vadd.f32 1.0, %v7390_v59  ;;  %7395 = vrcp.f32 %v2414_v2 }
 0x47a   :  { %7397 = vrcp.f32 %v2415_v50 }
 0x47b   :  { %v7392_v56 = vpop.eup %7391 }
 0x47c   :  { %v7394_v60 = vpop.eup %7393  ;;  %v2428_v62 = vadd.f32 1.0, %v7392_v56 }
 0x47d   :  { %v2429_v13 = vadd.f32 1.0, %v7394_v60 }
 0x47e   :  { %7399 = vrcp.f32 %v2428_v62 }
 0x47f   :  { %7401 = vrcp.f32 %v2429_v13 }
 0x485   :  { %v7396_v27 = vpop.eup %7395 }
 0x487   :  { %v7398_v29 = vpop.eup %7397 }
 0x4a3   :  { %v2399_v4 = vpop.f32.mrf.mxu1 }
 0x4a4   :  { %v2434_v0 = vadd.f32 %v2399_v4, %v11406_v35  ;;  %v7400_v4 = vpop.eup %7399 }
 0x4a5   :  { %v2401_v52 = vpop.f32.mrf.mxu1  ;;  %v7402_v35 = vpop.eup %7401  ;;  %v2442_v21 = vsub.f32 1.0, %v7400_v4 }
 0x4a6   :  { %v2436_v57 = vmul.f32 %v7396_v27, %v2434_v0  ;;  %v2435_v46 = vadd.f32 %v2401_v52, %v11409_v39  ;;  %v2443_v62 = vsub.f32 1.0, %v7402_v35  ;;  %v2446_v27 = vmul.f32 %v7400_v4, %v9250_v58  ;;  %v9389_v58 = vld [vmem:[#allocation8 + $0x150] ss:$24 sps:$4 sm:$0xff]  }
 0x4a7   :  { %v2403_v59 = vpop.f32.mrf.mxu1  ;;  %v2447_v39 = vmul.f32 %v7402_v35, %v9252_v48  ;;  %v9392_v48 = vld [vmem:[#allocation8 + $0x124] ss:$24 sps:$4 sm:$0xff]   ;;  %v9566_v4 = vld [vmem:[#allocation8 + $0x248] ss:$24 sps:$4 sm:$0xff]  }
 0x4a8   :  { %v2438_v2 = vadd.f32 %v2436_v57, %v740_v28  ;;  %v2437_v50 = vmul.f32 %v7398_v29, %v2435_v46  ;;  %v9408_v35 = vld [vmem:[#allocation8 + $0xc4] ss:$24 sps:$4 sm:$0xff]   ;;  %v9548_v29 = vld [vmem:[#allocation8 + $0x2d8] ss:$24 sps:$4 sm:$0xff]   ;;  %11442 = vst [vmem:[#allocation42_spill] sm:$0xff] %v9566_v4 }
 0x4a9   :  { %v2404_v56 = vpop.f32.mrf.mxu1  ;;  %v9545_v46 = vld [vmem:[#allocation8 + $0x2dc] ss:$24 sps:$4 sm:$0xff]   ;;  %11436 = vst [vmem:[#allocation75_spill] sm:$0xff] %v9548_v29 }
 0x4aa   :  { %7403 = vtanh.f32 %v2438_v2  ;;  %v2439_v60 = vadd.f32 %v2437_v50, %v742_v37  ;;  %11435 = vst [vmem:[#allocation108_spill] sm:$0xff] %v9545_v46  ;;  %v9551_v37 = vld [vmem:[#allocation8 + $0x2ac] ss:$24 sps:$4 sm:$0xff]   ;;  %v9554_v2 = vld [vmem:[#allocation8 + $0x2a8] ss:$24 sps:$4 sm:$0xff]  }
 0x4ab   :  { %11437 = vst [vmem:[#allocation109_spill] sm:$0xff] %v9551_v37  ;;  %11438 = vst [vmem:[#allocation80_spill] sm:$0xff] %v9554_v2  ;;  %v9557_v50 = vld [vmem:[#allocation8 + $0x27c] ss:$24 sps:$4 sm:$0xff]   ;;  %v9560_v56 = vld [vmem:[#allocation8 + $0x278] ss:$24 sps:$4 sm:$0xff]  }
 0x4ac   :  { %7405 = vtanh.f32 %v2439_v60  ;;  %11439 = vst [vmem:[#allocation82_spill] sm:$0xff] %v9557_v50  ;;  %11440 = vst [vmem:[#allocation110_spill] sm:$0xff] %v9560_v56  ;;  %v9563_v60 = vld [vmem:[#allocation8 + $0x24c] ss:$24 sps:$4 sm:$0xff]  }
 0x4ad   :  { %11441 = vst [vmem:[#allocation84_spill] sm:$0xff] %v9563_v60 }
 0x4b7   :  { %v7404_v34 = vpop.eup %7403 }
 0x4b8   :  { %v2444_v0 = vmul.f32 %v7404_v34, %v2442_v21  ;;  %v9397_v21 = vld [vmem:[#allocation8 + $0x120] ss:$24 sps:$4 sm:$0xff]   ;;  %v9569_v34 = vld [vmem:[#allocation8 + $0x21c] ss:$24 sps:$4 sm:$0xff]  }
 0x4b9   :  { %v7406_v52 = vpop.eup %7405  ;;  %11443 = vst [vmem:[#allocation49_spill] sm:$0xff] %v9569_v34 }
 0x4ba   :  { %v2445_v59 = vmul.f32 %v7406_v52, %v2443_v62  ;;  %v9375_v51 = vadd.f32 %v2446_v27, %v2444_v0  ;;  %v9572_v62 = vld [vmem:[#allocation8 + $0x218] ss:$24 sps:$4 sm:$0xff]   ;;  %v9575_v0 = vld [vmem:[#allocation8 + $0x1ec] ss:$24 sps:$4 sm:$0xff]   ;;  %v9578_v27 = vld [vmem:[#allocation8 + $0x1e8] ss:$24 sps:$4 sm:$0xff]  }
 0x4bb   :  { %11444 = vst [vmem:[#allocation51_spill] sm:$0xff] %v9572_v62  ;;  %11445 = vst [vmem:[#allocation52_spill] sm:$0xff] %v9575_v0  ;;  %v9581_v52 = vld [vmem:[#allocation8 + $0x1bc] ss:$24 sps:$4 sm:$0xff]  }
 0x4bc   :  { %v9377_v13 = vadd.f32 %v2447_v39, %v2445_v59  ;;  %v9383_v57 = vpack.c.bf16 %v9375_v51, %v9375_v51  ;;  %v9542_v39 = vld [vmem:[#allocation8 + $0x8] ss:$24 sps:$4 sm:$0xff]   ;;  %11446 = vst [vmem:[#allocation54_spill] sm:$0xff] %v9578_v27  ;;  %11447 = vst [vmem:[#allocation55_spill] sm:$0xff] %v9581_v52  ;;  %v9584_v59 = vld [vmem:[#allocation8 + $0x1b8] ss:$24 sps:$4 sm:$0xff]  }
 0x4bd   :  { %11434 = vst [vmem:[#allocation72_spill] sm:$0xff] %v9542_v39  ;;  %11448 = vst [vmem:[#allocation57_spill] sm:$0xff] %v9584_v59 }
 0x4be   :  { %v2451_v28 = vpack.c.bf16 %v9377_v13, %v9377_v13 }
 0x4c0   :  { %2484 = vmatprep.mubr.bf16.mxu0 %v2451_v28  ;;  %2525 = vmatprep.mubr.bf16.mxu1 %v2451_v28 }
 0x4c1   :  { %2485 = vmatmul.mubr.bf16.vlgmr.msra.gmra.mxu0 %v9383_v57  ;;  %2526 = vmatmul.mubr.bf16.vlgmr.msra.gmra.mxu1 %v9383_v57 }
 0x4c2   :  { %2535 = vmatpush1.bf16.msra.mxu0 %v11343_v3  ;;  %2566 = vmatprep.mubr.bf16.mxu0 %v2451_v28  ;;  %v9400_v3 = vld [vmem:[#allocation8 + $0xf4] ss:$24 sps:$4 sm:$0xff]  }
 0x4c3   :  { %2536 = vmatprep.subr.bf16.mxu0 %v11344_v23  ;;  %2622 = vmatpush1.bf16.msra.mxu1 %v9389_v58  ;;  %v9405_v23 = vld [vmem:[#allocation8 + $0xf0] ss:$24 sps:$4 sm:$0xff]   ;;  %v9587_v28 = vld [vmem:[#allocation8 + $0x18c] ss:$24 sps:$4 sm:$0xff]  }
 0x4c4   :  { %2623 = vmatprep.subr.bf16.mxu1 %v9392_v48  ;;  %11449 = vst [vmem:[#allocation59_spill] sm:$0xff] %v9587_v28 }
 0x4c6   :  { %2537 = vmatpush1.bf16.msra.mxu0 %v9016_v31  ;;  %v9416_v31 = vld [vmem:[#allocation8 + $0x94] ss:$24 sps:$4 sm:$0xff]  }
 0x4c7   :  { %2538 = vmatprep.subr.bf16.mxu0 %v9022_v22  ;;  %2624 = vmatpush1.bf16.msra.mxu1 %v9397_v21  ;;  %v9413_v22 = vld [vmem:[#allocation8 + $0xc0] ss:$24 sps:$4 sm:$0xff]  }
 0x4c8   :  { %2625 = vmatprep.subr.bf16.mxu1 %v9400_v3 }
 0x4ca   :  { %2539 = vmatpush1.bf16.msra.mxu0 %v9029_v32  ;;  %v9421_v32 = vld [vmem:[#allocation8 + $0x90] ss:$24 sps:$4 sm:$0xff]  }
 0x4cb   :  { %2540 = vmatprep.subr.bf16.mxu0 %v9032_v15  ;;  %2626 = vmatpush1.bf16.msra.mxu1 %v9405_v23  ;;  %v9424_v15 = vld [vmem:[#allocation8 + $0x64] ss:$24 sps:$4 sm:$0xff]  }
 0x4cc   :  { %2627 = vmatprep.subr.bf16.mxu1 %v9408_v35 }
 0x4ce   :  { %2541 = vmatpush1.bf16.msra.mxu0 %v9037_v45  ;;  %v9429_v45 = vld [vmem:[#allocation8 + $0x60] ss:$24 sps:$4 sm:$0xff]  }
 0x4cf   :  { %2542 = vmatprep.subr.bf16.mxu0 %v11346_v49  ;;  %2628 = vmatpush1.bf16.msra.mxu1 %v9413_v22  ;;  %v9432_v49 = vld [vmem:[#allocation8 + $0x34] ss:$24 sps:$4 sm:$0xff]  }
 0x4d0   :  { %2629 = vmatprep.subr.bf16.mxu1 %v9416_v31 }
 0x4d2   :  { %2543 = vmatpush1.bf16.msra.mxu0 %v9045_v12  ;;  %v9437_v12 = vld [vmem:[#allocation8 + $0x30] ss:$24 sps:$4 sm:$0xff]  }
 0x4d3   :  { %2544 = vmatprep.subr.bf16.mxu0 %v11348_v55  ;;  %2630 = vmatpush1.bf16.msra.mxu1 %v9421_v32  ;;  %v9440_v55 = vld [vmem:[#allocation8 + $0x4] ss:$24 sps:$4 sm:$0xff]  }
 0x4d4   :  { %2631 = vmatprep.subr.bf16.mxu1 %v9424_v15 }
 0x4d6   :  { %2545 = vmatpush1.bf16.msra.mxu0 %v9053_v1  ;;  %v9445_v1 = vld [vmem:[#allocation8] ss:$24 sps:$4 sm:$0xff]  }
 0x4d7   :  { %2546 = vmatprep.subr.bf16.mxu0 %v11350_v40  ;;  %2632 = vmatpush1.bf16.msra.mxu1 %v9429_v45  ;;  %v9448_v40 = vld [vmem:[#allocation8 + $0x2d4] ss:$24 sps:$4 sm:$0xff]  }
 0x4d8   :  { %2633 = vmatprep.subr.bf16.mxu1 %v9432_v49 }
 0x4da   :  { %2547 = vmatpush1.bf16.msra.mxu0 %v11352_v6  ;;  %v9453_v6 = vld [vmem:[#allocation8 + $0x2d0] ss:$24 sps:$4 sm:$0xff]  }
 0x4db   :  { %2548 = vmatprep.subr.bf16.mxu0 %v11353_v16  ;;  %2634 = vmatpush1.bf16.msra.mxu1 %v9437_v12  ;;  %v9456_v16 = vld [vmem:[#allocation8 + $0x2a4] ss:$24 sps:$4 sm:$0xff]  }
 0x4dc   :  { %2635 = vmatprep.subr.bf16.mxu1 %v9440_v55 }
 0x4de   :  { %2549 = vmatpush1.bf16.msra.mxu0 %v11356_v19  ;;  %v9461_v19 = vld [vmem:[#allocation8 + $0x2a0] ss:$24 sps:$4 sm:$0xff]  }
 0x4df   :  { %2550 = vmatprep.subr.bf16.mxu0 %v11357_v18  ;;  %2636 = vmatpush1.bf16.msra.mxu1 %v9445_v1  ;;  %11411 = vst [vmem:[#allocation25_spill] sm:$0xff] %v9461_v19  ;;  %v9464_v18 = vld [vmem:[#allocation8 + $0x274] ss:$24 sps:$4 sm:$0xff]  }
 0x4e0   :  { %2637 = vmatprep.subr.bf16.mxu1 %v9448_v40  ;;  %11412 = vst [vmem:[#allocation27_spill] sm:$0xff] %v9464_v18 }
 0x4e2   :  { %2551 = vmatpush2.bf16.msra.mxu0 %v11360_v30  ;;  %v9472_v30 = vld [vmem:[#allocation8 + $0x244] ss:$24 sps:$4 sm:$0xff]  }
 0x4e3   :  { %2552 = vmatprep.subr.bf16.mxu0 %v9080_v10  ;;  %2638 = vmatpush2.bf16.msra.mxu1 %v9453_v6  ;;  %v9469_v10 = vld [vmem:[#allocation8 + $0x270] ss:$24 sps:$4 sm:$0xff]   ;;  %11414 = vst [vmem:[#allocation91_spill] sm:$0xff] %v9472_v30 }
 0x4e4   :  { %2639 = vmatprep.subr.bf16.mxu1 %v9456_v16  ;;  %11413 = vst [vmem:[#allocation90_spill] sm:$0xff] %v9469_v10 }
 0x4e6   :  { %2553 = vmatpush2.bf16.msra.mxu0 %v9089_v14  ;;  %v9500_v14 = vld [vmem:[#allocation8 + $0x158] ss:$24 sps:$4 sm:$0xff]  }
 0x4e7   :  { %2554 = vmatprep.subr.bf16.mxu0 %v9096_v63  ;;  %2640 = vmatpush2.bf16.msra.mxu1 %v9461_v19  ;;  %v9477_v63 = vld [vmem:[#allocation8 + $0x240] ss:$24 sps:$4 sm:$0xff]   ;;  %11420 = vst [vmem:[#allocation48_spill] sm:$0xff] %v9500_v14 }
 0x4e8   :  { %2641 = vmatprep.subr.bf16.mxu1 %v9464_v18  ;;  %11415 = vst [vmem:[#allocation47_spill] sm:$0xff] %v9477_v63 }
 0x4ea   :  { %2555 = vmatpush2.bf16.msra.mxu0 %v9101_v43  ;;  %v11416_v43 = vld [vmem:[#allocation111_spill] sm:$0xff] }
 0x4eb   :  { %2556 = vmatprep.subr.bf16.mxu0 %v9104_v36  ;;  %2642 = vmatpush2.bf16.msra.mxu1 %v9469_v10  ;;  %v9503_v36 = vld [vmem:[#allocation8 + $0x12c] ss:$24 sps:$4 sm:$0xff]  }
 0x4ec   :  { %2643 = vmatprep.subr.bf16.mxu1 %v9472_v30  ;;  %11421 = vst [vmem:[#allocation97_spill] sm:$0xff] %v9503_v36 }
 0x4ee   :  { %2557 = vmatpush2.bf16.msra.mxu0 %v9109_v41  ;;  %v9512_v41 = vld [vmem:[#allocation8 + $0xf8] ss:$24 sps:$4 sm:$0xff]  }
 0x4ef   :  { %2558 = vmatprep.subr.bf16.mxu0 %v11362_v9  ;;  %2644 = vmatpush2.bf16.msra.mxu1 %v9477_v63  ;;  %11424 = vst [vmem:[#allocation53_spill] sm:$0xff] %v9512_v41  ;;  %v9524_v9 = vld [vmem:[#allocation8 + $0x98] ss:$24 sps:$4 sm:$0xff]  }
 0x4f0   :  { %2645 = vmatprep.subr.bf16.mxu1 %v8951_v24  ;;  %v9509_v24 = vld [vmem:[#allocation8 + $0xfc] ss:$24 sps:$4 sm:$0xff]   ;;  %11428 = vst [vmem:[#allocation58_spill] sm:$0xff] %v9524_v9 }
 0x4f1   :  { %11423 = vst [vmem:[#allocation98_spill] sm:$0xff] %v9509_v24 }
 0x4f2   :  { %2559 = vmatpush2.bf16.msra.mxu0 %v9117_v25  ;;  %v9518_v25 = vld [vmem:[#allocation8 + $0xc8] ss:$24 sps:$4 sm:$0xff]  }
 0x4f3   :  { %2560 = vmatprep.subr.bf16.mxu0 %v11364_v44  ;;  %2646 = vmatpush2.bf16.msra.mxu1 %v8957_v42  ;;  %v9494_v42 = vld [vmem:[#allocation8 + $0x15c] ss:$24 sps:$4 sm:$0xff]   ;;  %11426 = vst [vmem:[#allocation100_spill] sm:$0xff] %v9518_v25  ;;  %v9527_v44 = vld [vmem:[#allocation8 + $0x6c] ss:$24 sps:$4 sm:$0xff]  }
 0x4f4   :  { %2647 = vmatprep.subr.bf16.mxu1 %v8963_v17  ;;  %11417 = vst [vmem:[#allocation96_spill] sm:$0xff] %v9494_v42  ;;  %v11418_v17 = vld [vmem:[#allocation87_spill] sm:$0xff]  ;;  %11429 = vst [vmem:[#allocation101_spill] sm:$0xff] %v9527_v44 }
 0x4f6   :  { %2561 = vmatpush2.bf16.msra.mxu0 %v9125_v11  ;;  %v9521_v11 = vld [vmem:[#allocation8 + $0x9c] ss:$24 sps:$4 sm:$0xff]  }
 0x4f7   :  { %2562 = vmatprep.subr.bf16.mxu0 %v9128_v54  ;;  %2648 = vmatpush2.bf16.msra.mxu1 %v11365_v53  ;;  %v11419_v54 = vld [vmem:[#allocation89_spill] sm:$0xff]  ;;  %11427 = vst [vmem:[#allocation56_spill] sm:$0xff] %v9521_v11 }
 0x4f8   :  { %2649 = vmatprep.subr.bf16.mxu1 %v11366_v33  ;;  %v9530_v53 = vld [vmem:[#allocation8 + $0x68] ss:$24 sps:$4 sm:$0xff]   ;;  %v9533_v33 = vld [vmem:[#allocation8 + $0x3c] ss:$24 sps:$4 sm:$0xff]  }
 0x4f9   :  { %11430 = vst [vmem:[#allocation102_spill] sm:$0xff] %v9530_v53  ;;  %11431 = vst [vmem:[#allocation60_spill] sm:$0xff] %v9533_v33 }
 0x4fa   :  { %2563 = vmatpush2.bf16.msra.mxu0 %v9133_v26  ;;  %v9515_v26 = vld [vmem:[#allocation8 + $0xcc] ss:$24 sps:$4 sm:$0xff]  }
 0x4fb   :  { %2564 = vmatprep.subr.bf16.mxu0 %v11367_v20  ;;  %2650 = vmatpush2.bf16.msra.mxu1 %v11368_v38  ;;  %11425 = vst [vmem:[#allocation99_spill] sm:$0xff] %v9515_v26  ;;  %v9536_v20 = vld [vmem:[#allocation8 + $0x38] ss:$24 sps:$4 sm:$0xff]   ;;  %v9539_v38 = vld [vmem:[#allocation8 + $0xc] ss:$24 sps:$4 sm:$0xff]  }
 0x4fc   :  { %2651 = vmatprep.subr.bf16.mxu1 %v8987_v8  ;;  %v9506_v8 = vld [vmem:[#allocation8 + $0x128] ss:$24 sps:$4 sm:$0xff]   ;;  %11432 = vst [vmem:[#allocation62_spill] sm:$0xff] %v9536_v20  ;;  %11433 = vst [vmem:[#allocation103_spill] sm:$0xff] %v9539_v38 }
 0x4fd   :  { %11422 = vst [vmem:[#allocation50_spill] sm:$0xff] %v9506_v8 }
 0x4fe   :  { %2565 = vmatpush2.bf16.msra.mxu0 %v11416_v43  ;;  %v9593_v43 = vld [vmem:[#allocation8 + $0x154] ss:$24 sps:$4 sm:$0xff]  }
 0x4ff   :  { %2662 = vmatprep.subr.bf16.mxu0 %v9494_v42  ;;  %2652 = vmatpush2.bf16.msra.mxu1 %v11418_v17  ;;  %11451 = vst [vmem:[#allocation63_spill] sm:$0xff] %v9593_v43 }
 0x500   :  { %2703 = vmatprep.subr.bf16.mxu1 %v11419_v54 }
 0x501   :  { %2567 = vmatmul.mubr.bf16.vlgmr.msra.gmra.mxu0 %v9383_v57  ;;  %v9590_v57 = vld [vmem:[#allocation8 + $0x188] ss:$24 sps:$4 sm:$0xff]  }
 0x502   :  { %2663 = vmatpush1.bf16.msra.mxu0 %v9500_v14  ;;  %11450 = vst [vmem:[#allocation61_spill] sm:$0xff] %v9590_v57 }
 0x503   :  { %2664 = vmatprep.subr.bf16.mxu0 %v9503_v36 }
 0x506   :  { %2665 = vmatpush1.bf16.msra.mxu0 %v9506_v8 }
 0x507   :  { %2666 = vmatprep.subr.bf16.mxu0 %v9509_v24 }
 0x50a   :  { %2667 = vmatpush1.bf16.msra.mxu0 %v9512_v41 }
 0x50b   :  { %2668 = vmatprep.subr.bf16.mxu0 %v9515_v26 }
 0x50e   :  { %2669 = vmatpush1.bf16.msra.mxu0 %v9518_v25 }
 0x50f   :  { %2670 = vmatprep.subr.bf16.mxu0 %v9521_v11 }
 0x512   :  { %2671 = vmatpush1.bf16.msra.mxu0 %v9524_v9 }
 0x513   :  { %2672 = vmatprep.subr.bf16.mxu0 %v9527_v44 }
 0x516   :  { %2673 = vmatpush1.bf16.msra.mxu0 %v9530_v53 }
 0x517   :  { %2674 = vmatprep.subr.bf16.mxu0 %v9533_v33 }
 0x51a   :  { %2675 = vmatpush1.bf16.msra.mxu0 %v9536_v20 }
 0x51b   :  { %2676 = vmatprep.subr.bf16.mxu0 %v9539_v38 }
 0x51e   :  { %2677 = vmatpush1.bf16.msra.mxu0 %v9542_v39  ;;  %v11456_v39 = vld [vmem:[#allocation23_spill] sm:$0xff] }
 0x51f   :  { %2678 = vmatprep.subr.bf16.mxu0 %v9545_v46 }
 0x522   :  { %2679 = vmatpush2.bf16.msra.mxu0 %v9548_v29 }
 0x523   :  { %2680 = vmatprep.subr.bf16.mxu0 %v9551_v37 }
 0x526   :  { %2681 = vmatpush2.bf16.msra.mxu0 %v9554_v2 }
 0x527   :  { %2682 = vmatprep.subr.bf16.mxu0 %v9557_v50 }
 0x52a   :  { %2683 = vmatpush2.bf16.msra.mxu0 %v9560_v56 }
 0x52b   :  { %2684 = vmatprep.subr.bf16.mxu0 %v9563_v60  ;;  %v11453_v60 = vld [vmem:[#allocation33_spill] sm:$0xff] }
 0x52e   :  { %2685 = vmatpush2.bf16.msra.mxu0 %v9566_v4  ;;  %v11452_v4 = vld [vmem:[#allocation126_spill] sm:$0xff] }
 0x52f   :  { %2686 = vmatprep.subr.bf16.mxu0 %v9569_v34  ;;  %v788_v56 = vadd.f32 %v11453_v60, %v11452_v4 }
 0x532   :  { %2687 = vmatpush2.bf16.msra.mxu0 %v9572_v62 }
 0x533   :  { %2688 = vmatprep.subr.bf16.mxu0 %v9575_v0 }
 0x536   :  { %2689 = vmatpush2.bf16.msra.mxu0 %v9578_v27 }
 0x537   :  { %2690 = vmatprep.subr.bf16.mxu0 %v9581_v52 }
 0x53a   :  { %2691 = vmatpush2.bf16.msra.mxu0 %v9584_v59 }
 0x53b   :  { %2692 = vmatprep.subr.bf16.mxu0 %v9587_v28  ;;  %v11454_v28 = vld [vmem:[#allocation35_spill] sm:$0xff] }
 0x53c   :  { %v790_v50 = vadd.f32 %v11454_v28, %v11400_v5 }
 0x53e   :  { %2693 = vmatpush2.bf16.msra.mxu0 %v9590_v57 }
 0x53f   :  { %2790 = vmatprep.subr.bf16.mxu0 %v9593_v43  ;;  %v11455_v43 = vld [vmem:[#allocation34_spill] sm:$0xff] }
 0x540   :  { %v829_v46 = vadd.f32 %v11455_v43, %v11402_v7 }
 0x581   :  { %v2486_v17 = vpop.f32.mrf.mxu0  ;;  %v2527_v54 = vpop.f32.mrf.mxu1 }
 0x582   :  { %v2575_v2 = vadd.f32 %v2486_v17, %v788_v56 }
 0x583   :  { %v2488_v27 = vpop.f32.mrf.mxu0  ;;  %v2529_v52 = vpop.f32.mrf.mxu1 }
 0x584   :  { %v2576_v57 = vadd.f32 %v2488_v27, %v790_v50  ;;  %v6531_v37 = vmul.f32 -1.442695, %v2575_v2 }
 0x585   :  { %v2490_v0 = vpop.f32.mrf.mxu0  ;;  %v2531_v62 = vpop.f32.mrf.mxu1 }
 0x586   :  { %v6532_v29 = vmul.f32 -1.442695, %v2576_v57  ;;  %7407 = vpow2.f32 %v6531_v37  ;;  %v11457_v0 = vld [vmem:[#allocation36_spill] sm:$0xff]  ;;  %v11458_v57 = vld [vmem:[#allocation22_spill] sm:$0xff] }
 0x587   :  { %v2491_v34 = vpop.f32.mrf.mxu0  ;;  %v2532_v59 = vpop.f32.mrf.mxu1  ;;  %v831_v62 = vadd.f32 %v11457_v0, %v11456_v39  ;;  %v11460_v0 = vld [vmem:[#allocation128_spill] sm:$0xff] }
 0x588   :  { %7409 = vpow2.f32 %v6532_v29  ;;  %v2589_v34 = vadd.f32 %v2527_v54, %v829_v46 }
 0x589   :  { %v2590_v59 = vadd.f32 %v2529_v52, %v831_v62  ;;  %v11459_v52 = vld [vmem:[#allocation37_spill] sm:$0xff] }
 0x58a   :  { %v6533_v38 = vmul.f32 -1.442695, %v2589_v34  ;;  %v870_v54 = vadd.f32 %v11459_v52, %v11407_v61  ;;  %v11461_v34 = vld [vmem:[#allocation39_spill] sm:$0xff] }
 0x58b   :  { %v6534_v20 = vmul.f32 -1.442695, %v2590_v59  ;;  %v872_v59 = vadd.f32 %v11461_v34, %v9242_v47 }
 0x58c   :  { %7411 = vpow2.f32 %v6533_v38 }
 0x58d   :  { %7413 = vpow2.f32 %v6534_v20 }
 0x593   :  { %v7408_v60 = vpop.eup %7407 }
 0x594   :  { %v2583_v28 = vadd.f32 1.0, %v7408_v60 }
 0x595   :  { %v7410_v4 = vpop.eup %7409 }
 0x596   :  { %v2584_v50 = vadd.f32 1.0, %v7410_v4  ;;  %7415 = vrcp.f32 %v2583_v28 }
 0x598   :  { %7417 = vrcp.f32 %v2584_v50 }
 0x599   :  { %v7412_v37 = vpop.eup %7411 }
 0x59a   :  { %v7414_v29 = vpop.eup %7413  ;;  %v2597_v2 = vadd.f32 1.0, %v7412_v37 }
 0x59b   :  { %v2598_v27 = vadd.f32 1.0, %v7414_v29 }
 0x59c   :  { %7419 = vrcp.f32 %v2597_v2 }
 0x59d   :  { %7421 = vrcp.f32 %v2598_v27 }
 0x5a3   :  { %v7416_v17 = vpop.eup %7415 }
 0x5a5   :  { %v7418_v20 = vpop.eup %7417 }
 0x5a9   :  { %v7420_v29 = vpop.eup %7419 }
 0x5c1   :  { %v2568_v56 = vpop.f32.mrf.mxu0 }
 0x5c2   :  { %v2603_v43 = vadd.f32 %v2568_v56, %v11458_v57  ;;  %v7422_v56 = vpop.eup %7421  ;;  %v2611_v57 = vsub.f32 1.0, %v7420_v29 }
 0x5c3   :  { %v2570_v46 = vpop.f32.mrf.mxu0  ;;  %v2612_v2 = vsub.f32 1.0, %v7422_v56 }
 0x5c4   :  { %v2605_v38 = vmul.f32 %v7416_v17, %v2603_v43  ;;  %v2604_v62 = vadd.f32 %v2570_v46, %v11460_v0  ;;  %v2615_v17 = vmul.f32 %v7420_v29, %v9375_v51  ;;  %v2616_v0 = vmul.f32 %v7422_v56, %v9377_v13  ;;  %v9624_v51 = vld [vmem:[#allocation8 + $0x160] ss:$24 sps:$4 sm:$0xff]   ;;  %v9627_v13 = vld [vmem:[#allocation8 + $0x134] ss:$24 sps:$4 sm:$0xff]   ;;  %v9667_v29 = vld [vmem:[#allocation8 + $0x44] ss:$24 sps:$4 sm:$0xff]  }
 0x5c5   :  { %v2572_v4 = vpop.f32.mrf.mxu0  ;;  %v9672_v56 = vld [vmem:[#allocation8 + $0x40] ss:$24 sps:$4 sm:$0xff]  }
 0x5c6   :  { %v2607_v60 = vadd.f32 %v2605_v38, %v870_v54  ;;  %v2606_v28 = vmul.f32 %v7418_v20, %v2604_v62  ;;  %v9640_v62 = vld [vmem:[#allocation8 + $0x100] ss:$24 sps:$4 sm:$0xff]   ;;  %v9643_v20 = vld [vmem:[#allocation8 + $0xd4] ss:$24 sps:$4 sm:$0xff]  }
 0x5c7   :  { %v2573_v50 = vpop.f32.mrf.mxu0 }
 0x5c8   :  { %7423 = vtanh.f32 %v2607_v60  ;;  %v2608_v37 = vadd.f32 %v2606_v28, %v872_v59  ;;  %v9648_v59 = vld [vmem:[#allocation8 + $0xd0] ss:$24 sps:$4 sm:$0xff]   ;;  %v9651_v60 = vld [vmem:[#allocation8 + $0xa4] ss:$24 sps:$4 sm:$0xff]   ;;  %v9656_v28 = vld [vmem:[#allocation8 + $0xa0] ss:$24 sps:$4 sm:$0xff]  }
 0x5c9   :  { %v9659_v50 = vld [vmem:[#allocation8 + $0x74] ss:$24 sps:$4 sm:$0xff]  }
 0x5ca   :  { %7425 = vtanh.f32 %v2608_v37  ;;  %v9664_v37 = vld [vmem:[#allocation8 + $0x70] ss:$24 sps:$4 sm:$0xff]  }
 0x5d5   :  { %v7424_v52 = vpop.eup %7423 }
 0x5d6   :  { %v2613_v43 = vmul.f32 %v7424_v52, %v2611_v57  ;;  %v9632_v57 = vld [vmem:[#allocation8 + $0x130] ss:$24 sps:$4 sm:$0xff]   ;;  %v9675_v52 = vld [vmem:[#allocation8 + $0x14] ss:$24 sps:$4 sm:$0xff]  }
 0x5d7   :  { %v7426_v46 = vpop.eup %7425 }
 0x5d8   :  { %v2614_v4 = vmul.f32 %v7426_v46, %v2612_v2  ;;  %v9612_v34 = vadd.f32 %v2615_v17, %v2613_v43  ;;  %v9680_v2 = vld [vmem:[#allocation8 + $0x10] ss:$24 sps:$4 sm:$0xff]   ;;  %v9683_v43 = vld [vmem:[#allocation8 + $0x2e4] ss:$24 sps:$4 sm:$0xff]   ;;  %v9688_v17 = vld [vmem:[#allocation8 + $0x2e0] ss:$24 sps:$4 sm:$0xff]  }
 0x5d9   :  { %11462 = vst [vmem:[#allocation64_spill] sm:$0xff] %v9688_v17  ;;  %v9691_v46 = vld [vmem:[#allocation8 + $0x2b4] ss:$24 sps:$4 sm:$0xff]  }
 0x5da   :  { %v9614_v27 = vadd.f32 %v2616_v0, %v2614_v4  ;;  %v9620_v38 = vpack.c.bf16 %v9612_v34, %v9612_v34  ;;  %v9635_v0 = vld [vmem:[#allocation8 + $0x104] ss:$24 sps:$4 sm:$0xff]   ;;  %11463 = vst [vmem:[#allocation65_spill] sm:$0xff] %v9691_v46  ;;  %v9696_v4 = vld [vmem:[#allocation8 + $0x2b0] ss:$24 sps:$4 sm:$0xff]  }
 0x5db   :  { %11464 = vst [vmem:[#allocation68_spill] sm:$0xff] %v9696_v4 }
 0x5dc   :  { %v2620_v54 = vpack.c.bf16 %v9614_v27, %v9614_v27 }
 0x5de   :  { %2653 = vmatprep.mubr.bf16.mxu1 %v2620_v54  ;;  %2694 = vmatprep.mubr.bf16.mxu0 %v2620_v54 }
 0x5df   :  { %2654 = vmatmul.mubr.bf16.vlgmr.msra.gmra.mxu1 %v9620_v38  ;;  %2695 = vmatmul.mubr.bf16.vlgmr.msra.gmra.mxu0 %v9620_v38 }
 0x5e0   :  { %2704 = vmatpush1.bf16.msra.mxu1 %v9624_v51  ;;  %2735 = vmatprep.mubr.bf16.mxu1 %v2620_v54  ;;  %v9699_v54 = vld [vmem:[#allocation8 + $0x284] ss:$24 sps:$4 sm:$0xff]  }
 0x5e1   :  { %2705 = vmatprep.subr.bf16.mxu1 %v9627_v13  ;;  %2791 = vmatpush1.bf16.msra.mxu0 %v9389_v58  ;;  %11465 = vst [vmem:[#allocation71_spill] sm:$0xff] %v9699_v54 }
 0x5e2   :  { %2792 = vmatprep.subr.bf16.mxu0 %v9392_v48 }
 0x5e4   :  { %2706 = vmatpush1.bf16.msra.mxu1 %v9632_v57 }
 0x5e5   :  { %2707 = vmatprep.subr.bf16.mxu1 %v9635_v0  ;;  %2793 = vmatpush1.bf16.msra.mxu0 %v9397_v21 }
 0x5e6   :  { %2794 = vmatprep.subr.bf16.mxu0 %v9400_v3 }
 0x5e8   :  { %2708 = vmatpush1.bf16.msra.mxu1 %v9640_v62 }
 0x5e9   :  { %2709 = vmatprep.subr.bf16.mxu1 %v9643_v20  ;;  %2795 = vmatpush1.bf16.msra.mxu0 %v9405_v23 }
 0x5ea   :  { %2796 = vmatprep.subr.bf16.mxu0 %v9408_v35 }
 0x5ec   :  { %2710 = vmatpush1.bf16.msra.mxu1 %v9648_v59 }
 0x5ed   :  { %2711 = vmatprep.subr.bf16.mxu1 %v9651_v60  ;;  %2797 = vmatpush1.bf16.msra.mxu0 %v9413_v22 }
 0x5ee   :  { %2798 = vmatprep.subr.bf16.mxu0 %v9416_v31 }
 0x5f0   :  { %2712 = vmatpush1.bf16.msra.mxu1 %v9656_v28 }
 0x5f1   :  { %2713 = vmatprep.subr.bf16.mxu1 %v9659_v50  ;;  %2799 = vmatpush1.bf16.msra.mxu0 %v9421_v32 }
 0x5f2   :  { %2800 = vmatprep.subr.bf16.mxu0 %v9424_v15 }
 0x5f4   :  { %2714 = vmatpush1.bf16.msra.mxu1 %v9664_v37 }
 0x5f5   :  { %2715 = vmatprep.subr.bf16.mxu1 %v9667_v29  ;;  %2801 = vmatpush1.bf16.msra.mxu0 %v9429_v45 }
 0x5f6   :  { %2802 = vmatprep.subr.bf16.mxu0 %v9432_v49 }
 0x5f8   :  { %2716 = vmatpush1.bf16.msra.mxu1 %v9672_v56 }
 0x5f9   :  { %2717 = vmatprep.subr.bf16.mxu1 %v9675_v52  ;;  %2803 = vmatpush1.bf16.msra.mxu0 %v9437_v12 }
 0x5fa   :  { %2804 = vmatprep.subr.bf16.mxu0 %v9440_v55 }
 0x5fc   :  { %2718 = vmatpush1.bf16.msra.mxu1 %v9680_v2 }
 0x5fd   :  { %2719 = vmatprep.subr.bf16.mxu1 %v9683_v43  ;;  %2805 = vmatpush1.bf16.msra.mxu0 %v9445_v1 }
 0x5fe   :  { %2806 = vmatprep.subr.bf16.mxu0 %v9448_v40 }
 0x600   :  { %2720 = vmatpush2.bf16.msra.mxu1 %v9688_v17  ;;  %v9704_v17 = vld [vmem:[#allocation8 + $0x280] ss:$24 sps:$4 sm:$0xff]  }
 0x601   :  { %2721 = vmatprep.subr.bf16.mxu1 %v9691_v46  ;;  %2807 = vmatpush2.bf16.msra.mxu0 %v9453_v6  ;;  %11466 = vst [vmem:[#allocation73_spill] sm:$0xff] %v9704_v17  ;;  %v9707_v46 = vld [vmem:[#allocation8 + $0x254] ss:$24 sps:$4 sm:$0xff]  }
 0x602   :  { %2808 = vmatprep.subr.bf16.mxu0 %v9456_v16  ;;  %11467 = vst [vmem:[#allocation74_spill] sm:$0xff] %v9707_v46 }
 0x604   :  { %2722 = vmatpush2.bf16.msra.mxu1 %v9696_v4  ;;  %v9712_v4 = vld [vmem:[#allocation8 + $0x250] ss:$24 sps:$4 sm:$0xff]  }
 0x605   :  { %2723 = vmatprep.subr.bf16.mxu1 %v9699_v54  ;;  %2809 = vmatpush2.bf16.msra.mxu0 %v9461_v19  ;;  %11468 = vst [vmem:[#allocation76_spill] sm:$0xff] %v9712_v4  ;;  %v9715_v54 = vld [vmem:[#allocation8 + $0x224] ss:$24 sps:$4 sm:$0xff]  }
 0x606   :  { %2810 = vmatprep.subr.bf16.mxu0 %v9464_v18  ;;  %11469 = vst [vmem:[#allocation77_spill] sm:$0xff] %v9715_v54  ;;  %v9719_v18 = vld [vmem:[#allocation8 + $0x214] ss:$24 sps:$4 sm:$0xff]  }
 0x607   :  { %11470 = vst [vmem:[#allocation78_spill] sm:$0xff] %v9719_v18 }
 0x608   :  { %2724 = vmatpush2.bf16.msra.mxu1 %v9704_v17  ;;  %v9722_v17 = vld [vmem:[#allocation8 + $0x220] ss:$24 sps:$4 sm:$0xff]  }
 0x609   :  { %2725 = vmatprep.subr.bf16.mxu1 %v9707_v46  ;;  %2811 = vmatpush2.bf16.msra.mxu0 %v9469_v10  ;;  %11471 = vst [vmem:[#allocation79_spill] sm:$0xff] %v9722_v17  ;;  %v9725_v10 = vld [vmem:[#allocation8 + $0x1f4] ss:$24 sps:$4 sm:$0xff]  }
 0x60a   :  { %2812 = vmatprep.subr.bf16.mxu0 %v9472_v30  ;;  %11472 = vst [vmem:[#allocation81_spill] sm:$0xff] %v9725_v10  ;;  %v9728_v30 = vld [vmem:[#allocation8 + $0x210] ss:$24 sps:$4 sm:$0xff]  }
 0x60b   :  { %11473 = vst [vmem:[#allocation83_spill] sm:$0xff] %v9728_v30 }
 0x60c   :  { %2726 = vmatpush2.bf16.msra.mxu1 %v9712_v4  ;;  %v9731_v4 = vld [vmem:[#allocation8 + $0x1e4] ss:$24 sps:$4 sm:$0xff]  }
 0x60d   :  { %2727 = vmatprep.subr.bf16.mxu1 %v9715_v54  ;;  %2813 = vmatpush2.bf16.msra.mxu0 %v9477_v63  ;;  %11474 = vst [vmem:[#allocation85_spill] sm:$0xff] %v9731_v4  ;;  %v9734_v63 = vld [vmem:[#allocation8 + $0x1f0] ss:$24 sps:$4 sm:$0xff]  }
 0x60e   :  { %2814 = vmatprep.subr.bf16.mxu0 %v9719_v18  ;;  %11475 = vst [vmem:[#allocation86_spill] sm:$0xff] %v9734_v63  ;;  %v9737_v18 = vld [vmem:[#allocation8 + $0x1c4] ss:$24 sps:$4 sm:$0xff]  }
 0x60f   :  { %11476 = vst [vmem:[#allocation88_spill] sm:$0xff] %v9737_v18 }
 0x610   :  { %2728 = vmatpush2.bf16.msra.mxu1 %v9722_v17  ;;  %v9740_v17 = vld [vmem:[#allocation8 + $0x1e0] ss:$24 sps:$4 sm:$0xff]  }
 0x611   :  { %2729 = vmatprep.subr.bf16.mxu1 %v9725_v10  ;;  %2815 = vmatpush2.bf16.msra.mxu0 %v9728_v30  ;;  %11477 = vst [vmem:[#allocation41_spill] sm:$0xff] %v9740_v17  ;;  %v9743_v10 = vld [vmem:[#allocation8 + $0x1b4] ss:$24 sps:$4 sm:$0xff]   ;;  %v9746_v30 = vld [vmem:[#allocation8 + $0x1c0] ss:$24 sps:$4 sm:$0xff]  }
 0x612   :  { %2816 = vmatprep.subr.bf16.mxu0 %v9731_v4  ;;  %11478 = vst [vmem:[#allocation26_spill] sm:$0xff] %v9743_v10  ;;  %11479 = vst [vmem:[#allocation127_spill] sm:$0xff] %v9746_v30  ;;  %v9749_v4 = vld [vmem:[#allocation8 + $0x194] ss:$24 sps:$4 sm:$0xff]  }
 0x613   :  { %11480 = vst [vmem:[#allocation28_spill] sm:$0xff] %v9749_v4 }
 0x614   :  { %2730 = vmatpush2.bf16.msra.mxu1 %v9734_v63  ;;  %v9752_v63 = vld [vmem:[#allocation8 + $0x1b0] ss:$24 sps:$4 sm:$0xff]  }
 0x615   :  { %2731 = vmatprep.subr.bf16.mxu1 %v9737_v18  ;;  %2817 = vmatpush2.bf16.msra.mxu0 %v9740_v17  ;;  %11481 = vst [vmem:[#allocation21_spill] sm:$0xff] %v9752_v63  ;;  %v9755_v18 = vld [vmem:[#allocation8 + $0x184] ss:$24 sps:$4 sm:$0xff]   ;;  %v9758_v17 = vld [vmem:[#allocation8 + $0x190] ss:$24 sps:$4 sm:$0xff]  }
 0x616   :  { %2818 = vmatprep.subr.bf16.mxu0 %v9743_v10  ;;  %11482 = vst [vmem:[#allocation29_spill] sm:$0xff] %v9755_v18  ;;  %11483 = vst [vmem:[#allocation31_spill] sm:$0xff] %v9758_v17  ;;  %v9762_v10 = vld [vmem:[#allocation8 + $0x180] ss:$24 sps:$4 sm:$0xff]  }
 0x617   :  { %11484 = vst [vmem:[#allocation24_spill] sm:$0xff] %v9762_v10 }
 0x618   :  { %2732 = vmatpush2.bf16.msra.mxu1 %v9746_v30  ;;  %v9765_v30 = vld [vmem:[#allocation8 + $0x164] ss:$24 sps:$4 sm:$0xff]  }
 0x619   :  { %2733 = vmatprep.subr.bf16.mxu1 %v9749_v4  ;;  %2819 = vmatpush2.bf16.msra.mxu0 %v9752_v63  ;;  %11485 = vst [vmem:[#allocation30_spill] sm:$0xff] %v9765_v30 }
 0x61a   :  { %2820 = vmatprep.subr.bf16.mxu0 %v9755_v18 }
 0x61c   :  { %2734 = vmatpush2.bf16.msra.mxu1 %v9758_v17 }
 0x61d   :  { %2831 = vmatprep.subr.bf16.mxu1 %v9494_v42  ;;  %2821 = vmatpush2.bf16.msra.mxu0 %v9762_v10  ;;  %v11506_v10 = vld [vmem:[#allocation126_spill] sm:$0xff] }
 0x61e   :  { %2872 = vmatprep.subr.bf16.mxu0 %v9765_v30 }
 0x61f   :  { %2736 = vmatmul.mubr.bf16.vlgmr.msra.gmra.mxu1 %v9620_v38  ;;  %v11486_v38 = vld [vmem:[#allocation62_spill] sm:$0xff] }
 0x620   :  { %2832 = vmatpush1.bf16.msra.mxu1 %v9500_v14 }
 0x621   :  { %2833 = vmatprep.subr.bf16.mxu1 %v9503_v36 }
 0x624   :  { %2834 = vmatpush1.bf16.msra.mxu1 %v9506_v8  ;;  %v11487_v8 = vld [vmem:[#allocation103_spill] sm:$0xff] }
 0x625   :  { %2835 = vmatprep.subr.bf16.mxu1 %v9509_v24  ;;  %v11488_v24 = vld [vmem:[#allocation72_spill] sm:$0xff] }
 0x628   :  { %2836 = vmatpush1.bf16.msra.mxu1 %v9512_v41  ;;  %v11489_v41 = vld [vmem:[#allocation108_spill] sm:$0xff] }
 0x629   :  { %2837 = vmatprep.subr.bf16.mxu1 %v9515_v26  ;;  %v11490_v26 = vld [vmem:[#allocation75_spill] sm:$0xff] }
 0x62c   :  { %2838 = vmatpush1.bf16.msra.mxu1 %v9518_v25  ;;  %v11491_v25 = vld [vmem:[#allocation109_spill] sm:$0xff] }
 0x62d   :  { %2839 = vmatprep.subr.bf16.mxu1 %v9521_v11  ;;  %v11492_v11 = vld [vmem:[#allocation80_spill] sm:$0xff] }
 0x630   :  { %2840 = vmatpush1.bf16.msra.mxu1 %v9524_v9  ;;  %v11493_v9 = vld [vmem:[#allocation82_spill] sm:$0xff] }
 0x631   :  { %2841 = vmatprep.subr.bf16.mxu1 %v9527_v44  ;;  %v11494_v44 = vld [vmem:[#allocation110_spill] sm:$0xff] }
 0x634   :  { %2842 = vmatpush1.bf16.msra.mxu1 %v9530_v53  ;;  %v11495_v53 = vld [vmem:[#allocation84_spill] sm:$0xff] }
 0x635   :  { %2843 = vmatprep.subr.bf16.mxu1 %v9533_v33  ;;  %v11496_v33 = vld [vmem:[#allocation42_spill] sm:$0xff] }
 0x638   :  { %2844 = vmatpush1.bf16.msra.mxu1 %v11486_v38  ;;  %v11497_v38 = vld [vmem:[#allocation49_spill] sm:$0xff] }
 0x639   :  { %2845 = vmatprep.subr.bf16.mxu1 %v11487_v8  ;;  %v11498_v8 = vld [vmem:[#allocation51_spill] sm:$0xff] }
 0x63c   :  { %2846 = vmatpush1.bf16.msra.mxu1 %v11488_v24  ;;  %v11499_v24 = vld [vmem:[#allocation52_spill] sm:$0xff] }
 0x63d   :  { %2847 = vmatprep.subr.bf16.mxu1 %v11489_v41  ;;  %v11500_v41 = vld [vmem:[#allocation54_spill] sm:$0xff] }
 0x640   :  { %2848 = vmatpush2.bf16.msra.mxu1 %v11490_v26  ;;  %v11501_v26 = vld [vmem:[#allocation55_spill] sm:$0xff] }
 0x641   :  { %2849 = vmatprep.subr.bf16.mxu1 %v11491_v25  ;;  %v11502_v25 = vld [vmem:[#allocation57_spill] sm:$0xff] }
 0x644   :  { %2850 = vmatpush2.bf16.msra.mxu1 %v11492_v11  ;;  %v11503_v11 = vld [vmem:[#allocation59_spill] sm:$0xff] }
 0x645   :  { %2851 = vmatprep.subr.bf16.mxu1 %v11493_v9  ;;  %v11504_v9 = vld [vmem:[#allocation61_spill] sm:$0xff] }
 0x648   :  { %2852 = vmatpush2.bf16.msra.mxu1 %v11494_v44  ;;  %v11505_v44 = vld [vmem:[#allocation63_spill] sm:$0xff] }
 0x649   :  { %2853 = vmatprep.subr.bf16.mxu1 %v11495_v53 }
 0x64c   :  { %2854 = vmatpush2.bf16.msra.mxu1 %v11496_v33 }
 0x64d   :  { %2855 = vmatprep.subr.bf16.mxu1 %v11497_v38 }
 0x650   :  { %2856 = vmatpush2.bf16.msra.mxu1 %v11498_v8 }
 0x651   :  { %2857 = vmatprep.subr.bf16.mxu1 %v11499_v24 }
 0x654   :  { %2858 = vmatpush2.bf16.msra.mxu1 %v11500_v41  ;;  %v11507_v41 = vld [vmem:[#allocation38_spill] sm:$0xff] }
 0x655   :  { %2859 = vmatprep.subr.bf16.mxu1 %v11501_v26  ;;  %v918_v42 = vadd.f32 %v11507_v41, %v11506_v10  ;;  %v11508_v26 = vld [vmem:[#allocation40_spill] sm:$0xff] }
 0x658   :  { %2860 = vmatpush2.bf16.msra.mxu1 %v11502_v25  ;;  %v920_v25 = vadd.f32 %v11508_v26, %v11400_v5 }
 0x659   :  { %2861 = vmatprep.subr.bf16.mxu1 %v11503_v11 }
 0x65c   :  { %2862 = vmatpush2.bf16.msra.mxu1 %v11504_v9 }
 0x65d   :  { %2959 = vmatprep.subr.bf16.mxu1 %v11505_v44  ;;  %v11509_v44 = vld [vmem:[#allocation43_spill] sm:$0xff] }
 0x65e   :  { %v959_v63 = vadd.f32 %v11509_v44, %v11402_v7  ;;  %v11511_v44 = vld [vmem:[#allocation22_spill] sm:$0xff] }
 0x69f   :  { %v2655_v53 = vpop.f32.mrf.mxu1  ;;  %v2696_v33 = vpop.f32.mrf.mxu0 }
 0x6a0   :  { %v2744_v17 = vadd.f32 %v2655_v53, %v918_v42 }
 0x6a1   :  { %v2657_v36 = vpop.f32.mrf.mxu1  ;;  %v2698_v38 = vpop.f32.mrf.mxu0 }
 0x6a2   :  { %v2745_v11 = vadd.f32 %v2657_v36, %v920_v25  ;;  %v6535_v18 = vmul.f32 -1.442695, %v2744_v17 }
 0x6a3   :  { %v2659_v14 = vpop.f32.mrf.mxu1  ;;  %v2700_v8 = vpop.f32.mrf.mxu0 }
 0x6a4   :  { %v6536_v9 = vmul.f32 -1.442695, %v2745_v11  ;;  %7427 = vpow2.f32 %v6535_v18  ;;  %v11510_v14 = vld [vmem:[#allocation45_spill] sm:$0xff] }
 0x6a5   :  { %v2660_v30 = vpop.f32.mrf.mxu1  ;;  %v2701_v24 = vpop.f32.mrf.mxu0  ;;  %v961_v8 = vadd.f32 %v11510_v14, %v11456_v39  ;;  %v11513_v14 = vld [vmem:[#allocation128_spill] sm:$0xff] }
 0x6a6   :  { %7429 = vpow2.f32 %v6536_v9  ;;  %v2758_v30 = vadd.f32 %v2696_v33, %v959_v63  ;;  %v11512_v33 = vld [vmem:[#allocation44_spill] sm:$0xff] }
 0x6a7   :  { %v2759_v24 = vadd.f32 %v2698_v38, %v961_v8  ;;  %v1000_v38 = vadd.f32 %v11512_v33, %v11407_v61 }
 0x6a8   :  { %v6537_v4 = vmul.f32 -1.442695, %v2758_v30  ;;  %v11514_v30 = vld [vmem:[#allocation46_spill] sm:$0xff] }
 0x6a9   :  { %v6538_v54 = vmul.f32 -1.442695, %v2759_v24  ;;  %v1002_v24 = vadd.f32 %v11514_v30, %v9242_v47 }
 0x6aa   :  { %7431 = vpow2.f32 %v6537_v4 }
 0x6ab   :  { %7433 = vpow2.f32 %v6538_v54 }
 0x6b1   :  { %v7428_v41 = vpop.eup %7427 }
 0x6b2   :  { %v2752_v26 = vadd.f32 1.0, %v7428_v41 }
 0x6b3   :  { %v7430_v10 = vpop.eup %7429 }
 0x6b4   :  { %v2753_v42 = vadd.f32 1.0, %v7430_v10  ;;  %7435 = vrcp.f32 %v2752_v26 }
 0x6b6   :  { %7437 = vrcp.f32 %v2753_v42 }
 0x6b7   :  { %v7432_v18 = vpop.eup %7431 }
 0x6b8   :  { %v7434_v36 = vpop.eup %7433  ;;  %v2766_v25 = vadd.f32 1.0, %v7432_v18 }
 0x6b9   :  { %v2767_v9 = vadd.f32 1.0, %v7434_v36 }
 0x6ba   :  { %7439 = vrcp.f32 %v2766_v25 }
 0x6bb   :  { %7441 = vrcp.f32 %v2767_v9 }
 0x6c1   :  { %v7436_v17 = vpop.eup %7435 }
 0x6c3   :  { %v7438_v54 = vpop.eup %7437 }
 0x6c7   :  { %v7440_v36 = vpop.eup %7439 }
 0x6df   :  { %v2737_v11 = vpop.f32.mrf.mxu1 }
 0x6e0   :  { %v2772_v53 = vadd.f32 %v2737_v11, %v11511_v44  ;;  %v7442_v11 = vpop.eup %7441  ;;  %v2780_v44 = vsub.f32 1.0, %v7440_v36 }
 0x6e1   :  { %v2739_v63 = vpop.f32.mrf.mxu1  ;;  %v2781_v25 = vsub.f32 1.0, %v7442_v11 }
 0x6e2   :  { %v2774_v4 = vmul.f32 %v7436_v17, %v2772_v53  ;;  %v2773_v8 = vadd.f32 %v2739_v63, %v11513_v14  ;;  %v2784_v17 = vmul.f32 %v7440_v36, %v9612_v34  ;;  %v2785_v14 = vmul.f32 %v7442_v11, %v9614_v27  ;;  %v11515_v34 = vld [vmem:[#allocation64_spill] sm:$0xff]  ;;  %v11516_v27 = vld [vmem:[#allocation65_spill] sm:$0xff]  ;;  %v11526_v36 = vld [vmem:[#allocation78_spill] sm:$0xff] }
 0x6e3   :  { %v2741_v10 = vpop.f32.mrf.mxu1  ;;  %v11527_v11 = vld [vmem:[#allocation79_spill] sm:$0xff] }
 0x6e4   :  { %v2776_v41 = vadd.f32 %v2774_v4, %v1000_v38  ;;  %v2775_v26 = vmul.f32 %v7438_v54, %v2773_v8  ;;  %v11519_v8 = vld [vmem:[#allocation27_spill] sm:$0xff]  ;;  %v11520_v54 = vld [vmem:[#allocation73_spill] sm:$0xff] }
 0x6e5   :  { %v2742_v42 = vpop.f32.mrf.mxu1 }
 0x6e6   :  { %7443 = vtanh.f32 %v2776_v41  ;;  %v2777_v18 = vadd.f32 %v2775_v26, %v1002_v24  ;;  %v11521_v24 = vld [vmem:[#allocation90_spill] sm:$0xff]  ;;  %v11522_v41 = vld [vmem:[#allocation91_spill] sm:$0xff]  ;;  %v11523_v26 = vld [vmem:[#allocation76_spill] sm:$0xff] }
 0x6e7   :  { %v11524_v42 = vld [vmem:[#allocation77_spill] sm:$0xff] }
 0x6e8   :  { %7445 = vtanh.f32 %v2777_v18  ;;  %v11525_v18 = vld [vmem:[#allocation47_spill] sm:$0xff] }
 0x6f3   :  { %v7444_v33 = vpop.eup %7443 }
 0x6f4   :  { %v2782_v53 = vmul.f32 %v7444_v33, %v2780_v44  ;;  %v11517_v44 = vld [vmem:[#allocation68_spill] sm:$0xff]  ;;  %v11528_v33 = vld [vmem:[#allocation81_spill] sm:$0xff] }
 0x6f5   :  { %v7446_v63 = vpop.eup %7445 }
 0x6f6   :  { %v2783_v10 = vmul.f32 %v7446_v63, %v2781_v25  ;;  %v9817_v30 = vadd.f32 %v2784_v17, %v2782_v53  ;;  %v11529_v25 = vld [vmem:[#allocation83_spill] sm:$0xff]  ;;  %v11530_v53 = vld [vmem:[#allocation85_spill] sm:$0xff]  ;;  %v11531_v17 = vld [vmem:[#allocation86_spill] sm:$0xff] }
 0x6f7   :  { %v11532_v63 = vld [vmem:[#allocation88_spill] sm:$0xff] }
 0x6f8   :  { %v9819_v9 = vadd.f32 %v2785_v14, %v2783_v10  ;;  %v9825_v4 = vpack.c.bf16 %v9817_v30, %v9817_v30  ;;  %v11518_v14 = vld [vmem:[#allocation71_spill] sm:$0xff]  ;;  %v11533_v10 = vld [vmem:[#allocation41_spill] sm:$0xff] }
 0x6fa   :  { %v2789_v38 = vpack.c.bf16 %v9819_v9, %v9819_v9 }
 0x6fc   :  { %2822 = vmatprep.mubr.bf16.mxu0 %v2789_v38  ;;  %2863 = vmatprep.mubr.bf16.mxu1 %v2789_v38 }
 0x6fd   :  { %2823 = vmatmul.mubr.bf16.vlgmr.msra.gmra.mxu0 %v9825_v4  ;;  %2864 = vmatmul.mubr.bf16.vlgmr.msra.gmra.mxu1 %v9825_v4 }
 0x6fe   :  { %2873 = vmatpush1.bf16.msra.mxu0 %v9624_v51  ;;  %2904 = vmatprep.mubr.bf16.mxu0 %v2789_v38  ;;  %v11534_v38 = vld [vmem:[#allocation26_spill] sm:$0xff] }
 0x6ff   :  { %2874 = vmatprep.subr.bf16.mxu0 %v9627_v13  ;;  %2960 = vmatpush1.bf16.msra.mxu1 %v9389_v58 }
 0x700   :  { %2961 = vmatprep.subr.bf16.mxu1 %v9392_v48 }
 0x702   :  { %2875 = vmatpush1.bf16.msra.mxu0 %v9632_v57 }
 0x703   :  { %2876 = vmatprep.subr.bf16.mxu0 %v9635_v0  ;;  %2962 = vmatpush1.bf16.msra.mxu1 %v9397_v21 }
 0x704   :  { %2963 = vmatprep.subr.bf16.mxu1 %v9400_v3 }
 0x706   :  { %2877 = vmatpush1.bf16.msra.mxu0 %v9640_v62 }
 0x707   :  { %2878 = vmatprep.subr.bf16.mxu0 %v9643_v20  ;;  %2964 = vmatpush1.bf16.msra.mxu1 %v9405_v23 }
 0x708   :  { %2965 = vmatprep.subr.bf16.mxu1 %v9408_v35 }
 0x70a   :  { %2879 = vmatpush1.bf16.msra.mxu0 %v9648_v59 }
 0x70b   :  { %2880 = vmatprep.subr.bf16.mxu0 %v9651_v60  ;;  %2966 = vmatpush1.bf16.msra.mxu1 %v9413_v22 }
 0x70c   :  { %2967 = vmatprep.subr.bf16.mxu1 %v9416_v31 }
 0x70e   :  { %2881 = vmatpush1.bf16.msra.mxu0 %v9656_v28 }
 0x70f   :  { %2882 = vmatprep.subr.bf16.mxu0 %v9659_v50  ;;  %2968 = vmatpush1.bf16.msra.mxu1 %v9421_v32 }
 0x710   :  { %2969 = vmatprep.subr.bf16.mxu1 %v9424_v15 }
 0x712   :  { %2883 = vmatpush1.bf16.msra.mxu0 %v9664_v37 }
 0x713   :  { %2884 = vmatprep.subr.bf16.mxu0 %v9667_v29  ;;  %2970 = vmatpush1.bf16.msra.mxu1 %v9429_v45 }
 0x714   :  { %2971 = vmatprep.subr.bf16.mxu1 %v9432_v49 }
 0x716   :  { %2885 = vmatpush1.bf16.msra.mxu0 %v9672_v56 }
 0x717   :  { %2886 = vmatprep.subr.bf16.mxu0 %v9675_v52  ;;  %2972 = vmatpush1.bf16.msra.mxu1 %v9437_v12 }
 0x718   :  { %2973 = vmatprep.subr.bf16.mxu1 %v9440_v55 }
 0x71a   :  { %2887 = vmatpush1.bf16.msra.mxu0 %v9680_v2 }
 0x71b   :  { %2888 = vmatprep.subr.bf16.mxu0 %v9683_v43  ;;  %2974 = vmatpush1.bf16.msra.mxu1 %v9445_v1 }
 0x71c   :  { %2975 = vmatprep.subr.bf16.mxu1 %v9448_v40 }
 0x71e   :  { %2889 = vmatpush2.bf16.msra.mxu0 %v11515_v34 }
 0x71f   :  { %2890 = vmatprep.subr.bf16.mxu0 %v11516_v27  ;;  %2976 = vmatpush2.bf16.msra.mxu1 %v9453_v6 }
 0x720   :  { %2977 = vmatprep.subr.bf16.mxu1 %v9456_v16 }
 0x722   :  { %2891 = vmatpush2.bf16.msra.mxu0 %v11517_v44 }
 0x723   :  { %2892 = vmatprep.subr.bf16.mxu0 %v11518_v14  ;;  %2978 = vmatpush2.bf16.msra.mxu1 %v9461_v19 }
 0x724   :  { %2979 = vmatprep.subr.bf16.mxu1 %v11519_v8 }
 0x726   :  { %2893 = vmatpush2.bf16.msra.mxu0 %v11520_v54 }
 0x727   :  { %2894 = vmatprep.subr.bf16.mxu0 %v9707_v46  ;;  %2980 = vmatpush2.bf16.msra.mxu1 %v11521_v24  ;;  %v11575_v24 = vld [vmem:[#allocation126_spill] sm:$0xff] }
 0x728   :  { %2981 = vmatprep.subr.bf16.mxu1 %v11522_v41 }
 0x72a   :  { %2895 = vmatpush2.bf16.msra.mxu0 %v11523_v26 }
 0x72b   :  { %2896 = vmatprep.subr.bf16.mxu0 %v11524_v42  ;;  %2982 = vmatpush2.bf16.msra.mxu1 %v11525_v18  ;;  %v11535_v42 = vld [vmem:[#allocation127_spill] sm:$0xff]  ;;  %v11536_v18 = vld [vmem:[#allocation28_spill] sm:$0xff] }
 0x72c   :  { %2983 = vmatprep.subr.bf16.mxu1 %v11526_v36  ;;  %v11537_v36 = vld [vmem:[#allocation21_spill] sm:$0xff] }
 0x72e   :  { %2897 = vmatpush2.bf16.msra.mxu0 %v11527_v11  ;;  %v11538_v11 = vld [vmem:[#allocation29_spill] sm:$0xff] }
 0x72f   :  { %2898 = vmatprep.subr.bf16.mxu0 %v11528_v33  ;;  %2984 = vmatpush2.bf16.msra.mxu1 %v11529_v25  ;;  %v11539_v33 = vld [vmem:[#allocation31_spill] sm:$0xff]  ;;  %v11540_v25 = vld [vmem:[#allocation96_spill] sm:$0xff] }
 0x730   :  { %2985 = vmatprep.subr.bf16.mxu1 %v11530_v53  ;;  %v11541_v53 = vld [vmem:[#allocation24_spill] sm:$0xff] }
 0x732   :  { %2899 = vmatpush2.bf16.msra.mxu0 %v11531_v17  ;;  %v11542_v17 = vld [vmem:[#allocation30_spill] sm:$0xff] }
 0x733   :  { %2900 = vmatprep.subr.bf16.mxu0 %v11532_v63  ;;  %2986 = vmatpush2.bf16.msra.mxu1 %v11533_v10  ;;  %v11543_v10 = vld [vmem:[#allocation48_spill] sm:$0xff] }
 0x734   :  { %2987 = vmatprep.subr.bf16.mxu1 %v11534_v38  ;;  %v11544_v38 = vld [vmem:[#allocation97_spill] sm:$0xff] }
 0x736   :  { %2901 = vmatpush2.bf16.msra.mxu0 %v11535_v42  ;;  %v11545_v42 = vld [vmem:[#allocation50_spill] sm:$0xff] }
 0x737   :  { %2902 = vmatprep.subr.bf16.mxu0 %v11536_v18  ;;  %2988 = vmatpush2.bf16.msra.mxu1 %v11537_v36  ;;  %v11546_v18 = vld [vmem:[#allocation98_spill] sm:$0xff]  ;;  %v11547_v36 = vld [vmem:[#allocation53_spill] sm:$0xff] }
 0x738   :  { %2989 = vmatprep.subr.bf16.mxu1 %v11538_v11  ;;  %v11548_v11 = vld [vmem:[#allocation99_spill] sm:$0xff] }
 0x73a   :  { %2903 = vmatpush2.bf16.msra.mxu0 %v11539_v33  ;;  %v11549_v33 = vld [vmem:[#allocation100_spill] sm:$0xff] }
 0x73b   :  { %3000 = vmatprep.subr.bf16.mxu0 %v11540_v25  ;;  %2990 = vmatpush2.bf16.msra.mxu1 %v11541_v53  ;;  %v11550_v25 = vld [vmem:[#allocation56_spill] sm:$0xff]  ;;  %v11551_v53 = vld [vmem:[#allocation58_spill] sm:$0xff] }
 0x73c   :  { %3041 = vmatprep.subr.bf16.mxu1 %v11542_v17  ;;  %v11552_v17 = vld [vmem:[#allocation101_spill] sm:$0xff] }
 0x73d   :  { %2905 = vmatmul.mubr.bf16.vlgmr.msra.gmra.mxu0 %v9825_v4  ;;  %v11553_v4 = vld [vmem:[#allocation102_spill] sm:$0xff] }
 0x73e   :  { %3001 = vmatpush1.bf16.msra.mxu0 %v11543_v10  ;;  %v11554_v10 = vld [vmem:[#allocation60_spill] sm:$0xff] }
 0x73f   :  { %3002 = vmatprep.subr.bf16.mxu0 %v11544_v38  ;;  %v11555_v38 = vld [vmem:[#allocation62_spill] sm:$0xff] }
 0x742   :  { %3003 = vmatpush1.bf16.msra.mxu0 %v11545_v42  ;;  %v11556_v42 = vld [vmem:[#allocation103_spill] sm:$0xff] }
 0x743   :  { %3004 = vmatprep.subr.bf16.mxu0 %v11546_v18  ;;  %v11557_v18 = vld [vmem:[#allocation72_spill] sm:$0xff] }
 0x746   :  { %3005 = vmatpush1.bf16.msra.mxu0 %v11547_v36  ;;  %v11558_v36 = vld [vmem:[#allocation108_spill] sm:$0xff] }
 0x747   :  { %3006 = vmatprep.subr.bf16.mxu0 %v11548_v11  ;;  %v11559_v11 = vld [vmem:[#allocation75_spill] sm:$0xff] }
 0x74a   :  { %3007 = vmatpush1.bf16.msra.mxu0 %v11549_v33  ;;  %v11560_v33 = vld [vmem:[#allocation109_spill] sm:$0xff] }
 0x74b   :  { %3008 = vmatprep.subr.bf16.mxu0 %v11550_v25  ;;  %v11561_v25 = vld [vmem:[#allocation80_spill] sm:$0xff] }
 0x74e   :  { %3009 = vmatpush1.bf16.msra.mxu0 %v11551_v53  ;;  %v11562_v53 = vld [vmem:[#allocation82_spill] sm:$0xff] }
 0x74f   :  { %3010 = vmatprep.subr.bf16.mxu0 %v11552_v17  ;;  %v11563_v17 = vld [vmem:[#allocation110_spill] sm:$0xff] }
 0x752   :  { %3011 = vmatpush1.bf16.msra.mxu0 %v11553_v4  ;;  %v11564_v4 = vld [vmem:[#allocation84_spill] sm:$0xff] }
 0x753   :  { %3012 = vmatprep.subr.bf16.mxu0 %v11554_v10  ;;  %v11565_v10 = vld [vmem:[#allocation42_spill] sm:$0xff] }
 0x756   :  { %3013 = vmatpush1.bf16.msra.mxu0 %v11555_v38  ;;  %v11566_v38 = vld [vmem:[#allocation49_spill] sm:$0xff] }
 0x757   :  { %3014 = vmatprep.subr.bf16.mxu0 %v11556_v42  ;;  %v11567_v42 = vld [vmem:[#allocation51_spill] sm:$0xff] }
 0x75a   :  { %3015 = vmatpush1.bf16.msra.mxu0 %v11557_v18  ;;  %v11568_v18 = vld [vmem:[#allocation52_spill] sm:$0xff] }
 0x75b   :  { %3016 = vmatprep.subr.bf16.mxu0 %v11558_v36  ;;  %v11569_v36 = vld [vmem:[#allocation54_spill] sm:$0xff] }
 0x75e   :  { %3017 = vmatpush2.bf16.msra.mxu0 %v11559_v11  ;;  %v11570_v11 = vld [vmem:[#allocation55_spill] sm:$0xff] }
 0x75f   :  { %3018 = vmatprep.subr.bf16.mxu0 %v11560_v33  ;;  %v11571_v33 = vld [vmem:[#allocation57_spill] sm:$0xff] }
 0x762   :  { %3019 = vmatpush2.bf16.msra.mxu0 %v11561_v25  ;;  %v11572_v25 = vld [vmem:[#allocation59_spill] sm:$0xff] }
 0x763   :  { %3020 = vmatprep.subr.bf16.mxu0 %v11562_v53  ;;  %v11573_v53 = vld [vmem:[#allocation61_spill] sm:$0xff] }
 0x766   :  { %3021 = vmatpush2.bf16.msra.mxu0 %v11563_v17  ;;  %v11574_v17 = vld [vmem:[#allocation63_spill] sm:$0xff] }
 0x767   :  { %3022 = vmatprep.subr.bf16.mxu0 %v11564_v4 }
 0x76a   :  { %3023 = vmatpush2.bf16.msra.mxu0 %v11565_v10 }
 0x76b   :  { %3024 = vmatprep.subr.bf16.mxu0 %v11566_v38 }
 0x76e   :  { %3025 = vmatpush2.bf16.msra.mxu0 %v11567_v42 }
 0x76f   :  { %3026 = vmatprep.subr.bf16.mxu0 %v11568_v18 }
 0x772   :  { %3027 = vmatpush2.bf16.msra.mxu0 %v11569_v36  ;;  %v11576_v36 = vld [vmem:[#allocation66_spill] sm:$0xff] }
 0x773   :  { %3028 = vmatprep.subr.bf16.mxu0 %v11570_v11  ;;  %v1048_v46 = vadd.f32 %v11576_v36, %v11575_v24  ;;  %v11577_v11 = vld [vmem:[#allocation69_spill] sm:$0xff] }
 0x776   :  { %3029 = vmatpush2.bf16.msra.mxu0 %v11571_v33  ;;  %v1050_v33 = vadd.f32 %v11577_v11, %v11400_v5 }
 0x777   :  { %3030 = vmatprep.subr.bf16.mxu0 %v11572_v25 }
 0x77a   :  { %3031 = vmatpush2.bf16.msra.mxu0 %v11573_v53 }
 0x77b   :  { %3128 = vmatprep.subr.bf16.mxu0 %v11574_v17  ;;  %v11578_v17 = vld [vmem:[#allocation67_spill] sm:$0xff] }
 0x77c   :  { %v1089_v19 = vadd.f32 %v11578_v17, %v11402_v7  ;;  %v11580_v17 = vld [vmem:[#allocation22_spill] sm:$0xff] }
 0x7bd   :  { %v2824_v4 = vpop.f32.mrf.mxu0  ;;  %v2865_v10 = vpop.f32.mrf.mxu1 }
 0x7be   :  { %v2913_v54 = vadd.f32 %v2824_v4, %v1048_v46 }
 0x7bf   :  { %v2826_v63 = vpop.f32.mrf.mxu0  ;;  %v2867_v38 = vpop.f32.mrf.mxu1 }
 0x7c0   :  { %v2914_v25 = vadd.f32 %v2826_v63, %v1050_v33  ;;  %v6539_v8 = vmul.f32 -1.442695, %v2913_v54 }
 0x7c1   :  { %v2828_v26 = vpop.f32.mrf.mxu0  ;;  %v2869_v42 = vpop.f32.mrf.mxu1 }
 0x7c2   :  { %v6540_v53 = vmul.f32 -1.442695, %v2914_v25  ;;  %7447 = vpow2.f32 %v6539_v8  ;;  %v11579_v26 = vld [vmem:[#allocation70_spill] sm:$0xff] }
 0x7c3   :  { %v2829_v41 = vpop.f32.mrf.mxu0  ;;  %v2870_v18 = vpop.f32.mrf.mxu1  ;;  %v1091_v42 = vadd.f32 %v11579_v26, %v11456_v39  ;;  %v11582_v26 = vld [vmem:[#allocation128_spill] sm:$0xff] }
 0x7c4   :  { %7449 = vpow2.f32 %v6540_v53  ;;  %v2927_v41 = vadd.f32 %v2865_v10, %v1089_v19  ;;  %v11581_v10 = vld [vmem:[#allocation92_spill] sm:$0xff] }
 0x7c5   :  { %v2928_v18 = vadd.f32 %v2867_v38, %v1091_v42  ;;  %v1130_v38 = vadd.f32 %v11581_v10, %v11407_v61 }
 0x7c6   :  { %v6541_v14 = vmul.f32 -1.442695, %v2927_v41  ;;  %v11583_v41 = vld [vmem:[#allocation94_spill] sm:$0xff] }
 0x7c7   :  { %v6542_v44 = vmul.f32 -1.442695, %v2928_v18  ;;  %v1132_v18 = vadd.f32 %v11583_v41, %v9242_v47 }
 0x7c8   :  { %7451 = vpow2.f32 %v6541_v14 }
 0x7c9   :  { %7453 = vpow2.f32 %v6542_v44 }
 0x7cf   :  { %v7448_v36 = vpop.eup %7447 }
 0x7d0   :  { %v2921_v11 = vadd.f32 1.0, %v7448_v36 }
 0x7d1   :  { %v7450_v24 = vpop.eup %7449 }
 0x7d2   :  { %v2922_v46 = vadd.f32 1.0, %v7450_v24  ;;  %7455 = vrcp.f32 %v2921_v11 }
 0x7d4   :  { %7457 = vrcp.f32 %v2922_v46 }
 0x7d5   :  { %v7452_v8 = vpop.eup %7451 }
 0x7d6   :  { %v7454_v54 = vpop.eup %7453  ;;  %v2935_v33 = vadd.f32 1.0, %v7452_v8 }
 0x7d7   :  { %v2936_v53 = vadd.f32 1.0, %v7454_v54 }
 0x7d8   :  { %7459 = vrcp.f32 %v2935_v33 }
 0x7d9   :  { %7461 = vrcp.f32 %v2936_v53 }
 0x7df   :  { %v7456_v4 = vpop.eup %7455 }
 0x7e1   :  { %v7458_v44 = vpop.eup %7457 }
 0x7e5   :  { %v7460_v54 = vpop.eup %7459 }
 0x7fd   :  { %v2906_v25 = vpop.f32.mrf.mxu0 }
 0x7fe   :  { %v2941_v63 = vadd.f32 %v2906_v25, %v11580_v17  ;;  %v7462_v25 = vpop.eup %7461  ;;  %v2949_v17 = vsub.f32 1.0, %v7460_v54 }
 0x7ff   :  { %v2908_v19 = vpop.f32.mrf.mxu0  ;;  %v2950_v33 = vsub.f32 1.0, %v7462_v25 }
 0x800   :  { %v2943_v14 = vmul.f32 %v7456_v4, %v2941_v63  ;;  %v2942_v42 = vadd.f32 %v2908_v19, %v11582_v26  ;;  %v2953_v4 = vmul.f32 %v7460_v54, %v9817_v30  ;;  %v2954_v26 = vmul.f32 %v7462_v25, %v9819_v9  ;;  %v11602_v30 = vld [vmem:[#allocation41_spill] sm:$0xff]  ;;  %v11603_v9 = vld [vmem:[#allocation26_spill] sm:$0xff] }
 0x801   :  { %v2910_v24 = vpop.f32.mrf.mxu0  ;;  %v11613_v54 = vld [vmem:[#allocation97_spill] sm:$0xff]  ;;  %v11614_v25 = vld [vmem:[#allocation50_spill] sm:$0xff] }
 0x802   :  { %v2945_v36 = vadd.f32 %v2943_v14, %v1130_v38  ;;  %v2944_v11 = vmul.f32 %v7458_v44, %v2942_v42  ;;  %v11606_v42 = vld [vmem:[#allocation21_spill] sm:$0xff] }
 0x803   :  { %v2911_v46 = vpop.f32.mrf.mxu0  ;;  %v11607_v44 = vld [vmem:[#allocation29_spill] sm:$0xff] }
 0x804   :  { %7463 = vtanh.f32 %v2945_v36  ;;  %v2946_v8 = vadd.f32 %v2944_v11, %v1132_v18  ;;  %v11608_v18 = vld [vmem:[#allocation31_spill] sm:$0xff]  ;;  %v11609_v36 = vld [vmem:[#allocation96_spill] sm:$0xff]  ;;  %v11611_v46 = vld [vmem:[#allocation30_spill] sm:$0xff] }
 0x805   :  { %v11610_v11 = vld [vmem:[#allocation24_spill] sm:$0xff] }
 0x806   :  { %7465 = vtanh.f32 %v2946_v8  ;;  %v11612_v8 = vld [vmem:[#allocation48_spill] sm:$0xff] }
 0x811   :  { %v7464_v10 = vpop.eup %7463 }
 0x812   :  { %v2951_v63 = vmul.f32 %v7464_v10, %v2949_v17  ;;  %v11604_v17 = vld [vmem:[#allocation127_spill] sm:$0xff]  ;;  %v11615_v10 = vld [vmem:[#allocation98_spill] sm:$0xff] }
 0x813   :  { %v7466_v19 = vpop.eup %7465 }
 0x814   :  { %v2952_v24 = vmul.f32 %v7466_v19, %v2950_v33  ;;  %v9942_v41 = vadd.f32 %v2953_v4, %v2951_v63  ;;  %v11616_v33 = vld [vmem:[#allocation53_spill] sm:$0xff]  ;;  %v11617_v63 = vld [vmem:[#allocation99_spill] sm:$0xff]  ;;  %v11618_v4 = vld [vmem:[#allocation100_spill] sm:$0xff] }
 0x815   :  { %v11619_v19 = vld [vmem:[#allocation56_spill] sm:$0xff] }
 0x816   :  { %v9944_v53 = vadd.f32 %v2954_v26, %v2952_v24  ;;  %v9950_v14 = vpack.c.bf16 %v9942_v41, %v9942_v41  ;;  %v11605_v26 = vld [vmem:[#allocation28_spill] sm:$0xff]  ;;  %v11620_v24 = vld [vmem:[#allocation58_spill] sm:$0xff] }
 0x818   :  { %v2958_v38 = vpack.c.bf16 %v9944_v53, %v9944_v53 }
 0x81a   :  { %2991 = vmatprep.mubr.bf16.mxu1 %v2958_v38  ;;  %3032 = vmatprep.mubr.bf16.mxu0 %v2958_v38 }
 0x81b   :  { %2992 = vmatmul.mubr.bf16.vlgmr.msra.gmra.mxu1 %v9950_v14  ;;  %3033 = vmatmul.mubr.bf16.vlgmr.msra.gmra.mxu0 %v9950_v14 }
 0x81c   :  { %3042 = vmatpush1.bf16.msra.mxu1 %v9624_v51  ;;  %3073 = vmatprep.mubr.bf16.mxu1 %v2958_v38  ;;  %v11621_v38 = vld [vmem:[#allocation101_spill] sm:$0xff] }
 0x81d   :  { %3043 = vmatprep.subr.bf16.mxu1 %v9627_v13  ;;  %3129 = vmatpush1.bf16.msra.mxu0 %v9389_v58  ;;  %v11584_v58 = vld [vmem:[#allocation68_spill] sm:$0xff] }
 0x81e   :  { %3130 = vmatprep.subr.bf16.mxu0 %v9392_v48  ;;  %v11585_v48 = vld [vmem:[#allocation71_spill] sm:$0xff] }
 0x820   :  { %3044 = vmatpush1.bf16.msra.mxu1 %v9632_v57 }
 0x821   :  { %3045 = vmatprep.subr.bf16.mxu1 %v9635_v0  ;;  %3131 = vmatpush1.bf16.msra.mxu0 %v9397_v21  ;;  %v11586_v21 = vld [vmem:[#allocation25_spill] sm:$0xff] }
 0x822   :  { %3132 = vmatprep.subr.bf16.mxu0 %v9400_v3  ;;  %v11587_v3 = vld [vmem:[#allocation27_spill] sm:$0xff] }
 0x824   :  { %3046 = vmatpush1.bf16.msra.mxu1 %v9640_v62 }
 0x825   :  { %3047 = vmatprep.subr.bf16.mxu1 %v9643_v20  ;;  %3133 = vmatpush1.bf16.msra.mxu0 %v9405_v23  ;;  %v11588_v23 = vld [vmem:[#allocation73_spill] sm:$0xff] }
 0x826   :  { %3134 = vmatprep.subr.bf16.mxu0 %v9408_v35  ;;  %v11589_v35 = vld [vmem:[#allocation74_spill] sm:$0xff] }
 0x828   :  { %3048 = vmatpush1.bf16.msra.mxu1 %v9648_v59 }
 0x829   :  { %3049 = vmatprep.subr.bf16.mxu1 %v9651_v60  ;;  %3135 = vmatpush1.bf16.msra.mxu0 %v9413_v22  ;;  %v11590_v22 = vld [vmem:[#allocation90_spill] sm:$0xff] }
 0x82a   :  { %3136 = vmatprep.subr.bf16.mxu0 %v9416_v31  ;;  %v11591_v31 = vld [vmem:[#allocation91_spill] sm:$0xff] }
 0x82c   :  { %3050 = vmatpush1.bf16.msra.mxu1 %v9656_v28 }
 0x82d   :  { %3051 = vmatprep.subr.bf16.mxu1 %v9659_v50  ;;  %3137 = vmatpush1.bf16.msra.mxu0 %v9421_v32  ;;  %v11592_v32 = vld [vmem:[#allocation76_spill] sm:$0xff] }
 0x82e   :  { %3138 = vmatprep.subr.bf16.mxu0 %v9424_v15  ;;  %v11593_v15 = vld [vmem:[#allocation77_spill] sm:$0xff] }
 0x830   :  { %3052 = vmatpush1.bf16.msra.mxu1 %v9664_v37 }
 0x831   :  { %3053 = vmatprep.subr.bf16.mxu1 %v9667_v29  ;;  %3139 = vmatpush1.bf16.msra.mxu0 %v9429_v45  ;;  %v11594_v45 = vld [vmem:[#allocation47_spill] sm:$0xff] }
 0x832   :  { %3140 = vmatprep.subr.bf16.mxu0 %v9432_v49  ;;  %v11595_v49 = vld [vmem:[#allocation78_spill] sm:$0xff] }
 0x834   :  { %3054 = vmatpush1.bf16.msra.mxu1 %v9672_v56 }
 0x835   :  { %3055 = vmatprep.subr.bf16.mxu1 %v9675_v52  ;;  %3141 = vmatpush1.bf16.msra.mxu0 %v9437_v12  ;;  %v11596_v12 = vld [vmem:[#allocation79_spill] sm:$0xff] }
 0x836   :  { %3142 = vmatprep.subr.bf16.mxu0 %v9440_v55  ;;  %v11597_v55 = vld [vmem:[#allocation81_spill] sm:$0xff] }
 0x838   :  { %3056 = vmatpush1.bf16.msra.mxu1 %v9680_v2 }
 0x839   :  { %3057 = vmatprep.subr.bf16.mxu1 %v9683_v43  ;;  %3143 = vmatpush1.bf16.msra.mxu0 %v9445_v1  ;;  %v11598_v1 = vld [vmem:[#allocation83_spill] sm:$0xff] }
 0x83a   :  { %3144 = vmatprep.subr.bf16.mxu0 %v9448_v40  ;;  %v11599_v40 = vld [vmem:[#allocation85_spill] sm:$0xff] }
 0x83c   :  { %3058 = vmatpush2.bf16.msra.mxu1 %v11515_v34 }
 0x83d   :  { %3059 = vmatprep.subr.bf16.mxu1 %v11516_v27  ;;  %3145 = vmatpush2.bf16.msra.mxu0 %v9453_v6  ;;  %v11600_v6 = vld [vmem:[#allocation86_spill] sm:$0xff] }
 0x83e   :  { %3146 = vmatprep.subr.bf16.mxu0 %v9456_v16  ;;  %v11601_v16 = vld [vmem:[#allocation88_spill] sm:$0xff] }
 0x840   :  { %3060 = vmatpush2.bf16.msra.mxu1 %v11584_v58 }
 0x841   :  { %3061 = vmatprep.subr.bf16.mxu1 %v11585_v48  ;;  %3147 = vmatpush2.bf16.msra.mxu0 %v11586_v21  ;;  %v11623_v21 = vld [vmem:[#allocation60_spill] sm:$0xff] }
 0x842   :  { %3148 = vmatprep.subr.bf16.mxu0 %v11587_v3  ;;  %v11624_v3 = vld [vmem:[#allocation62_spill] sm:$0xff] }
 0x844   :  { %3062 = vmatpush2.bf16.msra.mxu1 %v11588_v23 }
 0x845   :  { %3063 = vmatprep.subr.bf16.mxu1 %v11589_v35  ;;  %3149 = vmatpush2.bf16.msra.mxu0 %v11590_v22  ;;  %v11625_v22 = vld [vmem:[#allocation103_spill] sm:$0xff] }
 0x846   :  { %3150 = vmatprep.subr.bf16.mxu0 %v11591_v31  ;;  %v11626_v31 = vld [vmem:[#allocation72_spill] sm:$0xff] }
 0x848   :  { %3064 = vmatpush2.bf16.msra.mxu1 %v11592_v32 }
 0x849   :  { %3065 = vmatprep.subr.bf16.mxu1 %v11593_v15  ;;  %3151 = vmatpush2.bf16.msra.mxu0 %v11594_v45  ;;  %v11627_v45 = vld [vmem:[#allocation108_spill] sm:$0xff] }
 0x84a   :  { %3152 = vmatprep.subr.bf16.mxu0 %v11595_v49 }
 0x84c   :  { %3066 = vmatpush2.bf16.msra.mxu1 %v11596_v12 }
 0x84d   :  { %3067 = vmatprep.subr.bf16.mxu1 %v11597_v55  ;;  %3153 = vmatpush2.bf16.msra.mxu0 %v11598_v1 }
 0x84e   :  { %3154 = vmatprep.subr.bf16.mxu0 %v11599_v40 }
 0x850   :  { %3068 = vmatpush2.bf16.msra.mxu1 %v11600_v6 }
 0x851   :  { %3069 = vmatprep.subr.bf16.mxu1 %v11601_v16  ;;  %3155 = vmatpush2.bf16.msra.mxu0 %v11602_v30 }
 0x852   :  { %3156 = vmatprep.subr.bf16.mxu0 %v11603_v9 }
 0x854   :  { %3070 = vmatpush2.bf16.msra.mxu1 %v11604_v17 }
 0x855   :  { %3071 = vmatprep.subr.bf16.mxu1 %v11605_v26  ;;  %3157 = vmatpush2.bf16.msra.mxu0 %v11606_v42 }
 0x856   :  { %3158 = vmatprep.subr.bf16.mxu0 %v11607_v44 }
 0x858   :  { %3072 = vmatpush2.bf16.msra.mxu1 %v11608_v18 }
 0x859   :  { %3169 = vmatprep.subr.bf16.mxu1 %v11609_v36  ;;  %3159 = vmatpush2.bf16.msra.mxu0 %v11610_v11  ;;  %v11628_v36 = vld [vmem:[#allocation75_spill] sm:$0xff] }
 0x85a   :  { %3210 = vmatprep.subr.bf16.mxu0 %v11611_v46 }
 0x85b   :  { %3074 = vmatmul.mubr.bf16.vlgmr.msra.gmra.mxu1 %v9950_v14  ;;  %v11622_v14 = vld [vmem:[#allocation102_spill] sm:$0xff] }
 0x85c   :  { %3170 = vmatpush1.bf16.msra.mxu1 %v11612_v8  ;;  %v11629_v8 = vld [vmem:[#allocation109_spill] sm:$0xff] }
 0x85d   :  { %3171 = vmatprep.subr.bf16.mxu1 %v11613_v54  ;;  %v11630_v54 = vld [vmem:[#allocation80_spill] sm:$0xff] }
 0x860   :  { %3172 = vmatpush1.bf16.msra.mxu1 %v11614_v25  ;;  %v11631_v25 = vld [vmem:[#allocation82_spill] sm:$0xff] }
 0x861   :  { %3173 = vmatprep.subr.bf16.mxu1 %v11615_v10  ;;  %v11632_v10 = vld [vmem:[#allocation110_spill] sm:$0xff] }
 0x864   :  { %3174 = vmatpush1.bf16.msra.mxu1 %v11616_v33  ;;  %v11633_v33 = vld [vmem:[#allocation84_spill] sm:$0xff] }
 0x865   :  { %3175 = vmatprep.subr.bf16.mxu1 %v11617_v63  ;;  %v11634_v63 = vld [vmem:[#allocation42_spill] sm:$0xff] }
 0x868   :  { %3176 = vmatpush1.bf16.msra.mxu1 %v11618_v4  ;;  %v11635_v4 = vld [vmem:[#allocation49_spill] sm:$0xff] }
 0x869   :  { %3177 = vmatprep.subr.bf16.mxu1 %v11619_v19  ;;  %v11636_v19 = vld [vmem:[#allocation51_spill] sm:$0xff] }
 0x86c   :  { %3178 = vmatpush1.bf16.msra.mxu1 %v11620_v24  ;;  %v11637_v24 = vld [vmem:[#allocation52_spill] sm:$0xff] }
 0x86d   :  { %3179 = vmatprep.subr.bf16.mxu1 %v11621_v38  ;;  %v11638_v38 = vld [vmem:[#allocation54_spill] sm:$0xff] }
 0x870   :  { %3180 = vmatpush1.bf16.msra.mxu1 %v11622_v14  ;;  %v11639_v14 = vld [vmem:[#allocation55_spill] sm:$0xff] }
 0x871   :  { %3181 = vmatprep.subr.bf16.mxu1 %v11623_v21  ;;  %v11640_v21 = vld [vmem:[#allocation57_spill] sm:$0xff] }
 0x874   :  { %3182 = vmatpush1.bf16.msra.mxu1 %v11624_v3  ;;  %v11641_v3 = vld [vmem:[#allocation59_spill] sm:$0xff] }
 0x875   :  { %3183 = vmatprep.subr.bf16.mxu1 %v11625_v22  ;;  %v11642_v22 = vld [vmem:[#allocation61_spill] sm:$0xff] }
 0x878   :  { %3184 = vmatpush1.bf16.msra.mxu1 %v11626_v31  ;;  %v11643_v31 = vld [vmem:[#allocation63_spill] sm:$0xff] }
 0x879   :  { %3185 = vmatprep.subr.bf16.mxu1 %v11627_v45 }
 0x87c   :  { %3186 = vmatpush2.bf16.msra.mxu1 %v11628_v36 }
 0x87d   :  { %3187 = vmatprep.subr.bf16.mxu1 %v11629_v8 }
 0x880   :  { %3188 = vmatpush2.bf16.msra.mxu1 %v11630_v54 }
 0x881   :  { %3189 = vmatprep.subr.bf16.mxu1 %v11631_v25 }
 0x884   :  { %3190 = vmatpush2.bf16.msra.mxu1 %v11632_v10 }
 0x885   :  { %3191 = vmatprep.subr.bf16.mxu1 %v11633_v33 }
 0x888   :  { %3192 = vmatpush2.bf16.msra.mxu1 %v11634_v63 }
 0x889   :  { %3193 = vmatprep.subr.bf16.mxu1 %v11635_v4  ;;  %v11644_v4 = vld [vmem:[#allocation126_spill] sm:$0xff] }
 0x88c   :  { %3194 = vmatpush2.bf16.msra.mxu1 %v11636_v19  ;;  %v11645_v19 = vld [vmem:[#allocation93_spill] sm:$0xff] }
 0x88d   :  { %3195 = vmatprep.subr.bf16.mxu1 %v11637_v24  ;;  %v1178_v24 = vadd.f32 %v11645_v19, %v11644_v4 }
 0x890   :  { %3196 = vmatpush2.bf16.msra.mxu1 %v11638_v38  ;;  %v11646_v38 = vld [vmem:[#allocation95_spill] sm:$0xff] }
 0x891   :  { %3197 = vmatprep.subr.bf16.mxu1 %v11639_v14  ;;  %v1180_v14 = vadd.f32 %v11646_v38, %v11400_v5 }
 0x894   :  { %3198 = vmatpush2.bf16.msra.mxu1 %v11640_v21 }
 0x895   :  { %3199 = vmatprep.subr.bf16.mxu1 %v11641_v3 }
 0x898   :  { %3200 = vmatpush2.bf16.msra.mxu1 %v11642_v22 }
 0x899   :  { %3297 = vmatprep.subr.bf16.mxu1 %v11643_v31  ;;  %v11647_v31 = vld [vmem:[#allocation104_spill] sm:$0xff] }
 0x89a   :  { %v1219_v11 = vadd.f32 %v11647_v31, %v11402_v7 }
 0x8db   :  { %v2993_v45 = vpop.f32.mrf.mxu1  ;;  %v3034_v36 = vpop.f32.mrf.mxu0 }
 0x8dc   :  { %v3082_v21 = vadd.f32 %v2993_v45, %v1178_v24 }
 0x8dd   :  { %v2995_v8 = vpop.f32.mrf.mxu1  ;;  %v3036_v54 = vpop.f32.mrf.mxu0 }
 0x8de   :  { %v3083_v3 = vadd.f32 %v2995_v8, %v1180_v14  ;;  %v6543_v46 = vmul.f32 -1.442695, %v3082_v21 }
 0x8df   :  { %v2997_v25 = vpop.f32.mrf.mxu1  ;;  %v3038_v10 = vpop.f32.mrf.mxu0 }
 0x8e0   :  { %v6544_v22 = vmul.f32 -1.442695, %v3083_v3  ;;  %7467 = vpow2.f32 %v6543_v46  ;;  %v11648_v25 = vld [vmem:[#allocation106_spill] sm:$0xff] }
 0x8e1   :  { %v2998_v33 = vpop.f32.mrf.mxu1  ;;  %v3039_v63 = vpop.f32.mrf.mxu0  ;;  %v1221_v10 = vadd.f32 %v11648_v25, %v11456_v39  ;;  %v11649_v3 = vld [vmem:[#allocation22_spill] sm:$0xff]  ;;  %v11651_v25 = vld [vmem:[#allocation128_spill] sm:$0xff] }
 0x8e2   :  { %7469 = vpow2.f32 %v6544_v22  ;;  %v3096_v33 = vadd.f32 %v3034_v36, %v1219_v11  ;;  %v11650_v36 = vld [vmem:[#allocation105_spill] sm:$0xff] }
 0x8e3   :  { %v3097_v63 = vadd.f32 %v3036_v54, %v1221_v10  ;;  %v1260_v54 = vadd.f32 %v11650_v36, %v11407_v61 }
 0x8e4   :  { %v6545_v18 = vmul.f32 -1.442695, %v3096_v33  ;;  %v11652_v33 = vld [vmem:[#allocation107_spill] sm:$0xff] }
 0x8e5   :  { %v6546_v44 = vmul.f32 -1.442695, %v3097_v63  ;;  %v1262_v63 = vadd.f32 %v11652_v33, %v9242_v47 }
 0x8e6   :  { %7471 = vpow2.f32 %v6545_v18 }
 0x8e7   :  { %7473 = vpow2.f32 %v6546_v44 }
 0x8ed   :  { %v7468_v19 = vpop.eup %7467 }
 0x8ee   :  { %v3090_v38 = vadd.f32 1.0, %v7468_v19 }
 0x8ef   :  { %v7470_v4 = vpop.eup %7469 }
 0x8f0   :  { %v3091_v45 = vadd.f32 1.0, %v7470_v4  ;;  %7475 = vrcp.f32 %v3090_v38 }
 0x8f2   :  { %7477 = vrcp.f32 %v3091_v45 }
 0x8f3   :  { %v7472_v46 = vpop.eup %7471 }
 0x8f4   :  { %v7474_v8 = vpop.eup %7473  ;;  %v3104_v24 = vadd.f32 1.0, %v7472_v46 }
 0x8f5   :  { %v3105_v21 = vadd.f32 1.0, %v7474_v8 }
 0x8f6   :  { %7479 = vrcp.f32 %v3104_v24 }
 0x8f7   :  { %7481 = vrcp.f32 %v3105_v21 }
 0x8fd   :  { %v7476_v31 = vpop.eup %7475 }
 0x8ff   :  { %v7478_v44 = vpop.eup %7477 }
 0x903   :  { %v7480_v8 = vpop.eup %7479 }
 0x91b   :  { %v3075_v14 = vpop.f32.mrf.mxu1 }
 0x91c   :  { %v3110_v22 = vadd.f32 %v3075_v14, %v11649_v3  ;;  %v7482_v14 = vpop.eup %7481  ;;  %v3118_v3 = vsub.f32 1.0, %v7480_v8 }
 0x91d   :  { %v3077_v11 = vpop.f32.mrf.mxu1  ;;  %v3119_v24 = vsub.f32 1.0, %v7482_v14 }
 0x91e   :  { %v3112_v18 = vmul.f32 %v7476_v31, %v3110_v22  ;;  %v3111_v10 = vadd.f32 %v3077_v11, %v11651_v25  ;;  %v3122_v31 = vmul.f32 %v7480_v8, %v9942_v41  ;;  %v3123_v25 = vmul.f32 %v7482_v14, %v9944_v53  ;;  %v7656_v41 = vld [vmem:[#allocation8 + $0x150] ss:$24 sps:$4 sm:$0xff]   ;;  %v7657_v53 = vld [vmem:[#allocation8 + $0x124] ss:$24 sps:$4 sm:$0xff]  }
 0x91f   :  { %v3079_v4 = vpop.f32.mrf.mxu1  ;;  %v7699_v8 = vld [vmem:[#allocation8 + $0x27c] ss:$24 sps:$4 sm:$0xff]   ;;  %v7700_v14 = vld [vmem:[#allocation8 + $0x278] ss:$24 sps:$4 sm:$0xff]  }
 0x920   :  { %v3114_v19 = vadd.f32 %v3112_v18, %v1260_v54  ;;  %v3113_v38 = vmul.f32 %v7478_v44, %v3111_v10  ;;  %v7661_v10 = vld [vmem:[#allocation8 + $0xc4] ss:$24 sps:$4 sm:$0xff]  }
 0x921   :  { %v3080_v45 = vpop.f32.mrf.mxu1  ;;  %v7693_v44 = vld [vmem:[#allocation8 + $0xc] ss:$24 sps:$4 sm:$0xff]  }
 0x922   :  { %7483 = vtanh.f32 %v3114_v19  ;;  %v3115_v46 = vadd.f32 %v3113_v38, %v1262_v63  ;;  %v7694_v63 = vld [vmem:[#allocation8 + $0x8] ss:$24 sps:$4 sm:$0xff]   ;;  %v7695_v19 = vld [vmem:[#allocation8 + $0x2dc] ss:$24 sps:$4 sm:$0xff]   ;;  %v7696_v38 = vld [vmem:[#allocation8 + $0x2d8] ss:$24 sps:$4 sm:$0xff]  }
 0x923   :  { %v7697_v45 = vld [vmem:[#allocation8 + $0x2ac] ss:$24 sps:$4 sm:$0xff]  }
 0x924   :  { %7485 = vtanh.f32 %v3115_v46  ;;  %v7698_v46 = vld [vmem:[#allocation8 + $0x2a8] ss:$24 sps:$4 sm:$0xff]  }
 0x92f   :  { %v7484_v36 = vpop.eup %7483 }
 0x930   :  { %v3120_v22 = vmul.f32 %v7484_v36, %v3118_v3  ;;  %v7658_v3 = vld [vmem:[#allocation8 + $0x120] ss:$24 sps:$4 sm:$0xff]   ;;  %v7701_v36 = vld [vmem:[#allocation8 + $0x24c] ss:$24 sps:$4 sm:$0xff]  }
 0x931   :  { %v7486_v11 = vpop.eup %7485 }
 0x932   :  { %v3121_v4 = vmul.f32 %v7486_v11, %v3119_v24  ;;  %v10067_v33 = vadd.f32 %v3122_v31, %v3120_v22  ;;  %v7702_v24 = vld [vmem:[#allocation8 + $0x248] ss:$24 sps:$4 sm:$0xff]   ;;  %v7703_v22 = vld [vmem:[#allocation8 + $0x21c] ss:$24 sps:$4 sm:$0xff]   ;;  %v7704_v31 = vld [vmem:[#allocation8 + $0x218] ss:$24 sps:$4 sm:$0xff]  }
 0x933   :  { %v7705_v11 = vld [vmem:[#allocation8 + $0x1ec] ss:$24 sps:$4 sm:$0xff]  }
 0x934   :  { %v10069_v21 = vadd.f32 %v3123_v25, %v3121_v4  ;;  %v10075_v18 = vpack.c.bf16 %v10067_v33, %v10067_v33  ;;  %v7659_v25 = vld [vmem:[#allocation8 + $0xf4] ss:$24 sps:$4 sm:$0xff]   ;;  %v7706_v4 = vld [vmem:[#allocation8 + $0x1e8] ss:$24 sps:$4 sm:$0xff]  }
 0x936   :  { %v3127_v54 = vpack.c.bf16 %v10069_v21, %v10069_v21 }
 0x938   :  { %3160 = vmatprep.mubr.bf16.mxu0 %v3127_v54  ;;  %3201 = vmatprep.mubr.bf16.mxu1 %v3127_v54 }
 0x939   :  { %3161 = vmatmul.mubr.bf16.vlgmr.msra.gmra.mxu0 %v10075_v18  ;;  %3202 = vmatmul.mubr.bf16.vlgmr.msra.gmra.mxu1 %v10075_v18 }
 0x93a   :  { %3211 = vmatpush1.bf16.msra.mxu0 %v9624_v51  ;;  %3242 = vmatprep.mubr.bf16.mxu0 %v3127_v54  ;;  %v7660_v51 = vld [vmem:[#allocation8 + $0xf0] ss:$24 sps:$4 sm:$0xff]   ;;  %v7707_v54 = vld [vmem:[#allocation8 + $0x1bc] ss:$24 sps:$4 sm:$0xff]  }
 0x93b   :  { %3212 = vmatprep.subr.bf16.mxu0 %v9627_v13  ;;  %3298 = vmatpush1.bf16.msra.mxu1 %v7656_v41  ;;  %v7662_v13 = vld [vmem:[#allocation8 + $0xc0] ss:$24 sps:$4 sm:$0xff]   ;;  %v7709_v41 = vld [vmem:[#allocation8 + $0x18c] ss:$24 sps:$4 sm:$0xff]  }
 0x93c   :  { %3299 = vmatprep.subr.bf16.mxu1 %v7657_v53  ;;  %v7710_v53 = vld [vmem:[#allocation8 + $0x188] ss:$24 sps:$4 sm:$0xff]  }
 0x93e   :  { %3213 = vmatpush1.bf16.msra.mxu0 %v9632_v57  ;;  %v7663_v57 = vld [vmem:[#allocation8 + $0x94] ss:$24 sps:$4 sm:$0xff]  }
 0x93f   :  { %3214 = vmatprep.subr.bf16.mxu0 %v9635_v0  ;;  %3300 = vmatpush1.bf16.msra.mxu1 %v7658_v3  ;;  %v7664_v0 = vld [vmem:[#allocation8 + $0x90] ss:$24 sps:$4 sm:$0xff]  }
 0x940   :  { %3301 = vmatprep.subr.bf16.mxu1 %v7659_v25 }
 0x942   :  { %3215 = vmatpush1.bf16.msra.mxu0 %v9640_v62  ;;  %v7665_v62 = vld [vmem:[#allocation8 + $0x64] ss:$24 sps:$4 sm:$0xff]  }
 0x943   :  { %3216 = vmatprep.subr.bf16.mxu0 %v9643_v20  ;;  %3302 = vmatpush1.bf16.msra.mxu1 %v7660_v51  ;;  %v7666_v20 = vld [vmem:[#allocation8 + $0x60] ss:$24 sps:$4 sm:$0xff]  }
 0x944   :  { %3303 = vmatprep.subr.bf16.mxu1 %v7661_v10 }
 0x946   :  { %3217 = vmatpush1.bf16.msra.mxu0 %v9648_v59  ;;  %v7667_v59 = vld [vmem:[#allocation8 + $0x34] ss:$24 sps:$4 sm:$0xff]  }
 0x947   :  { %3218 = vmatprep.subr.bf16.mxu0 %v9651_v60  ;;  %3304 = vmatpush1.bf16.msra.mxu1 %v7662_v13  ;;  %v7668_v60 = vld [vmem:[#allocation8 + $0x30] ss:$24 sps:$4 sm:$0xff]  }
 0x948   :  { %3305 = vmatprep.subr.bf16.mxu1 %v7663_v57 }
 0x94a   :  { %3219 = vmatpush1.bf16.msra.mxu0 %v9656_v28  ;;  %v7669_v28 = vld [vmem:[#allocation8 + $0x4] ss:$24 sps:$4 sm:$0xff]  }
 0x94b   :  { %3220 = vmatprep.subr.bf16.mxu0 %v9659_v50  ;;  %3306 = vmatpush1.bf16.msra.mxu1 %v7664_v0  ;;  %v7670_v50 = vld [vmem:[#allocation8] ss:$24 sps:$4 sm:$0xff]  }
 0x94c   :  { %3307 = vmatprep.subr.bf16.mxu1 %v7665_v62 }
 0x94e   :  { %3221 = vmatpush1.bf16.msra.mxu0 %v9664_v37  ;;  %v7671_v37 = vld [vmem:[#allocation8 + $0x2d4] ss:$24 sps:$4 sm:$0xff]  }
 0x94f   :  { %3222 = vmatprep.subr.bf16.mxu0 %v9667_v29  ;;  %3308 = vmatpush1.bf16.msra.mxu1 %v7666_v20  ;;  %v7672_v29 = vld [vmem:[#allocation8 + $0x2d0] ss:$24 sps:$4 sm:$0xff]  }
 0x950   :  { %3309 = vmatprep.subr.bf16.mxu1 %v7667_v59  ;;  %v11657_v20 = vld [vmem:[#allocation126_spill] sm:$0xff]  ;;  %v11658_v59 = vld [vmem:[#allocation112_spill] sm:$0xff] }
 0x952   :  { %3223 = vmatpush1.bf16.msra.mxu0 %v9672_v56  ;;  %v7673_v56 = vld [vmem:[#allocation8 + $0x2a4] ss:$24 sps:$4 sm:$0xff]  }
 0x953   :  { %3224 = vmatprep.subr.bf16.mxu0 %v9675_v52  ;;  %3310 = vmatpush1.bf16.msra.mxu1 %v7668_v60  ;;  %v7674_v52 = vld [vmem:[#allocation8 + $0x2a0] ss:$24 sps:$4 sm:$0xff]   ;;  %v1308_v60 = vadd.f32 %v11658_v59, %v11657_v20  ;;  %v7713_v59 = vld [vmem:[#allocation8 + $0x130] ss:$24 sps:$4 sm:$0xff]  }
 0x954   :  { %3311 = vmatprep.subr.bf16.mxu1 %v7669_v28  ;;  %v11659_v28 = vld [vmem:[#allocation114_spill] sm:$0xff] }
 0x956   :  { %3225 = vmatpush1.bf16.msra.mxu0 %v9680_v2  ;;  %v7675_v2 = vld [vmem:[#allocation8 + $0x274] ss:$24 sps:$4 sm:$0xff]  }
 0x957   :  { %3226 = vmatprep.subr.bf16.mxu0 %v9683_v43  ;;  %3312 = vmatpush1.bf16.msra.mxu1 %v7670_v50  ;;  %v7676_v43 = vld [vmem:[#allocation8 + $0x270] ss:$24 sps:$4 sm:$0xff]   ;;  %v1310_v50 = vadd.f32 %v11659_v28, %v11400_v5  ;;  %v7715_v28 = vld [vmem:[#allocation8 + $0x100] ss:$24 sps:$4 sm:$0xff]  }
 0x958   :  { %3313 = vmatprep.subr.bf16.mxu1 %v7671_v37 }
 0x95a   :  { %3227 = vmatpush2.bf16.msra.mxu0 %v11515_v34  ;;  %v7677_v34 = vld [vmem:[#allocation8 + $0x244] ss:$24 sps:$4 sm:$0xff]  }
 0x95b   :  { %3228 = vmatprep.subr.bf16.mxu0 %v11516_v27  ;;  %3314 = vmatpush2.bf16.msra.mxu1 %v7672_v29  ;;  %v7678_v27 = vld [vmem:[#allocation8 + $0x240] ss:$24 sps:$4 sm:$0xff]  }
 0x95c   :  { %3315 = vmatprep.subr.bf16.mxu1 %v7673_v56 }
 0x95e   :  { %3229 = vmatpush2.bf16.msra.mxu0 %v11584_v58  ;;  %v11653_v58 = vld [vmem:[#allocation29_spill] sm:$0xff] }
 0x95f   :  { %3230 = vmatprep.subr.bf16.mxu0 %v11585_v48  ;;  %3316 = vmatpush2.bf16.msra.mxu1 %v7674_v52  ;;  %v11654_v48 = vld [vmem:[#allocation31_spill] sm:$0xff] }
 0x960   :  { %3317 = vmatprep.subr.bf16.mxu1 %v7675_v2  ;;  %v11660_v2 = vld [vmem:[#allocation113_spill] sm:$0xff] }
 0x962   :  { %3231 = vmatpush2.bf16.msra.mxu0 %v11588_v23  ;;  %v7679_v23 = vld [vmem:[#allocation8 + $0x15c] ss:$24 sps:$4 sm:$0xff]  }
 0x963   :  { %3232 = vmatprep.subr.bf16.mxu0 %v11589_v35  ;;  %3318 = vmatpush2.bf16.msra.mxu1 %v7676_v43  ;;  %v11655_v35 = vld [vmem:[#allocation24_spill] sm:$0xff]  ;;  %v1349_v43 = vadd.f32 %v11660_v2, %v11402_v7 }
 0x964   :  { %3319 = vmatprep.subr.bf16.mxu1 %v7677_v34  ;;  %v11661_v34 = vld [vmem:[#allocation115_spill] sm:$0xff]  ;;  %v7721_v2 = vld [vmem:[#allocation8 + $0x70] ss:$24 sps:$4 sm:$0xff]  }
 0x966   :  { %3233 = vmatpush2.bf16.msra.mxu0 %v11592_v32  ;;  %v11656_v32 = vld [vmem:[#allocation30_spill] sm:$0xff] }
 0x967   :  { %3234 = vmatprep.subr.bf16.mxu0 %v11593_v15  ;;  %3320 = vmatpush2.bf16.msra.mxu1 %v7678_v27  ;;  %v7680_v15 = vld [vmem:[#allocation8 + $0x158] ss:$24 sps:$4 sm:$0xff]   ;;  %v1351_v27 = vadd.f32 %v11661_v34, %v11456_v39 }
 0x968   :  { %3321 = vmatprep.subr.bf16.mxu1 %v11595_v49  ;;  %v7681_v49 = vld [vmem:[#allocation8 + $0x12c] ss:$24 sps:$4 sm:$0xff]   ;;  %v7723_v34 = vld [vmem:[#allocation8 + $0x40] ss:$24 sps:$4 sm:$0xff]  }
 0x96a   :  { %3235 = vmatpush2.bf16.msra.mxu0 %v11596_v12  ;;  %v7682_v12 = vld [vmem:[#allocation8 + $0x128] ss:$24 sps:$4 sm:$0xff]  }
 0x96b   :  { %3236 = vmatprep.subr.bf16.mxu0 %v11597_v55  ;;  %3322 = vmatpush2.bf16.msra.mxu1 %v11598_v1  ;;  %v7683_v55 = vld [vmem:[#allocation8 + $0xfc] ss:$24 sps:$4 sm:$0xff]   ;;  %v7684_v1 = vld [vmem:[#allocation8 + $0xf8] ss:$24 sps:$4 sm:$0xff]  }
 0x96c   :  { %3323 = vmatprep.subr.bf16.mxu1 %v11599_v40  ;;  %v7685_v40 = vld [vmem:[#allocation8 + $0xcc] ss:$24 sps:$4 sm:$0xff]  }
 0x96e   :  { %3237 = vmatpush2.bf16.msra.mxu0 %v11600_v6  ;;  %v7686_v6 = vld [vmem:[#allocation8 + $0xc8] ss:$24 sps:$4 sm:$0xff]  }
 0x96f   :  { %3238 = vmatprep.subr.bf16.mxu0 %v11601_v16  ;;  %3324 = vmatpush2.bf16.msra.mxu1 %v11602_v30  ;;  %v7687_v16 = vld [vmem:[#allocation8 + $0x9c] ss:$24 sps:$4 sm:$0xff]   ;;  %v7688_v30 = vld [vmem:[#allocation8 + $0x98] ss:$24 sps:$4 sm:$0xff]  }
 0x970   :  { %3325 = vmatprep.subr.bf16.mxu1 %v11603_v9  ;;  %v7689_v9 = vld [vmem:[#allocation8 + $0x6c] ss:$24 sps:$4 sm:$0xff]  }
 0x972   :  { %3239 = vmatpush2.bf16.msra.mxu0 %v11604_v17  ;;  %v7690_v17 = vld [vmem:[#allocation8 + $0x68] ss:$24 sps:$4 sm:$0xff]  }
 0x973   :  { %3240 = vmatprep.subr.bf16.mxu0 %v11605_v26  ;;  %3326 = vmatpush2.bf16.msra.mxu1 %v11606_v42  ;;  %v7691_v26 = vld [vmem:[#allocation8 + $0x3c] ss:$24 sps:$4 sm:$0xff]   ;;  %v7692_v42 = vld [vmem:[#allocation8 + $0x38] ss:$24 sps:$4 sm:$0xff]  }
 0x974   :  { %3327 = vmatprep.subr.bf16.mxu1 %v11653_v58 }
 0x976   :  { %3241 = vmatpush2.bf16.msra.mxu0 %v11654_v48 }
 0x977   :  { %3338 = vmatprep.subr.bf16.mxu0 %v7679_v23  ;;  %3328 = vmatpush2.bf16.msra.mxu1 %v11655_v35 }
 0x978   :  { %3379 = vmatprep.subr.bf16.mxu1 %v11656_v32 }
 0x979   :  { %3243 = vmatmul.mubr.bf16.vlgmr.msra.gmra.mxu0 %v10075_v18  ;;  %v7708_v18 = vld [vmem:[#allocation8 + $0x1b8] ss:$24 sps:$4 sm:$0xff]  }
 0x97a   :  { %3339 = vmatpush1.bf16.msra.mxu0 %v7680_v15 }
 0x97b   :  { %3340 = vmatprep.subr.bf16.mxu0 %v7681_v49 }
 0x97e   :  { %3341 = vmatpush1.bf16.msra.mxu0 %v7682_v12 }
 0x97f   :  { %3342 = vmatprep.subr.bf16.mxu0 %v7683_v55 }
 0x982   :  { %3343 = vmatpush1.bf16.msra.mxu0 %v7684_v1 }
 0x983   :  { %3344 = vmatprep.subr.bf16.mxu0 %v7685_v40 }
 0x986   :  { %3345 = vmatpush1.bf16.msra.mxu0 %v7686_v6 }
 0x987   :  { %3346 = vmatprep.subr.bf16.mxu0 %v7687_v16 }
 0x98a   :  { %3347 = vmatpush1.bf16.msra.mxu0 %v7688_v30  ;;  %v11662_v30 = vld [vmem:[#allocation22_spill] sm:$0xff] }
 0x98b   :  { %3348 = vmatprep.subr.bf16.mxu0 %v7689_v9 }
 0x98e   :  { %3349 = vmatpush1.bf16.msra.mxu0 %v7690_v17 }
 0x98f   :  { %3350 = vmatprep.subr.bf16.mxu0 %v7691_v26 }
 0x992   :  { %3351 = vmatpush1.bf16.msra.mxu0 %v7692_v42  ;;  %v11663_v42 = vld [vmem:[#allocation116_spill] sm:$0xff] }
 0x993   :  { %3352 = vmatprep.subr.bf16.mxu0 %v7693_v44  ;;  %v1390_v44 = vadd.f32 %v11663_v42, %v11407_v61  ;;  %v7741_v42 = vld [vmem:[#allocation8 + $0x190] ss:$24 sps:$4 sm:$0xff]  }
 0x996   :  { %3353 = vmatpush1.bf16.msra.mxu0 %v7694_v63 }
 0x997   :  { %3354 = vmatprep.subr.bf16.mxu0 %v7695_v19  ;;  %v11664_v19 = vld [vmem:[#allocation128_spill] sm:$0xff] }
 0x99a   :  { %3355 = vmatpush2.bf16.msra.mxu0 %v7696_v38 }
 0x99b   :  { %3356 = vmatprep.subr.bf16.mxu0 %v7697_v45 }
 0x99e   :  { %3357 = vmatpush2.bf16.msra.mxu0 %v7698_v46 }
 0x99f   :  { %3358 = vmatprep.subr.bf16.mxu0 %v7699_v8  ;;  %v11665_v8 = vld [vmem:[#allocation118_spill] sm:$0xff] }
 0x9a2   :  { %3359 = vmatpush2.bf16.msra.mxu0 %v7700_v14  ;;  %v1392_v14 = vadd.f32 %v11665_v8, %v9242_v47  ;;  %v7282_v8 = vld [vmem:[#allocation11 + $0xcc] ss:$16 sps:$4 sm:$0xff]  }
 0x9a3   :  { %3360 = vmatprep.subr.bf16.mxu0 %v7701_v36 }
 0x9a6   :  { %3361 = vmatpush2.bf16.msra.mxu0 %v7702_v24 }
 0x9a7   :  { %3362 = vmatprep.subr.bf16.mxu0 %v7703_v22 }
 0x9aa   :  { %3363 = vmatpush2.bf16.msra.mxu0 %v7704_v31 }
 0x9ab   :  { %3364 = vmatprep.subr.bf16.mxu0 %v7705_v11 }
 0x9ae   :  { %3365 = vmatpush2.bf16.msra.mxu0 %v7706_v4 }
 0x9af   :  { %3366 = vmatprep.subr.bf16.mxu0 %v7707_v54 }
 0x9b2   :  { %3367 = vmatpush2.bf16.msra.mxu0 %v7708_v18 }
 0x9b3   :  { %3368 = vmatprep.subr.bf16.mxu0 %v7709_v41 }
 0x9b6   :  { %3369 = vmatpush2.bf16.msra.mxu0 %v7710_v53 }
 0x9f9   :  { %v3162_v3 = vpop.f32.mrf.mxu0  ;;  %v3203_v25 = vpop.f32.mrf.mxu1 }
 0x9fa   :  { %v3251_v37 = vadd.f32 %v3162_v3, %v1308_v60  ;;  %v3265_v58 = vadd.f32 %v3203_v25, %v1349_v43  ;;  %v7714_v60 = vld [vmem:[#allocation8 + $0x104] ss:$24 sps:$4 sm:$0xff]  }
 0x9fb   :  { %v3164_v51 = vpop.f32.mrf.mxu0  ;;  %v3205_v10 = vpop.f32.mrf.mxu1  ;;  %v7722_v43 = vld [vmem:[#allocation8 + $0x44] ss:$24 sps:$4 sm:$0xff]  }
 0x9fc   :  { %v3252_v29 = vadd.f32 %v3164_v51, %v1310_v50  ;;  %v6547_v56 = vmul.f32 -1.442695, %v3251_v37  ;;  %v3266_v48 = vadd.f32 %v3205_v10, %v1351_v27  ;;  %v6549_v23 = vmul.f32 -1.442695, %v3265_v58  ;;  %v7716_v50 = vld [vmem:[#allocation8 + $0xd4] ss:$24 sps:$4 sm:$0xff]  }
 0x9fd   :  { %v3166_v13 = vpop.f32.mrf.mxu0  ;;  %v3207_v57 = vpop.f32.mrf.mxu1  ;;  %v7717_v37 = vld [vmem:[#allocation8 + $0xd0] ss:$24 sps:$4 sm:$0xff]   ;;  %v7724_v27 = vld [vmem:[#allocation8 + $0x14] ss:$24 sps:$4 sm:$0xff]  }
 0x9fe   :  { %v6548_v52 = vmul.f32 -1.442695, %v3252_v29  ;;  %7487 = vpow2.f32 %v6547_v56  ;;  %v6550_v35 = vmul.f32 -1.442695, %v3266_v48  ;;  %v7718_v29 = vld [vmem:[#allocation8 + $0xa4] ss:$24 sps:$4 sm:$0xff]  }
 0x9ff   :  { %v3167_v0 = vpop.f32.mrf.mxu0  ;;  %v3208_v62 = vpop.f32.mrf.mxu1  ;;  %v7719_v56 = vld [vmem:[#allocation8 + $0xa0] ss:$24 sps:$4 sm:$0xff]   ;;  %v7725_v58 = vld [vmem:[#allocation8 + $0x10] ss:$24 sps:$4 sm:$0xff]   ;;  %v7726_v48 = vld [vmem:[#allocation8 + $0x2e4] ss:$24 sps:$4 sm:$0xff]  }
 0xa00   :  { %7489 = vpow2.f32 %v6548_v52  ;;  %v7720_v52 = vld [vmem:[#allocation8 + $0x74] ss:$24 sps:$4 sm:$0xff]  }
 0xa01   :  { %7491 = vpow2.f32 %v6549_v23  ;;  %v7727_v23 = vld [vmem:[#allocation8 + $0x2e0] ss:$24 sps:$4 sm:$0xff]  }
 0xa02   :  { %7493 = vpow2.f32 %v6550_v35  ;;  %v7728_v35 = vld [vmem:[#allocation8 + $0x2b4] ss:$24 sps:$4 sm:$0xff]  }
 0xa0b   :  { %v7488_v32 = vpop.eup %7487 }
 0xa0c   :  { %v3259_v49 = vadd.f32 1.0, %v7488_v32  ;;  %v7729_v32 = vld [vmem:[#allocation8 + $0x2b0] ss:$24 sps:$4 sm:$0xff]  }
 0xa0d   :  { %v7490_v15 = vpop.eup %7489 }
 0xa0e   :  { %v3260_v12 = vadd.f32 1.0, %v7490_v15  ;;  %7495 = vrcp.f32 %v3259_v49  ;;  %v7492_v55 = vpop.eup %7491  ;;  %v7730_v15 = vld [vmem:[#allocation8 + $0x284] ss:$24 sps:$4 sm:$0xff]   ;;  %v7731_v49 = vld [vmem:[#allocation8 + $0x280] ss:$24 sps:$4 sm:$0xff]  }
 0xa0f   :  { %v7494_v1 = vpop.eup %7493  ;;  %v3273_v40 = vadd.f32 1.0, %v7492_v55  ;;  %v7733_v55 = vld [vmem:[#allocation8 + $0x250] ss:$24 sps:$4 sm:$0xff]  }
 0xa10   :  { %7497 = vrcp.f32 %v3260_v12  ;;  %v3274_v16 = vadd.f32 1.0, %v7494_v1  ;;  %v7732_v12 = vld [vmem:[#allocation8 + $0x254] ss:$24 sps:$4 sm:$0xff]   ;;  %v7734_v1 = vld [vmem:[#allocation8 + $0x224] ss:$24 sps:$4 sm:$0xff]  }
 0xa11   :  { %7499 = vrcp.f32 %v3273_v40  ;;  %v7735_v40 = vld [vmem:[#allocation8 + $0x220] ss:$24 sps:$4 sm:$0xff]  }
 0xa12   :  { %7501 = vrcp.f32 %v3274_v16  ;;  %v7737_v16 = vld [vmem:[#allocation8 + $0x1f0] ss:$24 sps:$4 sm:$0xff]  }
 0xa1b   :  { %v7496_v17 = vpop.eup %7495 }
 0xa1d   :  { %v7498_v45 = vpop.eup %7497 }
 0xa1e   :  { %v7500_v11 = vpop.eup %7499 }
 0xa1f   :  { %v7502_v4 = vpop.eup %7501  ;;  %v3287_v54 = vsub.f32 1.0, %v7500_v11  ;;  %v3291_v3 = vmul.f32 %v7500_v11, %v10067_v33  ;;  %v7711_v33 = vld [vmem:[#allocation8 + $0x160] ss:$24 sps:$4 sm:$0xff]  }
 0xa20   :  { %v3288_v41 = vsub.f32 1.0, %v7502_v4  ;;  %v3292_v10 = vmul.f32 %v7502_v4, %v10069_v21  ;;  %v7712_v21 = vld [vmem:[#allocation8 + $0x134] ss:$24 sps:$4 sm:$0xff]  }
 0xa21   :  { %v7286_v11 = vld [vmem:[#allocation11 + $0xa8] ss:$16 sps:$4 sm:$0xff]   ;;  %v7291_v4 = vld [vmem:[#allocation11 + $0x84] ss:$16 sps:$4 sm:$0xff]  }
 0xa39   :  { %v3244_v6 = vpop.f32.mrf.mxu0 }
 0xa3a   :  { %v3279_v9 = vadd.f32 %v3244_v6, %v11662_v30  ;;  %v7736_v6 = vld [vmem:[#allocation8 + $0x1f4] ss:$24 sps:$4 sm:$0xff]  }
 0xa3b   :  { %v3246_v26 = vpop.f32.mrf.mxu0 }
 0xa3c   :  { %v3281_v63 = vmul.f32 %v7496_v17, %v3279_v9  ;;  %v3280_v38 = vadd.f32 %v3246_v26, %v11664_v19  ;;  %v7738_v9 = vld [vmem:[#allocation8 + $0x1c4] ss:$24 sps:$4 sm:$0xff]   ;;  %v7739_v17 = vld [vmem:[#allocation8 + $0x1c0] ss:$24 sps:$4 sm:$0xff]   ;;  %v7740_v26 = vld [vmem:[#allocation8 + $0x194] ss:$24 sps:$4 sm:$0xff]  }
 0xa3d   :  { %v3248_v46 = vpop.f32.mrf.mxu0 }
 0xa3e   :  { %v3283_v36 = vadd.f32 %v3281_v63, %v1390_v44  ;;  %v3282_v24 = vmul.f32 %v7498_v45, %v3280_v38  ;;  %v7271_v44 = vld [vmem:[#allocation11 + $0xe0] ss:$16 sps:$4 sm:$0xff]   ;;  %v7273_v63 = vld [vmem:[#allocation11 + $0xe4] ss:$16 sps:$4 sm:$0xff]   ;;  %v7274_v38 = vld [vmem:[#allocation11 + $0xe8] ss:$16 sps:$4 sm:$0xff]  }
 0xa3f   :  { %v3249_v22 = vpop.f32.mrf.mxu0  ;;  %v7276_v45 = vld [vmem:[#allocation11 + $0xec] ss:$16 sps:$4 sm:$0xff]   ;;  %v7279_v46 = vld [vmem:[#allocation11 + $0xc4] ss:$16 sps:$4 sm:$0xff]   ;;  %3850 = vmatprep.subr.bf16.mxu0 %v7273_v63  ;;  %v7352_v63 = vld [vmem:[#allocation11 + $0x148] ss:$16 sps:$4 sm:$0xff]  }
 0xa40   :  { %7503 = vtanh.f32 %v3283_v36  ;;  %v3284_v31 = vadd.f32 %v3282_v24, %v1392_v14  ;;  %v7277_v14 = vld [vmem:[#allocation11 + $0xc0] ss:$16 sps:$4 sm:$0xff]   ;;  %v7280_v36 = vld [vmem:[#allocation11 + $0xc8] ss:$16 sps:$4 sm:$0xff]   ;;  %v7285_v24 = vld [vmem:[#allocation11 + $0xa4] ss:$16 sps:$4 sm:$0xff]  }
 0xa41   :  { %v7288_v22 = vld [vmem:[#allocation11 + $0xac] ss:$16 sps:$4 sm:$0xff]  }
 0xa42   :  { %7505 = vtanh.f32 %v3284_v31  ;;  %v7283_v31 = vld [vmem:[#allocation11 + $0xa0] ss:$16 sps:$4 sm:$0xff]  }
 0xa4d   :  { %v7504_v18 = vpop.eup %7503 }
 0xa4e   :  { %v3289_v53 = vmul.f32 %v7504_v18, %v3287_v54  ;;  %v7294_v54 = vld [vmem:[#allocation11 + $0x8c] ss:$16 sps:$4 sm:$0xff]   ;;  %v7289_v18 = vld [vmem:[#allocation11 + $0x80] ss:$16 sps:$4 sm:$0xff]  }
 0xa4f   :  { %v7506_v25 = vpop.eup %7505 }
 0xa50   :  { %v3290_v51 = vmul.f32 %v7506_v25, %v3288_v41  ;;  %v10136_v13 = vadd.f32 %v3291_v3, %v3289_v53  ;;  %v7292_v41 = vld [vmem:[#allocation11 + $0x88] ss:$16 sps:$4 sm:$0xff]   ;;  %v7297_v53 = vld [vmem:[#allocation11 + $0x64] ss:$16 sps:$4 sm:$0xff]   ;;  %v7300_v3 = vld [vmem:[#allocation11 + $0x6c] ss:$16 sps:$4 sm:$0xff]  }
 0xa51   :  { %v7295_v25 = vld [vmem:[#allocation11 + $0x60] ss:$16 sps:$4 sm:$0xff]  }
 0xa52   :  { %v10138_v57 = vadd.f32 %v3292_v10, %v3290_v51  ;;  %v10144_v62 = vpack.c.bf16 %v10136_v13, %v10136_v13  ;;  %v7298_v51 = vld [vmem:[#allocation11 + $0x68] ss:$16 sps:$4 sm:$0xff]   ;;  %v7303_v10 = vld [vmem:[#allocation11 + $0x44] ss:$16 sps:$4 sm:$0xff]  }
 0xa54   :  { %v3296_v0 = vpack.c.bf16 %v10138_v57, %v10138_v57 }
 0xa56   :  { %3329 = vmatprep.mubr.bf16.mxu1 %v3296_v0  ;;  %3370 = vmatprep.mubr.bf16.mxu0 %v3296_v0 }
 0xa57   :  { %3330 = vmatmul.mubr.bf16.vlgmr.msra.gmra.mxu1 %v10144_v62  ;;  %3371 = vmatmul.mubr.bf16.vlgmr.msra.gmra.mxu0 %v10144_v62 }
 0xa58   :  { %3380 = vmatpush1.bf16.msra.mxu1 %v7711_v33  ;;  %3411 = vmatprep.mubr.bf16.mxu1 %v3296_v0  ;;  %v7306_v0 = vld [vmem:[#allocation11 + $0x4c] ss:$16 sps:$4 sm:$0xff]   ;;  %v7304_v33 = vld [vmem:[#allocation11 + $0x48] ss:$16 sps:$4 sm:$0xff]  }
 0xa59   :  { %3381 = vmatprep.subr.bf16.mxu1 %v7712_v21  ;;  %3851 = vmatpush1.bf16.msra.mxu0 %v7271_v44  ;;  %v7309_v21 = vld [vmem:[#allocation11 + $0x24] ss:$16 sps:$4 sm:$0xff]   ;;  %v7349_v44 = vld [vmem:[#allocation11 + $0x140] ss:$16 sps:$4 sm:$0xff]  }
 0xa5a   :  { %3852 = vmatprep.subr.bf16.mxu0 %v7279_v46  ;;  %v7355_v46 = vld [vmem:[#allocation11 + $0x120] ss:$16 sps:$4 sm:$0xff]  }
 0xa5c   :  { %3382 = vmatpush1.bf16.msra.mxu1 %v7713_v59  ;;  %v7312_v59 = vld [vmem:[#allocation11 + $0x2c] ss:$16 sps:$4 sm:$0xff]  }
 0xa5d   :  { %3383 = vmatprep.subr.bf16.mxu1 %v7714_v60  ;;  %3853 = vmatpush1.bf16.msra.mxu0 %v7277_v14  ;;  %v7307_v60 = vld [vmem:[#allocation11 + $0x20] ss:$16 sps:$4 sm:$0xff]   ;;  %v7363_v14 = vld [vmem:[#allocation11 + $0x104] ss:$16 sps:$4 sm:$0xff]  }
 0xa5e   :  { %3854 = vmatprep.subr.bf16.mxu0 %v7285_v24  ;;  %v7361_v24 = vld [vmem:[#allocation11 + $0x100] ss:$16 sps:$4 sm:$0xff]  }
 0xa60   :  { %3384 = vmatpush1.bf16.msra.mxu1 %v7715_v28  ;;  %v7310_v28 = vld [vmem:[#allocation11 + $0x28] ss:$16 sps:$4 sm:$0xff]  }
 0xa61   :  { %3385 = vmatprep.subr.bf16.mxu1 %v7716_v50  ;;  %3855 = vmatpush1.bf16.msra.mxu0 %v7283_v31  ;;  %v7315_v50 = vld [vmem:[#allocation11 + $0x4] ss:$16 sps:$4 sm:$0xff]  }
 0xa62   :  { %3856 = vmatprep.subr.bf16.mxu0 %v7291_v4  ;;  %v3939_v31 = vld [vmem:[%s10936_s7 + $0x18] sm:$0xff]  ;;  %v3934_v4 = vld [vmem:[%s10935_s6 + $0x10] sm:$0xff] }
 0xa63   :  { %4153 = vperm.xlu1 %7054, %v3939_v31  }
 0xa64   :  { %3386 = vmatpush1.bf16.msra.mxu1 %v7717_v37  ;;  %v7318_v37 = vld [vmem:[#allocation11 + $0xc] ss:$16 sps:$4 sm:$0xff]  }
 0xa65   :  { %3387 = vmatprep.subr.bf16.mxu1 %v7718_v29  ;;  %3857 = vmatpush1.bf16.msra.mxu0 %v7289_v18  ;;  %v7313_v29 = vld [vmem:[#allocation11] ss:$16 sps:$4 sm:$0xff]  }
 0xa66   :  { %3858 = vmatprep.subr.bf16.mxu0 %v7297_v53  ;;  %v3933_v18 = vld [vmem:[%s10935_s6 + $0x8] sm:$0xff]  ;;  %v3943_v53 = vld [vmem:[%s10937_s8 + $0x18] sm:$0xff] }
 0xa67   :  { %4056 = vperm.xlu1 %7054, %v3934_v4  }
 0xa68   :  { %3388 = vmatpush1.bf16.msra.mxu1 %v7719_v56  ;;  %v7316_v56 = vld [vmem:[#allocation11 + $0x8] ss:$16 sps:$4 sm:$0xff]  }
 0xa69   :  { %3389 = vmatprep.subr.bf16.mxu1 %v7720_v52  ;;  %3859 = vmatpush1.bf16.msra.mxu0 %v7295_v25  ;;  %v7321_v52 = vld [vmem:[#allocation11 + $0x1e4] ss:$16 sps:$4 sm:$0xff]  }
 0xa6a   :  { %3860 = vmatprep.subr.bf16.mxu0 %v7303_v10  ;;  %v3936_v25 = vld [vmem:[%s10936_s7] sm:$0xff]  ;;  %v3941_v10 = vld [vmem:[%s10937_s8 + $0x8] sm:$0xff] }
 0xa6b   :  { %4051 = vperm.xlu1 %7054, %v3933_v18  }
 0xa6c   :  { %3390 = vmatpush1.bf16.msra.mxu1 %v7721_v2  ;;  %v7324_v2 = vld [vmem:[#allocation11 + $0x1ec] ss:$16 sps:$4 sm:$0xff]  }
 0xa6d   :  { %3391 = vmatprep.subr.bf16.mxu1 %v7722_v43  ;;  %v7319_v43 = vld [vmem:[#allocation11 + $0x1e0] ss:$16 sps:$4 sm:$0xff]  }
 0xa6f   :  { %4277 = vperm.xlu1 %7054, %v3943_v53  }
 0xa70   :  { %3392 = vmatpush1.bf16.msra.mxu1 %v7723_v34  ;;  %v7322_v34 = vld [vmem:[#allocation11 + $0x1e8] ss:$16 sps:$4 sm:$0xff]  }
 0xa71   :  { %3393 = vmatprep.subr.bf16.mxu1 %v7724_v27  ;;  %v7327_v27 = vld [vmem:[#allocation11 + $0x1c4] ss:$16 sps:$4 sm:$0xff]  }
 0xa73   :  { %4138 = vperm.xlu1 %7054, %v3936_v25  }
 0xa74   :  { %3394 = vmatpush1.bf16.msra.mxu1 %v7725_v58  ;;  %v7330_v58 = vld [vmem:[#allocation11 + $0x1cc] ss:$16 sps:$4 sm:$0xff]  }
 0xa75   :  { %3395 = vmatprep.subr.bf16.mxu1 %v7726_v48  ;;  %v7325_v48 = vld [vmem:[#allocation11 + $0x1c0] ss:$16 sps:$4 sm:$0xff]  }
 0xa77   :  { %4267 = vperm.xlu1 %7054, %v3941_v10  }
 0xa78   :  { %3396 = vmatpush2.bf16.msra.mxu1 %v7727_v23  ;;  %v7328_v23 = vld [vmem:[#allocation11 + $0x1c8] ss:$16 sps:$4 sm:$0xff]  }
 0xa79   :  { %3397 = vmatprep.subr.bf16.mxu1 %v7728_v35  ;;  %v7333_v35 = vld [vmem:[#allocation11 + $0x1a4] ss:$16 sps:$4 sm:$0xff]  }
 0xa7c   :  { %3398 = vmatpush2.bf16.msra.mxu1 %v7729_v32  ;;  %v7336_v32 = vld [vmem:[#allocation11 + $0x1ac] ss:$16 sps:$4 sm:$0xff]  }
 0xa7d   :  { %3399 = vmatprep.subr.bf16.mxu1 %v7730_v15  ;;  %v7331_v15 = vld [vmem:[#allocation11 + $0x1a0] ss:$16 sps:$4 sm:$0xff]  }
 0xa80   :  { %3400 = vmatpush2.bf16.msra.mxu1 %v7731_v49  ;;  %v7334_v49 = vld [vmem:[#allocation11 + $0x1a8] ss:$16 sps:$4 sm:$0xff]  }
 0xa81   :  { %3401 = vmatprep.subr.bf16.mxu1 %v7732_v12  ;;  %v7339_v12 = vld [vmem:[#allocation11 + $0x184] ss:$16 sps:$4 sm:$0xff]  }
 0xa84   :  { %3402 = vmatpush2.bf16.msra.mxu1 %v7733_v55  ;;  %v7342_v55 = vld [vmem:[#allocation11 + $0x18c] ss:$16 sps:$4 sm:$0xff]  }
 0xa85   :  { %3403 = vmatprep.subr.bf16.mxu1 %v7734_v1  ;;  %v7337_v1 = vld [vmem:[#allocation11 + $0x180] ss:$16 sps:$4 sm:$0xff]  }
 0xa88   :  { %3404 = vmatpush2.bf16.msra.mxu1 %v7735_v40  ;;  %v7340_v40 = vld [vmem:[#allocation11 + $0x188] ss:$16 sps:$4 sm:$0xff]  }
 0xa89   :  { %3405 = vmatprep.subr.bf16.mxu1 %v7736_v6  ;;  %v7345_v6 = vld [vmem:[#allocation11 + $0x164] ss:$16 sps:$4 sm:$0xff]  }
 0xa8c   :  { %3406 = vmatpush2.bf16.msra.mxu1 %v7737_v16  ;;  %v7348_v16 = vld [vmem:[#allocation11 + $0x16c] ss:$16 sps:$4 sm:$0xff]  }
 0xa8d   :  { %3407 = vmatprep.subr.bf16.mxu1 %v7738_v9  ;;  %v7343_v9 = vld [vmem:[#allocation11 + $0x160] ss:$16 sps:$4 sm:$0xff]  }
 0xa90   :  { %3408 = vmatpush2.bf16.msra.mxu1 %v7739_v17  ;;  %v7346_v17 = vld [vmem:[#allocation11 + $0x168] ss:$16 sps:$4 sm:$0xff]  }
 0xa91   :  { %3409 = vmatprep.subr.bf16.mxu1 %v7740_v26  ;;  %v7351_v26 = vld [vmem:[#allocation11 + $0x144] ss:$16 sps:$4 sm:$0xff]  }
 0xa94   :  { %3410 = vmatpush2.bf16.msra.mxu1 %v7741_v42  ;;  %v7354_v42 = vld [vmem:[#allocation11 + $0x14c] ss:$16 sps:$4 sm:$0xff]  }
 0xa95   :  { %3891 = vmatprep.subr.bf16.mxu1 %v7276_v45  ;;  %v7360_v45 = vld [vmem:[#allocation11 + $0x12c] ss:$16 sps:$4 sm:$0xff]  }
 0xa97   :  { %3412 = vmatmul.mubr.bf16.vlgmr.msra.gmra.mxu1 %v10144_v62  ;;  %v7301_v62 = vld [vmem:[#allocation11 + $0x40] ss:$16 sps:$4 sm:$0xff]  }
 0xa98   :  { %3892 = vmatpush1.bf16.msra.mxu1 %v7274_v38  ;;  %3861 = vmatpush1.bf16.msra.mxu0 %v7301_v62  ;;  %v7357_v38 = vld [vmem:[#allocation11 + $0x124] ss:$16 sps:$4 sm:$0xff]  }
 0xa99   :  { %3893 = vmatprep.subr.bf16.mxu1 %v7282_v8  ;;  %3862 = vmatprep.subr.bf16.mxu0 %v7309_v21  ;;  %v7358_v8 = vld [vmem:[#allocation11 + $0x128] ss:$16 sps:$4 sm:$0xff]   ;;  %v4655_v62 = vld [vmem:[%s10939_s10 + $0x8] sm:$0xff] }
 0xa9a   :  { %4663 = vperm.xlu1 %7054, %v4655_v62   ;;  %v5322_v21 = vld [vmem:[%s10941_s12] sm:$0xff] }
 0xa9c   :  { %3894 = vmatpush1.bf16.msra.mxu1 %v7280_v36  ;;  %3863 = vmatpush1.bf16.msra.mxu0 %v7307_v60  ;;  %v7366_v36 = vld [vmem:[#allocation11 + $0x10c] ss:$16 sps:$4 sm:$0xff]   ;;  %v6643_v60 = vld [vmem:[#allocation2] ss:$0 sm:$0xff] }
 0xa9d   :  { %3895 = vmatprep.subr.bf16.mxu1 %v7288_v22  ;;  %3864 = vmatprep.subr.bf16.mxu0 %v7315_v50  ;;  %v7364_v22 = vld [vmem:[#allocation11 + $0x108] ss:$16 sps:$4 sm:$0xff]  }
 0xa9e   :  { %5325 = vperm.xlu1 %7054, %v5322_v21  }
 0xaa0   :  { %3896 = vmatpush1.bf16.msra.mxu1 %v7286_v11  ;;  %3865 = vmatpush1.bf16.msra.mxu0 %v7313_v29  ;;  %v3935_v11 = vld [vmem:[%s10935_s6 + $0x18] sm:$0xff] }
 0xaa1   :  { %3897 = vmatprep.subr.bf16.mxu1 %v7294_v54  ;;  %3866 = vmatprep.subr.bf16.mxu0 %v7321_v52  ;;  %v3938_v54 = vld [vmem:[%s10936_s7 + $0x10] sm:$0xff] }
 0xaa2   :  { %4061 = vperm.xlu0 %7053, %v3935_v11   ;;  %5985 = vperm.xlu1 %7054, %v6643_v60   ;;  %v11671_v11 = vld [vmem:[#allocation123_spill] sm:$0xff] }
 0xaa3   :  { %v1522_v4 = vadd.f32 %v11671_v11, %v9242_v47 }
 0xaa4   :  { %3898 = vmatpush1.bf16.msra.mxu1 %v7292_v41  ;;  %3867 = vmatpush2.bf16.msra.mxu0 %v7319_v43  ;;  %v3937_v41 = vld [vmem:[%s10936_s7 + $0x8] sm:$0xff] }
 0xaa5   :  { %3899 = vmatprep.subr.bf16.mxu1 %v7300_v3  ;;  %3868 = vmatprep.subr.bf16.mxu0 %v7327_v27  ;;  %v3932_v3 = vld [vmem:[%s10935_s6] sm:$0xff]  ;;  %s7882_s6 = scalar_lea.vmem %s6312_s29, 128 }
 0xaa6   :  { %4148 = vperm.xlu0 %7053, %v3938_v54   ;;  %p7883_p7 = scmp.ne.s32.totalorder %s6312_s29, %s7882_s6  ;;  %p7888_p9 = scmp.lt.s32.totalorder %s7882_s6, %s7882_s6 }
 0xaa8   :  { %3900 = vmatpush1.bf16.msra.mxu1 %v7298_v51  ;;  %3869 = vmatpush2.bf16.msra.mxu0 %v7325_v48  ;;  %v3942_v51 = vld [vmem:[%s10937_s8 + $0x10] sm:$0xff]  ;;  %p7889_p10 = por %p7888_p9, %p7887_p8 }
 0xaa9   :  { %3901 = vmatprep.subr.bf16.mxu1 %v7306_v0  ;;  %3870 = vmatprep.subr.bf16.mxu0 %v7333_v35  ;;  %v3940_v0 = vld [vmem:[%s10937_s8] sm:$0xff] }
 0xaaa   :  { %4143 = vperm.xlu0 %7053, %v3937_v41   ;;  %p7890_p11 = pnand %p7889_p10, %p7883_p7 }
 0xaac   :  { %3902 = vmatpush1.bf16.msra.mxu1 %v7304_v33  ;;  %3871 = vmatpush2.bf16.msra.mxu0 %v7331_v15  ;;  %v4654_v33 = vld [vmem:[%s10939_s10] sm:$0xff] }
 0xaad   :  { %3903 = vmatprep.subr.bf16.mxu1 %v7312_v59  ;;  %3872 = vmatprep.subr.bf16.mxu0 %v7339_v12  ;;  %v5916_v59 = vld [vmem:[%s10942_s13] sm:$0xff] }
 0xaae   :  { %4046 = vperm.xlu0 %7053, %v3932_v3  }
 0xab0   :  { %3904 = vmatpush1.bf16.msra.mxu1 %v7310_v28  ;;  %3873 = vmatpush2.bf16.msra.mxu0 %v7337_v1 }
 0xab1   :  { %3905 = vmatprep.subr.bf16.mxu1 %v7318_v37  ;;  %3874 = vmatprep.subr.bf16.mxu0 %v7345_v6 }
 0xab2   :  { %4272 = vperm.xlu0 %7053, %v3942_v51  }
 0xab4   :  { %3906 = vmatpush1.bf16.msra.mxu1 %v7316_v56  ;;  %3875 = vmatpush2.bf16.msra.mxu0 %v7343_v9 }
 0xab5   :  { %3907 = vmatprep.subr.bf16.mxu1 %v7324_v2  ;;  %3876 = vmatprep.subr.bf16.mxu0 %v7351_v26 }
 0xab6   :  { %4262 = vperm.xlu0 %7053, %v3940_v0  }
 0xab8   :  { %3908 = vmatpush2.bf16.msra.mxu1 %v7322_v34  ;;  %3877 = vmatpush2.bf16.msra.mxu0 %v7349_v44  ;;  %v11666_v34 = vld [vmem:[#allocation117_spill] sm:$0xff] }
 0xab9   :  { %3909 = vmatprep.subr.bf16.mxu1 %v7330_v58  ;;  %3878 = vmatprep.subr.bf16.mxu0 %v7357_v38  ;;  %v1438_v27 = vadd.f32 %v11666_v34, %v11657_v20  ;;  %v11667_v58 = vld [vmem:[#allocation119_spill] sm:$0xff] }
 0xaba   :  { %4658 = vperm.xlu0 %7053, %v4654_v33   ;;  %v1440_v48 = vadd.f32 %v11667_v58, %v11400_v5 }
 0xabc   :  { %3910 = vmatpush2.bf16.msra.mxu1 %v7328_v23  ;;  %3879 = vmatpush2.bf16.msra.mxu0 %v7355_v46 }
 0xabd   :  { %3911 = vmatprep.subr.bf16.mxu1 %v7336_v32  ;;  %3880 = vmatprep.subr.bf16.mxu0 %v7363_v14 }
 0xabe   :  { %5919 = vperm.xlu0 %7053, %v5916_v59  }
 0xac0   :  { %3912 = vmatpush2.bf16.msra.mxu1 %v7334_v49  ;;  %3881 = vmatpush2.bf16.msra.mxu0 %v7361_v24  ;;  %v11668_v49 = vld [vmem:[#allocation120_spill] sm:$0xff] }
 0xac1   :  { %3913 = vmatprep.subr.bf16.mxu1 %v7342_v55  ;;  %v1479_v12 = vadd.f32 %v11668_v49, %v11402_v7  ;;  %v11669_v55 = vld [vmem:[#allocation122_spill] sm:$0xff] }
 0xac2   :  { %v1481_v1 = vadd.f32 %v11669_v55, %v11456_v39 }
 0xac4   :  { %3914 = vmatpush2.bf16.msra.mxu1 %v7340_v40 }
 0xac5   :  { %3915 = vmatprep.subr.bf16.mxu1 %v7348_v16 }
 0xac8   :  { %3916 = vmatpush2.bf16.msra.mxu1 %v7346_v17 }
 0xac9   :  { %3917 = vmatprep.subr.bf16.mxu1 %v7354_v42 }
 0xacc   :  { %3918 = vmatpush2.bf16.msra.mxu1 %v7352_v63 }
 0xacd   :  { %3919 = vmatprep.subr.bf16.mxu1 %v7360_v45 }
 0xad0   :  { %3920 = vmatpush2.bf16.msra.mxu1 %v7358_v8  ;;  %v11670_v8 = vld [vmem:[#allocation121_spill] sm:$0xff] }
 0xad1   :  { %3921 = vmatprep.subr.bf16.mxu1 %v7366_v36  ;;  %v1520_v14 = vadd.f32 %v11670_v8, %v11407_v61 }
 0xad4   :  { %3922 = vmatpush2.bf16.msra.mxu1 %v7364_v22 }
 0xb17   :  { %v3331_v28 = vpop.f32.mrf.mxu1  ;;  %v3372_v50 = vpop.f32.mrf.mxu0 }
 0xb18   :  { %v3420_v23 = vadd.f32 %v3331_v28, %v1438_v27  ;;  %v3434_v40 = vadd.f32 %v3372_v50, %v1479_v12  ;;  %v10216_v28 = vld [vmem:[%s10938_s9] sm:$0xff] }
 0xb19   :  { %v3333_v37 = vpop.f32.mrf.mxu1  ;;  %v3374_v29 = vpop.f32.mrf.mxu0 }
 0xb1a   :  { %v3421_v35 = vadd.f32 %v3333_v37, %v1440_v48  ;;  %v6551_v32 = vmul.f32 -1.442695, %v3420_v23  ;;  %v3435_v6 = vadd.f32 %v3374_v29, %v1481_v1  ;;  %v6553_v16 = vmul.f32 -1.442695, %v3434_v40  ;;  %v11672_v37 = vld [vmem:[#allocation124_spill] sm:$0xff] }
 0xb1b   :  { %v3335_v56 = vpop.f32.mrf.mxu1  ;;  %v3376_v52 = vpop.f32.mrf.mxu0 }
 0xb1c   :  { %v6552_v15 = vmul.f32 -1.442695, %v3421_v35  ;;  %7507 = vpow2.f32 %v6551_v32  ;;  %v6554_v9 = vmul.f32 -1.442695, %v3435_v6  ;;  %v10225_v56 = vpop.permute.xlu1 %4153 }
 0xb1d   :  { %v3336_v2 = vpop.f32.mrf.mxu1  ;;  %v3377_v43 = vpop.f32.mrf.mxu0 }
 0xb1e   :  { %7509 = vpow2.f32 %v6552_v15  ;;  %v10231_v35 = vpop.permute.xlu0 %4061 }
 0xb1f   :  { %7511 = vpow2.f32 %v6553_v16 }
 0xb20   :  { %7513 = vpow2.f32 %v6554_v9 }
 0xb29   :  { %v7508_v20 = vpop.eup %7507 }
 0xb2a   :  { %v3428_v5 = vadd.f32 1.0, %v7508_v20  ;;  %v10238_v20 = vpop.permute.xlu1 %4056 }
 0xb2b   :  { %v7510_v17 = vpop.eup %7509 }
 0xb2c   :  { %v3429_v26 = vadd.f32 1.0, %v7510_v17  ;;  %7515 = vrcp.f32 %v3428_v5  ;;  %v7512_v42 = vpop.eup %7511 }
 0xb2d   :  { %v7514_v44 = vpop.eup %7513  ;;  %v3442_v63 = vadd.f32 1.0, %v7512_v42 }
 0xb2e   :  { %7517 = vrcp.f32 %v3429_v26  ;;  %v3443_v7 = vadd.f32 1.0, %v7514_v44  ;;  %v11673_v44 = vld [vmem:[#allocation125_spill] sm:$0xff] }
 0xb2f   :  { %7519 = vrcp.f32 %v3442_v63 }
 0xb30   :  { %7521 = vrcp.f32 %v3443_v7 }
 0xb39   :  { %v7516_v39 = vpop.eup %7515 }
 0xb3b   :  { %v7518_v22 = vpop.eup %7517 }
 0xb3c   :  { %v7520_v53 = vpop.eup %7519 }
 0xb3d   :  { %v7522_v3 = vpop.eup %7521  ;;  %v3456_v25 = vsub.f32 1.0, %v7520_v53 }
 0xb3e   :  { %v3457_v51 = vsub.f32 1.0, %v7522_v3  ;;  %v3461_v33 = vmul.f32 %v7522_v3, %v10138_v57 }
 0xb57   :  { %v3413_v38 = vpop.f32.mrf.mxu1 }
 0xb58   :  { %v3448_v45 = vadd.f32 %v3413_v38, %v11662_v30 }
 0xb59   :  { %v3415_v46 = vpop.f32.mrf.mxu1 }
 0xb5a   :  { %v3450_v36 = vmul.f32 %v7516_v39, %v3448_v45  ;;  %v3449_v24 = vadd.f32 %v3415_v46, %v11664_v19  ;;  %v3460_v19 = vmul.f32 %v7520_v53, %v10136_v13  ;;  %v7934_v13 = vmov 1966171168  }
 0xb5b   :  { %v3417_v31 = vpop.f32.mrf.mxu1  ;;  %v3947_v57 = vunpack.c.l.s4 %v7934_v13 }
 0xb5c   :  { %v3452_v54 = vadd.f32 %v3450_v36, %v1520_v14  ;;  %v3451_v18 = vmul.f32 %v7518_v22, %v3449_v24 }
 0xb5d   :  { %v3418_v41 = vpop.f32.mrf.mxu1  ;;  %v3948_v50 = vunpack.c.0.s8 %v3947_v57 }
 0xb5e   :  { %7523 = vtanh.f32 %v3452_v54  ;;  %v3453_v30 = vadd.f32 %v3451_v18, %v1522_v4  ;;  %v10258_v54 = vpop.permute.xlu0 %4148 }
 0xb5f   :  { %v10223_v29 = vsub.s32 %v3948_v50, %v11672_v37 }
 0xb60   :  { %7525 = vtanh.f32 %v3453_v30 }
 0xb6b   :  { %v7524_v61 = vpop.eup %7523 }
 0xb6c   :  { %v3458_v10 = vmul.f32 %v7524_v61, %v3456_v25 }
 0xb6d   :  { %v7526_v0 = vpop.eup %7525 }
 0xb6e   :  { %v3459_v62 = vmul.f32 %v7526_v0, %v3457_v51  ;;  %v3462_v47 = vadd.f32 %v3460_v19, %v3458_v10 }
 0xb70   :  { %v3463_v21 = vadd.f32 %v3461_v33, %v3459_v62  ;;  %v3464_v60 = vpack.c.bf16 %v3462_v47, %v3462_v47  ;;  %v10284_v33 = vpop.permute.xlu1 %4051 }
 0xb72   :  { %v3465_v59 = vpack.c.bf16 %v3463_v21, %v3463_v21 }
 0xb74   :  { %3882 = vmatprep.mubr.bf16.mxu0 %v3465_v59  ;;  %3923 = vmatprep.mubr.bf16.mxu1 %v3465_v59 }
 0xb75   :  { %3883 = vmatmul.mubr.bf16.vlgmr.msra.gmra.mxu0 %v3464_v60  ;;  %3924 = vmatmul.mubr.bf16.vlgmr.msra.gmra.mxu1 %v3464_v60 }
 0xb76   :  { %6778 = vmatprep.mubr.msk.f32.mxu1 %vm4666_vm0, %v10216_v28  ;;  %6822 = vmatprep.mubr.msk.f32.mxu0 %vm4666_vm0, %v10216_v28 }
 0xc35   :  { %v3884_v52 = vpop.f32.mrf.mxu0  ;;  %v3925_v2 = vpop.f32.mrf.mxu1 }
 0xc36   :  { %v3945_v43 = vcombine.high %v3884_v52, %v3884_v52  ;;  %v3952_v34 = vrot.slane %v3884_v52, %v10223_v29  ;;  %v3995_v27 = vcombine.high %v3925_v2, %v3925_v2  ;;  %v4002_v58 = vrot.slane %v3925_v2, %v10223_v29 }
 0xc37   :  { %v3886_v48 = vpop.f32.mrf.mxu0  ;;  %v10229_v23 = vpop.f32.mrf.mxu1 }
 0xc38   :  { %v3959_v32 = vrot.slane %v3945_v43, %v10223_v29  ;;  %v3960_v15 = vcombine.high %v3952_v34, %v3952_v34  ;;  %v3968_v49 = vrot.slane %v3952_v34, %v10223_v29  ;;  %v4009_v12 = vrot.slane %v3995_v27, %v10223_v29  ;;  %v10310_v27 = vpop.permute.xlu0 %4143 }
 0xc39   :  { %v4010_v55 = vcombine.high %v4002_v58, %v4002_v58  ;;  %v4018_v1 = vrot.slane %v4002_v58, %v10223_v29  ;;  %v4313_v40 = vcombine.high %v3886_v48, %v3886_v48  ;;  %v4320_v6 = vrot.slane %v3886_v48, %v10223_v29  ;;  %v3888_v16 = vpop.f32.mrf.mxu0  ;;  %v3929_v9 = vpop.f32.mrf.mxu1 }
 0xc3a   :  { %v3961_v17 = vcombine.high %v3959_v32, %v3959_v32  ;;  %v3975_v5 = vrot.slane %v3959_v32, %v10223_v29  ;;  %v3982_v26 = vrot.slane %v3960_v15, %v10223_v29  ;;  %v3990_v42 = vcombine.high %v3968_v49, %v3968_v49  ;;  %v10323_v9 = vpop.permute.xlu1 %4277 }
 0xc3b   :  { %v10243_v63 = vrot.slane %v3968_v49, %v11673_v44  ;;  %v4011_v38 = vcombine.high %v4009_v12, %v4009_v12  ;;  %v4025_v7 = vrot.slane %v4009_v12, %v10223_v29  ;;  %v4032_v45 = vrot.slane %v4010_v55, %v10223_v29  ;;  %v3889_v39 = vpop.f32.mrf.mxu0  ;;  %v3930_v46 = vpop.f32.mrf.mxu1 }
 0xc3c   :  { %v3989_v8 = vrot.slane %v3961_v17, %v10223_v29  ;;  %v3991_v14 = vcombine.high %v3975_v5, %v3975_v5  ;;  %v3992_v36 = vcombine.high %v3982_v26, %v3982_v26  ;;  %v10249_v24 = vrot.slane %v3982_v26, %v11673_v44 }
 0xc3d   :  { %v10252_v22 = vrot.slane %v3990_v42, %v11673_v44  ;;  %v10255_v31 = vrot.slane %v3975_v5, %v11673_v44  ;;  %v4039_v11 = vrot.slane %v4011_v38, %v10223_v29  ;;  %v4040_v4 = vcombine.high %v4018_v1, %v4018_v1 }
 0xc3e   :  { %v3993_v18 = vcombine.high %v3989_v8, %v3989_v8  ;;  %v10261_v41 = vrot.slane %v3992_v36, %v11673_v44  ;;  %v10264_v30 = vrot.slane %v3989_v8, %v11673_v44  ;;  %v10267_v53 = vrot.slane %v3991_v14, %v11673_v44 }
 0xc3f   :  { %v4041_v3 = vcombine.high %v4025_v7, %v4025_v7  ;;  %v4042_v25 = vcombine.high %v4032_v45, %v4032_v45  ;;  %v4043_v61 = vcombine.high %v4039_v11, %v4039_v11  ;;  %v10270_v51 = vrot.slane %v4018_v1, %v11673_v44 }
 0xc40   :  { %v10273_v10 = vrot.slane %v3993_v18, %v11673_v44  ;;  %v10276_v19 = vrot.slane %v4032_v45, %v11673_v44  ;;  %v10279_v0 = vrot.slane %v4040_v4, %v11673_v44  ;;  %v10282_v62 = vrot.slane %v4025_v7, %v11673_v44 }
 0xc41   :  { %v10287_v47 = vrot.slane %v4042_v25, %v11673_v44  ;;  %v10290_v21 = vrot.slane %v4039_v11, %v11673_v44  ;;  %v10293_v59 = vrot.slane %v4041_v3, %v11673_v44  ;;  %v10296_v60 = vrot.slane %v4043_v61, %v11673_v44  ;;  %v10343_v11 = vpop.permute.xlu0 %4046 }
 0xc42   :  { %v4327_v13 = vrot.slane %v4313_v40, %v10223_v29  ;;  %v4328_v57 = vcombine.high %v4320_v6, %v4320_v6  ;;  %v4336_v50 = vrot.slane %v4320_v6, %v10223_v29  ;;  %v4363_v37 = vcombine.high %v10229_v23, %v10229_v23 }
 0xc43   :  { %v4370_v52 = vrot.slane %v10229_v23, %v10223_v29  ;;  %v4107_v2 = vmul.f32 %v10243_v63, %v10231_v35  ;;  %v4199_v43 = vmul.f32 %v10270_v51, %v10225_v56  ;;  %v4106_v34 = vmul.f32 %v10243_v63, %v10238_v20 }
 0xc44   :  { %v4329_v58 = vcombine.high %v4327_v13, %v4327_v13  ;;  %v4343_v48 = vrot.slane %v4327_v13, %v10223_v29  ;;  %v4350_v32 = vrot.slane %v4328_v57, %v10223_v29  ;;  %v4358_v15 = vcombine.high %v4336_v50, %v4336_v50 }
 0xc45   :  { %v10315_v49 = vrot.slane %v4336_v50, %v11673_v44  ;;  %v4377_v23 = vrot.slane %v4363_v37, %v10223_v29  ;;  %v4378_v12 = vcombine.high %v4370_v52, %v4370_v52  ;;  %v4386_v55 = vrot.slane %v4370_v52, %v10223_v29 }
 0xc46   :  { %v4357_v1 = vrot.slane %v4329_v58, %v10223_v29  ;;  %v4359_v40 = vcombine.high %v4343_v48, %v4343_v48  ;;  %v4360_v6 = vcombine.high %v4350_v32, %v4350_v32  ;;  %v10321_v16 = vrot.slane %v4350_v32, %v11673_v44 }
 0xc47   :  { %v10326_v17 = vrot.slane %v4358_v15, %v11673_v44  ;;  %v10329_v5 = vrot.slane %v4343_v48, %v11673_v44  ;;  %v4379_v26 = vcombine.high %v4377_v23, %v4377_v23  ;;  %v4393_v42 = vrot.slane %v4377_v23, %v10223_v29 }
 0xc48   :  { %v4361_v38 = vcombine.high %v4357_v1, %v4357_v1  ;;  %v10333_v7 = vrot.slane %v4360_v6, %v11673_v44  ;;  %v10336_v45 = vrot.slane %v4357_v1, %v11673_v44  ;;  %v10339_v39 = vrot.slane %v4359_v40, %v11673_v44 }
 0xc49   :  { %v4400_v46 = vrot.slane %v4378_v12, %v10223_v29  ;;  %v4407_v8 = vrot.slane %v4379_v26, %v10223_v29  ;;  %v4408_v14 = vcombine.high %v4386_v55, %v4386_v55  ;;  %v4409_v36 = vcombine.high %v4393_v42, %v4393_v42 }
 0xc4a   :  { %v10346_v4 = vrot.slane %v4361_v38, %v11673_v44  ;;  %v4487_v18 = vrot.slane %v4386_v55, %v11673_v44  ;;  %v10350_v3 = vrot.slane %v4393_v42, %v11673_v44  ;;  %v4231_v25 = vadd.f32 %v4199_v43, %v4107_v2  ;;  %v10367_v2 = vpop.permute.xlu1 %4138  ;;  %v10389_v42 = vpop.permute.xlu0 %4272 }
 0xc4b   :  { %v4410_v61 = vcombine.high %v4400_v46, %v4400_v46  ;;  %v4411_v13 = vcombine.high %v4407_v8, %v4407_v8  ;;  %v10353_v57 = vrot.slane %v4400_v46, %v11673_v44  ;;  %v10356_v29 = vrot.slane %v4408_v14, %v11673_v44 }
 0xc4c   :  { %v10359_v50 = vrot.slane %v4407_v8, %v11673_v44  ;;  %v10362_v37 = vrot.slane %v4409_v36, %v11673_v44  ;;  %v4283_v52 = vadd.f32 %v10323_v9, %v4231_v25  ;;  %v4455_v58 = vmul.f32 %v10315_v49, %v10231_v35 }
 0xc4d   :  { %v10370_v43 = vrot.slane %v4410_v61, %v11673_v44  ;;  %v10373_v48 = vrot.slane %v4411_v13, %v11673_v44  ;;  %v4527_v32 = vmul.f32 %v4487_v18, %v10225_v56  ;;  %v4198_v15 = vmul.f32 %v10270_v51, %v10258_v54 }
 0xc4e   :  { %v4454_v23 = vmul.f32 %v10315_v49, %v10238_v20  ;;  %v4526_v12 = vmul.f32 %v4487_v18, %v10258_v54  ;;  %v4123_v55 = vmul.f32 %v10255_v31, %v10231_v35  ;;  %v4215_v1 = vmul.f32 %v10282_v62, %v10225_v56 }
 0xc4f   :  { %v4559_v40 = vadd.f32 %v4527_v32, %v4455_v58  ;;  %v4230_v6 = vadd.f32 %v4198_v15, %v4106_v34  ;;  %v4471_v44 = vmul.f32 %v10329_v5, %v10231_v35  ;;  %v4543_v26 = vmul.f32 %v10350_v3, %v10225_v56 }
 0xc50   :  { %v4558_v38 = vadd.f32 %v4526_v12, %v4454_v23  ;;  %v4247_v46 = vadd.f32 %v4215_v1, %v4123_v55  ;;  %v4105_v8 = vmul.f32 %v10243_v63, %v10284_v33  ;;  %v4197_v14 = vmul.f32 %v10270_v51, %v10310_v27  ;;  %v10402_v23 = vpop.permute.xlu1 %4267 }
 0xc51   :  { %v4591_v36 = vadd.f32 %v4559_v40, %v10323_v9  ;;  %v4282_v34 = vadd.f32 %v10389_v42, %v4230_v6  ;;  %v4575_v25 = vadd.f32 %v4543_v26, %v4471_v44  ;;  %v4453_v61 = vmul.f32 %v10315_v49, %v10284_v33 }
 0xc52   :  { %v4590_v13 = vadd.f32 %v4558_v38, %v10389_v42  ;;  %v4299_v58 = vadd.f32 %v10323_v9, %v4247_v46  ;;  %v4229_v32 = vadd.f32 %v4197_v14, %v4105_v8  ;;  %v4525_v15 = vmul.f32 %v4487_v18, %v10310_v27 }
 0xc53   :  { %v4623_v12 = vmax.f32 %v4283_v52, %v4591_v36  ;;  %v4607_v55 = vadd.f32 %v4575_v25, %v10323_v9  ;;  %v4122_v1 = vmul.f32 %v10255_v31, %v10238_v20  ;;  %v4214_v40 = vmul.f32 %v10282_v62, %v10258_v54 }
 0xc54   :  { %v4622_v6 = vmax.f32 %v4282_v34, %v4590_v13  ;;  %v4281_v44 = vadd.f32 %v10402_v23, %v4229_v32  ;;  %v4557_v26 = vadd.f32 %v4525_v15, %v4453_v61  ;;  %v4470_v38 = vmul.f32 %v10329_v5, %v10238_v20 }
 0xc55   :  { %6770 = vmatprep.subr.mxu1 %v4623_v12  ;;  %v4639_v46 = vmax.f32 %v4299_v58, %v4607_v55  ;;  %v4246_v8 = vadd.f32 %v4214_v40, %v4122_v1  ;;  %v4542_v52 = vmul.f32 %v10350_v3, %v10258_v54  ;;  %v4104_v14 = vmul.f32 %v10243_v63, %v10343_v11  ;;  %v10425_v55 = vpop.permute.xlu0 %4262 }
 0xc56   :  { %6771 = vmatpush3.msra.mxu1 %v4623_v12  ;;  %v4589_v36 = vadd.f32 %v4557_v26, %v10402_v23  ;;  %v4196_v34 = vmul.f32 %v10270_v51, %v10367_v2  ;;  %v4452_v25 = vmul.f32 %v10315_v49, %v10343_v11  ;;  %v4524_v61 = vmul.f32 %v4487_v18, %v10367_v2 }
 0xc57   :  { %6772 = vmatprep.subr.mxu1 %v4622_v6  ;;  %6814 = vmatprep.subr.mxu0 %v4639_v46  ;;  %v4298_v13 = vadd.f32 %v10389_v42, %v4246_v8  ;;  %v4574_v58 = vadd.f32 %v4542_v52, %v4470_v38  ;;  %v4121_v32 = vmul.f32 %v10255_v31, %v10284_v33 }
 0xc58   :  { %6773 = vmatpush3.msra.mxu1 %v4622_v6  ;;  %6815 = vmatpush3.msra.mxu0 %v4639_v46  ;;  %v4621_v63 = vmax.f32 %v4281_v44, %v4589_v36  ;;  %v4228_v15 = vadd.f32 %v4196_v34, %v4104_v14  ;;  %v4556_v12 = vadd.f32 %v4524_v61, %v4452_v25 }
 0xc59   :  { %v4606_v51 = vadd.f32 %v4574_v58, %v10389_v42  ;;  %v4213_v49 = vmul.f32 %v10282_v62, %v10310_v27  ;;  %v4469_v18 = vmul.f32 %v10329_v5, %v10284_v33  ;;  %v4541_v1 = vmul.f32 %v10350_v3, %v10310_v27 }
 0xc5a   :  { %6774 = vmatprep.subr.mxu1 %v4621_v63  ;;  %v4280_v40 = vadd.f32 %v10425_v55, %v4228_v15  ;;  %v4588_v6 = vadd.f32 %v4556_v12, %v10425_v55  ;;  %v4111_v44 = vmul.f32 %v10249_v24, %v10231_v35  ;;  %v4203_v26 = vmul.f32 %v10276_v19, %v10225_v56 }
 0xc5b   :  { %v4638_v38 = vmax.f32 %v4298_v13, %v4606_v51  ;;  %6775 = vmatpush3.msra.mxu1 %v4621_v63  ;;  %v4245_v46 = vadd.f32 %v4213_v49, %v4121_v32  ;;  %v4573_v8 = vadd.f32 %v4541_v1, %v4469_v18  ;;  %v4459_v52 = vmul.f32 %v10321_v16, %v10231_v35  ;;  %v10451_v13 = vld [vmem:[%s10938_s9 + $0x8] sm:$0xff] }
 0xc5c   :  { %v4620_v14 = vmax.f32 %v4280_v40, %v4588_v6  ;;  %v4235_v36 = vadd.f32 %v4203_v26, %v4111_v44  ;;  %v4531_v34 = vmul.f32 %v10353_v57, %v10225_v56  ;;  %v4120_v25 = vmul.f32 %v10255_v31, %v10343_v11 }
 0xc5d   :  { %6816 = vmatprep.subr.mxu0 %v4638_v38  ;;  %v4297_v61 = vadd.f32 %v10402_v23, %v4245_v46  ;;  %v4605_v58 = vadd.f32 %v4573_v8, %v10402_v23  ;;  %v4212_v32 = vmul.f32 %v10282_v62, %v10367_v2  ;;  %v4468_v63 = vmul.f32 %v10329_v5, %v10343_v11 }
 0xc5e   :  { %6817 = vmatpush3.msra.mxu0 %v4638_v38  ;;  %6776 = vmatprep.subr.mxu1 %v4620_v14  ;;  %v4287_v31 = vadd.f32 %v10323_v9, %v4235_v36  ;;  %v4563_v15 = vadd.f32 %v4531_v34, %v4459_v52  ;;  %v4540_v12 = vmul.f32 %v10350_v3, %v10367_v2 }
 0xc5f   :  { %v4637_v51 = vmax.f32 %v4297_v61, %v4605_v58  ;;  %6777 = vmatpush3.msra.mxu1 %v4620_v14  ;;  %v4244_v49 = vadd.f32 %v4212_v32, %v4120_v25  ;;  %v4110_v18 = vmul.f32 %v10249_v24, %v10238_v20  ;;  %v4202_v62 = vmul.f32 %v10276_v19, %v10258_v54 }
 0xc60   :  { %6779 = vmatmul.mubr.msk.f32.vlgmr.msra.gmra.mxu1 %vm4666_vm0, %v10451_v13  ;;  %v4595_v5 = vadd.f32 %v4563_v15, %v10323_v9  ;;  %v4572_v1 = vadd.f32 %v4540_v12, %v4468_v63  ;;  %v4458_v40 = vmul.f32 %v10321_v16, %v10238_v20  ;;  %v4530_v3 = vmul.f32 %v10353_v57, %v10258_v54 }
 0xc61   :  { %6818 = vmatprep.subr.mxu0 %v4637_v51  ;;  %v4296_v6 = vadd.f32 %v10425_v55, %v4244_v49  ;;  %v4234_v44 = vadd.f32 %v4202_v62, %v4110_v18  ;;  %v4131_v26 = vmul.f32 %v10267_v53, %v10231_v35  ;;  %v4223_v38 = vmul.f32 %v10293_v59, %v10225_v56 }
 0xc62   :  { %6819 = vmatpush3.msra.mxu0 %v4637_v51  ;;  %v4627_v46 = vmax.f32 %v4287_v31, %v4595_v5  ;;  %v4604_v8 = vadd.f32 %v4572_v1, %v10425_v55  ;;  %v4562_v52 = vadd.f32 %v4530_v3, %v4458_v40  ;;  %v4479_v14 = vmul.f32 %v10339_v39, %v10231_v35 }
 0xc63   :  { %v4286_v36 = vadd.f32 %v10389_v42, %v4234_v44  ;;  %v4255_v34 = vadd.f32 %v4223_v38, %v4131_v26  ;;  %v4551_v25 = vmul.f32 %v10362_v37, %v10225_v56  ;;  %v4109_v61 = vmul.f32 %v10249_v24, %v10284_v33  ;;  %6789 = vmatprep.mubr.msk.f32.mxu1 %vm4666_vm0, %v10216_v28 }
 0xc64   :  { %6781 = vmatprep.subr.mxu1 %v4627_v46  ;;  %v4636_v58 = vmax.f32 %v4296_v6, %v4604_v8  ;;  %v4594_v32 = vadd.f32 %v4562_v52, %v10389_v42  ;;  %v4201_v63 = vmul.f32 %v10276_v19, %v10310_v27  ;;  %v4457_v31 = vmul.f32 %v10321_v16, %v10284_v33 }
 0xc65   :  { %6782 = vmatpush3.msra.mxu1 %v4627_v46  ;;  %v4307_v15 = vadd.f32 %v10323_v9, %v4255_v34  ;;  %v4583_v12 = vadd.f32 %v4551_v25, %v4479_v14  ;;  %v4529_v51 = vmul.f32 %v10353_v57, %v10310_v27  ;;  %v4130_v49 = vmul.f32 %v10267_v53, %v10238_v20 }
 0xc66   :  { %6820 = vmatprep.subr.mxu0 %v4636_v58  ;;  %v4626_v18 = vmax.f32 %v4286_v36, %v4594_v32  ;;  %v4233_v62 = vadd.f32 %v4201_v63, %v4109_v61  ;;  %v4222_v5 = vmul.f32 %v10293_v59, %v10258_v54  ;;  %v4478_v1 = vmul.f32 %v10339_v39, %v10238_v20 }
 0xc67   :  { %6821 = vmatpush3.msra.mxu0 %v4636_v58  ;;  %v4615_v40 = vadd.f32 %v4583_v12, %v10323_v9  ;;  %v4561_v3 = vadd.f32 %v4529_v51, %v4457_v31  ;;  %v4550_v6 = vmul.f32 %v10362_v37, %v10258_v54  ;;  %v4108_v44 = vmul.f32 %v10249_v24, %v10343_v11 }
 0xc68   :  { %6783 = vmatprep.subr.mxu1 %v4626_v18  ;;  %6823 = vmatmul.mubr.msk.f32.vlgmr.msra.gmra.mxu0 %vm4666_vm0, %v10451_v13  ;;  %v4285_v26 = vadd.f32 %v10402_v23, %v4233_v62  ;;  %v4254_v38 = vadd.f32 %v4222_v5, %v4130_v49  ;;  %v4200_v46 = vmul.f32 %v10276_v19, %v10367_v2 }
 0xc69   :  { %v4647_v8 = vmax.f32 %v4307_v15, %v4615_v40  ;;  %6784 = vmatpush3.msra.mxu1 %v4626_v18  ;;  %v4593_v52 = vadd.f32 %v4561_v3, %v10402_v23  ;;  %v4582_v14 = vadd.f32 %v4550_v6, %v4478_v1  ;;  %v4456_v36 = vmul.f32 %v10321_v16, %v10343_v11 }
 0xc6a   :  { %v4306_v24 = vadd.f32 %v10389_v42, %v4254_v38  ;;  %v4232_v34 = vadd.f32 %v4200_v46, %v4108_v44  ;;  %v4528_v25 = vmul.f32 %v10353_v57, %v10367_v2  ;;  %v4129_v61 = vmul.f32 %v10267_v53, %v10284_v33  ;;  %6844 = vmatprep.mubr.msk.f32.mxu0 %vm4666_vm0, %v10216_v28 }
 0xc6b   :  { %6836 = vmatprep.subr.mxu0 %v4647_v8  ;;  %v4625_v19 = vmax.f32 %v4285_v26, %v4593_v52  ;;  %v4614_v58 = vadd.f32 %v4582_v14, %v10389_v42  ;;  %v4221_v32 = vmul.f32 %v10293_v59, %v10310_v27  ;;  %v4477_v16 = vmul.f32 %v10339_v39, %v10284_v33 }
 0xc6c   :  { %6837 = vmatpush3.msra.mxu0 %v4647_v8  ;;  %v4284_v63 = vadd.f32 %v10425_v55, %v4232_v34  ;;  %v4560_v57 = vadd.f32 %v4528_v25, %v4456_v36  ;;  %v4549_v31 = vmul.f32 %v10362_v37, %v10310_v27  ;;  %v4115_v15 = vmul.f32 %v10252_v22, %v10231_v35 }
 0xc6d   :  { %6785 = vmatprep.subr.mxu1 %v4625_v19  ;;  %v4646_v12 = vmax.f32 %v4306_v24, %v4614_v58  ;;  %v4253_v51 = vadd.f32 %v4221_v32, %v4129_v61  ;;  %v4207_v49 = vmul.f32 %v10279_v0, %v10225_v56  ;;  %v4463_v18 = vmul.f32 %v10326_v17, %v10231_v35 }
 0xc6e   :  { %6786 = vmatpush3.msra.mxu1 %v4625_v19  ;;  %v4592_v62 = vadd.f32 %v4560_v57, %v10425_v55  ;;  %v4581_v5 = vadd.f32 %v4549_v31, %v4477_v16  ;;  %v4535_v1 = vmul.f32 %v10356_v29, %v10225_v56  ;;  %v4128_v40 = vmul.f32 %v10267_v53, %v10343_v11 }
 0xc6f   :  { %6838 = vmatprep.subr.mxu0 %v4646_v12  ;;  %v4305_v3 = vadd.f32 %v10402_v23, %v4253_v51  ;;  %v4239_v6 = vadd.f32 %v4207_v49, %v4115_v15  ;;  %v4220_v44 = vmul.f32 %v10293_v59, %v10367_v2  ;;  %v4476_v26 = vmul.f32 %v10339_v39, %v10343_v11 }
 0xc70   :  { %6839 = vmatpush3.msra.mxu0 %v4646_v12  ;;  %v4624_v38 = vmax.f32 %v4284_v63, %v4592_v62  ;;  %v4613_v46 = vadd.f32 %v4581_v5, %v10402_v23  ;;  %v4567_v8 = vadd.f32 %v4535_v1, %v4463_v18  ;;  %v4548_v52 = vmul.f32 %v10362_v37, %v10367_v2 }
 0xc71   :  { %v4291_v53 = vadd.f32 %v10323_v9, %v4239_v6  ;;  %v4252_v14 = vadd.f32 %v4220_v44, %v4128_v40  ;;  %v4114_v36 = vmul.f32 %v10252_v22, %v10238_v20  ;;  %v4206_v59 = vmul.f32 %v10279_v0, %v10258_v54 }
 0xc72   :  { %6787 = vmatprep.subr.mxu1 %v4624_v38  ;;  %v4645_v24 = vmax.f32 %v4305_v3, %v4613_v46  ;;  %v4599_v39 = vadd.f32 %v4567_v8, %v10323_v9  ;;  %v4580_v34 = vadd.f32 %v4548_v52, %v4476_v26  ;;  %v4462_v25 = vmul.f32 %v10326_v17, %v10238_v20 }
 0xc73   :  { %6788 = vmatpush3.msra.mxu1 %v4624_v38  ;;  %v4304_v37 = vadd.f32 %v10425_v55, %v4252_v14  ;;  %v4238_v61 = vadd.f32 %v4206_v59, %v4114_v36  ;;  %v4534_v19 = vmul.f32 %v10356_v29, %v10258_v54  ;;  %v4113_v58 = vmul.f32 %v10252_v22, %v10284_v33 }
 0xc74   :  { %6840 = vmatprep.subr.mxu0 %v4645_v24  ;;  %6790 = vmatmul.mubr.msk.f32.vlgmr.msra.gmra.mxu1 %vm4666_vm0, %v10451_v13  ;;  %v4631_v32 = vmax.f32 %v4291_v53, %v4599_v39  ;;  %v4612_v16 = vadd.f32 %v4580_v34, %v10425_v55  ;;  %v4205_v63 = vmul.f32 %v10279_v0, %v10310_v27 }
 0xc75   :  { %6841 = vmatpush3.msra.mxu0 %v4645_v24  ;;  %v4290_v57 = vadd.f32 %v10389_v42, %v4238_v61  ;;  %v4566_v31 = vadd.f32 %v4534_v19, %v4462_v25  ;;  %v4461_v15 = vmul.f32 %v10326_v17, %v10284_v33  ;;  %v4533_v12 = vmul.f32 %v10356_v29, %v10310_v27 }
 0xc76   :  { %6792 = vmatprep.subr.mxu1 %v4631_v32  ;;  %v4644_v51 = vmax.f32 %v4304_v37, %v4612_v16  ;;  %v4237_v49 = vadd.f32 %v4205_v63, %v4113_v58  ;;  %v4112_v18 = vmul.f32 %v10252_v22, %v10343_v11  ;;  %v4204_v62 = vmul.f32 %v10279_v0, %v10367_v2 }
 0xc77   :  { %6793 = vmatpush3.msra.mxu1 %v4631_v32  ;;  %v4598_v5 = vadd.f32 %v4566_v31, %v10389_v42  ;;  %v4565_v1 = vadd.f32 %v4533_v12, %v4461_v15  ;;  %v4460_v40 = vmul.f32 %v10326_v17, %v10343_v11  ;;  %v4532_v3 = vmul.f32 %v10356_v29, %v10367_v2 }
 0xc78   :  { %6842 = vmatprep.subr.mxu0 %v4644_v51  ;;  %v4289_v6 = vadd.f32 %v10402_v23, %v4237_v49  ;;  %v4236_v44 = vadd.f32 %v4204_v62, %v4112_v18  ;;  %6800 = vmatprep.mubr.msk.f32.mxu1 %vm4666_vm0, %v10216_v28  ;;  %v4119_v22 = vmul.f32 %v10261_v41, %v10231_v35 }
 0xc79   :  { %6843 = vmatpush3.msra.mxu0 %v4644_v51  ;;  %v4630_v0 = vmax.f32 %v4290_v57, %v4598_v5  ;;  %v4597_v26 = vadd.f32 %v4565_v1, %v10402_v23  ;;  %v4564_v38 = vadd.f32 %v4532_v3, %v4460_v40  ;;  %v4211_v17 = vmul.f32 %v10287_v47, %v10225_v56 }
 0xc7a   :  { %6845 = vmatmul.mubr.msk.f32.vlgmr.msra.gmra.mxu0 %vm4666_vm0, %v10451_v13  ;;  %v4288_v29 = vadd.f32 %v10425_v55, %v4236_v44  ;;  %v4467_v46 = vmul.f32 %v10333_v7, %v10231_v35  ;;  %v4539_v8 = vmul.f32 %v10370_v43, %v10225_v56  ;;  %v4118_v52 = vmul.f32 %v10261_v41, %v10238_v20 }
 0xc7b   :  { %6794 = vmatprep.subr.mxu1 %v4630_v0  ;;  %v4629_v53 = vmax.f32 %v4289_v6, %v4597_v26  ;;  %v4596_v14 = vadd.f32 %v4564_v38, %v10425_v55  ;;  %v4243_v36 = vadd.f32 %v4211_v17, %v4119_v22  ;;  %v4210_v59 = vmul.f32 %v10287_v47, %v10258_v54 }
 0xc7c   :  { %6795 = vmatpush3.msra.mxu1 %v4630_v0  ;;  %v4571_v24 = vadd.f32 %v4539_v8, %v4467_v46  ;;  %v4466_v39 = vmul.f32 %v10333_v7, %v10238_v20  ;;  %v4538_v34 = vmul.f32 %v10370_v43, %v10258_v54  ;;  %v4117_v25 = vmul.f32 %v10261_v41, %v10284_v33 }
 0xc7d   :  { %6796 = vmatprep.subr.mxu1 %v4629_v53  ;;  %v4628_v37 = vmax.f32 %v4288_v29, %v4596_v14  ;;  %v4295_v61 = vadd.f32 %v10323_v9, %v4243_v36  ;;  %v4242_v19 = vadd.f32 %v4210_v59, %v4118_v52  ;;  %v4209_v58 = vmul.f32 %v10287_v47, %v10310_v27 }
 0xc7e   :  { %6797 = vmatpush3.msra.mxu1 %v4629_v53  ;;  %v4603_v32 = vadd.f32 %v4571_v24, %v10323_v9  ;;  %v4570_v16 = vadd.f32 %v4538_v34, %v4466_v39  ;;  %v4465_v63 = vmul.f32 %v10333_v7, %v10284_v33  ;;  %v4537_v57 = vmul.f32 %v10370_v43, %v10310_v27 }
 0xc7f   :  { %6798 = vmatprep.subr.mxu1 %v4628_v37  ;;  %v4294_v31 = vadd.f32 %v10389_v42, %v4242_v19  ;;  %v4241_v15 = vadd.f32 %v4209_v58, %v4117_v25  ;;  %v4116_v12 = vmul.f32 %v10261_v41, %v10343_v11  ;;  %v4208_v51 = vmul.f32 %v10287_v47, %v10367_v2 }
 0xc80   :  { %6799 = vmatpush3.msra.mxu1 %v4628_v37  ;;  %v4635_v49 = vmax.f32 %v4295_v61, %v4603_v32  ;;  %v4602_v18 = vadd.f32 %v4570_v16, %v10389_v42  ;;  %v4569_v62 = vadd.f32 %v4537_v57, %v4465_v63  ;;  %v4464_v5 = vmul.f32 %v10333_v7, %v10343_v11 }
 0xc81   :  { %6801 = vmatmul.mubr.msk.f32.vlgmr.msra.gmra.mxu1 %vm4666_vm0, %v10451_v13  ;;  %v4293_v1 = vadd.f32 %v10402_v23, %v4241_v15  ;;  %v4240_v40 = vadd.f32 %v4208_v51, %v4116_v12  ;;  %v4536_v41 = vmul.f32 %v10370_v43, %v10367_v2  ;;  %v4127_v47 = vmul.f32 %v10264_v30, %v10231_v35 }
 0xc82   :  { %6803 = vmatprep.subr.mxu1 %v4635_v49  ;;  %v4634_v3 = vmax.f32 %v4294_v31, %v4602_v18  ;;  %v4601_v6 = vadd.f32 %v4569_v62, %v10402_v23  ;;  %6811 = vmatprep.mubr.msk.f32.mxu1 %vm4666_vm0, %v10216_v28  ;;  %v4219_v7 = vmul.f32 %v10290_v21, %v10225_v56 }
 0xc83   :  { %6804 = vmatpush3.msra.mxu1 %v4635_v49  ;;  %v4292_v44 = vadd.f32 %v10425_v55, %v4240_v40  ;;  %v4568_v22 = vadd.f32 %v4536_v41, %v4464_v5  ;;  %v4475_v43 = vmul.f32 %v10336_v45, %v10231_v35  ;;  %v4547_v0 = vmul.f32 %v10359_v50, %v10225_v56 }
 0xc84   :  { %6805 = vmatprep.subr.mxu1 %v4634_v3  ;;  %v4633_v26 = vmax.f32 %v4293_v1, %v4601_v6  ;;  %v4251_v38 = vadd.f32 %v4219_v7, %v4127_v47  ;;  %v4126_v17 = vmul.f32 %v10264_v30, %v10238_v20  ;;  %v4218_v29 = vmul.f32 %v10290_v21, %v10258_v54 }
 0xc85   :  { %6806 = vmatpush3.msra.mxu1 %v4634_v3  ;;  %v4600_v46 = vadd.f32 %v4568_v22, %v10425_v55  ;;  %v4579_v8 = vadd.f32 %v4547_v0, %v4475_v43  ;;  %v4474_v52 = vmul.f32 %v10336_v45, %v10238_v20  ;;  %v4546_v53 = vmul.f32 %v10359_v50, %v10258_v54 }
 0xc86   :  { %6807 = vmatprep.subr.mxu1 %v4633_v26  ;;  %v4303_v14 = vadd.f32 %v10323_v9, %v4251_v38  ;;  %v4250_v36 = vadd.f32 %v4218_v29, %v4126_v17  ;;  %v4125_v59 = vmul.f32 %v10264_v30, %v10284_v33  ;;  %v4217_v24 = vmul.f32 %v10290_v21, %v10310_v27 }
 0xc87   :  { %6808 = vmatpush3.msra.mxu1 %v4633_v26  ;;  %v4632_v39 = vmax.f32 %v4292_v44, %v4600_v46  ;;  %v4611_v34 = vadd.f32 %v4579_v8, %v10323_v9  ;;  %v4578_v25 = vadd.f32 %v4546_v53, %v4474_v52  ;;  %v4473_v37 = vmul.f32 %v10336_v45, %v10284_v33 }
 0xc88   :  { %v4302_v61 = vadd.f32 %v10389_v42, %v4250_v36  ;;  %v4249_v19 = vadd.f32 %v4217_v24, %v4125_v59  ;;  %v4545_v58 = vmul.f32 %v10359_v50, %v10310_v27  ;;  %v4124_v32 = vmul.f32 %v10264_v30, %v10343_v11 }
 0xc89   :  { %6809 = vmatprep.subr.mxu1 %v4632_v39  ;;  %v4643_v16 = vmax.f32 %v4303_v14, %v4611_v34  ;;  %v4610_v63 = vadd.f32 %v4578_v25, %v10389_v42  ;;  %v4216_v57 = vmul.f32 %v10290_v21, %v10367_v2  ;;  %v4472_v31 = vmul.f32 %v10336_v45, %v10343_v11 }
 0xc8a   :  { %6810 = vmatpush3.msra.mxu1 %v4632_v39  ;;  %v4301_v15 = vadd.f32 %v10402_v23, %v4249_v19  ;;  %v4577_v12 = vadd.f32 %v4545_v58, %v4473_v37  ;;  %v4544_v51 = vmul.f32 %v10359_v50, %v10367_v2  ;;  %v4135_v30 = vmul.f32 %v10273_v10, %v10231_v35  ;;  %v10730_v39 = vpop.permute.xlu0 %4658  ;;  %v10736_v19 = vld [vmem:[%s10940_s11] sm:$0xff] }
 0xc8b   :  { %6812 = vmatmul.mubr.msk.f32.vlgmr.msra.gmra.mxu1 %vm4666_vm0, %v10451_v13  ;;  %6825 = vmatprep.subr.mxu1 %v4643_v16  ;;  %v4642_v49 = vmax.f32 %v4302_v61, %v4610_v63  ;;  %v4248_v18 = vadd.f32 %v4216_v57, %v4124_v32  ;;  %v4227_v21 = vmul.f32 %v10296_v60, %v10225_v56 }
 0xc8c   :  { %6826 = vmatpush3.msra.mxu1 %v4643_v16  ;;  %v4609_v45 = vadd.f32 %v4577_v12, %v10402_v23  ;;  %v4576_v62 = vadd.f32 %v4544_v51, %v4472_v31  ;;  %6833 = vmatprep.mubr.msk.f32.mxu1 %vm4666_vm0, %v10216_v28  ;;  %v4483_v50 = vmul.f32 %v10346_v4, %v10231_v35 }
 0xc8d   :  { %6827 = vmatprep.subr.mxu1 %v4642_v49  ;;  %v4300_v5 = vadd.f32 %v10425_v55, %v4248_v18  ;;  %v4259_v1 = vadd.f32 %v4227_v21, %v4135_v30  ;;  %v4555_v40 = vmul.f32 %v10373_v48, %v10225_v56  ;;  %v4134_v41 = vmul.f32 %v10273_v10, %v10238_v20 }
 0xc8e   :  { %6828 = vmatpush3.msra.mxu1 %v4642_v49  ;;  %v4641_v47 = vmax.f32 %v4301_v15, %v4609_v45  ;;  %v4608_v3 = vadd.f32 %v4576_v62, %v10425_v55  ;;  %v4226_v6 = vmul.f32 %v10296_v60, %v10258_v54  ;;  %v4482_v35 = vmul.f32 %v10346_v4, %v10238_v20 }
 0xc8f   :  { %v4311_v7 = vadd.f32 %v10323_v9, %v4259_v1  ;;  %v4587_v44 = vadd.f32 %v4555_v40, %v4483_v50  ;;  %v4554_v22 = vmul.f32 %v10373_v48, %v10258_v54  ;;  %v4133_v56 = vmul.f32 %v10273_v10, %v10284_v33 }
 0xc90   :  { %6829 = vmatprep.subr.mxu1 %v4641_v47  ;;  %v4640_v43 = vmax.f32 %v4300_v5, %v4608_v3  ;;  %v4258_v0 = vadd.f32 %v4226_v6, %v4134_v41  ;;  %v4225_v26 = vmul.f32 %v10296_v60, %v10310_v27  ;;  %v4481_v38 = vmul.f32 %v10346_v4, %v10284_v33 }
 0xc91   :  { %6830 = vmatpush3.msra.mxu1 %v4641_v47  ;;  %v4619_v20 = vadd.f32 %v4587_v44, %v10323_v9  ;;  %v4586_v17 = vadd.f32 %v4554_v22, %v4482_v35  ;;  %v4553_v29 = vmul.f32 %v10373_v48, %v10310_v27  ;;  %v4132_v54 = vmul.f32 %v10273_v10, %v10343_v11 }
 0xc92   :  { %6831 = vmatprep.subr.mxu1 %v4640_v43  ;;  %v4310_v46 = vadd.f32 %v10389_v42, %v4258_v0  ;;  %v4257_v8 = vadd.f32 %v4225_v26, %v4133_v56  ;;  %v4224_v52 = vmul.f32 %v10296_v60, %v10367_v2  ;;  %v4480_v33 = vmul.f32 %v10346_v4, %v10343_v11 }
 0xc93   :  { %6832 = vmatpush3.msra.mxu1 %v4640_v43  ;;  %v4651_v53 = vmax.f32 %v4311_v7, %v4619_v20  ;;  %v4618_v9 = vadd.f32 %v4586_v17, %v10389_v42  ;;  %v4585_v14 = vadd.f32 %v4553_v29, %v4481_v38  ;;  %v4552_v27 = vmul.f32 %v10373_v48, %v10367_v2 }
 0xc94   :  { %6834 = vmatmul.mubr.msk.f32.vlgmr.msra.gmra.mxu1 %vm4666_vm0, %v10451_v13  ;;  %v4309_v10 = vadd.f32 %v10402_v23, %v4257_v8  ;;  %v4256_v36 = vadd.f32 %v4224_v52, %v4132_v54  ;;  %v7935_v42 = vmov 0.0  }
 0xc95   :  { %6847 = vmatprep.subr.mxu1 %v4651_v53  ;;  %v4650_v59 = vmax.f32 %v4310_v46, %v4618_v9  ;;  %v4617_v60 = vadd.f32 %v4585_v14, %v10402_v23  ;;  %v4584_v24 = vadd.f32 %v4552_v27, %v4480_v33  ;;  %6855 = vmatprep.mubr.msk.f32.mxu1 %vm4666_vm0, %v10216_v28  ;;  %v10727_v28 = vpop.permute.xlu1 %4663 }
 0xc96   :  { %6848 = vmatpush3.msra.mxu1 %v4651_v53  ;;  %v4308_v4 = vadd.f32 %v10425_v55, %v4256_v36  ;;  %6858 = vmatprep.subr.mxu0 %v7935_v42 }
 0xc97   :  { %6849 = vmatprep.subr.mxu1 %v4650_v59  ;;  %v4649_v11 = vmax.f32 %v4309_v10, %v4617_v60  ;;  %v4616_v2 = vadd.f32 %v4584_v24, %v10425_v55  ;;  %6862 = vmatprep.mubr.msk.f32.mxu0 %vm7936_vm1, %v7935_v42 }
 0xc98   :  { %6850 = vmatpush3.msra.mxu1 %v4650_v59 }
 0xc99   :  { %6851 = vmatprep.subr.mxu1 %v4649_v11  ;;  %v4648_v48 = vmax.f32 %v4308_v4, %v4616_v2 }
 0xc9a   :  { %6852 = vmatpush3.msra.mxu1 %v4649_v11 }
 0xc9b   :  { %6853 = vmatprep.subr.mxu1 %v4648_v48 }
 0xc9c   :  { %6854 = vmatpush3.msra.mxu1 %v4648_v48 }
 0xc9d   :  { %6856 = vmatmul.mubr.msk.f32.vlgmr.msra.gmra.mxu1 %vm4666_vm0, %v10451_v13  ;;  %6865 = vmatprep.subr.mxu1 %v7935_v42 }
 0xc9e   :  { %6869 = vmatprep.mubr.msk.f32.mxu1 %vm7936_vm1, %v7935_v42 }
 0xd20   :  { %v6780_v23 = vpop.f32.mrf.mxu1 }
 0xd21   :  { %v4745_v55 = vadd.f32 %v6780_v23, %v10727_v28 }
 0xd22   :  { %v4739_v13 = vpop.f32.mrf.mxu1 }
 0xd23   :  { %vm5274_vm2 = vcmp.gt.f32.partialorder %v4745_v55, 0.0  ;;  %v5290_v34 = vmul.f32 0.01, %v4745_v55  ;;  %v4740_v25 = vadd.f32 %v4739_v13, %v10730_v39 }
 0xd25   :  { %vm5273_vm3 = vcmp.gt.f32.partialorder %v4740_v25, 0.0  ;;  %v5289_v37 = vmul.f32 0.01, %v4740_v25  ;;  %v5306_v61 = vsel %vm5274_vm2, %v4745_v55, %v5290_v34 }
 0xd26   :  { %6859 = vmatpush3.msra.mxu0 %v5306_v61  ;;  %v6007_v61 = vld [vmem:[%s10944_s15 + $0x58] sm:$0xff] }
 0xd27   :  { %6860 = vmatprep.subr.mxu0 %v7935_v42  ;;  %v5305_v58 = vsel %vm5273_vm3, %v4740_v25, %v5289_v37  ;;  %v6009_v25 = vld [vmem:[%s10944_s15 + $0x68] sm:$0xff]  ;;  %v6008_v37 = vld [vmem:[%s10944_s15 + $0x60] sm:$0xff] }
 0xd28   :  { %6861 = vmatpush3.msra.mxu0 %v5305_v58  ;;  %v6824_v51 = vpop.f32.mrf.mxu0  ;;  %v6005_v58 = vld [vmem:[%s10944_s15 + $0x48] sm:$0xff] }
 0xd29   :  { %6863 = vmatmul.mubr.msk.f32.vlgmr.msra.gmra.mxu0 %vm5328_vm4, %v10736_v19  ;;  %6872 = vmatprep.subr.mxu0 %v7935_v42  ;;  %v5045_v18 = vadd.f32 %v6824_v51, %v10727_v28  ;;  %v6126_v51 = vld [vmem:[#allocation12 + $0x58] sm:$0xff] }
 0xd2a   :  { %6876 = vmatprep.mubr.msk.f32.mxu0 %vm7936_vm1, %v7935_v42  ;;  %v5039_v49 = vpop.f32.mrf.mxu0 }
 0xd2b   :  { %v5040_v5 = vadd.f32 %v5039_v49, %v10730_v39  ;;  %v5298_v41 = vmul.f32 0.01, %v5045_v18  ;;  %vm5282_vm9 = vcmp.gt.f32.partialorder %v5045_v18, 0.0  ;;  %v6125_v49 = vld [vmem:[#allocation12 + $0x50] sm:$0xff] }
 0xd2d   :  { %v5297_v7 = vmul.f32 0.01, %v5040_v5  ;;  %vm5281_vm10 = vcmp.gt.f32.partialorder %v5040_v5, 0.0  ;;  %v5314_v43 = vsel %vm5282_vm9, %v5045_v18, %v5298_v41  ;;  %v6000_v18 = vld [vmem:[%s10944_s15 + $0x20] sm:$0xff] }
 0xd2e   :  { %v5996_v41 = vld [vmem:[%s10944_s15] sm:$0xff] }
 0xd2f   :  { %v5313_v20 = vsel %vm5281_vm10, %v5040_v5, %v5297_v7  ;;  %v6122_v5 = vld [vmem:[#allocation12 + $0x38] sm:$0xff] }
 0xd34   :  { %v6791_v32 = vpop.f32.mrf.mxu1 }
 0xd35   :  { %v4820_v16 = vadd.f32 %v6791_v32, %v10727_v28  ;;  %v6130_v32 = vld [vmem:[#allocation12 + $0x78] sm:$0xff] }
 0xd36   :  { %v4814_v63 = vpop.f32.mrf.mxu1 }
 0xd37   :  { %vm5276_vm5 = vcmp.gt.f32.partialorder %v4820_v16, 0.0  ;;  %v5292_v57 = vmul.f32 0.01, %v4820_v16  ;;  %v4815_v31 = vadd.f32 %v4814_v63, %v10730_v39  ;;  %v6004_v63 = vld [vmem:[%s10944_s15 + $0x40] sm:$0xff] }
 0xd39   :  { %vm5275_vm6 = vcmp.gt.f32.partialorder %v4815_v31, 0.0  ;;  %v5291_v15 = vmul.f32 0.01, %v4815_v31  ;;  %v5308_v12 = vsel %vm5276_vm5, %v4820_v16, %v5292_v57  ;;  %v6129_v16 = vld [vmem:[#allocation12 + $0x70] sm:$0xff]  ;;  %v6128_v57 = vld [vmem:[#allocation12 + $0x68] sm:$0xff] }
 0xd3a   :  { %6866 = vmatpush3.msra.mxu1 %v5308_v12  ;;  %v6846_v21 = vpop.f32.mrf.mxu0  ;;  %v6002_v12 = vld [vmem:[%s10944_s15 + $0x30] sm:$0xff] }
 0xd3b   :  { %6867 = vmatprep.subr.mxu1 %v7935_v42  ;;  %v5307_v30 = vsel %vm5275_vm6, %v4815_v31, %v5291_v15  ;;  %v5195_v3 = vadd.f32 %v6846_v21, %v10727_v28  ;;  %v6003_v31 = vld [vmem:[%s10944_s15 + $0x38] sm:$0xff]  ;;  %v6127_v15 = vld [vmem:[#allocation12 + $0x60] sm:$0xff] }
 0xd3c   :  { %6868 = vmatpush3.msra.mxu1 %v5307_v30  ;;  %v5189_v47 = vpop.f32.mrf.mxu0  ;;  %v6001_v30 = vld [vmem:[%s10944_s15 + $0x28] sm:$0xff]  ;;  %v6124_v21 = vld [vmem:[#allocation12 + $0x48] sm:$0xff] }
 0xd3d   :  { %6870 = vmatmul.mubr.msk.f32.vlgmr.msra.gmra.mxu1 %vm5328_vm4, %v10736_v19  ;;  %6879 = vmatprep.subr.mxu1 %v7935_v42  ;;  %v5190_v44 = vadd.f32 %v5189_v47, %v10730_v39  ;;  %v5302_v56 = vmul.f32 0.01, %v5195_v3  ;;  %vm5286_vm11 = vcmp.gt.f32.partialorder %v5195_v3, 0.0  ;;  %v6120_v47 = vld [vmem:[#allocation12 + $0x28] sm:$0xff] }
 0xd3e   :  { %6883 = vmatprep.mubr.msk.f32.mxu1 %vm7936_vm1, %v7935_v42 }
 0xd3f   :  { %v5301_v26 = vmul.f32 0.01, %v5190_v44  ;;  %vm5285_vm12 = vcmp.gt.f32.partialorder %v5190_v44, 0.0  ;;  %v5318_v46 = vsel %vm5286_vm11, %v5195_v3, %v5302_v56  ;;  %v6119_v3 = vld [vmem:[#allocation12 + $0x20] sm:$0xff]  ;;  %v10878_v56 = vpop.permute.xlu1 %5325 }
 0xd41   :  { %v6802_v45 = vpop.f32.mrf.mxu1  ;;  %v5317_v33 = vsel %vm5285_vm12, %v5190_v44, %v5301_v26  ;;  %vm6027_vm12 = vcmask 1041409  }
 0xd42   :  { %v4895_v62 = vadd.f32 %v6802_v45, %v10727_v28  ;;  %v5999_v45 = vld [vmem:[%s10944_s15 + $0x18] sm:$0xff] }
 0xd43   :  { %v4889_v50 = vpop.f32.mrf.mxu1 }
 0xd44   :  { %vm5278_vm7 = vcmp.gt.f32.partialorder %v4895_v62, 0.0  ;;  %v5294_v1 = vmul.f32 0.01, %v4895_v62  ;;  %v4890_v40 = vadd.f32 %v4889_v50, %v10730_v39  ;;  %v5998_v50 = vld [vmem:[%s10944_s15 + $0x10] sm:$0xff] }
 0xd46   :  { %vm5277_vm8 = vcmp.gt.f32.partialorder %v4890_v40, 0.0  ;;  %v5293_v6 = vmul.f32 0.01, %v4890_v40  ;;  %v5310_v35 = vsel %vm5278_vm7, %v4895_v62, %v5294_v1  ;;  %v6123_v62 = vld [vmem:[#allocation12 + $0x40] sm:$0xff] }
 0xd47   :  { %6873 = vmatpush3.msra.mxu0 %v5310_v35  ;;  %v5997_v1 = vld [vmem:[%s10944_s15 + $0x8] sm:$0xff] }
 0xd48   :  { %6874 = vmatprep.subr.mxu0 %v7935_v42  ;;  %v5309_v22 = vsel %vm5277_vm8, %v4890_v40, %v5293_v6  ;;  %v6121_v40 = vld [vmem:[#allocation12 + $0x30] sm:$0xff]  ;;  %v6118_v6 = vld [vmem:[#allocation12 + $0x18] sm:$0xff] }
 0xd49   :  { %6875 = vmatpush3.msra.mxu0 %v5309_v22 }
 0xd4a   :  { %6877 = vmatmul.mubr.msk.f32.vlgmr.msra.gmra.mxu0 %vm5328_vm4, %v10736_v19  ;;  %6886 = vmatprep.subr.mxu0 %v7935_v42 }
 0xd4b   :  { %v6813_v0 = vpop.f32.mrf.mxu1  ;;  %6887 = vmatpush3.msra.mxu0 %v5314_v43  ;;  %6890 = vmatprep.mubr.msk.f32.mxu0 %vm7936_vm1, %v7935_v42 }
 0xd4c   :  { %v4970_v38 = vadd.f32 %v6813_v0, %v10727_v28  ;;  %6888 = vmatprep.subr.mxu0 %v7935_v42 }
 0xd4d   :  { %v4964_v17 = vpop.f32.mrf.mxu1  ;;  %6889 = vmatpush3.msra.mxu0 %v5313_v20 }
 0xd4e   :  { %vm5280_vm13 = vcmp.gt.f32.partialorder %v4970_v38, 0.0  ;;  %v5296_v29 = vmul.f32 0.01, %v4970_v38  ;;  %v4965_v54 = vadd.f32 %v4964_v17, %v10730_v39  ;;  %6891 = vmatmul.mubr.msk.f32.vlgmr.msra.gmra.mxu0 %vm5328_vm4, %v10736_v19  ;;  %6900 = vmatprep.subr.mxu0 %v7935_v42 }
 0xd4f   :  { %6901 = vmatpush3.msra.mxu0 %v5318_v46  ;;  %6904 = vmatprep.mubr.msk.f32.mxu0 %vm7936_vm1, %v7935_v42 }
 0xd50   :  { %vm5279_vm14 = vcmp.gt.f32.partialorder %v4965_v54, 0.0  ;;  %v5295_v8 = vmul.f32 0.01, %v4965_v54  ;;  %v5312_v52 = vsel %vm5280_vm13, %v4970_v38, %v5296_v29  ;;  %6902 = vmatprep.subr.mxu0 %v7935_v42  ;;  %vm6029_vm13 = vcmask 1042434  }
 0xd51   :  { %6880 = vmatpush3.msra.mxu1 %v5312_v52  ;;  %6903 = vmatpush3.msra.mxu0 %v5317_v33 }
 0xd52   :  { %6881 = vmatprep.subr.mxu1 %v7935_v42  ;;  %v5311_v53 = vsel %vm5279_vm14, %v4965_v54, %v5295_v8  ;;  %6905 = vmatmul.mubr.msk.f32.vlgmr.msra.gmra.mxu0 %vm5328_vm4, %v10736_v19  ;;  %vm6031_vm14 = vcmask 1043459  }
 0xd53   :  { %6882 = vmatpush3.msra.mxu1 %v5311_v53  ;;  %6914 = vmatprep.subr.mxu0 %v7935_v42 }
 0xd54   :  { %v6835_v9 = vpop.f32.mrf.mxu1  ;;  %6884 = vmatmul.mubr.msk.f32.vlgmr.msra.gmra.mxu1 %vm5328_vm4, %v10736_v19  ;;  %6893 = vmatprep.subr.mxu1 %v7935_v42 }
 0xd55   :  { %v5120_v14 = vadd.f32 %v6835_v9, %v10727_v28  ;;  %6897 = vmatprep.mubr.msk.f32.mxu1 %vm7936_vm1, %v7935_v42  ;;  %6946 = vmatprep.mubr.msk.f32.mxu0 %vm7936_vm1, %v7935_v42  ;;  %v10884_v9 = vpop.permute.xlu0 %5919 }
 0xd56   :  { %v5114_v27 = vpop.f32.mrf.mxu1 }
 0xd57   :  { %vm5284_vm15 = vcmp.gt.f32.partialorder %v5120_v14, 0.0  ;;  %v5300_v10 = vmul.f32 0.01, %v5120_v14  ;;  %v5115_v36 = vadd.f32 %v5114_v27, %v10730_v39 }
 0xd59   :  { %vm5283_vm0 = vcmp.gt.f32.partialorder %v5115_v36, 0.0  ;;  %v5299_v59 = vmul.f32 0.01, %v5115_v36  ;;  %v5316_v60 = vsel %vm5284_vm15, %v5120_v14, %v5300_v10  ;;  %vm6033_vm15 = vcmask 1044484  }
 0xd5a   :  { %6894 = vmatpush3.msra.mxu1 %v5316_v60 }
 0xd5b   :  { %6895 = vmatprep.subr.mxu1 %v7935_v42  ;;  %v5315_v24 = vsel %vm5283_vm0, %v5115_v36, %v5299_v59  ;;  %vm6035_vm0 = vcmask 1045509  }
 0xd5c   :  { %6896 = vmatpush3.msra.mxu1 %v5315_v24 }
 0xd5d   :  { %v6857_v11 = vpop.f32.mrf.mxu1  ;;  %6898 = vmatmul.mubr.msk.f32.vlgmr.msra.gmra.mxu1 %vm5328_vm4, %v10736_v19  ;;  %6907 = vmatprep.subr.mxu1 %v7935_v42 }
 0xd5e   :  { %v5270_v4 = vadd.f32 %v6857_v11, %v10727_v28  ;;  %6911 = vmatprep.mubr.msk.f32.mxu1 %vm7936_vm1, %v7935_v42  ;;  %v6011_v28 = vld [vmem:[%s10944_s15 + $0x78] sm:$0xff] }
 0xd5f   :  { %v5264_v2 = vpop.f32.mrf.mxu1  ;;  %6915 = vmatpush3.msra.mxu0 %v6011_v28 }
 0xd60   :  { %vm5288_vm2 = vcmp.gt.f32.partialorder %v5270_v4, 0.0  ;;  %v5304_v48 = vmul.f32 0.01, %v5270_v4  ;;  %v5265_v23 = vadd.f32 %v5264_v2, %v10730_v39  ;;  %v6010_v39 = vld [vmem:[%s10944_s15 + $0x70] sm:$0xff]  ;;  %6916 = vmatprep.subr.mxu0 %v7935_v42 }
 0xd61   :  { %6917 = vmatpush3.msra.mxu0 %v6010_v39 }
 0xd62   :  { %vm5287_vm3 = vcmp.gt.f32.partialorder %v5265_v23, 0.0  ;;  %v5303_v55 = vmul.f32 0.01, %v5265_v23  ;;  %v5320_v13 = vsel %vm5288_vm2, %v5270_v4, %v5304_v48  ;;  %6918 = vmatprep.subr.mxu0 %v7935_v42  ;;  %vm6037_vm2 = vcmask 1046534  }
 0xd63   :  { %6908 = vmatpush3.msra.mxu1 %v5320_v13  ;;  %6919 = vmatpush3.msra.mxu0 %v6009_v25 }
 0xd64   :  { %6909 = vmatprep.subr.mxu1 %v7935_v42  ;;  %v5319_v34 = vsel %vm5287_vm3, %v5265_v23, %v5303_v55  ;;  %6920 = vmatprep.subr.mxu0 %v7935_v42  ;;  %vm6039_vm3 = vcmask 1047559  }
 0xd65   :  { %6910 = vmatpush3.msra.mxu1 %v5319_v34  ;;  %6921 = vmatpush3.msra.mxu0 %v6008_v37 }
 0xd66   :  { %6912 = vmatmul.mubr.msk.f32.vlgmr.msra.gmra.mxu1 %vm5328_vm4, %v10736_v19  ;;  %6949 = vmatprep.subr.mxu1 %v7935_v42  ;;  %v6006_v19 = vld [vmem:[%s10944_s15 + $0x50] sm:$0xff] }
 0xd67   :  { %6981 = vmatprep.mubr.msk.f32.mxu1 %vm7936_vm1, %v7935_v42  ;;  %6922 = vmatprep.subr.mxu0 %v7935_v42 }
 0xd68   :  { %6923 = vmatpush3.msra.mxu0 %v6007_v61  ;;  %6950 = vmatpush3.msra.mxu1 %v6130_v32 }
 0xd69   :  { %6924 = vmatprep.subr.mxu0 %v7935_v42  ;;  %6951 = vmatprep.subr.mxu1 %v7935_v42 }
 0xd6a   :  { %6925 = vmatpush3.msra.mxu0 %v6006_v19  ;;  %6952 = vmatpush3.msra.mxu1 %v6129_v16 }
 0xd6b   :  { %6926 = vmatprep.subr.mxu0 %v7935_v42  ;;  %6953 = vmatprep.subr.mxu1 %v7935_v42 }
 0xd6c   :  { %6927 = vmatpush3.msra.mxu0 %v6005_v58  ;;  %6954 = vmatpush3.msra.mxu1 %v6128_v57 }
 0xd6d   :  { %6928 = vmatprep.subr.mxu0 %v7935_v42  ;;  %6955 = vmatprep.subr.mxu1 %v7935_v42 }
 0xd6e   :  { %6929 = vmatpush3.msra.mxu0 %v6004_v63  ;;  %6956 = vmatpush3.msra.mxu1 %v6127_v15 }
 0xd6f   :  { %6930 = vmatprep.subr.mxu0 %v7935_v42  ;;  %6957 = vmatprep.subr.mxu1 %v7935_v42 }
 0xd70   :  { %6931 = vmatpush3.msra.mxu0 %v6003_v31  ;;  %6958 = vmatpush3.msra.mxu1 %v6126_v51 }
 0xd71   :  { %6932 = vmatprep.subr.mxu0 %v7935_v42  ;;  %6959 = vmatprep.subr.mxu1 %v7935_v42 }
 0xd72   :  { %6933 = vmatpush3.msra.mxu0 %v6002_v12  ;;  %6960 = vmatpush3.msra.mxu1 %v6125_v49 }
 0xd73   :  { %6934 = vmatprep.subr.mxu0 %v7935_v42  ;;  %6961 = vmatprep.subr.mxu1 %v7935_v42 }
 0xd74   :  { %6935 = vmatpush3.msra.mxu0 %v6001_v30  ;;  %6962 = vmatpush3.msra.mxu1 %v6124_v21 }
 0xd75   :  { %6936 = vmatprep.subr.mxu0 %v7935_v42  ;;  %6963 = vmatprep.subr.mxu1 %v7935_v42 }
 0xd76   :  { %6937 = vmatpush3.msra.mxu0 %v6000_v18  ;;  %6964 = vmatpush3.msra.mxu1 %v6123_v62 }
 0xd77   :  { %6938 = vmatprep.subr.mxu0 %v7935_v42  ;;  %6965 = vmatprep.subr.mxu1 %v7935_v42 }
 0xd78   :  { %6939 = vmatpush3.msra.mxu0 %v5999_v45  ;;  %6966 = vmatpush3.msra.mxu1 %v6122_v5 }
 0xd79   :  { %6940 = vmatprep.subr.mxu0 %v7935_v42  ;;  %6967 = vmatprep.subr.mxu1 %v7935_v42 }
 0xd7a   :  { %6941 = vmatpush3.msra.mxu0 %v5998_v50  ;;  %6968 = vmatpush3.msra.mxu1 %v6121_v40 }
 0xd7b   :  { %6942 = vmatprep.subr.mxu0 %v7935_v42  ;;  %6969 = vmatprep.subr.mxu1 %v7935_v42 }
 0xd7c   :  { %6943 = vmatpush3.msra.mxu0 %v5997_v1  ;;  %6970 = vmatpush3.msra.mxu1 %v6120_v47 }
 0xd7d   :  { %6944 = vmatprep.subr.mxu0 %v7935_v42  ;;  %6971 = vmatprep.subr.mxu1 %v7935_v42 }
 0xd7e   :  { %6945 = vmatpush3.msra.mxu0 %v5996_v41  ;;  %6972 = vmatpush3.msra.mxu1 %v6119_v3 }
 0xd7f   :  { %6984 = vmatprep.subr.mxu0 %v7935_v42  ;;  %6973 = vmatprep.subr.mxu1 %v7935_v42 }
 0xd80   :  { %6974 = vmatpush3.msra.mxu1 %v6118_v6 }
 0xd81   :  { %6975 = vmatprep.subr.mxu1 %v7935_v42 }
 0xde9   :  { %v5398_v35 = vpop.f32.mrf.mxu0 }
 0xdea   :  { %v5399_v0 = vadd.f32 %v5398_v35, %v10878_v56 }
 0xdeb   :  { %v6864_v7 = vpop.f32.mrf.mxu0 }
 0xdec   :  { %v5900_v29 = vmul.f32 0.01, %v5399_v0  ;;  %vm5892_vm6 = vcmp.gt.f32.partialorder %v5399_v0, 0.0 }
 0xdee   :  { %v5908_v14 = vsel %vm5892_vm6, %v5399_v0, %v5900_v29 }
 0xdef   :  { %v5922_v24 = vmul.f32 %v10884_v9, %v5908_v14 }
 0xdf1   :  { %v5930_v39 = vrot.slane %v5922_v24, 4 }
 0xdf3   :  { %v5931_v16 = vadd.f32 %v5930_v39, %v5922_v24 }
 0xdf5   :  { %v5932_v21 = vrot.slane %v5931_v16, 2 }
 0xdf7   :  { %v5933_v47 = vadd.f32 %v5932_v21, %v5931_v16  ;;  %v6116_v21 = vld [vmem:[#allocation12 + $0x8] sm:$0xff] }
 0xdfd   :  { %v5468_v44 = vpop.f32.mrf.mxu1 }
 0xdfe   :  { %v5469_v43 = vadd.f32 %v5468_v44, %v10878_v56 }
 0xdff   :  { %v6871_v22 = vpop.f32.mrf.mxu1 }
 0xe00   :  { %v5901_v38 = vmul.f32 0.01, %v5469_v43  ;;  %vm5893_vm4 = vcmp.gt.f32.partialorder %v5469_v43, 0.0 }
 0xe02   :  { %v5909_v8 = vsel %vm5893_vm4, %v5469_v43, %v5901_v38  ;;  %v5934_v38 = vrot.slane %v5933_v47, 1 }
 0xe03   :  { %v5923_v27 = vmul.f32 %v10884_v9, %v5909_v8 }
 0xe05   :  { %v5936_v48 = vrot.slane %v5923_v27, 4 }
 0xe07   :  { %v5937_v61 = vadd.f32 %v5936_v48, %v5923_v27  ;;  %v5935_v27 = vadd.f32 %v5934_v38, %v5933_v47  ;;  %v6220_v47 = vld [vmem:[#allocation14 + $0x48] sm:$0xff] }
 0xe09   :  { %v5938_v12 = vrot.slane %v5937_v61, 2 }
 0xe0a   :  { %v5538_v26 = vpop.f32.mrf.mxu0 }
 0xe0b   :  { %v5539_v20 = vadd.f32 %v5538_v26, %v10878_v56  ;;  %v5939_v1 = vadd.f32 %v5938_v12, %v5937_v61 }
 0xe0c   :  { %v6878_v17 = vpop.f32.mrf.mxu0 }
 0xe0d   :  { %vm5894_vm5 = vcmp.gt.f32.partialorder %v5539_v20, 0.0  ;;  %v5902_v54 = vmul.f32 0.01, %v5539_v20  ;;  %v5940_v44 = vrot.slane %v5939_v1, 1 }
 0xe0e   :  { %v5678_v46 = vpop.f32.mrf.mxu0 }
 0xe0f   :  { %v5679_v52 = vadd.f32 %v5678_v46, %v10878_v56  ;;  %v5910_v33 = vsel %vm5894_vm5, %v5539_v20, %v5902_v54 }
 0xe10   :  { %v6892_v53 = vpop.f32.mrf.mxu0  ;;  %v5924_v59 = vmul.f32 %v10884_v9, %v5910_v33 }
 0xe11   :  { %v5904_v10 = vmul.f32 0.01, %v5679_v52  ;;  %vm5896_vm7 = vcmp.gt.f32.partialorder %v5679_v52, 0.0 }
 0xe12   :  { %v5818_v36 = vpop.f32.mrf.mxu0  ;;  %v5942_v34 = vrot.slane %v5924_v59, 4 }
 0xe13   :  { %v5819_v60 = vadd.f32 %v5818_v36, %v10878_v56  ;;  %v5912_v23 = vsel %vm5896_vm7, %v5679_v52, %v5904_v10  ;;  %v5941_v52 = vadd.f32 %v5940_v44, %v5939_v1  ;;  %v6223_v1 = vld [vmem:[#allocation14 + $0x60] sm:$0xff] }
 0xe14   :  { %v5608_v11 = vpop.f32.mrf.mxu1  ;;  %v6906_v4 = vpop.f32.mrf.mxu0  ;;  %v5926_v25 = vmul.f32 %v10884_v9, %v5912_v23  ;;  %v5943_v32 = vadd.f32 %v5942_v34, %v5924_v59  ;;  %v6215_v44 = vld [vmem:[#allocation14 + $0x20] sm:$0xff] }
 0xe15   :  { %v5609_v2 = vadd.f32 %v5608_v11, %v10878_v56  ;;  %v5906_v55 = vmul.f32 0.01, %v5819_v60  ;;  %vm5898_vm9 = vcmp.gt.f32.partialorder %v5819_v60, 0.0 }
 0xe16   :  { %v6885_v13 = vpop.f32.mrf.mxu1  ;;  %v5954_v57 = vrot.slane %v5926_v25, 4  ;;  %v5944_v30 = vrot.slane %v5943_v32, 2 }
 0xe17   :  { %vm5895_vm8 = vcmp.gt.f32.partialorder %v5609_v2, 0.0  ;;  %v5903_v28 = vmul.f32 0.01, %v5609_v2  ;;  %v5914_v58 = vsel %vm5898_vm9, %v5819_v60, %v5906_v55  ;;  %v5986_v60 = vpop.permute.xlu1 %5985 }
 0xe18   :  { %v5928_v31 = vmul.f32 %v10884_v9, %v5914_v58  ;;  %v5955_v62 = vadd.f32 %v5954_v57, %v5926_v25  ;;  %v5945_v40 = vadd.f32 %v5944_v30, %v5943_v32  ;;  %v5989_v11 = vadd.f32 %v5986_v60, %v5941_v52 }
 0xe19   :  { %v5911_v37 = vsel %vm5895_vm8, %v5609_v2, %v5903_v28  ;;  %v5988_v23 = vadd.f32 %v5986_v60, %v5935_v27 }
 0xe1a   :  { %v5925_v19 = vmul.f32 %v10884_v9, %v5911_v37  ;;  %v5966_v50 = vrot.slane %v5928_v31, 4  ;;  %v5956_v35 = vrot.slane %v5955_v62, 2  ;;  %v5946_v0 = vrot.slane %v5945_v40, 1 }
 0xe1b   :  { %v6028_v25 = vsel %vm6027_vm12, %v5989_v11, %v5988_v23 }
 0xe1c   :  { %v5948_v63 = vrot.slane %v5925_v19, 4  ;;  %v5967_v7 = vadd.f32 %v5966_v50, %v5928_v31  ;;  %v5957_v54 = vadd.f32 %v5956_v35, %v5955_v62  ;;  %v5947_v53 = vadd.f32 %v5946_v0, %v5945_v40  ;;  %v6225_v62 = vld [vmem:[#allocation14 + $0x70] sm:$0xff]  ;;  %v6115_v50 = vld [vmem:[#allocation12] sm:$0xff]  ;;  %v6222_v40 = vld [vmem:[#allocation14 + $0x58] sm:$0xff] }
 0xe1d   :  { %v5748_v15 = vpop.f32.mrf.mxu1  ;;  %v6217_v35 = vld [vmem:[#allocation14 + $0x30] sm:$0xff] }
 0xe1e   :  { %v5949_v51 = vadd.f32 %v5948_v63, %v5925_v19  ;;  %v5749_v49 = vadd.f32 %v5748_v15, %v10878_v56  ;;  %v5968_v46 = vrot.slane %v5967_v7, 2  ;;  %v5958_v24 = vrot.slane %v5957_v54, 1 }
 0xe1f   :  { %v6899_v18 = vpop.f32.mrf.mxu1  ;;  %v5990_v48 = vadd.f32 %v5986_v60, %v5947_v53 }
 0xe20   :  { %v5950_v45 = vrot.slane %v5949_v51, 2  ;;  %vm5897_vm10 = vcmp.gt.f32.partialorder %v5749_v49, 0.0  ;;  %v5905_v5 = vmul.f32 0.01, %v5749_v49  ;;  %v5959_v28 = vadd.f32 %v5958_v24, %v5957_v54  ;;  %v6117_v18 = vld [vmem:[#allocation12 + $0x10] sm:$0xff]  ;;  %v6212_v54 = vld [vmem:[#allocation14 + $0x8] sm:$0xff] }
 0xe21   :  { %v6030_v61 = vsel %vm6029_vm13, %v5990_v48, %v6028_v25  ;;  %6976 = vmatpush3.msra.mxu1 %v6117_v18 }
 0xe22   :  { %v5913_v41 = vsel %vm5897_vm10, %v5749_v49, %v5905_v5  ;;  %v5951_v3 = vadd.f32 %v5950_v45, %v5949_v51  ;;  %v5992_v32 = vadd.f32 %v5986_v60, %v5959_v28  ;;  %v6226_v45 = vld [vmem:[#allocation14 + $0x78] sm:$0xff]  ;;  %6977 = vmatprep.subr.mxu1 %v7935_v42  ;;  %v6224_v5 = vld [vmem:[#allocation14 + $0x68] sm:$0xff] }
 0xe23   :  { %v5927_v6 = vmul.f32 %v10884_v9, %v5913_v41  ;;  %6978 = vmatpush3.msra.mxu1 %v6116_v21  ;;  %v6221_v41 = vld [vmem:[#allocation14 + $0x50] sm:$0xff] }
 0xe24   :  { %v5952_v20 = vrot.slane %v5951_v3, 1  ;;  %6979 = vmatprep.subr.mxu1 %v7935_v42 }
 0xe25   :  { %v5960_v22 = vrot.slane %v5927_v6, 4  ;;  %6980 = vmatpush3.msra.mxu1 %v6115_v50 }
 0xe26   :  { %v5888_v43 = vpop.f32.mrf.mxu1  ;;  %v5953_v10 = vadd.f32 %v5952_v20, %v5951_v3  ;;  %v6219_v3 = vld [vmem:[#allocation14 + $0x40] sm:$0xff] }
 0xe27   :  { %v5889_v26 = vadd.f32 %v5888_v43, %v10878_v56  ;;  %v5961_v17 = vadd.f32 %v5960_v22, %v5927_v6  ;;  %v5969_v56 = vadd.f32 %v5968_v46, %v5967_v7  ;;  %v6218_v6 = vld [vmem:[#allocation14 + $0x38] sm:$0xff]  ;;  %v6216_v7 = vld [vmem:[#allocation14 + $0x28] sm:$0xff]  ;;  %v6644_v43 = vld [vmem:[%s10945_s16] ss:$0 sm:$0xff] }
 0xe28   :  { %v6913_v29 = vpop.f32.mrf.mxu1  ;;  %v5991_v55 = vadd.f32 %v5986_v60, %v5953_v10  ;;  %v6214_v22 = vld [vmem:[#allocation14 + $0x18] sm:$0xff]  ;;  %v6211_v46 = vld [vmem:[#allocation14] sm:$0xff]  ;;  %v6646_v10 = vld [vmem:[%s10949_s20] ss:$0 sm:$0xff] }
 0xe29   :  { %vm5899_vm11 = vcmp.gt.f32.partialorder %v5889_v26, 0.0  ;;  %v5907_v8 = vmul.f32 0.01, %v5889_v26  ;;  %v5962_v33 = vrot.slane %v5961_v17, 2  ;;  %v5970_v39 = vrot.slane %v5969_v56, 1  ;;  %v6213_v29 = vld [vmem:[#allocation14 + $0x10] sm:$0xff] }
 0xe2a   :  { %v6032_v58 = vsel %vm6031_vm14, %v5991_v55, %v6030_v61 }
 0xe2b   :  { %v5915_v14 = vsel %vm5899_vm11, %v5889_v26, %v5907_v8  ;;  %v5963_v36 = vadd.f32 %v5962_v33, %v5961_v17  ;;  %v5971_v16 = vadd.f32 %v5970_v39, %v5969_v56  ;;  %v6034_v57 = vsel %vm6033_vm15, %v5992_v32, %v6032_v58  ;;  %v6645_v8 = vld [vmem:[%s10947_s18] ss:$0 sm:$0xff] }
 0xe2c   :  { %v5929_v59 = vmul.f32 %v10884_v9, %v5915_v14 }
 0xe2d   :  { %v5964_v4 = vrot.slane %v5963_v36, 1  ;;  %v5994_v12 = vadd.f32 %v5986_v60, %v5971_v16 }
 0xe2e   :  { %v5972_v2 = vrot.slane %v5929_v59, 4 }
 0xe2f   :  { %v5965_v13 = vadd.f32 %v5964_v4, %v5963_v36 }
 0xe30   :  { %v5973_v34 = vadd.f32 %v5972_v2, %v5929_v59 }
 0xe31   :  { %v5993_v9 = vadd.f32 %v5986_v60, %v5965_v13 }
 0xe32   :  { %v5974_v37 = vrot.slane %v5973_v34, 2 }
 0xe33   :  { %v6036_v15 = vsel %vm6035_vm0, %v5993_v9, %v6034_v57 }
 0xe34   :  { %v5975_v19 = vadd.f32 %v5974_v37, %v5973_v34  ;;  %v6038_v30 = vsel %vm6037_vm2, %v5994_v12, %v6036_v15 }
 0xe36   :  { %v5976_v63 = vrot.slane %v5975_v19, 1 }
 0xe38   :  { %v5977_v31 = vadd.f32 %v5976_v63, %v5975_v19 }
 0xe3a   :  { %v5995_v51 = vadd.f32 %v5986_v60, %v5977_v31 }
 0xe3c   :  { %v6040_v49 = vsel %vm6039_vm3, %v5995_v51, %v6038_v30 }
 0xe3d   :  { %6947 = vmatmul.mubr.f32.vlgmr.msra.gmra.mxu0 %v6040_v49 }
 0xe3e   :  { %7016 = vmatprep.mubr.msk.f32.mxu0 %vm7936_vm1, %v7935_v42  ;;  %6985 = vmatpush3.msra.mxu0 %v6226_v45 }
 0xe3f   :  { %6986 = vmatprep.subr.mxu0 %v7935_v42 }
 0xe40   :  { %6987 = vmatpush3.msra.mxu0 %v6225_v62 }
 0xe41   :  { %6988 = vmatprep.subr.mxu0 %v7935_v42 }
 0xe42   :  { %6989 = vmatpush3.msra.mxu0 %v6224_v5 }
 0xe43   :  { %6990 = vmatprep.subr.mxu0 %v7935_v42 }
 0xe44   :  { %6991 = vmatpush3.msra.mxu0 %v6223_v1 }
 0xe45   :  { %6992 = vmatprep.subr.mxu0 %v7935_v42 }
 0xe46   :  { %6993 = vmatpush3.msra.mxu0 %v6222_v40 }
 0xe47   :  { %6994 = vmatprep.subr.mxu0 %v7935_v42 }
 0xe48   :  { %6995 = vmatpush3.msra.mxu0 %v6221_v41 }
 0xe49   :  { %6996 = vmatprep.subr.mxu0 %v7935_v42 }
 0xe4a   :  { %6997 = vmatpush3.msra.mxu0 %v6220_v47 }
 0xe4b   :  { %6998 = vmatprep.subr.mxu0 %v7935_v42 }
 0xe4c   :  { %6999 = vmatpush3.msra.mxu0 %v6219_v3 }
 0xe4d   :  { %7000 = vmatprep.subr.mxu0 %v7935_v42 }
 0xe4e   :  { %7001 = vmatpush3.msra.mxu0 %v6218_v6 }
 0xe4f   :  { %7002 = vmatprep.subr.mxu0 %v7935_v42 }
 0xe50   :  { %7003 = vmatpush3.msra.mxu0 %v6217_v35 }
 0xe51   :  { %7004 = vmatprep.subr.mxu0 %v7935_v42 }
 0xe52   :  { %7005 = vmatpush3.msra.mxu0 %v6216_v7 }
 0xe53   :  { %7006 = vmatprep.subr.mxu0 %v7935_v42 }
 0xe54   :  { %7007 = vmatpush3.msra.mxu0 %v6215_v44 }
 0xe55   :  { %7008 = vmatprep.subr.mxu0 %v7935_v42 }
 0xe56   :  { %7009 = vmatpush3.msra.mxu0 %v6214_v22 }
 0xe57   :  { %7010 = vmatprep.subr.mxu0 %v7935_v42 }
 0xe58   :  { %7011 = vmatpush3.msra.mxu0 %v6213_v29 }
 0xe59   :  { %7012 = vmatprep.subr.mxu0 %v7935_v42 }
 0xe5a   :  { %7013 = vmatpush3.msra.mxu0 %v6212_v54 }
 0xe5b   :  { %7014 = vmatprep.subr.mxu0 %v7935_v42 }
 0xe5c   :  { %7015 = vmatpush3.msra.mxu0 %v6211_v46 }
 0xefd   :  { %v6108_v0 = vpop.f32.mrf.mxu0 }
 0xefe   :  { %v6109_v26 = vadd.f32 %v6644_v43, %v6108_v0 }
 0xeff   :  { %v6948_v38 = vpop.f32.mrf.mxu0 }
 0xf00   :  { %vm6112_vm1 = vcmp.gt.f32.partialorder %v6109_v26, 0.0  ;;  %v6113_v20 = vmul.f32 0.01, %v6109_v26 }
 0xf02   :  { %v6114_v17 = vsel %vm6112_vm1, %v6109_v26, %v6113_v20 }
 0xf03   :  { %6982 = vmatmul.mubr.f32.vlgmr.msra.gmra.mxu1 %v6114_v17 }
 0xfc3   :  { %v6204_v52 = vpop.f32.mrf.mxu1 }
 0xfc4   :  { %v6205_v33 = vadd.f32 %v6645_v8, %v6204_v52 }
 0xfc5   :  { %v6983_v53 = vpop.f32.mrf.mxu1 }
 0xfc6   :  { %vm6208_vm4 = vcmp.gt.f32.partialorder %v6205_v33, 0.0  ;;  %v6209_v14 = vmul.f32 0.01, %v6205_v33 }
 0xfc8   :  { %v6210_v27 = vsel %vm6208_vm4, %v6205_v33, %v6209_v14 }
 0xfc9   :  { %7017 = vmatmul.mubr.f32.vlgmr.msra.gmra.mxu0 %v6210_v27 }
0x1089   :  { %v6300_v36 = vpop.f32.mrf.mxu0 }
0x108a   :  { %v6301_v42 = vadd.f32 %v6646_v10, %v6300_v36 }
0x108b   :  { %v7018_v59 = vpop.f32.mrf.mxu0 }
0x108c   :  { %6304 = vst [vmem:[#allocation15] sm:$0xff] %v6301_v42 }
0x108d   :  { %7893 = shalt.err (!%p7890_p11)
}
0x108e   :  { %6314 = dma.vmem_to_hbm [thread:$0]  %s6312_s29, 128, %s10950_s21, [#allocation5]  }
0x108f   :  { %7910 = dma.done.wait [#allocation5], 128  }
0x1090   :  { %7911 = vsyncadd [#allocation5], 4294967168 }
0x1091   :  { %6318 = vsyncpa [#allocation4], 1 }
0x1092   :  { %6319 = vsyncpa [#allocation7], 1 }
0x1093   :  { %6320 = vsyncpa [#allocation10], 1 }
0x1094   :  { %6321 = vsyncpa [#allocation13], 1 }
0x1095   :  { %6322 = vsyncpa [#allocation5], 1 }

</bundles_post_ra>
